<compile_context>
chip_gen: v7x
topology: tpu7x:2x2x1
jax: 0.10.0
libtpu: 0.0.40
codegen_flags: <defaults>
</compile_context>

<pallas_src>
import jax
import jax.numpy as jnp
from jax import lax
from jax.experimental import pallas as pl
from jax.experimental.pallas import tpu as pltpu

K = 5            # conv kernel size for conv1..conv4
KK = K * K
PAD = 2          # zero padding for conv1..conv4
HID = 32         # hidden channels


def _leaky_relu(x, alpha=0.2):
    return jnp.where(x >= 0, x, alpha * x)


def _make_kernel(H, W, BT):
    Wp = W + 2 * PAD
    Hp = H + 2 * PAD
    NEXT = H * Wp                  # extended-output length (4 garbage cols per row)
    NEXTE = NEXT + 4               # slab width (covers the dx = 0..4 lane offsets)
    NFLAT = Hp * Wp + 4            # flat padded buffer (+4 so the max dy shift stays in bounds)
    HEAD = 2 * Wp + 2              # flat offset of interior pixel (0, 0)
    TAIL = NFLAT - (HEAD + NEXT)   # == 2*Wp + 2

    def kernel(x_ref, mask_ref,
               w1_ref, b1_ref, w2_ref, b2_ref, w3_ref, b3_ref,
               w4_ref, b4_ref, w5_ref, b5_ref,
               o_ref, pad_ref, slab_ref, slab1_ref):
        # Re-create the top/bottom zero-padding strips.  The conv layers never
        # write there, so zeroing once per invocation keeps every grid step
        # (and every image inside it) independent -> "parallel" is safe.
        pad_ref[:, 0:HEAD] = jnp.zeros((HID, HEAD), jnp.bfloat16)
        pad_ref[:, HEAD + NEXT:NFLAT] = jnp.zeros((HID, TAIL), jnp.bfloat16)

        # Valid-column mask: broadcast ONCE to (HID, NEXT) and reused by every
        # masked epilogue (JAX does not CSE broadcast_in_dim).
        mask2 = jnp.broadcast_to(mask_ref[...], (HID, NEXT)) > 0.5

        def conv_from(w_ref, b_ref, slab, rows):
            # 5x5 conv as 5 accumulating matmuls (one per dx); the RHS is the
            # dy-shifted slab read at lane offset dx (K = rows, N = NEXT).
            acc = jnp.dot(w_ref[0], slab[0:rows, 0:NEXT],
                          preferred_element_type=jnp.float32)
            for dx in range(1, K):
                acc = acc + jnp.dot(w_ref[dx], slab[0:rows, dx:dx + NEXT],
                                    preferred_element_type=jnp.float32)
            return acc + b_ref[...]                      # f32 (HID, NEXT)

        def masked_act(a):                               # LeakyReLU + pad re-zero
            return jnp.where(mask2, _leaky_relu(a), 0.0).astype(jnp.bfloat16)

        def build_slab():
            # 5 dy-shifted copies of the 32-channel padded activation map.
            for dy in range(K):
                slab_ref[dy * HID:(dy + 1) * HID, :] = (
                    pad_ref[:, dy * Wp:dy * Wp + NEXTE])

        for bi in range(BT):                             # images in this grid step
            # ---- conv1: 1 -> 32, k=5, p=2 (f32, tiny; 5 dy rows in slab1)
            for dy in range(K):
                slab1_ref[dy:dy + 1, :] = x_ref[bi, :, dy * Wp:dy * Wp + NEXTE]
            pad_ref[:, HEAD:HEAD + NEXT] = masked_act(
                conv_from(w1_ref, b1_ref, slab1_ref, K))

            # ---- conv2..conv4: 32 -> 32, k=5, p=2 (bf16 slab/weights, f32 acc)
            build_slab()
            pad_ref[:, HEAD:HEAD + NEXT] = masked_act(
                conv_from(w2_ref, b2_ref, slab_ref, K * HID))
            build_slab()
            pad_ref[:, HEAD:HEAD + NEXT] = masked_act(
                conv_from(w3_ref, b3_ref, slab_ref, K * HID))
            build_slab()
            a4 = _leaky_relu(conv_from(w4_ref, b4_ref, slab_ref, K * HID))  # f32

            # ---- conv5: 1x1, 32 -> 1, + ReLU (VPU multiply + sublane reduce)
            out = jnp.sum(a4 * w5_ref[...], axis=0, keepdims=True) + b5_ref[...]
            o_ref[bi] = jnp.maximum(out, 0.0)            # (1, NEXT) f32

    return kernel, NEXT, NEXTE, NFLAT


def _weight_mat(w, dtype):
    """HWIO (K, K, Cin, Cout) -> per-dx im2col matrices (K[dx], Cout, K*Cin)."""
    kh, kw, cin, cout = w.shape
    return (jnp.transpose(w, (1, 3, 0, 2))              # (dx, co, dy, ci)
            .reshape(kw, cout, kh * cin)
            .astype(dtype))


def _pick_bt(B, next_len):
    """Images per grid step: amortize per-step overhead for small images."""
    cap = max(1, min(8, 8192 // max(next_len, 1)))
    bt = 1
    for d in range(1, B + 1):
        if B % d == 0 and d <= cap:
            bt = d
    return bt


def _vmem_limit_bytes(kernel_bytes):
    """Generation-aware scoped-VMEM limit with headroom (no hard-coded 64 MiB)."""
    cap = 64 * 1024 * 1024                                # conservative fallback
    try:
        cap = int(pltpu.get_tpu_info().vmem_capacity_bytes)
    except Exception:
        pass
    return min(max(32 * 1024 * 1024, 2 * int(kernel_bytes)), (cap * 85) // 100)


def illumination_alone(x_nchw, params):
    """x_nchw: (B, 1, H, W) float32 -> (B, 1, H, W) float32."""
    w1, b1, w2, b2, w3, b3, w4, b4, w5, b5 = params       # HWIO weights
    B, _, H, W = x_nchw.shape
    Wp, Hp = W + 2 * PAD, H + 2 * PAD

    BT = _pick_bt(B, H * Wp)
    kernel, NEXT, NEXTE, NFLAT = _make_kernel(H, W, BT)

    # Flat, zero-padded input: row-major over the (Hp, Wp) padded grid, +tail zeros.
    xpad = jnp.pad(x_nchw.reshape(B, H, W), ((0, 0), (PAD, PAD), (PAD, PAD)))
    xflat = jnp.pad(xpad.reshape(B, 1, Hp * Wp),
                    ((0, 0), (0, 0), (0, NFLAT - Hp * Wp)))

    # Lane mask over the extended output: 1.0 on real columns, 0.0 on the 4
    # wrap-around columns per row (re-creates the left/right zero padding).
    col = jnp.arange(NEXT, dtype=jnp.int32) % Wp
    mask = (col < W).astype(jnp.float32).reshape(1, NEXT)

    # Per-dx im2col weight matrices; conv2-4 in bf16, conv1/conv5/biases in f32.
    wm1 = _weight_mat(w1, jnp.float32)                    # (5, 32, 5)
    wm2 = _weight_mat(w2, jnp.bfloat16)                   # (5, 32, 160)
    wm3 = _weight_mat(w3, jnp.bfloat16)
    wm4 = _weight_mat(w4, jnp.bfloat16)
    wm5 = w5.reshape(HID, 1).astype(jnp.float32)          # 1x1 conv
    bb1, bb2, bb3, bb4 = (b.reshape(HID, 1).astype(jnp.float32)
                          for b in (b1, b2, b3, b4))
    bb5 = b5.reshape(1, 1).astype(jnp.float32)

    def fixed(shape):
        return pl.BlockSpec(shape, lambda b, _n=len(shape): (0,) * _n)

    flops_img = 2 * NEXT * (KK * 1 * HID + 3 * KK * HID * HID + HID)
    weight_bytes = (4 * K * HID * K                      # conv1 (f32)
                    + 2 * 3 * K * HID * K * HID          # conv2-4 (bf16)
                    + 4 * (5 * HID + 2))                 # biases + conv5
    bytes_acc = B * (4 * NFLAT + 4 * NEXT) + weight_bytes + 4 * NEXT

    # Rough in-kernel VMEM footprint (scratch + double-buffered I/O + weights).
    kernel_bytes = (2 * HID * NFLAT + 2 * K * HID * NEXTE + 4 * K * NEXTE
                    + 2 * (4 * BT * NFLAT + 4 * BT * NEXT)
                    + 2 * weight_bytes + 2 * 4 * NEXT)

    out_ext = pl.pallas_call(
        kernel,
        out_shape=jax.ShapeDtypeStruct((B, 1, NEXT), jnp.float32),
        grid=(B // BT,),
        in_specs=[
            pl.BlockSpec((BT, 1, NFLAT), lambda b: (b, 0, 0)),  # padded input images
            fixed((1, NEXT)),                                   # valid-column mask
            fixed((K, HID, K * 1)), fixed((HID, 1)),            # conv1
            fixed((K, HID, K * HID)), fixed((HID, 1)),          # conv2
            fixed((K, HID, K * HID)), fixed((HID, 1)),          # conv3
            fixed((K, HID, K * HID)), fixed((HID, 1)),          # conv4
            fixed((HID, 1)), fixed((1, 1)),                     # conv5
        ],
        out_specs=pl.BlockSpec((BT, 1, NEXT), lambda b: (b, 0, 0)),
        scratch_shapes=[
            pltpu.VMEM((HID, NFLAT), jnp.bfloat16),             # flat padded activations
            pltpu.VMEM((K * HID, NEXTE), jnp.bfloat16),         # 5-row-shift im2col slab
            pltpu.VMEM((K, NEXTE), jnp.float32),                # conv1 slab (f32, tiny)
        ],
        compiler_params=pltpu.CompilerParams(
            dimension_semantics=("parallel",),                  # batch blocks independent
            vmem_limit_bytes=_vmem_limit_bytes(kernel_bytes),
        ),
        cost_estimate=pl.CostEstimate(flops=B * flops_img, transcendentals=0,
                                      bytes_accessed=bytes_acc),
    )(xflat, mask, wm1, bb1, wm2, bb2, wm3, bb3, wm4, bb4, wm5, bb5)

    # Drop the 4 wrap-around columns per row; restore NCHW.
    return out_ext.reshape(B, 1, H, Wp)[:, :, :, :W]


def reference(x_nchw, params, act_dtype=jnp.float32):
    """Pure-JAX lax-conv reference mirroring the PyTorch module.

    With act_dtype=bfloat16 it uses the same casting points as the kernel
    (conv1 and conv5 in f32, conv2-4 with bf16 operands / f32 accumulation).
    """
    w1, b1, w2, b2, w3, b3, w4, b4, w5, b5 = params
    x = jnp.transpose(x_nchw, (0, 2, 3, 1))
    dn = ('NHWC', 'HWIO', 'NHWC')

    def conv(v, w, b, pad, dt):
        y = lax.conv_general_dilated(v.astype(dt), w.astype(dt), (1, 1),
                                     [(pad, pad), (pad, pad)],
                                     dimension_numbers=dn,
                                     preferred_element_type=jnp.float32)
        return y + b

    lrelu = lambda v: jnp.where(v >= 0, v, 0.2 * v)
    x1 = lrelu(conv(x, w1, b1, PAD, jnp.float32))       # conv1 runs in f32 in the kernel
    x2 = lrelu(conv(x1, w2, b2, PAD, act_dtype))
    x3 = lrelu(conv(x2, w3, b3, PAD, act_dtype))
    x4 = lrelu(conv(x3, w4, b4, PAD, act_dtype))
    x5 = jnp.maximum(conv(x4, w5, b5, 0, jnp.float32), 0.0)   # conv5 is f32 in the kernel
    return jnp.transpose(x5, (0, 3, 1, 2))


def init_params(key):
    ks = jax.random.split(key, 10)
    scale = 0.1
    w1 = scale * jax.random.normal(ks[0], (K, K, 1, HID), jnp.float32)
    b1 = scale * jax.random.normal(ks[1], (HID,), jnp.float32)
    w2 = scale * jax.random.normal(ks[2], (K, K, HID, HID), jnp.float32)
    b2 = scale * jax.random.normal(ks[3], (HID,), jnp.float32)
    w3 = scale * jax.random.normal(ks[4], (K, K, HID, HID), jnp.float32)
    b3 = scale * jax.random.normal(ks[5], (HID,), jnp.float32)
    w4 = scale * jax.random.normal(ks[6], (K, K, HID, HID), jnp.float32)
    b4 = scale * jax.random.normal(ks[7], (HID,), jnp.float32)
    w5 = scale * jax.random.normal(ks[8], (1, 1, HID, 1), jnp.float32)
    b5 = scale * jax.random.normal(ks[9], (1,), jnp.float32)
    return (w1, b1, w2, b2, w3, b3, w4, b4, w5, b5)


if __name__ == "__main__":
    key = jax.random.PRNGKey(0)
    k_x, k_p = jax.random.split(key)

    B, H, W = 2, 16, 16
    x = jax.random.uniform(k_x, (B, 1, H, W), jnp.float32)   # illumination map
    params = init_params(k_p)

    out = jax.block_until_ready(illumination_alone(x, params))
    assert out.shape == (B, 1, H, W)

    # Strict check against a lax-conv reference with matched bf16 casting points
    # (differences are f32 summation-order only).
    ref_bf16 = jax.block_until_ready(reference(x, params, act_dtype=jnp.bfloat16))
    err_bf16 = float(jnp.max(jnp.abs(out - ref_bf16)))
    assert err_bf16 < 5e-3, f"kernel vs bf16-matched reference: max abs err {err_bf16}"

    # Loose sanity check against the exact float32 module semantics (bf16
    # intermediate activations trade ~1e-2 relative error for bf16 MXU rate).
    ref_f32 = jax.block_until_ready(reference(x, params, act_dtype=jnp.float32))
    err_f32 = float(jnp.max(jnp.abs(out - ref_f32)))
    assert err_f32 < 2.5e-1, f"kernel vs float32 reference: max abs err {err_f32}"

    print("KERNEL_OK")
</pallas_src>

<mosaic_0001>
module attributes {stable_mosaic.version = 11 : i64} {
  func.func @kernel(%arg0: i32, %arg1: memref<2x1x404xf32, #tpu.memory_space<vmem>>, %arg2: memref<1x320xf32, #tpu.memory_space<vmem>>, %arg3: memref<5x32x5xf32, #tpu.memory_space<vmem>>, %arg4: memref<32x1xf32, #tpu.memory_space<vmem>>, %arg5: memref<5x32x160xbf16, #tpu.memory_space<vmem>>, %arg6: memref<32x1xf32, #tpu.memory_space<vmem>>, %arg7: memref<5x32x160xbf16, #tpu.memory_space<vmem>>, %arg8: memref<32x1xf32, #tpu.memory_space<vmem>>, %arg9: memref<5x32x160xbf16, #tpu.memory_space<vmem>>, %arg10: memref<32x1xf32, #tpu.memory_space<vmem>>, %arg11: memref<32x1xf32, #tpu.memory_space<vmem>>, %arg12: memref<1x1xf32, #tpu.memory_space<vmem>>, %arg13: memref<2x1x320xf32, #tpu.memory_space<vmem>>, %arg14: memref<32x404xbf16, #tpu.memory_space<vmem>>, %arg15: memref<160x324xbf16, #tpu.memory_space<vmem>>, %arg16: memref<5x324xf32, #tpu.memory_space<vmem>>) attributes {dimension_semantics = [#tpu.dimension_semantics<parallel>], iteration_bounds = array<i64: 1>, scalar_prefetch = 0 : i64, scratch_operands = 3 : i64, tpu.core_type = #tpu.core_type<tc>, window_params = [{transform_indices = @transform_0, window_bounds = array<i64: 2, 1, 404>}, {pipeline_mode = #tpu.pipeline_mode<synchronous>, transform_indices = @transform_1, window_bounds = array<i64: 1, 320>}, {pipeline_mode = #tpu.pipeline_mode<synchronous>, transform_indices = @transform_2, window_bounds = array<i64: 5, 32, 5>}, {pipeline_mode = #tpu.pipeline_mode<synchronous>, transform_indices = @transform_3, window_bounds = array<i64: 32, 1>}, {pipeline_mode = #tpu.pipeline_mode<synchronous>, transform_indices = @transform_4, window_bounds = array<i64: 5, 32, 160>}, {pipeline_mode = #tpu.pipeline_mode<synchronous>, transform_indices = @transform_5, window_bounds = array<i64: 32, 1>}, {pipeline_mode = #tpu.pipeline_mode<synchronous>, transform_indices = @transform_6, window_bounds = array<i64: 5, 32, 160>}, {pipeline_mode = #tpu.pipeline_mode<synchronous>, transform_indices = @transform_7, window_bounds = array<i64: 32, 1>}, {pipeline_mode = #tpu.pipeline_mode<synchronous>, transform_indices = @transform_8, window_bounds = array<i64: 5, 32, 160>}, {pipeline_mode = #tpu.pipeline_mode<synchronous>, transform_indices = @transform_9, window_bounds = array<i64: 32, 1>}, {pipeline_mode = #tpu.pipeline_mode<synchronous>, transform_indices = @transform_10, window_bounds = array<i64: 32, 1>}, {pipeline_mode = #tpu.pipeline_mode<synchronous>, transform_indices = @transform_11, window_bounds = array<i64: 1, 1>}, {transform_indices = @transform_12, window_bounds = array<i64: 2, 1, 320>}]} {
    %cst = arith.constant 0.000000e+00 : bf16
    %0 = vector.broadcast %cst : bf16 to vector<32x42xbf16>
    %c0 = arith.constant 0 : index
    %c0_0 = arith.constant 0 : index
    %1 = vector.load %arg14[%c0, %c0_0] : memref<32x404xbf16, #tpu.memory_space<vmem>>, vector<32x42xbf16>
    tpu.vector_store %arg14[%c0, %c0_0], %0 {strides = array<i32>} : memref<32x404xbf16, #tpu.memory_space<vmem>>, vector<32x42xbf16>,
    %cst_1 = arith.constant 0.000000e+00 : bf16
    %2 = vector.broadcast %cst_1 : bf16 to vector<32x42xbf16>
    %c0_2 = arith.constant 0 : index
    %c362 = arith.constant 362 : index
    %3 = vector.load %arg14[%c0_2, %c362] : memref<32x404xbf16, #tpu.memory_space<vmem>>, vector<32x42xbf16>
    tpu.vector_store %arg14[%c0_2, %c362], %2 {strides = array<i32>} : memref<32x404xbf16, #tpu.memory_space<vmem>>, vector<32x42xbf16>,
    %c0_3 = arith.constant 0 : index
    %c0_4 = arith.constant 0 : index
    %4 = vector.load %arg2[%c0_3, %c0_4] : memref<1x320xf32, #tpu.memory_space<vmem>>, vector<1x320xf32>
    %5 = vector.shape_cast %4 : vector<1x320xf32> to vector<1x320xf32>
    %6 = vector.broadcast %5 : vector<1x320xf32> to vector<32x320xf32>
    %cst_5 = arith.constant 5.000000e-01 : f32
    %7 = vector.broadcast %cst_5 : f32 to vector<32x320xf32>
    %8 = arith.cmpf ogt, %6, %7 : vector<32x320xf32>
    %c0_6 = arith.constant 0 : index
    %c0_7 = arith.constant 0 : index
    %c0_8 = arith.constant 0 : index
    %9 = vector.load %arg1[%c0_6, %c0_7, %c0_8] : memref<2x1x404xf32, #tpu.memory_space<vmem>>, vector<1x1x324xf32>
    %10 = vector.shape_cast %9 : vector<1x1x324xf32> to vector<1x324xf32>
    %c0_9 = arith.constant 0 : index
    %c0_10 = arith.constant 0 : index
    %11 = vector.load %arg16[%c0_9, %c0_10] : memref<5x324xf32, #tpu.memory_space<vmem>>, vector<1x324xf32>
    tpu.vector_store %arg16[%c0_9, %c0_10], %10 {strides = array<i32>} : memref<5x324xf32, #tpu.memory_space<vmem>>, vector<1x324xf32>,
    %c0_11 = arith.constant 0 : index
    %c0_12 = arith.constant 0 : index
    %c20 = arith.constant 20 : index
    %12 = vector.load %arg1[%c0_11, %c0_12, %c20] : memref<2x1x404xf32, #tpu.memory_space<vmem>>, vector<1x1x324xf32>
    %13 = vector.shape_cast %12 : vector<1x1x324xf32> to vector<1x324xf32>
    %c1 = arith.constant 1 : index
    %c0_13 = arith.constant 0 : index
    %14 = vector.load %arg16[%c1, %c0_13] : memref<5x324xf32, #tpu.memory_space<vmem>>, vector<1x324xf32>
    tpu.vector_store %arg16[%c1, %c0_13], %13 {strides = array<i32>} : memref<5x324xf32, #tpu.memory_space<vmem>>, vector<1x324xf32>,
    %c0_14 = arith.constant 0 : index
    %c0_15 = arith.constant 0 : index
    %c40 = arith.constant 40 : index
    %15 = vector.load %arg1[%c0_14, %c0_15, %c40] : memref<2x1x404xf32, #tpu.memory_space<vmem>>, vector<1x1x324xf32>
    %16 = vector.shape_cast %15 : vector<1x1x324xf32> to vector<1x324xf32>
    %c2 = arith.constant 2 : index
    %c0_16 = arith.constant 0 : index
    %17 = vector.load %arg16[%c2, %c0_16] : memref<5x324xf32, #tpu.memory_space<vmem>>, vector<1x324xf32>
    tpu.vector_store %arg16[%c2, %c0_16], %16 {strides = array<i32>} : memref<5x324xf32, #tpu.memory_space<vmem>>, vector<1x324xf32>,
    %c0_17 = arith.constant 0 : index
    %c0_18 = arith.constant 0 : index
    %c60 = arith.constant 60 : index
    %18 = vector.load %arg1[%c0_17, %c0_18, %c60] : memref<2x1x404xf32, #tpu.memory_space<vmem>>, vector<1x1x324xf32>
    %19 = vector.shape_cast %18 : vector<1x1x324xf32> to vector<1x324xf32>
    %c3 = arith.constant 3 : index
    %c0_19 = arith.constant 0 : index
    %20 = vector.load %arg16[%c3, %c0_19] : memref<5x324xf32, #tpu.memory_space<vmem>>, vector<1x324xf32>
    tpu.vector_store %arg16[%c3, %c0_19], %19 {strides = array<i32>} : memref<5x324xf32, #tpu.memory_space<vmem>>, vector<1x324xf32>,
    %c0_20 = arith.constant 0 : index
    %c0_21 = arith.constant 0 : index
    %c80 = arith.constant 80 : index
    %21 = vector.load %arg1[%c0_20, %c0_21, %c80] : memref<2x1x404xf32, #tpu.memory_space<vmem>>, vector<1x1x324xf32>
    %22 = vector.shape_cast %21 : vector<1x1x324xf32> to vector<1x324xf32>
    %c4 = arith.constant 4 : index
    %c0_22 = arith.constant 0 : index
    %23 = vector.load %arg16[%c4, %c0_22] : memref<5x324xf32, #tpu.memory_space<vmem>>, vector<1x324xf32>
    tpu.vector_store %arg16[%c4, %c0_22], %22 {strides = array<i32>} : memref<5x324xf32, #tpu.memory_space<vmem>>, vector<1x324xf32>,
    %c0_23 = arith.constant 0 : index
    %c0_24 = arith.constant 0 : index
    %c0_25 = arith.constant 0 : index
    %24 = vector.load %arg3[%c0_23, %c0_24, %c0_25] : memref<5x32x5xf32, #tpu.memory_space<vmem>>, vector<1x32x5xf32>
    %25 = vector.shape_cast %24 : vector<1x32x5xf32> to vector<32x5xf32>
    %c0_26 = arith.constant 0 : index
    %c0_27 = arith.constant 0 : index
    %26 = vector.load %arg16[%c0_26, %c0_27] : memref<5x324xf32, #tpu.memory_space<vmem>>, vector<5x320xf32>
    %cst_28 = arith.constant dense<0.000000e+00> : vector<32x320xf32>
    %27 = tpu.matmul %25, %26, %cst_28 {dimension_numbers = #tpu.dot_dimension_numbers<[1], [0], [0], [1], [0, 0, 1, 1], [], []>} : vector<32x5xf32>, vector<5x320xf32>, vector<32x320xf32> -> vector<32x320xf32>
    %c1_29 = arith.constant 1 : index
    %c0_30 = arith.constant 0 : index
    %c0_31 = arith.constant 0 : index
    %28 = vector.load %arg3[%c1_29, %c0_30, %c0_31] : memref<5x32x5xf32, #tpu.memory_space<vmem>>, vector<1x32x5xf32>
    %29 = vector.shape_cast %28 : vector<1x32x5xf32> to vector<32x5xf32>
    %c0_32 = arith.constant 0 : index
    %c1_33 = arith.constant 1 : index
    %30 = vector.load %arg16[%c0_32, %c1_33] : memref<5x324xf32, #tpu.memory_space<vmem>>, vector<5x320xf32>
    %cst_34 = arith.constant dense<0.000000e+00> : vector<32x320xf32>
    %31 = tpu.matmul %29, %30, %cst_34 {dimension_numbers = #tpu.dot_dimension_numbers<[1], [0], [0], [1], [0, 0, 1, 1], [], []>} : vector<32x5xf32>, vector<5x320xf32>, vector<32x320xf32> -> vector<32x320xf32>
    %32 = arith.addf %27, %31 : vector<32x320xf32>
    %c2_35 = arith.constant 2 : index
    %c0_36 = arith.constant 0 : index
    %c0_37 = arith.constant 0 : index
    %33 = vector.load %arg3[%c2_35, %c0_36, %c0_37] : memref<5x32x5xf32, #tpu.memory_space<vmem>>, vector<1x32x5xf32>
    %34 = vector.shape_cast %33 : vector<1x32x5xf32> to vector<32x5xf32>
    %c0_38 = arith.constant 0 : index
    %c2_39 = arith.constant 2 : index
    %35 = vector.load %arg16[%c0_38, %c2_39] : memref<5x324xf32, #tpu.memory_space<vmem>>, vector<5x320xf32>
    %cst_40 = arith.constant dense<0.000000e+00> : vector<32x320xf32>
    %36 = tpu.matmul %34, %35, %cst_40 {dimension_numbers = #tpu.dot_dimension_numbers<[1], [0], [0], [1], [0, 0, 1, 1], [], []>} : vector<32x5xf32>, vector<5x320xf32>, vector<32x320xf32> -> vector<32x320xf32>
    %37 = arith.addf %32, %36 : vector<32x320xf32>
    %c3_41 = arith.constant 3 : index
    %c0_42 = arith.constant 0 : index
    %c0_43 = arith.constant 0 : index
    %38 = vector.load %arg3[%c3_41, %c0_42, %c0_43] : memref<5x32x5xf32, #tpu.memory_space<vmem>>, vector<1x32x5xf32>
    %39 = vector.shape_cast %38 : vector<1x32x5xf32> to vector<32x5xf32>
    %c0_44 = arith.constant 0 : index
    %c3_45 = arith.constant 3 : index
    %40 = vector.load %arg16[%c0_44, %c3_45] : memref<5x324xf32, #tpu.memory_space<vmem>>, vector<5x320xf32>
    %cst_46 = arith.constant dense<0.000000e+00> : vector<32x320xf32>
    %41 = tpu.matmul %39, %40, %cst_46 {dimension_numbers = #tpu.dot_dimension_numbers<[1], [0], [0], [1], [0, 0, 1, 1], [], []>} : vector<32x5xf32>, vector<5x320xf32>, vector<32x320xf32> -> vector<32x320xf32>
    %42 = arith.addf %37, %41 : vector<32x320xf32>
    %c4_47 = arith.constant 4 : index
    %c0_48 = arith.constant 0 : index
    %c0_49 = arith.constant 0 : index
    %43 = vector.load %arg3[%c4_47, %c0_48, %c0_49] : memref<5x32x5xf32, #tpu.memory_space<vmem>>, vector<1x32x5xf32>
    %44 = vector.shape_cast %43 : vector<1x32x5xf32> to vector<32x5xf32>
    %c0_50 = arith.constant 0 : index
    %c4_51 = arith.constant 4 : index
    %45 = vector.load %arg16[%c0_50, %c4_51] : memref<5x324xf32, #tpu.memory_space<vmem>>, vector<5x320xf32>
    %cst_52 = arith.constant dense<0.000000e+00> : vector<32x320xf32>
    %46 = tpu.matmul %44, %45, %cst_52 {dimension_numbers = #tpu.dot_dimension_numbers<[1], [0], [0], [1], [0, 0, 1, 1], [], []>} : vector<32x5xf32>, vector<5x320xf32>, vector<32x320xf32> -> vector<32x320xf32>
    %47 = arith.addf %42, %46 : vector<32x320xf32>
    %c0_53 = arith.constant 0 : index
    %c0_54 = arith.constant 0 : index
    %48 = vector.load %arg4[%c0_53, %c0_54] : memref<32x1xf32, #tpu.memory_space<vmem>>, vector<32x1xf32>
    %49 = vector.broadcast %48 : vector<32x1xf32> to vector<32x320xf32>
    %50 = arith.addf %47, %49 : vector<32x320xf32>
    %cst_55 = arith.constant 0.000000e+00 : f32
    %51 = vector.broadcast %cst_55 : f32 to vector<32x320xf32>
    %52 = arith.cmpf oge, %50, %51 : vector<32x320xf32>
    %cst_56 = arith.constant 2.000000e-01 : f32
    %53 = vector.broadcast %cst_56 : f32 to vector<32x320xf32>
    %54 = arith.mulf %53, %50 : vector<32x320xf32>
    %55 = arith.select %52, %50, %54 : vector<32x320xi1>, vector<32x320xf32>
    %cst_57 = arith.constant 0.000000e+00 : f32
    %56 = vector.broadcast %cst_57 : f32 to vector<32x320xf32>
    %57 = arith.select %8, %55, %56 : vector<32x320xi1>, vector<32x320xf32>
    %58 = arith.truncf %57 : vector<32x320xf32> to vector<32x320xbf16>
    %c0_58 = arith.constant 0 : index
    %c42 = arith.constant 42 : index
    %59 = vector.load %arg14[%c0_58, %c42] : memref<32x404xbf16, #tpu.memory_space<vmem>>, vector<32x320xbf16>
    tpu.vector_store %arg14[%c0_58, %c42], %58 {strides = array<i32>} : memref<32x404xbf16, #tpu.memory_space<vmem>>, vector<32x320xbf16>,
    %c0_59 = arith.constant 0 : index
    %c0_60 = arith.constant 0 : index
    %60 = vector.load %arg14[%c0_59, %c0_60] : memref<32x404xbf16, #tpu.memory_space<vmem>>, vector<32x324xbf16>
    %c0_61 = arith.constant 0 : index
    %c0_62 = arith.constant 0 : index
    %61 = vector.load %arg15[%c0_61, %c0_62] : memref<160x324xbf16, #tpu.memory_space<vmem>>, vector<32x324xbf16>
    tpu.vector_store %arg15[%c0_61, %c0_62], %60 {strides = array<i32>} : memref<160x324xbf16, #tpu.memory_space<vmem>>, vector<32x324xbf16>,
    %c0_63 = arith.constant 0 : index
    %c20_64 = arith.constant 20 : index
    %62 = vector.load %arg14[%c0_63, %c20_64] : memref<32x404xbf16, #tpu.memory_space<vmem>>, vector<32x324xbf16>
    %c32 = arith.constant 32 : index
    %c0_65 = arith.constant 0 : index
    %63 = vector.load %arg15[%c32, %c0_65] : memref<160x324xbf16, #tpu.memory_space<vmem>>, vector<32x324xbf16>
    tpu.vector_store %arg15[%c32, %c0_65], %62 {strides = array<i32>} : memref<160x324xbf16, #tpu.memory_space<vmem>>, vector<32x324xbf16>,
    %c0_66 = arith.constant 0 : index
    %c40_67 = arith.constant 40 : index
    %64 = vector.load %arg14[%c0_66, %c40_67] : memref<32x404xbf16, #tpu.memory_space<vmem>>, vector<32x324xbf16>
    %c64 = arith.constant 64 : index
    %c0_68 = arith.constant 0 : index
    %65 = vector.load %arg15[%c64, %c0_68] : memref<160x324xbf16, #tpu.memory_space<vmem>>, vector<32x324xbf16>
    tpu.vector_store %arg15[%c64, %c0_68], %64 {strides = array<i32>} : memref<160x324xbf16, #tpu.memory_space<vmem>>, vector<32x324xbf16>,
    %c0_69 = arith.constant 0 : index
    %c60_70 = arith.constant 60 : index
    %66 = vector.load %arg14[%c0_69, %c60_70] : memref<32x404xbf16, #tpu.memory_space<vmem>>, vector<32x324xbf16>
    %c96 = arith.constant 96 : index
    %c0_71 = arith.constant 0 : index
    %67 = vector.load %arg15[%c96, %c0_71] : memref<160x324xbf16, #tpu.memory_space<vmem>>, vector<32x324xbf16>
    tpu.vector_store %arg15[%c96, %c0_71], %66 {strides = array<i32>} : memref<160x324xbf16, #tpu.memory_space<vmem>>, vector<32x324xbf16>,
    %c0_72 = arith.constant 0 : index
    %c80_73 = arith.constant 80 : index
    %68 = vector.load %arg14[%c0_72, %c80_73] : memref<32x404xbf16, #tpu.memory_space<vmem>>, vector<32x324xbf16>
    %c128 = arith.constant 128 : index
    %c0_74 = arith.constant 0 : index
    %69 = vector.load %arg15[%c128, %c0_74] : memref<160x324xbf16, #tpu.memory_space<vmem>>, vector<32x324xbf16>
    tpu.vector_store %arg15[%c128, %c0_74], %68 {strides = array<i32>} : memref<160x324xbf16, #tpu.memory_space<vmem>>, vector<32x324xbf16>,
    %c0_75 = arith.constant 0 : index
    %c0_76 = arith.constant 0 : index
    %c0_77 = arith.constant 0 : index
    %70 = vector.load %arg5[%c0_75, %c0_76, %c0_77] : memref<5x32x160xbf16, #tpu.memory_space<vmem>>, vector<1x32x160xbf16>
    %71 = vector.shape_cast %70 : vector<1x32x160xbf16> to vector<32x160xbf16>
    %c0_78 = arith.constant 0 : index
    %c0_79 = arith.constant 0 : index
    %72 = vector.load %arg15[%c0_78, %c0_79] : memref<160x324xbf16, #tpu.memory_space<vmem>>, vector<160x320xbf16>
    %cst_80 = arith.constant dense<0.000000e+00> : vector<32x320xf32>
    %73 = tpu.matmul %71, %72, %cst_80 {dimension_numbers = #tpu.dot_dimension_numbers<[1], [0], [0], [1], [0, 0, 1, 1], [], []>} : vector<32x160xbf16>, vector<160x320xbf16>, vector<32x320xf32> -> vector<32x320xf32>
    %c1_81 = arith.constant 1 : index
    %c0_82 = arith.constant 0 : index
    %c0_83 = arith.constant 0 : index
    %74 = vector.load %arg5[%c1_81, %c0_82, %c0_83] : memref<5x32x160xbf16, #tpu.memory_space<vmem>>, vector<1x32x160xbf16>
    %75 = vector.shape_cast %74 : vector<1x32x160xbf16> to vector<32x160xbf16>
    %c0_84 = arith.constant 0 : index
    %c1_85 = arith.constant 1 : index
    %76 = vector.load %arg15[%c0_84, %c1_85] : memref<160x324xbf16, #tpu.memory_space<vmem>>, vector<160x320xbf16>
    %cst_86 = arith.constant dense<0.000000e+00> : vector<32x320xf32>
    %77 = tpu.matmul %75, %76, %cst_86 {dimension_numbers = #tpu.dot_dimension_numbers<[1], [0], [0], [1], [0, 0, 1, 1], [], []>} : vector<32x160xbf16>, vector<160x320xbf16>, vector<32x320xf32> -> vector<32x320xf32>
    %78 = arith.addf %73, %77 : vector<32x320xf32>
    %c2_87 = arith.constant 2 : index
    %c0_88 = arith.constant 0 : index
    %c0_89 = arith.constant 0 : index
    %79 = vector.load %arg5[%c2_87, %c0_88, %c0_89] : memref<5x32x160xbf16, #tpu.memory_space<vmem>>, vector<1x32x160xbf16>
    %80 = vector.shape_cast %79 : vector<1x32x160xbf16> to vector<32x160xbf16>
    %c0_90 = arith.constant 0 : index
    %c2_91 = arith.constant 2 : index
    %81 = vector.load %arg15[%c0_90, %c2_91] : memref<160x324xbf16, #tpu.memory_space<vmem>>, vector<160x320xbf16>
    %cst_92 = arith.constant dense<0.000000e+00> : vector<32x320xf32>
    %82 = tpu.matmul %80, %81, %cst_92 {dimension_numbers = #tpu.dot_dimension_numbers<[1], [0], [0], [1], [0, 0, 1, 1], [], []>} : vector<32x160xbf16>, vector<160x320xbf16>, vector<32x320xf32> -> vector<32x320xf32>
    %83 = arith.addf %78, %82 : vector<32x320xf32>
    %c3_93 = arith.constant 3 : index
    %c0_94 = arith.constant 0 : index
    %c0_95 = arith.constant 0 : index
    %84 = vector.load %arg5[%c3_93, %c0_94, %c0_95] : memref<5x32x160xbf16, #tpu.memory_space<vmem>>, vector<1x32x160xbf16>
    %85 = vector.shape_cast %84 : vector<1x32x160xbf16> to vector<32x160xbf16>
    %c0_96 = arith.constant 0 : index
    %c3_97 = arith.constant 3 : index
    %86 = vector.load %arg15[%c0_96, %c3_97] : memref<160x324xbf16, #tpu.memory_space<vmem>>, vector<160x320xbf16>
    %cst_98 = arith.constant dense<0.000000e+00> : vector<32x320xf32>
    %87 = tpu.matmul %85, %86, %cst_98 {dimension_numbers = #tpu.dot_dimension_numbers<[1], [0], [0], [1], [0, 0, 1, 1], [], []>} : vector<32x160xbf16>, vector<160x320xbf16>, vector<32x320xf32> -> vector<32x320xf32>
    %88 = arith.addf %83, %87 : vector<32x320xf32>
    %c4_99 = arith.constant 4 : index
    %c0_100 = arith.constant 0 : index
    %c0_101 = arith.constant 0 : index
    %89 = vector.load %arg5[%c4_99, %c0_100, %c0_101] : memref<5x32x160xbf16, #tpu.memory_space<vmem>>, vector<1x32x160xbf16>
    %90 = vector.shape_cast %89 : vector<1x32x160xbf16> to vector<32x160xbf16>
    %c0_102 = arith.constant 0 : index
    %c4_103 = arith.constant 4 : index
    %91 = vector.load %arg15[%c0_102, %c4_103] : memref<160x324xbf16, #tpu.memory_space<vmem>>, vector<160x320xbf16>
    %cst_104 = arith.constant dense<0.000000e+00> : vector<32x320xf32>
    %92 = tpu.matmul %90, %91, %cst_104 {dimension_numbers = #tpu.dot_dimension_numbers<[1], [0], [0], [1], [0, 0, 1, 1], [], []>} : vector<32x160xbf16>, vector<160x320xbf16>, vector<32x320xf32> -> vector<32x320xf32>
    %93 = arith.addf %88, %92 : vector<32x320xf32>
    %c0_105 = arith.constant 0 : index
    %c0_106 = arith.constant 0 : index
    %94 = vector.load %arg6[%c0_105, %c0_106] : memref<32x1xf32, #tpu.memory_space<vmem>>, vector<32x1xf32>
    %95 = vector.broadcast %94 : vector<32x1xf32> to vector<32x320xf32>
    %96 = arith.addf %93, %95 : vector<32x320xf32>
    %cst_107 = arith.constant 0.000000e+00 : f32
    %97 = vector.broadcast %cst_107 : f32 to vector<32x320xf32>
    %98 = arith.cmpf oge, %96, %97 : vector<32x320xf32>
    %cst_108 = arith.constant 2.000000e-01 : f32
    %99 = vector.broadcast %cst_108 : f32 to vector<32x320xf32>
    %100 = arith.mulf %99, %96 : vector<32x320xf32>
    %101 = arith.select %98, %96, %100 : vector<32x320xi1>, vector<32x320xf32>
    %cst_109 = arith.constant 0.000000e+00 : f32
    %102 = vector.broadcast %cst_109 : f32 to vector<32x320xf32>
    %103 = arith.select %8, %101, %102 : vector<32x320xi1>, vector<32x320xf32>
    %104 = arith.truncf %103 : vector<32x320xf32> to vector<32x320xbf16>
    %c0_110 = arith.constant 0 : index
    %c42_111 = arith.constant 42 : index
    %105 = vector.load %arg14[%c0_110, %c42_111] : memref<32x404xbf16, #tpu.memory_space<vmem>>, vector<32x320xbf16>
    tpu.vector_store %arg14[%c0_110, %c42_111], %104 {strides = array<i32>} : memref<32x404xbf16, #tpu.memory_space<vmem>>, vector<32x320xbf16>,
    %c0_112 = arith.constant 0 : index
    %c0_113 = arith.constant 0 : index
    %106 = vector.load %arg14[%c0_112, %c0_113] : memref<32x404xbf16, #tpu.memory_space<vmem>>, vector<32x324xbf16>
    %c0_114 = arith.constant 0 : index
    %c0_115 = arith.constant 0 : index
    %107 = vector.load %arg15[%c0_114, %c0_115] : memref<160x324xbf16, #tpu.memory_space<vmem>>, vector<32x324xbf16>
    tpu.vector_store %arg15[%c0_114, %c0_115], %106 {strides = array<i32>} : memref<160x324xbf16, #tpu.memory_space<vmem>>, vector<32x324xbf16>,
    %c0_116 = arith.constant 0 : index
    %c20_117 = arith.constant 20 : index
    %108 = vector.load %arg14[%c0_116, %c20_117] : memref<32x404xbf16, #tpu.memory_space<vmem>>, vector<32x324xbf16>
    %c32_118 = arith.constant 32 : index
    %c0_119 = arith.constant 0 : index
    %109 = vector.load %arg15[%c32_118, %c0_119] : memref<160x324xbf16, #tpu.memory_space<vmem>>, vector<32x324xbf16>
    tpu.vector_store %arg15[%c32_118, %c0_119], %108 {strides = array<i32>} : memref<160x324xbf16, #tpu.memory_space<vmem>>, vector<32x324xbf16>,
    %c0_120 = arith.constant 0 : index
    %c40_121 = arith.constant 40 : index
    %110 = vector.load %arg14[%c0_120, %c40_121] : memref<32x404xbf16, #tpu.memory_space<vmem>>, vector<32x324xbf16>
    %c64_122 = arith.constant 64 : index
    %c0_123 = arith.constant 0 : index
    %111 = vector.load %arg15[%c64_122, %c0_123] : memref<160x324xbf16, #tpu.memory_space<vmem>>, vector<32x324xbf16>
    tpu.vector_store %arg15[%c64_122, %c0_123], %110 {strides = array<i32>} : memref<160x324xbf16, #tpu.memory_space<vmem>>, vector<32x324xbf16>,
    %c0_124 = arith.constant 0 : index
    %c60_125 = arith.constant 60 : index
    %112 = vector.load %arg14[%c0_124, %c60_125] : memref<32x404xbf16, #tpu.memory_space<vmem>>, vector<32x324xbf16>
    %c96_126 = arith.constant 96 : index
    %c0_127 = arith.constant 0 : index
    %113 = vector.load %arg15[%c96_126, %c0_127] : memref<160x324xbf16, #tpu.memory_space<vmem>>, vector<32x324xbf16>
    tpu.vector_store %arg15[%c96_126, %c0_127], %112 {strides = array<i32>} : memref<160x324xbf16, #tpu.memory_space<vmem>>, vector<32x324xbf16>,
    %c0_128 = arith.constant 0 : index
    %c80_129 = arith.constant 80 : index
    %114 = vector.load %arg14[%c0_128, %c80_129] : memref<32x404xbf16, #tpu.memory_space<vmem>>, vector<32x324xbf16>
    %c128_130 = arith.constant 128 : index
    %c0_131 = arith.constant 0 : index
    %115 = vector.load %arg15[%c128_130, %c0_131] : memref<160x324xbf16, #tpu.memory_space<vmem>>, vector<32x324xbf16>
    tpu.vector_store %arg15[%c128_130, %c0_131], %114 {strides = array<i32>} : memref<160x324xbf16, #tpu.memory_space<vmem>>, vector<32x324xbf16>,
    %c0_132 = arith.constant 0 : index
    %c0_133 = arith.constant 0 : index
    %c0_134 = arith.constant 0 : index
    %116 = vector.load %arg7[%c0_132, %c0_133, %c0_134] : memref<5x32x160xbf16, #tpu.memory_space<vmem>>, vector<1x32x160xbf16>
    %117 = vector.shape_cast %116 : vector<1x32x160xbf16> to vector<32x160xbf16>
    %c0_135 = arith.constant 0 : index
    %c0_136 = arith.constant 0 : index
    %118 = vector.load %arg15[%c0_135, %c0_136] : memref<160x324xbf16, #tpu.memory_space<vmem>>, vector<160x320xbf16>
    %cst_137 = arith.constant dense<0.000000e+00> : vector<32x320xf32>
    %119 = tpu.matmul %117, %118, %cst_137 {dimension_numbers = #tpu.dot_dimension_numbers<[1], [0], [0], [1], [0, 0, 1, 1], [], []>} : vector<32x160xbf16>, vector<160x320xbf16>, vector<32x320xf32> -> vector<32x320xf32>
    %c1_138 = arith.constant 1 : index
    %c0_139 = arith.constant 0 : index
    %c0_140 = arith.constant 0 : index
    %120 = vector.load %arg7[%c1_138, %c0_139, %c0_140] : memref<5x32x160xbf16, #tpu.memory_space<vmem>>, vector<1x32x160xbf16>
    %121 = vector.shape_cast %120 : vector<1x32x160xbf16> to vector<32x160xbf16>
    %c0_141 = arith.constant 0 : index
    %c1_142 = arith.constant 1 : index
    %122 = vector.load %arg15[%c0_141, %c1_142] : memref<160x324xbf16, #tpu.memory_space<vmem>>, vector<160x320xbf16>
    %cst_143 = arith.constant dense<0.000000e+00> : vector<32x320xf32>
    %123 = tpu.matmul %121, %122, %cst_143 {dimension_numbers = #tpu.dot_dimension_numbers<[1], [0], [0], [1], [0, 0, 1, 1], [], []>} : vector<32x160xbf16>, vector<160x320xbf16>, vector<32x320xf32> -> vector<32x320xf32>
    %124 = arith.addf %119, %123 : vector<32x320xf32>
    %c2_144 = arith.constant 2 : index
    %c0_145 = arith.constant 0 : index
    %c0_146 = arith.constant 0 : index
    %125 = vector.load %arg7[%c2_144, %c0_145, %c0_146] : memref<5x32x160xbf16, #tpu.memory_space<vmem>>, vector<1x32x160xbf16>
    %126 = vector.shape_cast %125 : vector<1x32x160xbf16> to vector<32x160xbf16>
    %c0_147 = arith.constant 0 : index
    %c2_148 = arith.constant 2 : index
    %127 = vector.load %arg15[%c0_147, %c2_148] : memref<160x324xbf16, #tpu.memory_space<vmem>>, vector<160x320xbf16>
    %cst_149 = arith.constant dense<0.000000e+00> : vector<32x320xf32>
    %128 = tpu.matmul %126, %127, %cst_149 {dimension_numbers = #tpu.dot_dimension_numbers<[1], [0], [0], [1], [0, 0, 1, 1], [], []>} : vector<32x160xbf16>, vector<160x320xbf16>, vector<32x320xf32> -> vector<32x320xf32>
    %129 = arith.addf %124, %128 : vector<32x320xf32>
    %c3_150 = arith.constant 3 : index
    %c0_151 = arith.constant 0 : index
    %c0_152 = arith.constant 0 : index
    %130 = vector.load %arg7[%c3_150, %c0_151, %c0_152] : memref<5x32x160xbf16, #tpu.memory_space<vmem>>, vector<1x32x160xbf16>
    %131 = vector.shape_cast %130 : vector<1x32x160xbf16> to vector<32x160xbf16>
    %c0_153 = arith.constant 0 : index
    %c3_154 = arith.constant 3 : index
    %132 = vector.load %arg15[%c0_153, %c3_154] : memref<160x324xbf16, #tpu.memory_space<vmem>>, vector<160x320xbf16>
    %cst_155 = arith.constant dense<0.000000e+00> : vector<32x320xf32>
    %133 = tpu.matmul %131, %132, %cst_155 {dimension_numbers = #tpu.dot_dimension_numbers<[1], [0], [0], [1], [0, 0, 1, 1], [], []>} : vector<32x160xbf16>, vector<160x320xbf16>, vector<32x320xf32> -> vector<32x320xf32>
    %134 = arith.addf %129, %133 : vector<32x320xf32>
    %c4_156 = arith.constant 4 : index
    %c0_157 = arith.constant 0 : index
    %c0_158 = arith.constant 0 : index
    %135 = vector.load %arg7[%c4_156, %c0_157, %c0_158] : memref<5x32x160xbf16, #tpu.memory_space<vmem>>, vector<1x32x160xbf16>
    %136 = vector.shape_cast %135 : vector<1x32x160xbf16> to vector<32x160xbf16>
    %c0_159 = arith.constant 0 : index
    %c4_160 = arith.constant 4 : index
    %137 = vector.load %arg15[%c0_159, %c4_160] : memref<160x324xbf16, #tpu.memory_space<vmem>>, vector<160x320xbf16>
    %cst_161 = arith.constant dense<0.000000e+00> : vector<32x320xf32>
    %138 = tpu.matmul %136, %137, %cst_161 {dimension_numbers = #tpu.dot_dimension_numbers<[1], [0], [0], [1], [0, 0, 1, 1], [], []>} : vector<32x160xbf16>, vector<160x320xbf16>, vector<32x320xf32> -> vector<32x320xf32>
    %139 = arith.addf %134, %138 : vector<32x320xf32>
    %c0_162 = arith.constant 0 : index
    %c0_163 = arith.constant 0 : index
    %140 = vector.load %arg8[%c0_162, %c0_163] : memref<32x1xf32, #tpu.memory_space<vmem>>, vector<32x1xf32>
    %141 = vector.broadcast %140 : vector<32x1xf32> to vector<32x320xf32>
    %142 = arith.addf %139, %141 : vector<32x320xf32>
    %cst_164 = arith.constant 0.000000e+00 : f32
    %143 = vector.broadcast %cst_164 : f32 to vector<32x320xf32>
    %144 = arith.cmpf oge, %142, %143 : vector<32x320xf32>
    %cst_165 = arith.constant 2.000000e-01 : f32
    %145 = vector.broadcast %cst_165 : f32 to vector<32x320xf32>
    %146 = arith.mulf %145, %142 : vector<32x320xf32>
    %147 = arith.select %144, %142, %146 : vector<32x320xi1>, vector<32x320xf32>
    %cst_166 = arith.constant 0.000000e+00 : f32
    %148 = vector.broadcast %cst_166 : f32 to vector<32x320xf32>
    %149 = arith.select %8, %147, %148 : vector<32x320xi1>, vector<32x320xf32>
    %150 = arith.truncf %149 : vector<32x320xf32> to vector<32x320xbf16>
    %c0_167 = arith.constant 0 : index
    %c42_168 = arith.constant 42 : index
    %151 = vector.load %arg14[%c0_167, %c42_168] : memref<32x404xbf16, #tpu.memory_space<vmem>>, vector<32x320xbf16>
    tpu.vector_store %arg14[%c0_167, %c42_168], %150 {strides = array<i32>} : memref<32x404xbf16, #tpu.memory_space<vmem>>, vector<32x320xbf16>,
    %c0_169 = arith.constant 0 : index
    %c0_170 = arith.constant 0 : index
    %152 = vector.load %arg14[%c0_169, %c0_170] : memref<32x404xbf16, #tpu.memory_space<vmem>>, vector<32x324xbf16>
    %c0_171 = arith.constant 0 : index
    %c0_172 = arith.constant 0 : index
    %153 = vector.load %arg15[%c0_171, %c0_172] : memref<160x324xbf16, #tpu.memory_space<vmem>>, vector<32x324xbf16>
    tpu.vector_store %arg15[%c0_171, %c0_172], %152 {strides = array<i32>} : memref<160x324xbf16, #tpu.memory_space<vmem>>, vector<32x324xbf16>,
    %c0_173 = arith.constant 0 : index
    %c20_174 = arith.constant 20 : index
    %154 = vector.load %arg14[%c0_173, %c20_174] : memref<32x404xbf16, #tpu.memory_space<vmem>>, vector<32x324xbf16>
    %c32_175 = arith.constant 32 : index
    %c0_176 = arith.constant 0 : index
    %155 = vector.load %arg15[%c32_175, %c0_176] : memref<160x324xbf16, #tpu.memory_space<vmem>>, vector<32x324xbf16>
    tpu.vector_store %arg15[%c32_175, %c0_176], %154 {strides = array<i32>} : memref<160x324xbf16, #tpu.memory_space<vmem>>, vector<32x324xbf16>,
    %c0_177 = arith.constant 0 : index
    %c40_178 = arith.constant 40 : index
    %156 = vector.load %arg14[%c0_177, %c40_178] : memref<32x404xbf16, #tpu.memory_space<vmem>>, vector<32x324xbf16>
    %c64_179 = arith.constant 64 : index
    %c0_180 = arith.constant 0 : index
    %157 = vector.load %arg15[%c64_179, %c0_180] : memref<160x324xbf16, #tpu.memory_space<vmem>>, vector<32x324xbf16>
    tpu.vector_store %arg15[%c64_179, %c0_180], %156 {strides = array<i32>} : memref<160x324xbf16, #tpu.memory_space<vmem>>, vector<32x324xbf16>,
    %c0_181 = arith.constant 0 : index
    %c60_182 = arith.constant 60 : index
    %158 = vector.load %arg14[%c0_181, %c60_182] : memref<32x404xbf16, #tpu.memory_space<vmem>>, vector<32x324xbf16>
    %c96_183 = arith.constant 96 : index
    %c0_184 = arith.constant 0 : index
    %159 = vector.load %arg15[%c96_183, %c0_184] : memref<160x324xbf16, #tpu.memory_space<vmem>>, vector<32x324xbf16>
    tpu.vector_store %arg15[%c96_183, %c0_184], %158 {strides = array<i32>} : memref<160x324xbf16, #tpu.memory_space<vmem>>, vector<32x324xbf16>,
    %c0_185 = arith.constant 0 : index
    %c80_186 = arith.constant 80 : index
    %160 = vector.load %arg14[%c0_185, %c80_186] : memref<32x404xbf16, #tpu.memory_space<vmem>>, vector<32x324xbf16>
    %c128_187 = arith.constant 128 : index
    %c0_188 = arith.constant 0 : index
    %161 = vector.load %arg15[%c128_187, %c0_188] : memref<160x324xbf16, #tpu.memory_space<vmem>>, vector<32x324xbf16>
    tpu.vector_store %arg15[%c128_187, %c0_188], %160 {strides = array<i32>} : memref<160x324xbf16, #tpu.memory_space<vmem>>, vector<32x324xbf16>,
    %c0_189 = arith.constant 0 : index
    %c0_190 = arith.constant 0 : index
    %c0_191 = arith.constant 0 : index
    %162 = vector.load %arg9[%c0_189, %c0_190, %c0_191] : memref<5x32x160xbf16, #tpu.memory_space<vmem>>, vector<1x32x160xbf16>
    %163 = vector.shape_cast %162 : vector<1x32x160xbf16> to vector<32x160xbf16>
    %c0_192 = arith.constant 0 : index
    %c0_193 = arith.constant 0 : index
    %164 = vector.load %arg15[%c0_192, %c0_193] : memref<160x324xbf16, #tpu.memory_space<vmem>>, vector<160x320xbf16>
    %cst_194 = arith.constant dense<0.000000e+00> : vector<32x320xf32>
    %165 = tpu.matmul %163, %164, %cst_194 {dimension_numbers = #tpu.dot_dimension_numbers<[1], [0], [0], [1], [0, 0, 1, 1], [], []>} : vector<32x160xbf16>, vector<160x320xbf16>, vector<32x320xf32> -> vector<32x320xf32>
    %c1_195 = arith.constant 1 : index
    %c0_196 = arith.constant 0 : index
    %c0_197 = arith.constant 0 : index
    %166 = vector.load %arg9[%c1_195, %c0_196, %c0_197] : memref<5x32x160xbf16, #tpu.memory_space<vmem>>, vector<1x32x160xbf16>
    %167 = vector.shape_cast %166 : vector<1x32x160xbf16> to vector<32x160xbf16>
    %c0_198 = arith.constant 0 : index
    %c1_199 = arith.constant 1 : index
    %168 = vector.load %arg15[%c0_198, %c1_199] : memref<160x324xbf16, #tpu.memory_space<vmem>>, vector<160x320xbf16>
    %cst_200 = arith.constant dense<0.000000e+00> : vector<32x320xf32>
    %169 = tpu.matmul %167, %168, %cst_200 {dimension_numbers = #tpu.dot_dimension_numbers<[1], [0], [0], [1], [0, 0, 1, 1], [], []>} : vector<32x160xbf16>, vector<160x320xbf16>, vector<32x320xf32> -> vector<32x320xf32>
    %170 = arith.addf %165, %169 : vector<32x320xf32>
    %c2_201 = arith.constant 2 : index
    %c0_202 = arith.constant 0 : index
    %c0_203 = arith.constant 0 : index
    %171 = vector.load %arg9[%c2_201, %c0_202, %c0_203] : memref<5x32x160xbf16, #tpu.memory_space<vmem>>, vector<1x32x160xbf16>
    %172 = vector.shape_cast %171 : vector<1x32x160xbf16> to vector<32x160xbf16>
    %c0_204 = arith.constant 0 : index
    %c2_205 = arith.constant 2 : index
    %173 = vector.load %arg15[%c0_204, %c2_205] : memref<160x324xbf16, #tpu.memory_space<vmem>>, vector<160x320xbf16>
    %cst_206 = arith.constant dense<0.000000e+00> : vector<32x320xf32>
    %174 = tpu.matmul %172, %173, %cst_206 {dimension_numbers = #tpu.dot_dimension_numbers<[1], [0], [0], [1], [0, 0, 1, 1], [], []>} : vector<32x160xbf16>, vector<160x320xbf16>, vector<32x320xf32> -> vector<32x320xf32>
    %175 = arith.addf %170, %174 : vector<32x320xf32>
    %c3_207 = arith.constant 3 : index
    %c0_208 = arith.constant 0 : index
    %c0_209 = arith.constant 0 : index
    %176 = vector.load %arg9[%c3_207, %c0_208, %c0_209] : memref<5x32x160xbf16, #tpu.memory_space<vmem>>, vector<1x32x160xbf16>
    %177 = vector.shape_cast %176 : vector<1x32x160xbf16> to vector<32x160xbf16>
    %c0_210 = arith.constant 0 : index
    %c3_211 = arith.constant 3 : index
    %178 = vector.load %arg15[%c0_210, %c3_211] : memref<160x324xbf16, #tpu.memory_space<vmem>>, vector<160x320xbf16>
    %cst_212 = arith.constant dense<0.000000e+00> : vector<32x320xf32>
    %179 = tpu.matmul %177, %178, %cst_212 {dimension_numbers = #tpu.dot_dimension_numbers<[1], [0], [0], [1], [0, 0, 1, 1], [], []>} : vector<32x160xbf16>, vector<160x320xbf16>, vector<32x320xf32> -> vector<32x320xf32>
    %180 = arith.addf %175, %179 : vector<32x320xf32>
    %c4_213 = arith.constant 4 : index
    %c0_214 = arith.constant 0 : index
    %c0_215 = arith.constant 0 : index
    %181 = vector.load %arg9[%c4_213, %c0_214, %c0_215] : memref<5x32x160xbf16, #tpu.memory_space<vmem>>, vector<1x32x160xbf16>
    %182 = vector.shape_cast %181 : vector<1x32x160xbf16> to vector<32x160xbf16>
    %c0_216 = arith.constant 0 : index
    %c4_217 = arith.constant 4 : index
    %183 = vector.load %arg15[%c0_216, %c4_217] : memref<160x324xbf16, #tpu.memory_space<vmem>>, vector<160x320xbf16>
    %cst_218 = arith.constant dense<0.000000e+00> : vector<32x320xf32>
    %184 = tpu.matmul %182, %183, %cst_218 {dimension_numbers = #tpu.dot_dimension_numbers<[1], [0], [0], [1], [0, 0, 1, 1], [], []>} : vector<32x160xbf16>, vector<160x320xbf16>, vector<32x320xf32> -> vector<32x320xf32>
    %185 = arith.addf %180, %184 : vector<32x320xf32>
    %c0_219 = arith.constant 0 : index
    %c0_220 = arith.constant 0 : index
    %186 = vector.load %arg10[%c0_219, %c0_220] : memref<32x1xf32, #tpu.memory_space<vmem>>, vector<32x1xf32>
    %187 = vector.broadcast %186 : vector<32x1xf32> to vector<32x320xf32>
    %188 = arith.addf %185, %187 : vector<32x320xf32>
    %cst_221 = arith.constant 0.000000e+00 : f32
    %189 = vector.broadcast %cst_221 : f32 to vector<32x320xf32>
    %190 = arith.cmpf oge, %188, %189 : vector<32x320xf32>
    %cst_222 = arith.constant 2.000000e-01 : f32
    %191 = vector.broadcast %cst_222 : f32 to vector<32x320xf32>
    %192 = arith.mulf %191, %188 : vector<32x320xf32>
    %193 = arith.select %190, %188, %192 : vector<32x320xi1>, vector<32x320xf32>
    %c0_223 = arith.constant 0 : index
    %c0_224 = arith.constant 0 : index
    %194 = vector.load %arg11[%c0_223, %c0_224] : memref<32x1xf32, #tpu.memory_space<vmem>>, vector<32x1xf32>
    %195 = vector.broadcast %194 : vector<32x1xf32> to vector<32x320xf32>
    %196 = arith.mulf %193, %195 : vector<32x320xf32>
    %cst_225 = arith.constant dense<0.000000e+00> : vector<320xf32>
    %197 = vector.multi_reduction <add>, %196, %cst_225 [0] : vector<32x320xf32> to vector<320xf32>
    %198 = vector.shape_cast %197 : vector<320xf32> to vector<1x320xf32>
    %c0_226 = arith.constant 0 : index
    %c0_227 = arith.constant 0 : index
    %199 = vector.load %arg12[%c0_226, %c0_227] : memref<1x1xf32, #tpu.memory_space<vmem>>, vector<1x1xf32>
    %200 = vector.broadcast %199 : vector<1x1xf32> to vector<1x320xf32>
    %201 = arith.addf %198, %200 : vector<1x320xf32>
    %cst_228 = arith.constant 0.000000e+00 : f32
    %202 = vector.broadcast %cst_228 : f32 to vector<1x320xf32>
    %203 = arith.maximumf %201, %202 : vector<1x320xf32>
    %c0_229 = arith.constant 0 : index
    %c0_230 = arith.constant 0 : index
    %c0_231 = arith.constant 0 : index
    %204 = vector.load %arg13[%c0_229, %c0_230, %c0_231] : memref<2x1x320xf32, #tpu.memory_space<vmem>>, vector<1x1x320xf32>
    %205 = vector.shape_cast %204 : vector<1x1x320xf32> to vector<1x320xf32>
    %206 = vector.shape_cast %203 : vector<1x320xf32> to vector<1x1x320xf32>
    tpu.vector_store %arg13[%c0_229, %c0_230, %c0_231], %206 {strides = array<i32>} : memref<2x1x320xf32, #tpu.memory_space<vmem>>, vector<1x1x320xf32>,
    %c1_232 = arith.constant 1 : index
    %c0_233 = arith.constant 0 : index
    %c0_234 = arith.constant 0 : index
    %207 = vector.load %arg1[%c1_232, %c0_233, %c0_234] : memref<2x1x404xf32, #tpu.memory_space<vmem>>, vector<1x1x324xf32>
    %208 = vector.shape_cast %207 : vector<1x1x324xf32> to vector<1x324xf32>
    %c0_235 = arith.constant 0 : index
    %c0_236 = arith.constant 0 : index
    %209 = vector.load %arg16[%c0_235, %c0_236] : memref<5x324xf32, #tpu.memory_space<vmem>>, vector<1x324xf32>
    tpu.vector_store %arg16[%c0_235, %c0_236], %208 {strides = array<i32>} : memref<5x324xf32, #tpu.memory_space<vmem>>, vector<1x324xf32>,
    %c1_237 = arith.constant 1 : index
    %c0_238 = arith.constant 0 : index
    %c20_239 = arith.constant 20 : index
    %210 = vector.load %arg1[%c1_237, %c0_238, %c20_239] : memref<2x1x404xf32, #tpu.memory_space<vmem>>, vector<1x1x324xf32>
    %211 = vector.shape_cast %210 : vector<1x1x324xf32> to vector<1x324xf32>
    %c1_240 = arith.constant 1 : index
    %c0_241 = arith.constant 0 : index
    %212 = vector.load %arg16[%c1_240, %c0_241] : memref<5x324xf32, #tpu.memory_space<vmem>>, vector<1x324xf32>
    tpu.vector_store %arg16[%c1_240, %c0_241], %211 {strides = array<i32>} : memref<5x324xf32, #tpu.memory_space<vmem>>, vector<1x324xf32>,
    %c1_242 = arith.constant 1 : index
    %c0_243 = arith.constant 0 : index
    %c40_244 = arith.constant 40 : index
    %213 = vector.load %arg1[%c1_242, %c0_243, %c40_244] : memref<2x1x404xf32, #tpu.memory_space<vmem>>, vector<1x1x324xf32>
    %214 = vector.shape_cast %213 : vector<1x1x324xf32> to vector<1x324xf32>
    %c2_245 = arith.constant 2 : index
    %c0_246 = arith.constant 0 : index
    %215 = vector.load %arg16[%c2_245, %c0_246] : memref<5x324xf32, #tpu.memory_space<vmem>>, vector<1x324xf32>
    tpu.vector_store %arg16[%c2_245, %c0_246], %214 {strides = array<i32>} : memref<5x324xf32, #tpu.memory_space<vmem>>, vector<1x324xf32>,
    %c1_247 = arith.constant 1 : index
    %c0_248 = arith.constant 0 : index
    %c60_249 = arith.constant 60 : index
    %216 = vector.load %arg1[%c1_247, %c0_248, %c60_249] : memref<2x1x404xf32, #tpu.memory_space<vmem>>, vector<1x1x324xf32>
    %217 = vector.shape_cast %216 : vector<1x1x324xf32> to vector<1x324xf32>
    %c3_250 = arith.constant 3 : index
    %c0_251 = arith.constant 0 : index
    %218 = vector.load %arg16[%c3_250, %c0_251] : memref<5x324xf32, #tpu.memory_space<vmem>>, vector<1x324xf32>
    tpu.vector_store %arg16[%c3_250, %c0_251], %217 {strides = array<i32>} : memref<5x324xf32, #tpu.memory_space<vmem>>, vector<1x324xf32>,
    %c1_252 = arith.constant 1 : index
    %c0_253 = arith.constant 0 : index
    %c80_254 = arith.constant 80 : index
    %219 = vector.load %arg1[%c1_252, %c0_253, %c80_254] : memref<2x1x404xf32, #tpu.memory_space<vmem>>, vector<1x1x324xf32>
    %220 = vector.shape_cast %219 : vector<1x1x324xf32> to vector<1x324xf32>
    %c4_255 = arith.constant 4 : index
    %c0_256 = arith.constant 0 : index
    %221 = vector.load %arg16[%c4_255, %c0_256] : memref<5x324xf32, #tpu.memory_space<vmem>>, vector<1x324xf32>
    tpu.vector_store %arg16[%c4_255, %c0_256], %220 {strides = array<i32>} : memref<5x324xf32, #tpu.memory_space<vmem>>, vector<1x324xf32>,
    %c0_257 = arith.constant 0 : index
    %c0_258 = arith.constant 0 : index
    %c0_259 = arith.constant 0 : index
    %222 = vector.load %arg3[%c0_257, %c0_258, %c0_259] : memref<5x32x5xf32, #tpu.memory_space<vmem>>, vector<1x32x5xf32>
    %223 = vector.shape_cast %222 : vector<1x32x5xf32> to vector<32x5xf32>
    %c0_260 = arith.constant 0 : index
    %c0_261 = arith.constant 0 : index
    %224 = vector.load %arg16[%c0_260, %c0_261] : memref<5x324xf32, #tpu.memory_space<vmem>>, vector<5x320xf32>
    %cst_262 = arith.constant dense<0.000000e+00> : vector<32x320xf32>
    %225 = tpu.matmul %223, %224, %cst_262 {dimension_numbers = #tpu.dot_dimension_numbers<[1], [0], [0], [1], [0, 0, 1, 1], [], []>} : vector<32x5xf32>, vector<5x320xf32>, vector<32x320xf32> -> vector<32x320xf32>
    %c1_263 = arith.constant 1 : index
    %c0_264 = arith.constant 0 : index
    %c0_265 = arith.constant 0 : index
    %226 = vector.load %arg3[%c1_263, %c0_264, %c0_265] : memref<5x32x5xf32, #tpu.memory_space<vmem>>, vector<1x32x5xf32>
    %227 = vector.shape_cast %226 : vector<1x32x5xf32> to vector<32x5xf32>
    %c0_266 = arith.constant 0 : index
    %c1_267 = arith.constant 1 : index
    %228 = vector.load %arg16[%c0_266, %c1_267] : memref<5x324xf32, #tpu.memory_space<vmem>>, vector<5x320xf32>
    %cst_268 = arith.constant dense<0.000000e+00> : vector<32x320xf32>
    %229 = tpu.matmul %227, %228, %cst_268 {dimension_numbers = #tpu.dot_dimension_numbers<[1], [0], [0], [1], [0, 0, 1, 1], [], []>} : vector<32x5xf32>, vector<5x320xf32>, vector<32x320xf32> -> vector<32x320xf32>
    %230 = arith.addf %225, %229 : vector<32x320xf32>
    %c2_269 = arith.constant 2 : index
    %c0_270 = arith.constant 0 : index
    %c0_271 = arith.constant 0 : index
    %231 = vector.load %arg3[%c2_269, %c0_270, %c0_271] : memref<5x32x5xf32, #tpu.memory_space<vmem>>, vector<1x32x5xf32>
    %232 = vector.shape_cast %231 : vector<1x32x5xf32> to vector<32x5xf32>
    %c0_272 = arith.constant 0 : index
    %c2_273 = arith.constant 2 : index
    %233 = vector.load %arg16[%c0_272, %c2_273] : memref<5x324xf32, #tpu.memory_space<vmem>>, vector<5x320xf32>
    %cst_274 = arith.constant dense<0.000000e+00> : vector<32x320xf32>
    %234 = tpu.matmul %232, %233, %cst_274 {dimension_numbers = #tpu.dot_dimension_numbers<[1], [0], [0], [1], [0, 0, 1, 1], [], []>} : vector<32x5xf32>, vector<5x320xf32>, vector<32x320xf32> -> vector<32x320xf32>
    %235 = arith.addf %230, %234 : vector<32x320xf32>
    %c3_275 = arith.constant 3 : index
    %c0_276 = arith.constant 0 : index
    %c0_277 = arith.constant 0 : index
    %236 = vector.load %arg3[%c3_275, %c0_276, %c0_277] : memref<5x32x5xf32, #tpu.memory_space<vmem>>, vector<1x32x5xf32>
    %237 = vector.shape_cast %236 : vector<1x32x5xf32> to vector<32x5xf32>
    %c0_278 = arith.constant 0 : index
    %c3_279 = arith.constant 3 : index
    %238 = vector.load %arg16[%c0_278, %c3_279] : memref<5x324xf32, #tpu.memory_space<vmem>>, vector<5x320xf32>
    %cst_280 = arith.constant dense<0.000000e+00> : vector<32x320xf32>
    %239 = tpu.matmul %237, %238, %cst_280 {dimension_numbers = #tpu.dot_dimension_numbers<[1], [0], [0], [1], [0, 0, 1, 1], [], []>} : vector<32x5xf32>, vector<5x320xf32>, vector<32x320xf32> -> vector<32x320xf32>
    %240 = arith.addf %235, %239 : vector<32x320xf32>
    %c4_281 = arith.constant 4 : index
    %c0_282 = arith.constant 0 : index
    %c0_283 = arith.constant 0 : index
    %241 = vector.load %arg3[%c4_281, %c0_282, %c0_283] : memref<5x32x5xf32, #tpu.memory_space<vmem>>, vector<1x32x5xf32>
    %242 = vector.shape_cast %241 : vector<1x32x5xf32> to vector<32x5xf32>
    %c0_284 = arith.constant 0 : index
    %c4_285 = arith.constant 4 : index
    %243 = vector.load %arg16[%c0_284, %c4_285] : memref<5x324xf32, #tpu.memory_space<vmem>>, vector<5x320xf32>
    %cst_286 = arith.constant dense<0.000000e+00> : vector<32x320xf32>
    %244 = tpu.matmul %242, %243, %cst_286 {dimension_numbers = #tpu.dot_dimension_numbers<[1], [0], [0], [1], [0, 0, 1, 1], [], []>} : vector<32x5xf32>, vector<5x320xf32>, vector<32x320xf32> -> vector<32x320xf32>
    %245 = arith.addf %240, %244 : vector<32x320xf32>
    %c0_287 = arith.constant 0 : index
    %c0_288 = arith.constant 0 : index
    %246 = vector.load %arg4[%c0_287, %c0_288] : memref<32x1xf32, #tpu.memory_space<vmem>>, vector<32x1xf32>
    %247 = vector.broadcast %246 : vector<32x1xf32> to vector<32x320xf32>
    %248 = arith.addf %245, %247 : vector<32x320xf32>
    %cst_289 = arith.constant 0.000000e+00 : f32
    %249 = vector.broadcast %cst_289 : f32 to vector<32x320xf32>
    %250 = arith.cmpf oge, %248, %249 : vector<32x320xf32>
    %cst_290 = arith.constant 2.000000e-01 : f32
    %251 = vector.broadcast %cst_290 : f32 to vector<32x320xf32>
    %252 = arith.mulf %251, %248 : vector<32x320xf32>
    %253 = arith.select %250, %248, %252 : vector<32x320xi1>, vector<32x320xf32>
    %cst_291 = arith.constant 0.000000e+00 : f32
    %254 = vector.broadcast %cst_291 : f32 to vector<32x320xf32>
    %255 = arith.select %8, %253, %254 : vector<32x320xi1>, vector<32x320xf32>
    %256 = arith.truncf %255 : vector<32x320xf32> to vector<32x320xbf16>
    %c0_292 = arith.constant 0 : index
    %c42_293 = arith.constant 42 : index
    %257 = vector.load %arg14[%c0_292, %c42_293] : memref<32x404xbf16, #tpu.memory_space<vmem>>, vector<32x320xbf16>
    tpu.vector_store %arg14[%c0_292, %c42_293], %256 {strides = array<i32>} : memref<32x404xbf16, #tpu.memory_space<vmem>>, vector<32x320xbf16>,
    %c0_294 = arith.constant 0 : index
    %c0_295 = arith.constant 0 : index
    %258 = vector.load %arg14[%c0_294, %c0_295] : memref<32x404xbf16, #tpu.memory_space<vmem>>, vector<32x324xbf16>
    %c0_296 = arith.constant 0 : index
    %c0_297 = arith.constant 0 : index
    %259 = vector.load %arg15[%c0_296, %c0_297] : memref<160x324xbf16, #tpu.memory_space<vmem>>, vector<32x324xbf16>
    tpu.vector_store %arg15[%c0_296, %c0_297], %258 {strides = array<i32>} : memref<160x324xbf16, #tpu.memory_space<vmem>>, vector<32x324xbf16>,
    %c0_298 = arith.constant 0 : index
    %c20_299 = arith.constant 20 : index
    %260 = vector.load %arg14[%c0_298, %c20_299] : memref<32x404xbf16, #tpu.memory_space<vmem>>, vector<32x324xbf16>
    %c32_300 = arith.constant 32 : index
    %c0_301 = arith.constant 0 : index
    %261 = vector.load %arg15[%c32_300, %c0_301] : memref<160x324xbf16, #tpu.memory_space<vmem>>, vector<32x324xbf16>
    tpu.vector_store %arg15[%c32_300, %c0_301], %260 {strides = array<i32>} : memref<160x324xbf16, #tpu.memory_space<vmem>>, vector<32x324xbf16>,
    %c0_302 = arith.constant 0 : index
    %c40_303 = arith.constant 40 : index
    %262 = vector.load %arg14[%c0_302, %c40_303] : memref<32x404xbf16, #tpu.memory_space<vmem>>, vector<32x324xbf16>
    %c64_304 = arith.constant 64 : index
    %c0_305 = arith.constant 0 : index
    %263 = vector.load %arg15[%c64_304, %c0_305] : memref<160x324xbf16, #tpu.memory_space<vmem>>, vector<32x324xbf16>
    tpu.vector_store %arg15[%c64_304, %c0_305], %262 {strides = array<i32>} : memref<160x324xbf16, #tpu.memory_space<vmem>>, vector<32x324xbf16>,
    %c0_306 = arith.constant 0 : index
    %c60_307 = arith.constant 60 : index
    %264 = vector.load %arg14[%c0_306, %c60_307] : memref<32x404xbf16, #tpu.memory_space<vmem>>, vector<32x324xbf16>
    %c96_308 = arith.constant 96 : index
    %c0_309 = arith.constant 0 : index
    %265 = vector.load %arg15[%c96_308, %c0_309] : memref<160x324xbf16, #tpu.memory_space<vmem>>, vector<32x324xbf16>
    tpu.vector_store %arg15[%c96_308, %c0_309], %264 {strides = array<i32>} : memref<160x324xbf16, #tpu.memory_space<vmem>>, vector<32x324xbf16>,
    %c0_310 = arith.constant 0 : index
    %c80_311 = arith.constant 80 : index
    %266 = vector.load %arg14[%c0_310, %c80_311] : memref<32x404xbf16, #tpu.memory_space<vmem>>, vector<32x324xbf16>
    %c128_312 = arith.constant 128 : index
    %c0_313 = arith.constant 0 : index
    %267 = vector.load %arg15[%c128_312, %c0_313] : memref<160x324xbf16, #tpu.memory_space<vmem>>, vector<32x324xbf16>
    tpu.vector_store %arg15[%c128_312, %c0_313], %266 {strides = array<i32>} : memref<160x324xbf16, #tpu.memory_space<vmem>>, vector<32x324xbf16>,
    %c0_314 = arith.constant 0 : index
    %c0_315 = arith.constant 0 : index
    %c0_316 = arith.constant 0 : index
    %268 = vector.load %arg5[%c0_314, %c0_315, %c0_316] : memref<5x32x160xbf16, #tpu.memory_space<vmem>>, vector<1x32x160xbf16>
    %269 = vector.shape_cast %268 : vector<1x32x160xbf16> to vector<32x160xbf16>
    %c0_317 = arith.constant 0 : index
    %c0_318 = arith.constant 0 : index
    %270 = vector.load %arg15[%c0_317, %c0_318] : memref<160x324xbf16, #tpu.memory_space<vmem>>, vector<160x320xbf16>
    %cst_319 = arith.constant dense<0.000000e+00> : vector<32x320xf32>
    %271 = tpu.matmul %269, %270, %cst_319 {dimension_numbers = #tpu.dot_dimension_numbers<[1], [0], [0], [1], [0, 0, 1, 1], [], []>} : vector<32x160xbf16>, vector<160x320xbf16>, vector<32x320xf32> -> vector<32x320xf32>
    %c1_320 = arith.constant 1 : index
    %c0_321 = arith.constant 0 : index
    %c0_322 = arith.constant 0 : index
    %272 = vector.load %arg5[%c1_320, %c0_321, %c0_322] : memref<5x32x160xbf16, #tpu.memory_space<vmem>>, vector<1x32x160xbf16>
    %273 = vector.shape_cast %272 : vector<1x32x160xbf16> to vector<32x160xbf16>
    %c0_323 = arith.constant 0 : index
    %c1_324 = arith.constant 1 : index
    %274 = vector.load %arg15[%c0_323, %c1_324] : memref<160x324xbf16, #tpu.memory_space<vmem>>, vector<160x320xbf16>
    %cst_325 = arith.constant dense<0.000000e+00> : vector<32x320xf32>
    %275 = tpu.matmul %273, %274, %cst_325 {dimension_numbers = #tpu.dot_dimension_numbers<[1], [0], [0], [1], [0, 0, 1, 1], [], []>} : vector<32x160xbf16>, vector<160x320xbf16>, vector<32x320xf32> -> vector<32x320xf32>
    %276 = arith.addf %271, %275 : vector<32x320xf32>
    %c2_326 = arith.constant 2 : index
    %c0_327 = arith.constant 0 : index
    %c0_328 = arith.constant 0 : index
    %277 = vector.load %arg5[%c2_326, %c0_327, %c0_328] : memref<5x32x160xbf16, #tpu.memory_space<vmem>>, vector<1x32x160xbf16>
    %278 = vector.shape_cast %277 : vector<1x32x160xbf16> to vector<32x160xbf16>
    %c0_329 = arith.constant 0 : index
    %c2_330 = arith.constant 2 : index
    %279 = vector.load %arg15[%c0_329, %c2_330] : memref<160x324xbf16, #tpu.memory_space<vmem>>, vector<160x320xbf16>
    %cst_331 = arith.constant dense<0.000000e+00> : vector<32x320xf32>
    %280 = tpu.matmul %278, %279, %cst_331 {dimension_numbers = #tpu.dot_dimension_numbers<[1], [0], [0], [1], [0, 0, 1, 1], [], []>} : vector<32x160xbf16>, vector<160x320xbf16>, vector<32x320xf32> -> vector<32x320xf32>
    %281 = arith.addf %276, %280 : vector<32x320xf32>
    %c3_332 = arith.constant 3 : index
    %c0_333 = arith.constant 0 : index
    %c0_334 = arith.constant 0 : index
    %282 = vector.load %arg5[%c3_332, %c0_333, %c0_334] : memref<5x32x160xbf16, #tpu.memory_space<vmem>>, vector<1x32x160xbf16>
    %283 = vector.shape_cast %282 : vector<1x32x160xbf16> to vector<32x160xbf16>
    %c0_335 = arith.constant 0 : index
    %c3_336 = arith.constant 3 : index
    %284 = vector.load %arg15[%c0_335, %c3_336] : memref<160x324xbf16, #tpu.memory_space<vmem>>, vector<160x320xbf16>
    %cst_337 = arith.constant dense<0.000000e+00> : vector<32x320xf32>
    %285 = tpu.matmul %283, %284, %cst_337 {dimension_numbers = #tpu.dot_dimension_numbers<[1], [0], [0], [1], [0, 0, 1, 1], [], []>} : vector<32x160xbf16>, vector<160x320xbf16>, vector<32x320xf32> -> vector<32x320xf32>
    %286 = arith.addf %281, %285 : vector<32x320xf32>
    %c4_338 = arith.constant 4 : index
    %c0_339 = arith.constant 0 : index
    %c0_340 = arith.constant 0 : index
    %287 = vector.load %arg5[%c4_338, %c0_339, %c0_340] : memref<5x32x160xbf16, #tpu.memory_space<vmem>>, vector<1x32x160xbf16>
    %288 = vector.shape_cast %287 : vector<1x32x160xbf16> to vector<32x160xbf16>
    %c0_341 = arith.constant 0 : index
    %c4_342 = arith.constant 4 : index
    %289 = vector.load %arg15[%c0_341, %c4_342] : memref<160x324xbf16, #tpu.memory_space<vmem>>, vector<160x320xbf16>
    %cst_343 = arith.constant dense<0.000000e+00> : vector<32x320xf32>
    %290 = tpu.matmul %288, %289, %cst_343 {dimension_numbers = #tpu.dot_dimension_numbers<[1], [0], [0], [1], [0, 0, 1, 1], [], []>} : vector<32x160xbf16>, vector<160x320xbf16>, vector<32x320xf32> -> vector<32x320xf32>
    %291 = arith.addf %286, %290 : vector<32x320xf32>
    %c0_344 = arith.constant 0 : index
    %c0_345 = arith.constant 0 : index
    %292 = vector.load %arg6[%c0_344, %c0_345] : memref<32x1xf32, #tpu.memory_space<vmem>>, vector<32x1xf32>
    %293 = vector.broadcast %292 : vector<32x1xf32> to vector<32x320xf32>
    %294 = arith.addf %291, %293 : vector<32x320xf32>
    %cst_346 = arith.constant 0.000000e+00 : f32
    %295 = vector.broadcast %cst_346 : f32 to vector<32x320xf32>
    %296 = arith.cmpf oge, %294, %295 : vector<32x320xf32>
    %cst_347 = arith.constant 2.000000e-01 : f32
    %297 = vector.broadcast %cst_347 : f32 to vector<32x320xf32>
    %298 = arith.mulf %297, %294 : vector<32x320xf32>
    %299 = arith.select %296, %294, %298 : vector<32x320xi1>, vector<32x320xf32>
    %cst_348 = arith.constant 0.000000e+00 : f32
    %300 = vector.broadcast %cst_348 : f32 to vector<32x320xf32>
    %301 = arith.select %8, %299, %300 : vector<32x320xi1>, vector<32x320xf32>
    %302 = arith.truncf %301 : vector<32x320xf32> to vector<32x320xbf16>
    %c0_349 = arith.constant 0 : index
    %c42_350 = arith.constant 42 : index
    %303 = vector.load %arg14[%c0_349, %c42_350] : memref<32x404xbf16, #tpu.memory_space<vmem>>, vector<32x320xbf16>
    tpu.vector_store %arg14[%c0_349, %c42_350], %302 {strides = array<i32>} : memref<32x404xbf16, #tpu.memory_space<vmem>>, vector<32x320xbf16>,
    %c0_351 = arith.constant 0 : index
    %c0_352 = arith.constant 0 : index
    %304 = vector.load %arg14[%c0_351, %c0_352] : memref<32x404xbf16, #tpu.memory_space<vmem>>, vector<32x324xbf16>
    %c0_353 = arith.constant 0 : index
    %c0_354 = arith.constant 0 : index
    %305 = vector.load %arg15[%c0_353, %c0_354] : memref<160x324xbf16, #tpu.memory_space<vmem>>, vector<32x324xbf16>
    tpu.vector_store %arg15[%c0_353, %c0_354], %304 {strides = array<i32>} : memref<160x324xbf16, #tpu.memory_space<vmem>>, vector<32x324xbf16>,
    %c0_355 = arith.constant 0 : index
    %c20_356 = arith.constant 20 : index
    %306 = vector.load %arg14[%c0_355, %c20_356] : memref<32x404xbf16, #tpu.memory_space<vmem>>, vector<32x324xbf16>
    %c32_357 = arith.constant 32 : index
    %c0_358 = arith.constant 0 : index
    %307 = vector.load %arg15[%c32_357, %c0_358] : memref<160x324xbf16, #tpu.memory_space<vmem>>, vector<32x324xbf16>
    tpu.vector_store %arg15[%c32_357, %c0_358], %306 {strides = array<i32>} : memref<160x324xbf16, #tpu.memory_space<vmem>>, vector<32x324xbf16>,
    %c0_359 = arith.constant 0 : index
    %c40_360 = arith.constant 40 : index
    %308 = vector.load %arg14[%c0_359, %c40_360] : memref<32x404xbf16, #tpu.memory_space<vmem>>, vector<32x324xbf16>
    %c64_361 = arith.constant 64 : index
    %c0_362 = arith.constant 0 : index
    %309 = vector.load %arg15[%c64_361, %c0_362] : memref<160x324xbf16, #tpu.memory_space<vmem>>, vector<32x324xbf16>
    tpu.vector_store %arg15[%c64_361, %c0_362], %308 {strides = array<i32>} : memref<160x324xbf16, #tpu.memory_space<vmem>>, vector<32x324xbf16>,
    %c0_363 = arith.constant 0 : index
    %c60_364 = arith.constant 60 : index
    %310 = vector.load %arg14[%c0_363, %c60_364] : memref<32x404xbf16, #tpu.memory_space<vmem>>, vector<32x324xbf16>
    %c96_365 = arith.constant 96 : index
    %c0_366 = arith.constant 0 : index
    %311 = vector.load %arg15[%c96_365, %c0_366] : memref<160x324xbf16, #tpu.memory_space<vmem>>, vector<32x324xbf16>
    tpu.vector_store %arg15[%c96_365, %c0_366], %310 {strides = array<i32>} : memref<160x324xbf16, #tpu.memory_space<vmem>>, vector<32x324xbf16>,
    %c0_367 = arith.constant 0 : index
    %c80_368 = arith.constant 80 : index
    %312 = vector.load %arg14[%c0_367, %c80_368] : memref<32x404xbf16, #tpu.memory_space<vmem>>, vector<32x324xbf16>
    %c128_369 = arith.constant 128 : index
    %c0_370 = arith.constant 0 : index
    %313 = vector.load %arg15[%c128_369, %c0_370] : memref<160x324xbf16, #tpu.memory_space<vmem>>, vector<32x324xbf16>
    tpu.vector_store %arg15[%c128_369, %c0_370], %312 {strides = array<i32>} : memref<160x324xbf16, #tpu.memory_space<vmem>>, vector<32x324xbf16>,
    %c0_371 = arith.constant 0 : index
    %c0_372 = arith.constant 0 : index
    %c0_373 = arith.constant 0 : index
    %314 = vector.load %arg7[%c0_371, %c0_372, %c0_373] : memref<5x32x160xbf16, #tpu.memory_space<vmem>>, vector<1x32x160xbf16>
    %315 = vector.shape_cast %314 : vector<1x32x160xbf16> to vector<32x160xbf16>
    %c0_374 = arith.constant 0 : index
    %c0_375 = arith.constant 0 : index
    %316 = vector.load %arg15[%c0_374, %c0_375] : memref<160x324xbf16, #tpu.memory_space<vmem>>, vector<160x320xbf16>
    %cst_376 = arith.constant dense<0.000000e+00> : vector<32x320xf32>
    %317 = tpu.matmul %315, %316, %cst_376 {dimension_numbers = #tpu.dot_dimension_numbers<[1], [0], [0], [1], [0, 0, 1, 1], [], []>} : vector<32x160xbf16>, vector<160x320xbf16>, vector<32x320xf32> -> vector<32x320xf32>
    %c1_377 = arith.constant 1 : index
    %c0_378 = arith.constant 0 : index
    %c0_379 = arith.constant 0 : index
    %318 = vector.load %arg7[%c1_377, %c0_378, %c0_379] : memref<5x32x160xbf16, #tpu.memory_space<vmem>>, vector<1x32x160xbf16>
    %319 = vector.shape_cast %318 : vector<1x32x160xbf16> to vector<32x160xbf16>
    %c0_380 = arith.constant 0 : index
    %c1_381 = arith.constant 1 : index
    %320 = vector.load %arg15[%c0_380, %c1_381] : memref<160x324xbf16, #tpu.memory_space<vmem>>, vector<160x320xbf16>
    %cst_382 = arith.constant dense<0.000000e+00> : vector<32x320xf32>
    %321 = tpu.matmul %319, %320, %cst_382 {dimension_numbers = #tpu.dot_dimension_numbers<[1], [0], [0], [1], [0, 0, 1, 1], [], []>} : vector<32x160xbf16>, vector<160x320xbf16>, vector<32x320xf32> -> vector<32x320xf32>
    %322 = arith.addf %317, %321 : vector<32x320xf32>
    %c2_383 = arith.constant 2 : index
    %c0_384 = arith.constant 0 : index
    %c0_385 = arith.constant 0 : index
    %323 = vector.load %arg7[%c2_383, %c0_384, %c0_385] : memref<5x32x160xbf16, #tpu.memory_space<vmem>>, vector<1x32x160xbf16>
    %324 = vector.shape_cast %323 : vector<1x32x160xbf16> to vector<32x160xbf16>
    %c0_386 = arith.constant 0 : index
    %c2_387 = arith.constant 2 : index
    %325 = vector.load %arg15[%c0_386, %c2_387] : memref<160x324xbf16, #tpu.memory_space<vmem>>, vector<160x320xbf16>
    %cst_388 = arith.constant dense<0.000000e+00> : vector<32x320xf32>
    %326 = tpu.matmul %324, %325, %cst_388 {dimension_numbers = #tpu.dot_dimension_numbers<[1], [0], [0], [1], [0, 0, 1, 1], [], []>} : vector<32x160xbf16>, vector<160x320xbf16>, vector<32x320xf32> -> vector<32x320xf32>
    %327 = arith.addf %322, %326 : vector<32x320xf32>
    %c3_389 = arith.constant 3 : index
    %c0_390 = arith.constant 0 : index
    %c0_391 = arith.constant 0 : index
    %328 = vector.load %arg7[%c3_389, %c0_390, %c0_391] : memref<5x32x160xbf16, #tpu.memory_space<vmem>>, vector<1x32x160xbf16>
    %329 = vector.shape_cast %328 : vector<1x32x160xbf16> to vector<32x160xbf16>
    %c0_392 = arith.constant 0 : index
    %c3_393 = arith.constant 3 : index
    %330 = vector.load %arg15[%c0_392, %c3_393] : memref<160x324xbf16, #tpu.memory_space<vmem>>, vector<160x320xbf16>
    %cst_394 = arith.constant dense<0.000000e+00> : vector<32x320xf32>
    %331 = tpu.matmul %329, %330, %cst_394 {dimension_numbers = #tpu.dot_dimension_numbers<[1], [0], [0], [1], [0, 0, 1, 1], [], []>} : vector<32x160xbf16>, vector<160x320xbf16>, vector<32x320xf32> -> vector<32x320xf32>
    %332 = arith.addf %327, %331 : vector<32x320xf32>
    %c4_395 = arith.constant 4 : index
    %c0_396 = arith.constant 0 : index
    %c0_397 = arith.constant 0 : index
    %333 = vector.load %arg7[%c4_395, %c0_396, %c0_397] : memref<5x32x160xbf16, #tpu.memory_space<vmem>>, vector<1x32x160xbf16>
    %334 = vector.shape_cast %333 : vector<1x32x160xbf16> to vector<32x160xbf16>
    %c0_398 = arith.constant 0 : index
    %c4_399 = arith.constant 4 : index
    %335 = vector.load %arg15[%c0_398, %c4_399] : memref<160x324xbf16, #tpu.memory_space<vmem>>, vector<160x320xbf16>
    %cst_400 = arith.constant dense<0.000000e+00> : vector<32x320xf32>
    %336 = tpu.matmul %334, %335, %cst_400 {dimension_numbers = #tpu.dot_dimension_numbers<[1], [0], [0], [1], [0, 0, 1, 1], [], []>} : vector<32x160xbf16>, vector<160x320xbf16>, vector<32x320xf32> -> vector<32x320xf32>
    %337 = arith.addf %332, %336 : vector<32x320xf32>
    %c0_401 = arith.constant 0 : index
    %c0_402 = arith.constant 0 : index
    %338 = vector.load %arg8[%c0_401, %c0_402] : memref<32x1xf32, #tpu.memory_space<vmem>>, vector<32x1xf32>
    %339 = vector.broadcast %338 : vector<32x1xf32> to vector<32x320xf32>
    %340 = arith.addf %337, %339 : vector<32x320xf32>
    %cst_403 = arith.constant 0.000000e+00 : f32
    %341 = vector.broadcast %cst_403 : f32 to vector<32x320xf32>
    %342 = arith.cmpf oge, %340, %341 : vector<32x320xf32>
    %cst_404 = arith.constant 2.000000e-01 : f32
    %343 = vector.broadcast %cst_404 : f32 to vector<32x320xf32>
    %344 = arith.mulf %343, %340 : vector<32x320xf32>
    %345 = arith.select %342, %340, %344 : vector<32x320xi1>, vector<32x320xf32>
    %cst_405 = arith.constant 0.000000e+00 : f32
    %346 = vector.broadcast %cst_405 : f32 to vector<32x320xf32>
    %347 = arith.select %8, %345, %346 : vector<32x320xi1>, vector<32x320xf32>
    %348 = arith.truncf %347 : vector<32x320xf32> to vector<32x320xbf16>
    %c0_406 = arith.constant 0 : index
    %c42_407 = arith.constant 42 : index
    %349 = vector.load %arg14[%c0_406, %c42_407] : memref<32x404xbf16, #tpu.memory_space<vmem>>, vector<32x320xbf16>
    tpu.vector_store %arg14[%c0_406, %c42_407], %348 {strides = array<i32>} : memref<32x404xbf16, #tpu.memory_space<vmem>>, vector<32x320xbf16>,
    %c0_408 = arith.constant 0 : index
    %c0_409 = arith.constant 0 : index
    %350 = vector.load %arg14[%c0_408, %c0_409] : memref<32x404xbf16, #tpu.memory_space<vmem>>, vector<32x324xbf16>
    %c0_410 = arith.constant 0 : index
    %c0_411 = arith.constant 0 : index
    %351 = vector.load %arg15[%c0_410, %c0_411] : memref<160x324xbf16, #tpu.memory_space<vmem>>, vector<32x324xbf16>
    tpu.vector_store %arg15[%c0_410, %c0_411], %350 {strides = array<i32>} : memref<160x324xbf16, #tpu.memory_space<vmem>>, vector<32x324xbf16>,
    %c0_412 = arith.constant 0 : index
    %c20_413 = arith.constant 20 : index
    %352 = vector.load %arg14[%c0_412, %c20_413] : memref<32x404xbf16, #tpu.memory_space<vmem>>, vector<32x324xbf16>
    %c32_414 = arith.constant 32 : index
    %c0_415 = arith.constant 0 : index
    %353 = vector.load %arg15[%c32_414, %c0_415] : memref<160x324xbf16, #tpu.memory_space<vmem>>, vector<32x324xbf16>
    tpu.vector_store %arg15[%c32_414, %c0_415], %352 {strides = array<i32>} : memref<160x324xbf16, #tpu.memory_space<vmem>>, vector<32x324xbf16>,
    %c0_416 = arith.constant 0 : index
    %c40_417 = arith.constant 40 : index
    %354 = vector.load %arg14[%c0_416, %c40_417] : memref<32x404xbf16, #tpu.memory_space<vmem>>, vector<32x324xbf16>
    %c64_418 = arith.constant 64 : index
    %c0_419 = arith.constant 0 : index
    %355 = vector.load %arg15[%c64_418, %c0_419] : memref<160x324xbf16, #tpu.memory_space<vmem>>, vector<32x324xbf16>
    tpu.vector_store %arg15[%c64_418, %c0_419], %354 {strides = array<i32>} : memref<160x324xbf16, #tpu.memory_space<vmem>>, vector<32x324xbf16>,
    %c0_420 = arith.constant 0 : index
    %c60_421 = arith.constant 60 : index
    %356 = vector.load %arg14[%c0_420, %c60_421] : memref<32x404xbf16, #tpu.memory_space<vmem>>, vector<32x324xbf16>
    %c96_422 = arith.constant 96 : index
    %c0_423 = arith.constant 0 : index
    %357 = vector.load %arg15[%c96_422, %c0_423] : memref<160x324xbf16, #tpu.memory_space<vmem>>, vector<32x324xbf16>
    tpu.vector_store %arg15[%c96_422, %c0_423], %356 {strides = array<i32>} : memref<160x324xbf16, #tpu.memory_space<vmem>>, vector<32x324xbf16>,
    %c0_424 = arith.constant 0 : index
    %c80_425 = arith.constant 80 : index
    %358 = vector.load %arg14[%c0_424, %c80_425] : memref<32x404xbf16, #tpu.memory_space<vmem>>, vector<32x324xbf16>
    %c128_426 = arith.constant 128 : index
    %c0_427 = arith.constant 0 : index
    %359 = vector.load %arg15[%c128_426, %c0_427] : memref<160x324xbf16, #tpu.memory_space<vmem>>, vector<32x324xbf16>
    tpu.vector_store %arg15[%c128_426, %c0_427], %358 {strides = array<i32>} : memref<160x324xbf16, #tpu.memory_space<vmem>>, vector<32x324xbf16>,
    %c0_428 = arith.constant 0 : index
    %c0_429 = arith.constant 0 : index
    %c0_430 = arith.constant 0 : index
    %360 = vector.load %arg9[%c0_428, %c0_429, %c0_430] : memref<5x32x160xbf16, #tpu.memory_space<vmem>>, vector<1x32x160xbf16>
    %361 = vector.shape_cast %360 : vector<1x32x160xbf16> to vector<32x160xbf16>
    %c0_431 = arith.constant 0 : index
    %c0_432 = arith.constant 0 : index
    %362 = vector.load %arg15[%c0_431, %c0_432] : memref<160x324xbf16, #tpu.memory_space<vmem>>, vector<160x320xbf16>
    %cst_433 = arith.constant dense<0.000000e+00> : vector<32x320xf32>
    %363 = tpu.matmul %361, %362, %cst_433 {dimension_numbers = #tpu.dot_dimension_numbers<[1], [0], [0], [1], [0, 0, 1, 1], [], []>} : vector<32x160xbf16>, vector<160x320xbf16>, vector<32x320xf32> -> vector<32x320xf32>
    %c1_434 = arith.constant 1 : index
    %c0_435 = arith.constant 0 : index
    %c0_436 = arith.constant 0 : index
    %364 = vector.load %arg9[%c1_434, %c0_435, %c0_436] : memref<5x32x160xbf16, #tpu.memory_space<vmem>>, vector<1x32x160xbf16>
    %365 = vector.shape_cast %364 : vector<1x32x160xbf16> to vector<32x160xbf16>
    %c0_437 = arith.constant 0 : index
    %c1_438 = arith.constant 1 : index
    %366 = vector.load %arg15[%c0_437, %c1_438] : memref<160x324xbf16, #tpu.memory_space<vmem>>, vector<160x320xbf16>
    %cst_439 = arith.constant dense<0.000000e+00> : vector<32x320xf32>
    %367 = tpu.matmul %365, %366, %cst_439 {dimension_numbers = #tpu.dot_dimension_numbers<[1], [0], [0], [1], [0, 0, 1, 1], [], []>} : vector<32x160xbf16>, vector<160x320xbf16>, vector<32x320xf32> -> vector<32x320xf32>
    %368 = arith.addf %363, %367 : vector<32x320xf32>
    %c2_440 = arith.constant 2 : index
    %c0_441 = arith.constant 0 : index
    %c0_442 = arith.constant 0 : index
    %369 = vector.load %arg9[%c2_440, %c0_441, %c0_442] : memref<5x32x160xbf16, #tpu.memory_space<vmem>>, vector<1x32x160xbf16>
    %370 = vector.shape_cast %369 : vector<1x32x160xbf16> to vector<32x160xbf16>
    %c0_443 = arith.constant 0 : index
    %c2_444 = arith.constant 2 : index
    %371 = vector.load %arg15[%c0_443, %c2_444] : memref<160x324xbf16, #tpu.memory_space<vmem>>, vector<160x320xbf16>
    %cst_445 = arith.constant dense<0.000000e+00> : vector<32x320xf32>
    %372 = tpu.matmul %370, %371, %cst_445 {dimension_numbers = #tpu.dot_dimension_numbers<[1], [0], [0], [1], [0, 0, 1, 1], [], []>} : vector<32x160xbf16>, vector<160x320xbf16>, vector<32x320xf32> -> vector<32x320xf32>
    %373 = arith.addf %368, %372 : vector<32x320xf32>
    %c3_446 = arith.constant 3 : index
    %c0_447 = arith.constant 0 : index
    %c0_448 = arith.constant 0 : index
    %374 = vector.load %arg9[%c3_446, %c0_447, %c0_448] : memref<5x32x160xbf16, #tpu.memory_space<vmem>>, vector<1x32x160xbf16>
    %375 = vector.shape_cast %374 : vector<1x32x160xbf16> to vector<32x160xbf16>
    %c0_449 = arith.constant 0 : index
    %c3_450 = arith.constant 3 : index
    %376 = vector.load %arg15[%c0_449, %c3_450] : memref<160x324xbf16, #tpu.memory_space<vmem>>, vector<160x320xbf16>
    %cst_451 = arith.constant dense<0.000000e+00> : vector<32x320xf32>
    %377 = tpu.matmul %375, %376, %cst_451 {dimension_numbers = #tpu.dot_dimension_numbers<[1], [0], [0], [1], [0, 0, 1, 1], [], []>} : vector<32x160xbf16>, vector<160x320xbf16>, vector<32x320xf32> -> vector<32x320xf32>
    %378 = arith.addf %373, %377 : vector<32x320xf32>
    %c4_452 = arith.constant 4 : index
    %c0_453 = arith.constant 0 : index
    %c0_454 = arith.constant 0 : index
    %379 = vector.load %arg9[%c4_452, %c0_453, %c0_454] : memref<5x32x160xbf16, #tpu.memory_space<vmem>>, vector<1x32x160xbf16>
    %380 = vector.shape_cast %379 : vector<1x32x160xbf16> to vector<32x160xbf16>
    %c0_455 = arith.constant 0 : index
    %c4_456 = arith.constant 4 : index
    %381 = vector.load %arg15[%c0_455, %c4_456] : memref<160x324xbf16, #tpu.memory_space<vmem>>, vector<160x320xbf16>
    %cst_457 = arith.constant dense<0.000000e+00> : vector<32x320xf32>
    %382 = tpu.matmul %380, %381, %cst_457 {dimension_numbers = #tpu.dot_dimension_numbers<[1], [0], [0], [1], [0, 0, 1, 1], [], []>} : vector<32x160xbf16>, vector<160x320xbf16>, vector<32x320xf32> -> vector<32x320xf32>
    %383 = arith.addf %378, %382 : vector<32x320xf32>
    %c0_458 = arith.constant 0 : index
    %c0_459 = arith.constant 0 : index
    %384 = vector.load %arg10[%c0_458, %c0_459] : memref<32x1xf32, #tpu.memory_space<vmem>>, vector<32x1xf32>
    %385 = vector.broadcast %384 : vector<32x1xf32> to vector<32x320xf32>
    %386 = arith.addf %383, %385 : vector<32x320xf32>
    %cst_460 = arith.constant 0.000000e+00 : f32
    %387 = vector.broadcast %cst_460 : f32 to vector<32x320xf32>
    %388 = arith.cmpf oge, %386, %387 : vector<32x320xf32>
    %cst_461 = arith.constant 2.000000e-01 : f32
    %389 = vector.broadcast %cst_461 : f32 to vector<32x320xf32>
    %390 = arith.mulf %389, %386 : vector<32x320xf32>
    %391 = arith.select %388, %386, %390 : vector<32x320xi1>, vector<32x320xf32>
    %c0_462 = arith.constant 0 : index
    %c0_463 = arith.constant 0 : index
    %392 = vector.load %arg11[%c0_462, %c0_463] : memref<32x1xf32, #tpu.memory_space<vmem>>, vector<32x1xf32>
    %393 = vector.broadcast %392 : vector<32x1xf32> to vector<32x320xf32>
    %394 = arith.mulf %391, %393 : vector<32x320xf32>
    %cst_464 = arith.constant dense<0.000000e+00> : vector<320xf32>
    %395 = vector.multi_reduction <add>, %394, %cst_464 [0] : vector<32x320xf32> to vector<320xf32>
    %396 = vector.shape_cast %395 : vector<320xf32> to vector<1x320xf32>
    %c0_465 = arith.constant 0 : index
    %c0_466 = arith.constant 0 : index
    %397 = vector.load %arg12[%c0_465, %c0_466] : memref<1x1xf32, #tpu.memory_space<vmem>>, vector<1x1xf32>
    %398 = vector.broadcast %397 : vector<1x1xf32> to vector<1x320xf32>
    %399 = arith.addf %396, %398 : vector<1x320xf32>
    %cst_467 = arith.constant 0.000000e+00 : f32
    %400 = vector.broadcast %cst_467 : f32 to vector<1x320xf32>
    %401 = arith.maximumf %399, %400 : vector<1x320xf32>
    %c1_468 = arith.constant 1 : index
    %c0_469 = arith.constant 0 : index
    %c0_470 = arith.constant 0 : index
    %402 = vector.load %arg13[%c1_468, %c0_469, %c0_470] : memref<2x1x320xf32, #tpu.memory_space<vmem>>, vector<1x1x320xf32>
    %403 = vector.shape_cast %402 : vector<1x1x320xf32> to vector<1x320xf32>
    %404 = vector.shape_cast %401 : vector<1x320xf32> to vector<1x1x320xf32>
    tpu.vector_store %arg13[%c1_468, %c0_469, %c0_470], %404 {strides = array<i32>} : memref<2x1x320xf32, #tpu.memory_space<vmem>>, vector<1x1x320xf32>,
    return
  }
  func.func @transform_0(%arg0: i32) -> (i32, i32, i32) {
    %c0_i32 = arith.constant 0 : i32
    %c0_i32_0 = arith.constant 0 : i32
    %c0_i32_1 = arith.constant 0 : i32
    return %arg0, %c0_i32, %c0_i32_0 : i32, i32, i32
  }
  func.func @transform_1(%arg0: i32) -> (i32, i32) {
    %c0_i32 = arith.constant 0 : i32
    %c0_i32_0 = arith.constant 0 : i32
    %c0_i32_1 = arith.constant 0 : i32
    return %c0_i32, %c0_i32_0 : i32, i32
  }
  func.func @transform_2(%arg0: i32) -> (i32, i32, i32) {
    %c0_i32 = arith.constant 0 : i32
    %c0_i32_0 = arith.constant 0 : i32
    %c0_i32_1 = arith.constant 0 : i32
    %c0_i32_2 = arith.constant 0 : i32
    return %c0_i32, %c0_i32_0, %c0_i32_1 : i32, i32, i32
  }
  func.func @transform_3(%arg0: i32) -> (i32, i32) {
    %c0_i32 = arith.constant 0 : i32
    %c0_i32_0 = arith.constant 0 : i32
    %c0_i32_1 = arith.constant 0 : i32
    return %c0_i32, %c0_i32_0 : i32, i32
  }
  func.func @transform_4(%arg0: i32) -> (i32, i32, i32) {
    %c0_i32 = arith.constant 0 : i32
    %c0_i32_0 = arith.constant 0 : i32
    %c0_i32_1 = arith.constant 0 : i32
    %c0_i32_2 = arith.constant 0 : i32
    return %c0_i32, %c0_i32_0, %c0_i32_1 : i32, i32, i32
  }
  func.func @transform_5(%arg0: i32) -> (i32, i32) {
    %c0_i32 = arith.constant 0 : i32
    %c0_i32_0 = arith.constant 0 : i32
    %c0_i32_1 = arith.constant 0 : i32
    return %c0_i32, %c0_i32_0 : i32, i32
  }
  func.func @transform_6(%arg0: i32) -> (i32, i32, i32) {
    %c0_i32 = arith.constant 0 : i32
    %c0_i32_0 = arith.constant 0 : i32
    %c0_i32_1 = arith.constant 0 : i32
    %c0_i32_2 = arith.constant 0 : i32
    return %c0_i32, %c0_i32_0, %c0_i32_1 : i32, i32, i32
  }
  func.func @transform_7(%arg0: i32) -> (i32, i32) {
    %c0_i32 = arith.constant 0 : i32
    %c0_i32_0 = arith.constant 0 : i32
    %c0_i32_1 = arith.constant 0 : i32
    return %c0_i32, %c0_i32_0 : i32, i32
  }
  func.func @transform_8(%arg0: i32) -> (i32, i32, i32) {
    %c0_i32 = arith.constant 0 : i32
    %c0_i32_0 = arith.constant 0 : i32
    %c0_i32_1 = arith.constant 0 : i32
    %c0_i32_2 = arith.constant 0 : i32
    return %c0_i32, %c0_i32_0, %c0_i32_1 : i32, i32, i32
  }
  func.func @transform_9(%arg0: i32) -> (i32, i32) {
    %c0_i32 = arith.constant 0 : i32
    %c0_i32_0 = arith.constant 0 : i32
    %c0_i32_1 = arith.constant 0 : i32
    return %c0_i32, %c0_i32_0 : i32, i32
  }
  func.func @transform_10(%arg0: i32) -> (i32, i32) {
    %c0_i32 = arith.constant 0 : i32
    %c0_i32_0 = arith.constant 0 : i32
    %c0_i32_1 = arith.constant 0 : i32
    return %c0_i32, %c0_i32_0 : i32, i32
  }
  func.func @transform_11(%arg0: i32) -> (i32, i32) {
    %c0_i32 = arith.constant 0 : i32
    %c0_i32_0 = arith.constant 0 : i32
    %c0_i32_1 = arith.constant 0 : i32
    return %c0_i32, %c0_i32_0 : i32, i32
  }
  func.func @transform_12(%arg0: i32) -> (i32, i32, i32) {
    %c0_i32 = arith.constant 0 : i32
    %c0_i32_0 = arith.constant 0 : i32
    %c0_i32_1 = arith.constant 0 : i32
    return %arg0, %c0_i32, %c0_i32_0 : i32, i32, i32
  }
}

</mosaic_0001>

<bundles_post_ra>
// kernel: tpu_custom_call.1
= control target key start
LH: loop header
LB: loop body
LE: loop exit
PB: predicated region body
PF: predicated region fallthrough
CT: control target
= control target key end

     0   :  { %s18700_s0 = inlined_call_operand.vmem [shape: f32[2,1,404], index: 0, kind: input, shape index: {}]   ;;  %s18701_s1 = inlined_call_operand.vmem [shape: f32[1,320], index: 1, kind: input, shape index: {}]   ;;  %s18702_s2 = inlined_call_operand.vmem [shape: f32[5,32,5], index: 2, kind: input, shape index: {}]   ;;  %s18703_s3 = inlined_call_operand.vmem [shape: f32[32,1], index: 3, kind: input, shape index: {}]   ;;  %s18704_s4 = inlined_call_operand.vmem [shape: bf16[5,32,160], index: 4, kind: input, shape index: {}]   ;;  %s18705_s5 = inlined_call_operand.vmem [shape: f32[32,1], index: 5, kind: input, shape index: {}]   ;;  %s18706_s6 = inlined_call_operand.vmem [shape: bf16[5,32,160], index: 6, kind: input, shape index: {}]   ;;  %s18707_s7 = inlined_call_operand.vmem [shape: f32[32,1], index: 7, kind: input, shape index: {}]   ;;  %s18708_s8 = inlined_call_operand.hbm [shape: bf16[5,32,160], index: 8, kind: input, shape index: {}]   ;;  %s18709_s9 = inlined_call_operand.vmem [shape: f32[32,1], index: 9, kind: input, shape index: {}]   ;;  %s18710_s10 = inlined_call_operand.vmem [shape: f32[32,1], index: 10, kind: input, shape index: {}]   ;;  %s18711_s11 = inlined_call_operand.<no memory space> [shape: f32[1,1], index: 11, kind: input, shape index: {}]   ;;  %s18712_s12 = inlined_call_operand.hbm [shape: f32[2,1,320], index: 12, kind: output, shape index: {}]  }
   0x1   :  { %v17_v0 = vstv %s18711_s11 }
   0x2   :  { %18 = vst [vmem:[#allocation5] sm:$0x1] %v17_v0 }
   0x3   :  { %19 = vsyncpa [#allocation7], 0 }
   0x4   :  { %20 = vsyncpa [#allocation8], 0  ;;  %s12775_s23 = smov [#allocation6]   ;;  %s12727_s27 = scalar_lea.hbm %s18708_s8, 2560 }
   0x5   :  { %s42_s24 = sshll.u32 %s12775_s23, 4  ;;  %p12728_p0 = scmp.ne.s32.totalorder %s18708_s8, %s12727_s27  ;;  %s43_s24 = int_to_ptr.vmem [resolvable:$true] %s42_s24 }
   0x6   :  { %p12731_p1 = scmp.lt.u32.totalorder %s12727_s27, %s18708_s8 }
   0x8   :  { %p12733_p2 = pnand %p12731_p1, %p12728_p0 }
   0xa   :  { %12736 = shalt.err (!%p12733_p2)
}
   0xb   :  { %s12737_s11 = scalar_lea.vmem %s43_s24, 2560  ;;  %p12742_p4 = scmp.lt.s32.totalorder %s43_s24, %s43_s24 }
   0xc   :  { %p12738_p3 = scmp.ne.s32.totalorder %s43_s24, %s12737_s11  ;;  %p12743_p5 = scmp.lt.s32.totalorder %s12737_s11, %s12737_s11 }
   0xe   :  { %p12744_p6 = por %p12743_p5, %p12742_p4 }
  0x10   :  { %p12745_p7 = pnand %p12744_p6, %p12738_p3 }
  0x12   :  { %12748 = shalt.err (!%p12745_p7)
}
  0x13   :  { %s12776_s14 = smov 128   ;;  %s12777_s15 = smov 8  }
  0x14   :  { %48 = dma.hbm_to_vmem [thread:$0]  %s18708_s8, 2560, %s43_s24, [#allocation7], %s12776_s14, %s12776_s14, %s12777_s15  }
  0x15   :  { %12771 = dma.done.wait [#allocation7], 2560  }
  0x16   :  { %12772 = vsyncadd [#allocation7], 4294964736  ;;  %v18722_v1 = vlaneseq  ;;  %v117_v2 = vld [vmem:[%s18700_s0] sm:$0x7]  ;;  %s12778_s22 = smov 68   ;;  %s12779_s23 = smov 108  }
  0x17   :  { %v95_v3 = vld [vmem:[%s18700_s0] sm:$0x7]  ;;  %119 = vrot.lane.b32.xlu1 %v117_v2, %s12778_s22  ;;  %s12780_s29 = smov 48   ;;  %s12781_s30 = smov 88   ;;  %vm122_vm1 = vcmask 556032   ;;  %vm100_vm2 = vcmask 883712  }
  0x18   :  { %97 = vrot.lane.b32.xlu0 %v95_v3, %s12779_s23  ;;  %v128_v4 = vld [vmem:[%s18700_s0] sm:$0xf]  ;;  %vm12887_vm0 = vcmp.lt.s32.totalorder %v18722_v1, 324  ;;  %vm133_vm3 = vcmask 392192   ;;  %vm18721_vm4 = vcmask 719872   ;;  %vm18713_vm5 = vcmask 39936  }
  0x19   :  { %v106_v5 = vld [vmem:[%s18700_s0] sm:$0x7]  ;;  %v18723_v21 = vmov 0.0   ;;  %vm18714_vm6 = vcmask 1044480   ;;  %v12921_v24 = vld [vmem:[%s18702_s2 + $0x8] sm:$0xff]  ;;  %s12783_s16 = smov 127  }
  0x1a   :  { %v88_v7 = vld [vmem:[%s18700_s0] sm:$0x7]  ;;  %247 = vmatprep.mubr.f32.mxu0 %v18723_v21  ;;  %v12928_v25 = vld [vmem:[%s18702_s2 + $0x10] sm:$0xff]  ;;  %v12939_v26 = vld [vmem:[%s18702_s2 + $0x18] sm:$0xff]  ;;  %s12784_s21 = smov 126   ;;  %s12785_s8 = smov 125  }
  0x1b   :  { %93 = vst.msk [vmem:[#allocation4] ss:$8 sm:$0x7] %vm12887_vm0, %v88_v7  ;;  %130 = vrot.lane.b32.xlu1 %v128_v4, %s12780_s29  ;;  %v12907_v16 = vld [vmem:[%s18702_s2] sm:$0xff]  ;;  %s12786_s24 = smov 124   ;;  %v1204_v29 = vld [vmem:[%s18703_s3 + $0x8] sm:$0xff] }
  0x1c   :  { %108 = vrot.lane.b32.xlu0 %v106_v5, %s12781_s30  ;;  %12171 = vmatprep.mubr.msk.f32.mxu1 %vm18713_vm5, %v12907_v16  ;;  %v12947_v28 = vld [vmem:[%s18702_s2 + $0x40] sm:$0xff]  ;;  %v18726_v31 = vmov 0   ;;  %v1206_v32 = vld [vmem:[%s18703_s3 + $0x18] sm:$0xff]  ;;  %v1205_v33 = vld [vmem:[%s18703_s3 + $0x10] sm:$0xff]  ;;  %vm18720_vm7 = vcmask 1039360   ;;  %vm18718_vm8 = vcmask 1031168  }
  0x1d   :  { %v1203_v30 = vld [vmem:[%s18703_s3] sm:$0xff]  ;;  %12547 = vset.pattern.permute.xlu1 %v18726_v31  ;;  %12546 = vset.pattern.permute.xlu0 %v18726_v31  ;;  %v11661_v43 = vld [vmem:[%s18702_s2 + $0x28] sm:$0xff]  ;;  %v13005_v45 = vld [vmem:[%s18702_s2 + $0x50] sm:$0xff]  ;;  %vm18717_vm9 = vcmask 1022976   ;;  %vm18716_vm10 = vcmask 1014784   ;;  %v13125_v7 = vshrl.u32 %v18722_v1, 7 }
  0x1e   :  { %v11660_v39 = vld [vmem:[%s18702_s2 + $0x20] sm:$0xff]  ;;  %v12997_v44 = vld [vmem:[%s18702_s2 + $0x48] sm:$0xff]  ;;  %v11662_v48 = vld [vmem:[%s18702_s2 + $0x30] sm:$0xff]  ;;  %vm59_vm11 = vcmask 343040  }
  0x1f   :  { %v11689_v49 = vld [vmem:[%s18702_s2 + $0x58] sm:$0xff]  ;;  %v13024_v50 = vld [vmem:[%s18702_s2 + $0x60] sm:$0xff]  ;;  %v11702_v53 = vld [vmem:[%s18702_s2 + $0x68] sm:$0xff]  ;;  %18732 = vst [vmem:[#allocation12_spill] sm:$0xff] %v13125_v7 }
  0x20   :  { %v11663_v52 = vld [vmem:[%s18702_s2 + $0x38] sm:$0xff]  ;;  %v11703_v54 = vld [vmem:[%s18702_s2 + $0x70] sm:$0xff]  ;;  %v11716_v57 = vld [vmem:[%s18702_s2 + $0x80] sm:$0xff]  ;;  %60 = vst.msk [vmem:[#allocation2] sm:$0xff] %vm59_vm11, %v18726_v31 }
  0x21   :  { %v11704_v56 = vld [vmem:[%s18702_s2 + $0x78] sm:$0xff]  ;;  %v11717_v59 = vld [vmem:[%s18702_s2 + $0x88] sm:$0xff]  ;;  %v11718_v60 = vld [vmem:[%s18702_s2 + $0x90] sm:$0xff]  ;;  %61 = vst.msk [vmem:[#allocation2 + $0x20] sm:$0xff] %vm59_vm11, %v18726_v31 }
  0x22   :  { %v11719_v61 = vld [vmem:[%s18702_s2 + $0x98] sm:$0xff] }
  0x89   :  { %v120_v8 = vpop.permute.xlu1 %119 }
  0x8a   :  { %v98_v9 = vpop.permute.xlu0 %97  ;;  %v121_v10 = vrot.slane %v120_v8, 1 }
  0x8b   :  { %v99_v11 = vrot.slane %v98_v9, 1 }
  0x8c   :  { %v123_v12 = vsel %vm122_vm1, %v120_v8, %v121_v10 }
  0x8d   :  { %v101_v13 = vsel %vm100_vm2, %v98_v9, %v99_v11  ;;  %126 = vst.msk [vmem:[#allocation4 + $0x3] ss:$8 sm:$0x7] %vm12887_vm0, %v123_v12  ;;  %v131_v14 = vpop.permute.xlu1 %130  ;;  %v80_v9 = vsub.s32 2, %v13125_v7  ;;  %v13131_v11 = vld [vmem:[%s18701_s1] sm:$0x7] }
  0x8e   :  { %104 = vst.msk [vmem:[#allocation4 + $0x1] ss:$8 sm:$0x7] %vm12887_vm0, %v101_v13  ;;  %v109_v15 = vpop.permute.xlu0 %108  ;;  %v132_v17 = vrot.slane %v131_v14, 1  ;;  %s12788_s1 = smov 42  }
  0x8f   :  { %v110_v18 = vrot.slane %v109_v15, 1 }
  0x90   :  { %v134_v19 = vsel %vm133_vm3, %v131_v14, %v132_v17 }
  0x91   :  { %v112_v20 = vsel %vm18721_vm4, %v109_v15, %v110_v18  ;;  %137 = vst.msk [vmem:[#allocation4 + $0x4] ss:$8 sm:$0x7] %vm12887_vm0, %v134_v19 }
  0x92   :  { %115 = vst.msk [vmem:[#allocation4 + $0x2] ss:$8 sm:$0x7] %vm12887_vm0, %v112_v20 }
  0x99   :  { %v145_v22 = vld [vmem:[#allocation4 + $0x10] sm:$0x1f]  ;;  %v144_v23 = vld [vmem:[#allocation4 + $0x8] sm:$0x1f]  ;;  %v12942_v27 = vld [vmem:[#allocation4] sm:$0x1f] }
  0x9a   :  { %158 = vrot.lane.b32.xlu1 %v145_v22, %s12783_s16  ;;  %12169 = vmatprep.subr.msk.mxu1 %vm18714_vm6, %v145_v22 }
  0x9b   :  { %156 = vrot.lane.b32.xlu0 %v144_v23, %s12783_s16  ;;  %12170 = vmatpush3.msk.msra.mxu1 %vm18714_vm6, %v145_v22 }
  0x9c   :  { %12172 = vmatmul.mubr.msk.f32.vlgmr.msra.gmra.mrb[0].mxu1 %vm18713_vm5, %v12921_v24 }
  0x9d   :  { %12174 = vmatprep.mubr.msk.f32.mxu1 %vm18713_vm5, %v12928_v25 }
  0x9e   :  { %556 = vrot.lane.b32.xlu1 %v144_v23, %s12784_s21 }
  0x9f   :  { %154 = vrot.lane.b32.xlu0 %v12942_v27, %s12783_s16 }
  0xa0   :  { %12175 = vmatmul.mubr.msk.f32.gmra.mrb[2].mxu1 %vm18713_vm5, %v12939_v26 }
  0xa1   :  { %12179 = vmatprep.mubr.msk.f32.mxu1 %vm18713_vm5, %v12947_v28 }
  0xa2   :  { %554 = vrot.lane.b32.xlu1 %v12942_v27, %s12784_s21 }
  0xa3   :  { %558 = vrot.lane.b32.xlu0 %v145_v22, %s12784_s21 }
  0xa6   :  { %776 = vrot.lane.b32.xlu1 %v145_v22, %s12785_s8 }
  0xa7   :  { %774 = vrot.lane.b32.xlu0 %v144_v23, %s12785_s8 }
  0xaa   :  { %992 = vrot.lane.b32.xlu1 %v144_v23, %s12786_s24 }
  0xab   :  { %772 = vrot.lane.b32.xlu0 %v12942_v27, %s12785_s8 }
  0xae   :  { %990 = vrot.lane.b32.xlu1 %v12942_v27, %s12786_s24 }
  0xaf   :  { %994 = vrot.lane.b32.xlu0 %v145_v22, %s12786_s24 }
  0xb2   :  { %1214 = vperm.xlu1 %12547, %v1204_v29  }
  0xb3   :  { %1209 = vperm.xlu0 %12546, %v1203_v30  }
  0xb6   :  { %1219 = vperm.xlu1 %12547, %v1205_v33  }
  0xb7   :  { %1224 = vperm.xlu0 %12546, %v1206_v32  }
 0x10c   :  { %v159_v34 = vpop.permute.xlu1 %158 }
 0x10d   :  { %v157_v35 = vpop.permute.xlu0 %156 }
 0x10e   :  { %v162_v36 = vsel %vm18720_vm7, %v157_v35, %v159_v34 }
 0x10f   :  { %11664 = vmatprep.subr.msk.mxu0 %vm18714_vm6, %v162_v36 }
 0x110   :  { %v557_v37 = vpop.permute.xlu1 %556 }
 0x111   :  { %v155_v38 = vpop.permute.xlu0 %154 }
 0x112   :  { %v161_v40 = vsel %vm18720_vm7, %v155_v38, %v157_v35 }
 0x113   :  { %11665 = vmatpush1.msk.msra.mxu0 %vm18714_vm6, %v161_v40 }
 0x114   :  { %11666 = vmatmul.mubr.msk.f32.vlgmr.msra.gmra.mrb[0].mxu0 %vm18713_vm5, %v11660_v39  ;;  %12161 = vmatprep.subr.msk.mxu0 %vm18714_vm6, %v159_v34  ;;  %v555_v41 = vpop.permute.xlu1 %554 }
 0x115   :  { %12162 = vmatpush3.msk.msra.mxu0 %vm18714_vm6, %v159_v34  ;;  %v559_v42 = vpop.permute.xlu0 %558  ;;  %253 = vmatprep.mubr.f32.mxu0 %v18723_v21  ;;  %v561_v62 = vsel %vm18718_vm8, %v555_v41, %v557_v37 }
 0x116   :  { %11675 = vmatprep.subr.msk.mxu0 %vm18714_vm6, %v144_v23  ;;  %12177 = vmatprep.subr.msk.mxu1 %vm18714_vm6, %v559_v42  ;;  %v562_v58 = vsel %vm18718_vm8, %v557_v37, %v559_v42 }
 0x117   :  { %12178 = vmatpush3.msk.msra.mxu1 %vm18714_vm6, %v559_v42 }
 0x118   :  { %11667 = vmatmul.mubr.msk.f32.gmra.mrb[2].mxu0 %vm18713_vm5, %v11661_v43  ;;  %12180 = vmatmul.mubr.msk.f32.vlgmr.msra.gmra.mrb[0].mxu1 %vm18713_vm5, %v12997_v44  ;;  %v777_v46 = vpop.permute.xlu1 %776 }
 0x119   :  { %v775_v47 = vpop.permute.xlu0 %774  ;;  %12185 = vmatprep.subr.msk.mxu1 %vm18714_vm6, %v777_v46  ;;  %259 = vmatprep.mubr.f32.mxu0 %v18723_v21 }
 0x11a   :  { %12182 = vmatprep.mubr.msk.f32.mxu1 %vm18713_vm5, %v13005_v45  ;;  %12186 = vmatpush3.msk.msra.mxu1 %vm18714_vm6, %v777_v46  ;;  %v780_v63 = vsel %vm18717_vm9, %v775_v47, %v777_v46 }
 0x11c   :  { %11668 = vmatmul.mubr.msk.f32.gmra.mrb[4].mxu0 %vm18713_vm5, %v11662_v48  ;;  %12183 = vmatmul.mubr.msk.f32.gmra.mrb[2].mxu1 %vm18713_vm5, %v11689_v49  ;;  %v993_v0 = vpop.permute.xlu1 %992 }
 0x11d   :  { %v773_v51 = vpop.permute.xlu0 %772  ;;  %265 = vmatprep.mubr.f32.mxu0 %v18723_v21  ;;  %12187 = vmatprep.mubr.msk.f32.mxu1 %vm18713_vm5, %v13024_v50 }
 0x11e   :  { %v779_v2 = vsel %vm18717_vm9, %v773_v51, %v775_v47  ;;  %v13162_v47 = vsub.s32 0, %v13125_v7 }
 0x120   :  { %11669 = vmatmul.mubr.msk.f32.gmra.mrb[6].mxu0 %vm18713_vm5, %v11663_v52  ;;  %12188 = vmatmul.mubr.msk.f32.vlgmr.msra.gmra.mrb[0].mxu1 %vm18713_vm5, %v11702_v53  ;;  %v991_v4 = vpop.permute.xlu1 %990  ;;  %18733 = vst [vmem:[#allocation13_spill] sm:$0xff] %v13162_v47 }
 0x121   :  { %v995_v55 = vpop.permute.xlu0 %994  ;;  %12163 = vmatprep.mubr.msk.f32.mxu0 %vm18713_vm5, %v11660_v39  ;;  %12190 = vmatprep.mubr.msk.f32.mxu1 %vm18713_vm5, %v11703_v54  ;;  %v997_v5 = vsel %vm18716_vm10, %v991_v4, %v993_v0 }
 0x122   :  { %12193 = vmatprep.subr.msk.mxu1 %vm18714_vm6, %v995_v55  ;;  %v998_v3 = vsel %vm18716_vm10, %v993_v0, %v995_v55 }
 0x123   :  { %12194 = vmatpush3.msk.msra.mxu1 %vm18714_vm6, %v995_v55 }
 0x124   :  { %12164 = vmatmul.mubr.msk.f32.vlgmr.msra.gmra.mrb[8].mxu0 %vm18713_vm5, %v11661_v43  ;;  %12191 = vmatmul.mubr.msk.f32.gmra.mrb[2].mxu1 %vm18713_vm5, %v11704_v56 }
 0x125   :  { %11676 = vmatpush1.msk.msra.mxu0 %vm18714_vm6, %v12942_v27  ;;  %12166 = vmatprep.mubr.msk.f32.mxu0 %vm18713_vm5, %v11662_v48  ;;  %v76_v48 = vsub.s32 1, %v13125_v7 }
 0x126   :  { %11690 = vmatprep.subr.msk.mxu0 %vm18714_vm6, %v562_v58  ;;  %12195 = vmatprep.mubr.msk.f32.mxu1 %vm18713_vm5, %v11716_v57 }
 0x127   :  { %v13170_v55 = vrot.slane %v13131_v11, %v76_v48 }
 0x128   :  { %12167 = vmatmul.mubr.msk.f32.gmra.mrb[10].mxu0 %vm18713_vm5, %v11663_v52  ;;  %12196 = vmatmul.mubr.msk.f32.vlgmr.msra.gmra.mrb[0].mxu1 %vm18713_vm5, %v11717_v59 }
 0x129   :  { %439 = vmatprep.mubr.f32.mxu0 %v18723_v21  ;;  %12198 = vmatprep.mubr.msk.f32.mxu1 %vm18713_vm5, %v11718_v60 }
 0x12c   :  { %11677 = vmatmul.mubr.msk.f32.vlgmr.msra.gmra.mrb[0].mxu0 %vm18713_vm5, %v12907_v16  ;;  %12199 = vmatmul.mubr.msk.f32.gmra.mrb[2].mxu1 %vm18713_vm5, %v11719_v61  ;;  %v13138_v16 = vrot.slane %v13131_v11, %v80_v9 }
 0x12d   :  { %11691 = vmatpush1.msk.msra.mxu0 %vm18714_vm6, %v561_v62  ;;  %445 = vmatprep.mubr.f32.mxu0 %v18723_v21 }
 0x12e   :  { %11705 = vmatprep.subr.msk.mxu0 %vm18714_vm6, %v780_v63  ;;  %vm18715_vm12 = vcmp.gt.f32.partialorder %v13138_v16, 0.5 }
 0x130   :  { %11678 = vmatmul.mubr.msk.f32.gmra.mrb[2].mxu0 %vm18713_vm5, %v12921_v24 }
 0x131   :  { %451 = vmatprep.mubr.f32.mxu0 %v18723_v21  ;;  %v1215_v13 = vpop.permute.xlu1 %1214 }
 0x132   :  { %v1210_v12 = vpop.permute.xlu0 %1209 }
 0x134   :  { %11679 = vmatmul.mubr.msk.f32.gmra.mrb[4].mxu0 %vm18713_vm5, %v12928_v25 }
 0x135   :  { %457 = vmatprep.mubr.f32.mxu0 %v18723_v21  ;;  %v1220_v29 = vpop.permute.xlu1 %1219 }
 0x136   :  { %v13140_v25 = vpop.permute.xlu0 %1224 }
 0x138   :  { %11680 = vmatmul.mubr.msk.f32.gmra.mrb[6].mxu0 %vm18713_vm5, %v12939_v26 }
 0x139   :  { %645 = vmatprep.mubr.f32.mxu0 %v18723_v21 }
 0x13c   :  { %11692 = vmatmul.mubr.msk.f32.vlgmr.msra.gmra.mrb[0].mxu0 %vm18713_vm5, %v12947_v28 }
 0x13d   :  { %11706 = vmatpush1.msk.msra.mxu0 %vm18714_vm6, %v779_v2  ;;  %651 = vmatprep.mubr.f32.mxu0 %v18723_v21 }
 0x13e   :  { %11720 = vmatprep.subr.msk.mxu0 %vm18714_vm6, %v998_v3 }
 0x140   :  { %11693 = vmatmul.mubr.msk.f32.gmra.mrb[2].mxu0 %vm18713_vm5, %v12997_v44 }
 0x141   :  { %657 = vmatprep.mubr.f32.mxu0 %v18723_v21 }
 0x144   :  { %11694 = vmatmul.mubr.msk.f32.gmra.mrb[4].mxu0 %vm18713_vm5, %v13005_v45 }
 0x145   :  { %663 = vmatprep.mubr.f32.mxu0 %v18723_v21 }
 0x148   :  { %11695 = vmatmul.mubr.msk.f32.gmra.mrb[6].mxu0 %vm18713_vm5, %v11689_v49 }
 0x149   :  { %863 = vmatprep.mubr.f32.mxu0 %v18723_v21 }
 0x14c   :  { %11707 = vmatmul.mubr.msk.f32.vlgmr.msra.gmra.mrb[0].mxu0 %vm18713_vm5, %v13024_v50 }
 0x14d   :  { %11721 = vmatpush1.msk.msra.mxu0 %vm18714_vm6, %v997_v5  ;;  %869 = vmatprep.mubr.f32.mxu0 %v18723_v21  ;;  %vm86_vm6 = vcmp.gt.f32.partialorder %v13170_v55, 0.5 }
 0x14e   :  { %1774 = vmatprep.subr.bf16.mxu0 %v18726_v31 }
 0x150   :  { %11708 = vmatmul.mubr.msk.f32.gmra.mrb[2].mxu0 %vm18713_vm5, %v11702_v53  ;;  %v73_v53 = vrot.slane %v13131_v11, %v13162_v47 }
 0x151   :  { %875 = vmatprep.mubr.f32.mxu0 %v18723_v21 }
 0x154   :  { %11709 = vmatmul.mubr.msk.f32.gmra.mrb[4].mxu0 %vm18713_vm5, %v11703_v54 }
 0x155   :  { %881 = vmatprep.mubr.f32.mxu0 %v18723_v21 }
 0x158   :  { %11710 = vmatmul.mubr.msk.f32.gmra.mrb[6].mxu0 %vm18713_vm5, %v11704_v56 }
 0x159   :  { %1081 = vmatprep.mubr.f32.mxu0 %v18723_v21 }
 0x15c   :  { %11722 = vmatmul.mubr.msk.f32.vlgmr.msra.gmra.mrb[0].mxu0 %vm18713_vm5, %v11716_v57 }
 0x15d   :  { %1087 = vmatprep.mubr.f32.mxu0 %v18723_v21 }
 0x160   :  { %11723 = vmatmul.mubr.msk.f32.gmra.mrb[2].mxu0 %vm18713_vm5, %v11717_v59 }
 0x161   :  { %1093 = vmatprep.mubr.f32.mxu0 %v18723_v21 }
 0x164   :  { %11724 = vmatmul.mubr.msk.f32.gmra.mrb[4].mxu0 %vm18713_vm5, %v11718_v60 }
 0x165   :  { %1099 = vmatprep.mubr.f32.mxu0 %v18723_v21 }
 0x168   :  { %11725 = vmatmul.mubr.msk.f32.gmra.mrb[6].mxu0 %vm18713_vm5, %v11719_v61 }
 0x1f7   :  { %v12165_v8 = vpop.f32.mrb[8].mxu0 }
 0x1f8   :  { %v338_v10 = vpop.f32.mrb[9].mxu0 }
 0x1fb   :  { %v12168_v14 = vpop.f32.mrb[10].mxu0  ;;  %v12197_v15 = vpop.f32.mrb[0].mxu1 }
 0x1fc   :  { %v12241_v17 = vadd.f32 %v12197_v15, %v12165_v8  ;;  %v348_v18 = vpop.f32.mrb[11].mxu0  ;;  %v1172_v19 = vpop.f32.mrb[1].mxu1 }
 0x1fd   :  { %v12242_v20 = vadd.f32 %v1172_v19, %v338_v10 }
 0x1fe   :  { %v1232_v22 = vadd.f32 %v12241_v17, %v1215_v13 }
 0x1ff   :  { %v1229_v23 = vadd.f32 %v12242_v20, %v1210_v12  ;;  %v12200_v24 = vpop.f32.mrb[2].mxu1 }
 0x200   :  { %v1256_v26 = vmul.f32 0.2, %v1232_v22  ;;  %v12243_v27 = vadd.f32 %v12200_v24, %v12168_v14  ;;  %v1182_v28 = vpop.f32.mrb[3].mxu1  ;;  %vm1244_vm13 = vcmp.ge.f32.partialorder %v1232_v22, 0.0 }
 0x201   :  { %v1253_v30 = vmul.f32 0.2, %v1229_v23  ;;  %v12244_v32 = vadd.f32 %v1182_v28, %v348_v18  ;;  %vm1241_vm14 = vcmp.ge.f32.partialorder %v1229_v23, 0.0 }
 0x202   :  { %v1238_v33 = vadd.f32 %v12243_v27, %v13140_v25  ;;  %v1268_v34 = vsel %vm1244_vm13, %v1232_v22, %v1256_v26  ;;  %vm64_vm13 = vcmask 162816  }
 0x203   :  { %v1235_v35 = vadd.f32 %v12244_v32, %v1220_v29  ;;  %v1265_v36 = vsel %vm1241_vm14, %v1229_v23, %v1253_v30  ;;  %v1280_v37 = vsel %vm18715_vm12, %v1268_v34, 0.0  ;;  %65 = vst.msk [vmem:[#allocation2 + $0x18] sm:$0xff] %vm64_vm13, %v18726_v31  ;;  %67 = vst.msk [vmem:[#allocation2 + $0x38] sm:$0xff] %vm64_vm13, %v18726_v31  ;;  %vm13172_vm13 = vcmp.gt.f32.partialorder %v73_v53, 0.5 }
 0x204   :  { %v1262_v38 = vmul.f32 0.2, %v1238_v33  ;;  %v1277_v39 = vsel %vm18715_vm12, %v1265_v36, 0.0  ;;  %vm1250_vm15 = vcmp.ge.f32.partialorder %v1238_v33, 0.0 }
 0x205   :  { %v1259_v40 = vmul.f32 0.2, %v1235_v35  ;;  %v1289_v41 = vpack.c.bf16 %v1280_v37, %v1277_v39  ;;  %vm1247_vm5 = vcmp.ge.f32.partialorder %v1235_v35, 0.0 }
 0x206   :  { %v1274_v42 = vsel %vm1250_vm15, %v1238_v33, %v1262_v38 }
 0x207   :  { %1303 = vrot.lane.b32.xlu1 %v1289_v41, %s12788_s1  ;;  %v1271_v43 = vsel %vm1247_vm5, %v1235_v35, %v1259_v40  ;;  %v13151_v44 = vsel %vm18715_vm12, %v1274_v42, 0.0  ;;  %vm62_vm5 = vcmask 1048400  }
 0x208   :  { %v13155_v45 = vsel %vm18715_vm12, %v1271_v43, 0.0  ;;  %63 = vst.msk [vmem:[#allocation2 + $0x10] sm:$0xff] %vm62_vm5, %v18726_v31  ;;  %66 = vst.msk [vmem:[#allocation2 + $0x30] sm:$0xff] %vm62_vm5, %v18726_v31 }
 0x209   :  { %v1292_v46 = vpack.c.bf16 %v13151_v44, %v13155_v45 }
 0x20a   :  { %v1468_v38 = vld [vmem:[#allocation2 + $0x18] sm:$0xff] }
 0x20b   :  { %v1472_v39 = vld [vmem:[#allocation2 + $0x38] sm:$0xff] }
 0x20c   :  { %v10226_v61 = vld [vmem:[#allocation2 + $0x18] sm:$0xff] }
 0x22f   :  { %v1083_v49 = vpop.f32.mrb[0].mxu0 }
 0x230   :  { %v1227_v50 = vadd.f32 %v1210_v12, %v1083_v49  ;;  %v1085_v51 = vpop.f32.mrb[1].mxu0 }
 0x231   :  { %v1228_v52 = vadd.f32 %v1210_v12, %v1085_v51 }
 0x232   :  { %v1251_v54 = vmul.f32 0.2, %v1227_v50  ;;  %vm1239_vm14 = vcmp.ge.f32.partialorder %v1227_v50, 0.0 }
 0x233   :  { %v1252_v56 = vmul.f32 0.2, %v1228_v52  ;;  %v1089_v57 = vpop.f32.mrb[2].mxu0  ;;  %vm1240_vm15 = vcmp.ge.f32.partialorder %v1228_v52, 0.0 }
 0x234   :  { %v1230_v58 = vadd.f32 %v1215_v13, %v1089_v57  ;;  %v1091_v59 = vpop.f32.mrb[3].mxu0  ;;  %v1263_v62 = vsel %vm1239_vm14, %v1227_v50, %v1251_v54 }
 0x235   :  { %v1231_v60 = vadd.f32 %v1215_v13, %v1091_v59  ;;  %v1264_v0 = vsel %vm1240_vm15, %v1228_v52, %v1252_v56  ;;  %v1275_v11 = vsel %vm13172_vm13, %v1263_v62, 0.0 }
 0x236   :  { %vm1242_vm5 = vcmp.ge.f32.partialorder %v1230_v58, 0.0  ;;  %v1254_v63 = vmul.f32 0.2, %v1230_v58  ;;  %v1276_v15 = vsel %vm86_vm6, %v1264_v0, 0.0 }
 0x237   :  { %vm1243_vm12 = vcmp.ge.f32.partialorder %v1231_v60, 0.0  ;;  %v1255_v2 = vmul.f32 0.2, %v1231_v60  ;;  %v1095_v3 = vpop.f32.mrb[4].mxu0 }
 0x238   :  { %v1266_v4 = vsel %vm1242_vm5, %v1230_v58, %v1254_v63  ;;  %v1233_v5 = vadd.f32 %v1220_v29, %v1095_v3  ;;  %v1097_v8 = vpop.f32.mrb[5].mxu0 }
 0x239   :  { %v1267_v9 = vsel %vm1243_vm12, %v1231_v60, %v1255_v2  ;;  %v1234_v10 = vadd.f32 %v1220_v29, %v1097_v8  ;;  %v1278_v12 = vsel %vm13172_vm13, %v1266_v4, 0.0 }
 0x23a   :  { %v1257_v13 = vmul.f32 0.2, %v1233_v5  ;;  %v1287_v14 = vpack.c.bf16 %v1278_v12, %v1275_v11  ;;  %v1279_v17 = vsel %vm86_vm6, %v1267_v9, 0.0  ;;  %vm1245_vm14 = vcmp.ge.f32.partialorder %v1233_v5, 0.0 }
 0x23b   :  { %v1258_v18 = vmul.f32 0.2, %v1234_v10  ;;  %v1101_v19 = vpop.f32.mrb[6].mxu0  ;;  %v1288_v20 = vpack.c.bf16 %v1279_v17, %v1276_v15  ;;  %vm1246_vm12 = vcmp.ge.f32.partialorder %v1234_v10, 0.0 }
 0x23c   :  { %v1236_v22 = vadd.f32 %v13140_v25, %v1101_v19  ;;  %v1103_v23 = vpop.f32.mrb[7].mxu0  ;;  %1299 = vrot.lane.b32.xlu1 %v1287_v14, %s12788_s1  ;;  %v1269_v26 = vsel %vm1245_vm14, %v1233_v5, %v1257_v13  ;;  %vm1322_vm14 = vcmask 1047888  }
 0x23d   :  { %v1237_v24 = vadd.f32 %v13140_v25, %v1103_v23  ;;  %1301 = vrot.lane.b32.xlu0 %v1288_v20, %s12788_s1  ;;  %v1270_v28 = vsel %vm1246_vm12, %v1234_v10, %v1258_v18  ;;  %v1281_v33 = vsel %vm13172_vm13, %v1269_v26, 0.0  ;;  %vm1325_vm12 = vcmask 867328  }
 0x23e   :  { %vm1248_vm15 = vcmp.ge.f32.partialorder %v1236_v22, 0.0  ;;  %v1260_v27 = vmul.f32 0.2, %v1236_v22  ;;  %v1282_v25 = vsel %vm86_vm6, %v1270_v28, 0.0 }
 0x23f   :  { %vm1249_vm5 = vcmp.ge.f32.partialorder %v1237_v24, 0.0  ;;  %v1261_v29 = vmul.f32 0.2, %v1237_v24 }
 0x240   :  { %v1272_v30 = vsel %vm1248_vm15, %v1236_v22, %v1260_v27  ;;  %vm18719_vm15 = vcmask 261120  }
 0x241   :  { %v1273_v32 = vsel %vm1249_vm5, %v1237_v24, %v1261_v29  ;;  %v1284_v34 = vsel %vm13172_vm13, %v1272_v30, 0.0 }
 0x242   :  { %v1290_v35 = vpack.c.bf16 %v1284_v34, %v1281_v33  ;;  %v1285_v36 = vsel %vm86_vm6, %v1273_v32, 0.0 }
 0x243   :  { %v1291_v37 = vpack.c.bf16 %v1285_v36, %v1282_v25 }
 0x244   :  { %1305 = vrot.lane.b32.xlu0 %v1290_v35, %s12788_s1 }
 0x245   :  { %1307 = vrot.lane.b32.xlu1 %v1291_v37, %s12788_s1 }
 0x248   :  { %1309 = vrot.lane.b32.xlu0 %v1292_v46, %s12788_s1 }
 0x249   :  { %1487 = vrot.lane.b32.xlu1 %v1468_v38, %s12780_s29 }
 0x24d   :  { %1495 = vrot.lane.b32.xlu1 %v1472_v39, %s12780_s29 }
 0x279   :  { %v1304_v40 = vpop.permute.xlu1 %1303 }
 0x2ae   :  { %v1300_v41 = vpop.permute.xlu1 %1299 }
 0x2af   :  { %1323 = vst.msk [vmem:[#allocation2] sm:$0xff] %vm1322_vm14, %v1300_v41  ;;  %v1302_v42 = vpop.permute.xlu0 %1301 }
 0x2b0   :  { %v1313_v43 = vsel %vm59_vm11, %v1302_v42, %v1304_v40  ;;  %v13225_v51 = vsel %vm59_vm11, %v1300_v41, %v1302_v42 }
 0x2b1   :  { %1326 = vst.msk [vmem:[#allocation2 + $0x10] sm:$0xff] %vm1325_vm12, %v1313_v43 }
 0x2b6   :  { %v13208_v48 = vld [vmem:[#allocation2] sm:$0xff]  ;;  %v1306_v44 = vpop.permute.xlu0 %1305 }
 0x2b7   :  { %1327 = vst.msk [vmem:[#allocation2 + $0x20] sm:$0xff] %vm1322_vm14, %v1306_v44  ;;  %1481 = vrot.lane.b32.xlu0 %v13208_v48, %s12780_s29  ;;  %1354 = vrot.lane.b32.xlu1 %v13208_v48, %s12779_s23  ;;  %v1308_v46 = vpop.permute.xlu1 %1307 }
 0x2b8   :  { %v1332_v45 = vld [vmem:[#allocation2 + $0x10] sm:$0xff]  ;;  %v13252_v54 = vsel %vm59_vm11, %v1306_v44, %v1308_v46 }
 0x2b9   :  { %1338 = vst.msk [vmem:[#allocation3 + $0x10] sm:$0xff] %vm122_vm1, %v1332_v45 }
 0x2ba   :  { %v1310_v49 = vpop.permute.xlu0 %1309 }
 0x2bb   :  { %v1315_v50 = vsel %vm59_vm11, %v1308_v46, %v1310_v49  ;;  %1358 = vrot.lane.b32.xlu0 %v1332_v45, %s12779_s23  ;;  %1395 = vrot.lane.b32.xlu1 %v13208_v48, %s12781_s30  ;;  %v1488_v58 = vpop.permute.xlu1 %1487 }
 0x2bc   :  { %1329 = vst.msk [vmem:[#allocation2 + $0x30] sm:$0xff] %vm1325_vm12, %v1315_v50 }
 0x2be   :  { %v13234_v53 = vld [vmem:[#allocation2 + $0x20] sm:$0xff] }
 0x2bf   :  { %1399 = vrot.lane.b32.xlu0 %v1332_v45, %s12781_s30  ;;  %1436 = vrot.lane.b32.xlu1 %v13208_v48, %s12778_s22  ;;  %v13287_v59 = vpop.permute.xlu1 %1495 }
 0x2c0   :  { %v13267_v56 = vld [vmem:[#allocation3 + $0x10] sm:$0xff] }
 0x2c3   :  { %v1335_v52 = vld [vmem:[#allocation2 + $0x30] sm:$0xff]  ;;  %1440 = vrot.lane.b32.xlu0 %v1332_v45, %s12778_s22  ;;  %1356 = vrot.lane.b32.xlu1 %v13225_v51, %s12779_s23 }
 0x2c4   :  { %1341 = vst.msk [vmem:[#allocation3 + $0x28] sm:$0xff] %vm122_vm1, %v1335_v52 }
 0x2c7   :  { %1485 = vrot.lane.b32.xlu0 %v1332_v45, %s12780_s29  ;;  %1397 = vrot.lane.b32.xlu1 %v13225_v51, %s12781_s30 }
 0x2cb   :  { %1360 = vrot.lane.b32.xlu0 %v13234_v53, %s12779_s23  ;;  %1438 = vrot.lane.b32.xlu1 %v13225_v51, %s12778_s22  ;;  %v13277_v57 = vld [vmem:[#allocation3 + $0x28] sm:$0xff] }
 0x2cf   :  { %1401 = vrot.lane.b32.xlu0 %v13234_v53, %s12781_s30  ;;  %1483 = vrot.lane.b32.xlu1 %v13225_v51, %s12780_s29 }
 0x2d3   :  { %1442 = vrot.lane.b32.xlu0 %v13234_v53, %s12778_s22  ;;  %1364 = vrot.lane.b32.xlu1 %v1335_v52, %s12779_s23 }
 0x2d7   :  { %1489 = vrot.lane.b32.xlu0 %v13234_v53, %s12780_s29  ;;  %1603 = vrot.lane.b32.xlu1 %v13208_v48, %s12783_s16 }
 0x2db   :  { %1362 = vrot.lane.b32.xlu0 %v13252_v54, %s12779_s23  ;;  %1405 = vrot.lane.b32.xlu1 %v1335_v52, %s12781_s30 }
 0x2df   :  { %1403 = vrot.lane.b32.xlu0 %v13252_v54, %s12781_s30  ;;  %1972 = vrot.lane.b32.xlu1 %v13208_v48, %s12784_s21 }
 0x2e3   :  { %1444 = vrot.lane.b32.xlu0 %v13252_v54, %s12778_s22  ;;  %1446 = vrot.lane.b32.xlu1 %v1335_v52, %s12778_s22 }
 0x2e7   :  { %1493 = vrot.lane.b32.xlu0 %v1335_v52, %s12780_s29  ;;  %1491 = vrot.lane.b32.xlu1 %v13252_v54, %s12780_s29 }
 0x2eb   :  { %1607 = vrot.lane.b32.xlu0 %v13267_v56, %s12783_s16  ;;  %1605 = vrot.lane.b32.xlu1 %v13225_v51, %s12783_s16 }
 0x2ef   :  { %1976 = vrot.lane.b32.xlu0 %v13267_v56, %s12784_s21  ;;  %1974 = vrot.lane.b32.xlu1 %v13225_v51, %s12784_s21 }
 0x2f3   :  { %1609 = vrot.lane.b32.xlu0 %v13234_v53, %s12783_s16  ;;  %1613 = vrot.lane.b32.xlu1 %v13277_v57, %s12783_s16 }
 0x2f7   :  { %1611 = vrot.lane.b32.xlu0 %v13252_v54, %s12783_s16 }
 0x2fb   :  { %1980 = vrot.lane.b32.xlu0 %v13252_v54, %s12784_s21 }
 0x329   :  { %v1482_v60 = vpop.permute.xlu0 %1481  ;;  %v1355_v62 = vpop.permute.xlu1 %1354 }
 0x32d   :  { %v1359_v63 = vpop.permute.xlu0 %1358  ;;  %v1396_v0 = vpop.permute.xlu1 %1395 }
 0x32e   :  { %1379 = vst.msk [vmem:[#allocation3 + $0x40] sm:$0xff] %vm122_vm1, %v1359_v63 }
 0x331   :  { %v1400_v2 = vpop.permute.xlu0 %1399  ;;  %v1437_v3 = vpop.permute.xlu1 %1436 }
 0x332   :  { %1420 = vst.msk [vmem:[#allocation3 + $0x70] sm:$0xff] %vm122_vm1, %v1400_v2 }
 0x335   :  { %v1441_v4 = vpop.permute.xlu0 %1440  ;;  %v1357_v5 = vpop.permute.xlu1 %1356  ;;  %v13291_v8 = vld [vmem:[#allocation3 + $0x40] sm:$0xff] }
 0x336   :  { %1461 = vst.msk [vmem:[#allocation3 + $0xa0] sm:$0xff] %vm122_vm1, %v1441_v4  ;;  %v13295_v9 = vsel %vm100_vm2, %v1357_v5, %v1359_v63  ;;  %1619 = vrot.lane.b32.xlu0 %v13291_v8, %s12783_s16  ;;  %v13304_v13 = vsel %vm100_vm2, %v1355_v62, %v1357_v5 }
 0x337   :  { %1617 = vrot.lane.b32.xlu1 %v13295_v9, %s12783_s16 }
 0x339   :  { %v1486_v10 = vpop.permute.xlu0 %1485  ;;  %v1398_v11 = vpop.permute.xlu1 %1397  ;;  %v13301_v12 = vld [vmem:[#allocation3 + $0x70] sm:$0xff] }
 0x33a   :  { %v1500_v14 = vsel %vm133_vm3, %v1486_v10, %v1488_v58  ;;  %1631 = vrot.lane.b32.xlu0 %v13301_v12, %s12783_s16  ;;  %v13315_v19 = vsel %vm18721_vm4, %v1398_v11, %v1400_v2  ;;  %v13322_v23 = vsel %vm18721_vm4, %v1396_v0, %v1398_v11 }
 0x33b   :  { %1512 = vst.msk [vmem:[#allocation3 + $0xd0] sm:$0xff] %vm122_vm1, %v1500_v14  ;;  %1615 = vrot.lane.b32.xlu1 %v13304_v13, %s12783_s16 }
 0x33d   :  { %v1361_v15 = vpop.permute.xlu0 %1360  ;;  %v1439_v17 = vpop.permute.xlu1 %1438  ;;  %v13312_v18 = vld [vmem:[#allocation3 + $0xa0] sm:$0xff] }
 0x33e   :  { %1643 = vrot.lane.b32.xlu0 %v13312_v18, %s12783_s16  ;;  %v13331_v28 = vsel %vm122_vm1, %v1439_v17, %v1441_v4  ;;  %v13341_v32 = vsel %vm122_vm1, %v1437_v3, %v1439_v17  ;;  %v12550_v3 = vld [vmem:[%s18704_s4 + $0x24] ss:$8 sps:$4 sm:$0xff]  }
 0x33f   :  { %1629 = vrot.lane.b32.xlu1 %v13315_v19, %s12783_s16  ;;  %11741 = vmatprep.mubr.msk.bf16.mxu0 %vm18719_vm15, %v12550_v3 }
 0x340   :  { %11739 = vmatprep.mubr.msk.bf16.mxu1 %vm18719_vm15, %v12550_v3 }
 0x341   :  { %v1402_v20 = vpop.permute.xlu0 %1401  ;;  %v1484_v22 = vpop.permute.xlu1 %1483 }
 0x342   :  { %v13324_v24 = vld [vmem:[#allocation3 + $0xd0] sm:$0xff]  ;;  %v13348_v35 = vsel %vm133_vm3, %v1484_v22, %v1486_v10  ;;  %v13361_v38 = vsel %vm133_vm3, %v1482_v60, %v1484_v22 }
 0x343   :  { %1655 = vrot.lane.b32.xlu0 %v13324_v24, %s12783_s16  ;;  %1627 = vrot.lane.b32.xlu1 %v13322_v23, %s12783_s16 }
 0x345   :  { %v1443_v26 = vpop.permute.xlu0 %1442  ;;  %v1365_v27 = vpop.permute.xlu1 %1364 }
 0x346   :  { %1382 = vst.msk [vmem:[#allocation3 + $0x58] sm:$0xff] %vm122_vm1, %v1365_v27 }
 0x347   :  { %1978 = vrot.lane.b32.xlu0 %v13234_v53, %s12784_s21  ;;  %1641 = vrot.lane.b32.xlu1 %v13331_v28, %s12783_s16 }
 0x349   :  { %v13338_v29 = vpop.permute.xlu0 %1489  ;;  %v1604_v30 = vpop.permute.xlu1 %1603 }
 0x34b   :  { %1988 = vrot.lane.b32.xlu0 %v13291_v8, %s12784_s21  ;;  %1639 = vrot.lane.b32.xlu1 %v13341_v32, %s12783_s16 }
 0x34d   :  { %v1363_v33 = vpop.permute.xlu0 %1362  ;;  %v1406_v34 = vpop.permute.xlu1 %1405  ;;  %v13374_v43 = vld [vmem:[#allocation3 + $0x58] sm:$0xff] }
 0x34e   :  { %v13351_v25 = vsel %vm100_vm2, %v1363_v33, %v1365_v27  ;;  %1423 = vst.msk [vmem:[#allocation3 + $0x88] sm:$0xff] %vm122_vm1, %v1406_v34  ;;  %v13364_v39 = vsel %vm100_vm2, %v1361_v15, %v1363_v33 }
 0x34f   :  { %1623 = vrot.lane.b32.xlu0 %v13351_v25, %s12783_s16  ;;  %1653 = vrot.lane.b32.xlu1 %v13348_v35, %s12783_s16 }
 0x351   :  { %v1404_v36 = vpop.permute.xlu0 %1403  ;;  %v13358_v37 = vpop.permute.xlu1 %1972 }
 0x352   :  { %v13371_v42 = vsel %vm18721_vm4, %v1404_v36, %v1406_v34  ;;  %v13381_v46 = vsel %vm18721_vm4, %v1402_v20, %v1404_v36 }
 0x353   :  { %1621 = vrot.lane.b32.xlu0 %v13364_v39, %s12783_s16  ;;  %1651 = vrot.lane.b32.xlu1 %v13361_v38, %s12783_s16 }
 0x355   :  { %v1445_v40 = vpop.permute.xlu0 %1444  ;;  %v1447_v41 = vpop.permute.xlu1 %1446  ;;  %v13393_v62 = vld [vmem:[#allocation3 + $0x88] sm:$0xff] }
 0x356   :  { %1464 = vst.msk [vmem:[#allocation3 + $0xb8] sm:$0xff] %vm122_vm1, %v1447_v41  ;;  %v13407_v2 = vsel %vm122_vm1, %v1443_v26, %v1445_v40 }
 0x357   :  { %1625 = vrot.lane.b32.xlu1 %v13374_v43, %s12783_s16  ;;  %1635 = vrot.lane.b32.xlu0 %v13371_v42, %s12783_s16 }
 0x359   :  { %v1494_v44 = vpop.permute.xlu0 %1493  ;;  %v1492_v45 = vpop.permute.xlu1 %1491 }
 0x35a   :  { %v1503_v49 = vsel %vm133_vm3, %v1494_v44, %v13287_v59  ;;  %v13396_v59 = vsel %vm122_vm1, %v1445_v40, %v1447_v41  ;;  %v13422_v11 = vsel %vm133_vm3, %v1492_v45, %v1494_v44  ;;  %v13438_v22 = vsel %vm133_vm3, %v13338_v29, %v1492_v45 }
 0x35b   :  { %1515 = vst.msk [vmem:[#allocation3 + $0xe8] sm:$0xff] %vm122_vm1, %v1503_v49  ;;  %1982 = vrot.lane.b32.xlu1 %v13277_v57, %s12784_s21  ;;  %1633 = vrot.lane.b32.xlu0 %v13381_v46, %s12783_s16 }
 0x35d   :  { %v1608_v50 = vpop.permute.xlu0 %1607  ;;  %v1606_v52 = vpop.permute.xlu1 %1605  ;;  %v13417_v10 = vld [vmem:[#allocation3 + $0xb8] sm:$0xff] }
 0x35e   :  { %1775 = vmatpush1.bf16.msra.mxu0 %v1608_v50  ;;  %v1665_v58 = vsel %vm18720_vm7, %v1606_v52, %v1608_v50  ;;  %v1664_v60 = vsel %vm18720_vm7, %v1604_v30, %v1606_v52 }
 0x35f   :  { %1721 = vmatprep.subr.bf16.mxu1 %v1665_v58  ;;  %1776 = vmatprep.subr.bf16.mxu0 %v18726_v31 }
 0x360   :  { %1722 = vmatpush1.bf16.msra.mxu1 %v1664_v60  ;;  %1637 = vrot.lane.b32.xlu1 %v13393_v62, %s12783_s16 }
 0x361   :  { %v13400_v63 = vpop.permute.xlu0 %1976  ;;  %v13402_v0 = vpop.permute.xlu1 %1974  ;;  %1647 = vrot.lane.b32.xlu0 %v13396_v59, %s12783_s16 }
 0x362   :  { %v13434_v20 = vld [vmem:[#allocation3 + $0xe8] sm:$0xff] }
 0x364   :  { %1986 = vrot.lane.b32.xlu1 %v13295_v9, %s12784_s21 }
 0x365   :  { %v1610_v4 = vpop.permute.xlu0 %1609  ;;  %v1614_v5 = vpop.permute.xlu1 %1613  ;;  %1645 = vrot.lane.b32.xlu0 %v13407_v2, %s12783_s16 }
 0x366   :  { %1777 = vmatpush1.bf16.msra.mxu0 %v1614_v5 }
 0x367   :  { %1778 = vmatprep.subr.bf16.mxu0 %v18726_v31 }
 0x368   :  { %1649 = vrot.lane.b32.xlu1 %v13417_v10, %s12783_s16 }
 0x369   :  { %v1612_v14 = vpop.permute.xlu0 %1611  ;;  %1659 = vrot.lane.b32.xlu0 %v13422_v11, %s12783_s16 }
 0x36a   :  { %v1667_v15 = vsel %vm18720_vm7, %v1612_v14, %v1614_v5  ;;  %v1666_v17 = vsel %vm18720_vm7, %v1610_v4, %v1612_v14 }
 0x36b   :  { %1723 = vmatprep.subr.bf16.mxu1 %v1667_v15 }
 0x36c   :  { %1724 = vmatpush1.bf16.msra.mxu1 %v1666_v17  ;;  %1984 = vrot.lane.b32.xlu1 %v13304_v13, %s12784_s21 }
 0x36d   :  { %2000 = vrot.lane.b32.xlu0 %v13301_v12, %s12784_s21  ;;  %v13492_v26 = vpop.permute.xlu0 %1980 }
 0x370   :  { %1661 = vrot.lane.b32.xlu1 %v13434_v20, %s12783_s16 }
 0x371   :  { %1657 = vrot.lane.b32.xlu0 %v13438_v22, %s12783_s16 }
 0x374   :  { %1994 = vrot.lane.b32.xlu1 %v13374_v43, %s12784_s21 }
 0x375   :  { %2012 = vrot.lane.b32.xlu0 %v13312_v18, %s12784_s21 }
 0x378   :  { %1998 = vrot.lane.b32.xlu1 %v13315_v19, %s12784_s21 }
 0x379   :  { %2024 = vrot.lane.b32.xlu0 %v13324_v24, %s12784_s21 }
 0x37c   :  { %1996 = vrot.lane.b32.xlu1 %v13322_v23, %s12784_s21 }
 0x37d   :  { %2230 = vrot.lane.b32.xlu0 %v13267_v56, %s12785_s8 }
 0x380   :  { %2006 = vrot.lane.b32.xlu1 %v13393_v62, %s12784_s21 }
 0x381   :  { %2234 = vrot.lane.b32.xlu0 %v13252_v54, %s12785_s8 }
 0x384   :  { %2010 = vrot.lane.b32.xlu1 %v13331_v28, %s12784_s21 }
 0x385   :  { %2232 = vrot.lane.b32.xlu0 %v13234_v53, %s12785_s8 }
 0x388   :  { %2008 = vrot.lane.b32.xlu1 %v13341_v32, %s12784_s21 }
 0x389   :  { %2242 = vrot.lane.b32.xlu0 %v13291_v8, %s12785_s8 }
 0x38c   :  { %2018 = vrot.lane.b32.xlu1 %v13417_v10, %s12784_s21 }
 0x38d   :  { %2254 = vrot.lane.b32.xlu0 %v13301_v12, %s12785_s8 }
 0x390   :  { %2022 = vrot.lane.b32.xlu1 %v13348_v35, %s12784_s21 }
 0x391   :  { %2266 = vrot.lane.b32.xlu0 %v13312_v18, %s12785_s8 }
 0x394   :  { %2020 = vrot.lane.b32.xlu1 %v13361_v38, %s12784_s21 }
 0x395   :  { %1992 = vrot.lane.b32.xlu0 %v13351_v25, %s12784_s21 }
 0x398   :  { %2228 = vrot.lane.b32.xlu1 %v13225_v51, %s12785_s8 }
 0x399   :  { %1990 = vrot.lane.b32.xlu0 %v13364_v39, %s12784_s21 }
 0x39c   :  { %2226 = vrot.lane.b32.xlu1 %v13208_v48, %s12785_s8 }
 0x39d   :  { %2004 = vrot.lane.b32.xlu0 %v13371_v42, %s12784_s21 }
 0x3a0   :  { %2236 = vrot.lane.b32.xlu1 %v13277_v57, %s12785_s8 }
 0x3a1   :  { %2002 = vrot.lane.b32.xlu0 %v13381_v46, %s12784_s21 }
 0x3a4   :  { %2240 = vrot.lane.b32.xlu1 %v13295_v9, %s12785_s8 }
 0x3a5   :  { %2016 = vrot.lane.b32.xlu0 %v13396_v59, %s12784_s21 }
 0x3a8   :  { %v1620_v27 = vpop.permute.xlu0 %1619  ;;  %2238 = vrot.lane.b32.xlu1 %v13304_v13, %s12785_s8 }
 0x3a9   :  { %1779 = vmatpush1.bf16.msra.mxu0 %v1620_v27  ;;  %2014 = vrot.lane.b32.xlu0 %v13407_v2, %s12784_s21  ;;  %v1618_v29 = vpop.permute.xlu1 %1617 }
 0x3aa   :  { %v1669_v30 = vsel %vm18720_vm7, %v1618_v29, %v1620_v27  ;;  %1780 = vmatprep.subr.bf16.mxu0 %v18726_v31 }
 0x3ab   :  { %1725 = vmatprep.subr.bf16.mxu1 %v1669_v30 }
 0x3ac   :  { %v1632_v33 = vpop.permute.xlu0 %1631  ;;  %2248 = vrot.lane.b32.xlu1 %v13374_v43, %s12785_s8 }
 0x3ad   :  { %2028 = vrot.lane.b32.xlu0 %v13422_v11, %s12784_s21  ;;  %v1616_v34 = vpop.permute.xlu1 %1615 }
 0x3ae   :  { %v1668_v36 = vsel %vm18720_vm7, %v1616_v34, %v1618_v29 }
 0x3af   :  { %1726 = vmatpush1.bf16.msra.mxu1 %v1668_v36 }
 0x3b0   :  { %v1644_v40 = vpop.permute.xlu0 %1643  ;;  %2252 = vrot.lane.b32.xlu1 %v13315_v19, %s12785_s8 }
 0x3b1   :  { %2278 = vrot.lane.b32.xlu0 %v13324_v24, %s12785_s8  ;;  %v1630_v41 = vpop.permute.xlu1 %1629 }
 0x3b2   :  { %v1673_v29 = vsel %vm18720_vm7, %v1630_v41, %v1632_v33 }
 0x3b4   :  { %2250 = vrot.lane.b32.xlu1 %v13322_v23, %s12785_s8 }
 0x3b5   :  { %v13515_v44 = vpop.permute.xlu0 %1655  ;;  %2484 = vrot.lane.b32.xlu0 %v13267_v56, %s12786_s24  ;;  %v1628_v45 = vpop.permute.xlu1 %1627 }
 0x3b6   :  { %v1672_v36 = vsel %vm18720_vm7, %v1628_v45, %v1630_v41 }
 0x3b8   :  { %2260 = vrot.lane.b32.xlu1 %v13393_v62, %s12785_s8 }
 0x3b9   :  { %v13521_v49 = vpop.permute.xlu0 %1978  ;;  %2488 = vrot.lane.b32.xlu0 %v13252_v54, %s12786_s24  ;;  %v1642_v50 = vpop.permute.xlu1 %1641 }
 0x3bc   :  { %2264 = vrot.lane.b32.xlu1 %v13331_v28, %s12785_s8 }
 0x3bd   :  { %v13527_v52 = vpop.permute.xlu0 %1988  ;;  %2486 = vrot.lane.b32.xlu0 %v13234_v53, %s12786_s24  ;;  %v1640_v58 = vpop.permute.xlu1 %1639 }
 0x3c0   :  { %2030 = vrot.lane.b32.xlu1 %v13434_v20, %s12784_s21 }
 0x3c1   :  { %2026 = vrot.lane.b32.xlu0 %v13438_v22, %s12784_s21  ;;  %v1624_v60 = vpop.permute.xlu0 %1623  ;;  %v13535_v3 = vpop.permute.xlu1 %1653 }
 0x3c4   :  { %2262 = vrot.lane.b32.xlu1 %v13341_v32, %s12785_s8 }
 0x3c5   :  { %2496 = vrot.lane.b32.xlu0 %v13291_v8, %s12786_s24  ;;  %v1622_v4 = vpop.permute.xlu0 %1621  ;;  %v1652_v5 = vpop.permute.xlu1 %1651 }
 0x3c6   :  { %v1670_v27 = vsel %vm18720_vm7, %v1622_v4, %v1624_v60 }
 0x3c8   :  { %2272 = vrot.lane.b32.xlu1 %v13417_v10, %s12785_s8 }
 0x3c9   :  { %2246 = vrot.lane.b32.xlu0 %v13351_v25, %s12785_s8  ;;  %v1636_v14 = vpop.permute.xlu0 %1635  ;;  %v1626_v15 = vpop.permute.xlu1 %1625 }
 0x3ca   :  { %1781 = vmatpush1.bf16.msra.mxu0 %v1626_v15  ;;  %v1671_v17 = vsel %vm18720_vm7, %v1624_v60, %v1626_v15 }
 0x3cb   :  { %1727 = vmatprep.subr.bf16.mxu1 %v1671_v17  ;;  %1782 = vmatprep.subr.bf16.mxu0 %v18726_v31 }
 0x3cc   :  { %2276 = vrot.lane.b32.xlu1 %v13348_v35, %s12785_s8  ;;  %1728 = vmatpush1.bf16.msra.mxu1 %v1670_v27  ;;  %v1676_v27 = vsel %vm18720_vm7, %v1640_v58, %v1642_v50 }
 0x3cd   :  { %2244 = vrot.lane.b32.xlu0 %v13364_v39, %s12785_s8  ;;  %v1634_v30 = vpop.permute.xlu0 %1633  ;;  %1729 = vmatprep.subr.bf16.mxu1 %v1673_v29  ;;  %v13553_v34 = vpop.permute.xlu1 %1982 }
 0x3ce   :  { %1783 = vmatpush1.bf16.msra.mxu0 %v1632_v33  ;;  %v1674_v17 = vsel %vm18720_vm7, %v1634_v30, %v1636_v14  ;;  %v1677_v33 = vsel %vm18720_vm7, %v1642_v50, %v1644_v40 }
 0x3cf   :  { %1784 = vmatprep.subr.bf16.mxu0 %v18726_v31 }
 0x3d0   :  { %2274 = vrot.lane.b32.xlu1 %v13361_v38, %s12785_s8  ;;  %1730 = vmatpush1.bf16.msra.mxu1 %v1672_v36 }
 0x3d1   :  { %2258 = vrot.lane.b32.xlu0 %v13371_v42, %s12785_s8 }
 0x3d2   :  { %v1638_v60 = vpop.permute.xlu1 %1637 }
 0x3d3   :  { %v1648_v4 = vpop.permute.xlu0 %1647  ;;  %1785 = vmatpush1.bf16.msra.mxu0 %v1638_v60  ;;  %v1675_v15 = vsel %vm18720_vm7, %v1636_v14, %v1638_v60  ;;  %v1680_v60 = vsel %vm18720_vm7, %v1652_v5, %v13535_v3 }
 0x3d4   :  { %2482 = vrot.lane.b32.xlu1 %v13225_v51, %s12786_s24  ;;  %1731 = vmatprep.subr.bf16.mxu1 %v1675_v15  ;;  %v12548_v15 = vld [vmem:[%s18704_s4 + $0x20] ss:$8 sps:$4 sm:$0xff]  }
 0x3d5   :  { %2256 = vrot.lane.b32.xlu0 %v13381_v46, %s12785_s8  ;;  %1732 = vmatpush1.bf16.msra.mxu1 %v1674_v17 }
 0x3d6   :  { %1733 = vmatprep.subr.bf16.mxu1 %v1677_v33  ;;  %1786 = vmatprep.subr.bf16.mxu0 %v18726_v31  ;;  %v13569_v41 = vpop.permute.xlu1 %1986 }
 0x3d7   :  { %v1646_v45 = vpop.permute.xlu0 %1645  ;;  %1787 = vmatpush1.bf16.msra.mxu0 %v1644_v40  ;;  %v1681_v40 = vsel %vm18720_vm7, %v13535_v3, %v13515_v44  ;;  %v12551_v3 = vld [vmem:[%s18704_s4 + $0x34] ss:$8 sps:$4 sm:$0xff]  }
 0x3d8   :  { %2480 = vrot.lane.b32.xlu1 %v13208_v48, %s12786_s24  ;;  %1788 = vmatprep.subr.bf16.mxu0 %v18726_v31  ;;  %v1678_v36 = vsel %vm18720_vm7, %v1646_v45, %v1648_v4 }
 0x3d9   :  { %2270 = vrot.lane.b32.xlu0 %v13396_v59, %s12785_s8  ;;  %1734 = vmatpush1.bf16.msra.mxu1 %v1676_v27  ;;  %v12553_v27 = vld [vmem:[%s18704_s4 + $0x30] ss:$8 sps:$4 sm:$0xff]  }
 0x3da   :  { %v1650_v14 = vpop.permute.xlu1 %1649 }
 0x3db   :  { %v1660_v29 = vpop.permute.xlu0 %1659  ;;  %1789 = vmatpush1.bf16.msra.mxu0 %v1650_v14  ;;  %v1679_v30 = vsel %vm18720_vm7, %v1648_v4, %v1650_v14 }
 0x3dc   :  { %2490 = vrot.lane.b32.xlu1 %v13277_v57, %s12786_s24  ;;  %1735 = vmatprep.subr.bf16.mxu1 %v1679_v30 }
 0x3dd   :  { %2268 = vrot.lane.b32.xlu0 %v13407_v2, %s12785_s8  ;;  %1736 = vmatpush1.bf16.msra.mxu1 %v1678_v36 }
 0x3de   :  { %1737 = vmatprep.subr.bf16.mxu1 %v1681_v40  ;;  %1790 = vmatprep.subr.bf16.mxu0 %v18726_v31  ;;  %v13587_v50 = vpop.permute.xlu1 %1984 }
 0x3df   :  { %v13589_v58 = vpop.permute.xlu0 %2000  ;;  %1791 = vmatpush1.bf16.msra.mxu0 %v13515_v44  ;;  %v2037_v30 = vsel %vm18718_vm8, %v13587_v50, %v13569_v41 }
 0x3e0   :  { %2494 = vrot.lane.b32.xlu1 %v13295_v9, %s12786_s24  ;;  %1792 = vmatprep.subr.bf16.mxu0 %v18726_v31 }
 0x3e1   :  { %2282 = vrot.lane.b32.xlu0 %v13422_v11, %s12785_s8  ;;  %1738 = vmatpush1.bf16.msra.mxu1 %v1680_v60 }
 0x3e2   :  { %v1662_v4 = vpop.permute.xlu1 %1661 }
 0x3e3   :  { %v1658_v17 = vpop.permute.xlu0 %1657  ;;  %1793 = vmatpush1.bf16.msra.mxu0 %v1662_v4  ;;  %v1683_v44 = vsel %vm18720_vm7, %v1660_v29, %v1662_v4 }
 0x3e4   :  { %v1682_v5 = vsel %vm18720_vm7, %v1658_v17, %v1660_v29  ;;  %2492 = vrot.lane.b32.xlu1 %v13304_v13, %s12786_s24  ;;  %1739 = vmatprep.subr.bf16.mxu1 %v1683_v44 }
 0x3e5   :  { %2508 = vrot.lane.b32.xlu0 %v13301_v12, %s12786_s24  ;;  %1740 = vmatpush1.bf16.msra.mxu1 %v1682_v5 }
 0x3e6   :  { %1807 = vmatmul.mubr.bf16.vlgmr.msra.gmra.mrb[12].mxu0 %v12548_v15  ;;  %1847 = vmatprep.subr.bf16.mxu1 %v13225_v51  ;;  %v13612_v33 = vpop.permute.xlu1 %1994 }
 0x3e7   :  { %v13614_v45 = vpop.permute.xlu0 %2012  ;;  %1900 = vmatprep.subr.bf16.mxu0 %v18726_v31  ;;  %11742 = vmatprep.mubr.msk.bf16.mxu0 %vm18719_vm15, %v12551_v3 }
 0x3e8   :  { %1901 = vmatpush1.bf16.msra.mxu0 %v13267_v56  ;;  %2284 = vrot.lane.b32.xlu1 %v13434_v20, %s12785_s8  ;;  %v12556_v56 = vld [vmem:[%s18704_s4 + $0x4] ss:$8 sps:$4 sm:$0xff]  }
 0x3e9   :  { %2280 = vrot.lane.b32.xlu0 %v13438_v22, %s12785_s8  ;;  %1754 = vmatmul.mubr.bf16.vlgmr.msra.gmra.mrb[4].mxu1 %v12548_v15 }
 0x3ea   :  { %1848 = vmatpush1.bf16.msra.mxu1 %v13208_v48  ;;  %1902 = vmatprep.subr.bf16.mxu0 %v18726_v31  ;;  %v13625_v51 = vpop.permute.xlu1 %1998 }
 0x3eb   :  { %v13630_v14 = vpop.permute.xlu0 %2024  ;;  %1849 = vmatprep.subr.bf16.mxu1 %v13252_v54  ;;  %11740 = vmatprep.mubr.msk.bf16.mxu1 %vm18719_vm15, %v12551_v3 }
 0x3ec   :  { %1903 = vmatpush1.bf16.msra.mxu0 %v13277_v57  ;;  %2502 = vrot.lane.b32.xlu1 %v13374_v43, %s12786_s24 }
 0x3ed   :  { %2520 = vrot.lane.b32.xlu0 %v13312_v18, %s12786_s24  ;;  %1904 = vmatprep.subr.bf16.mxu0 %v18726_v31 }
 0x3ee   :  { %1850 = vmatpush1.bf16.msra.mxu1 %v13234_v53  ;;  %v13644_v48 = vpop.permute.xlu1 %1996  ;;  %1815 = vmatmul.mubr.bf16.gmra.mrb[16].mxu0 %v12553_v27 }
 0x3ef   :  { %v13646_v54 = vpop.permute.xlu0 %2230  ;;  %1851 = vmatprep.subr.bf16.mxu1 %v13295_v9  ;;  %11749 = vmatprep.mubr.msk.bf16.mxu0 %vm18719_vm15, %v12556_v56  ;;  %v2041_v15 = vsel %vm18718_vm8, %v13644_v48, %v13625_v51 }
 0x3f0   :  { %1905 = vmatpush1.bf16.msra.mxu0 %v13291_v8  ;;  %2506 = vrot.lane.b32.xlu1 %v13315_v19, %s12786_s24 }
 0x3f1   :  { %2532 = vrot.lane.b32.xlu0 %v13324_v24, %s12786_s24  ;;  %1906 = vmatprep.subr.bf16.mxu0 %v18726_v31 }
 0x3f2   :  { %1852 = vmatpush1.bf16.msra.mxu1 %v13304_v13  ;;  %v13657_v53 = vpop.permute.xlu1 %2006 }
 0x3f3   :  { %v13659_v57 = vpop.permute.xlu0 %2234  ;;  %1853 = vmatprep.subr.bf16.mxu1 %v13351_v25  ;;  %1764 = vmatmul.mubr.bf16.gmra.mrb[8].mxu1 %v12553_v27 }
 0x3f4   :  { %1907 = vmatpush1.bf16.msra.mxu0 %v13374_v43  ;;  %2504 = vrot.lane.b32.xlu1 %v13322_v23, %s12786_s24  ;;  %v12554_v43 = vld [vmem:[%s18704_s4] ss:$8 sps:$4 sm:$0xff]  }
 0x3f5   :  { %2500 = vrot.lane.b32.xlu0 %v13351_v25, %s12786_s24  ;;  %1908 = vmatprep.subr.bf16.mxu0 %v18726_v31 }
 0x3f6   :  { %1854 = vmatpush1.bf16.msra.mxu1 %v13364_v39  ;;  %v13669_v8 = vpop.permute.xlu1 %2010  ;;  %11747 = vmatprep.mubr.msk.bf16.mxu1 %vm18719_vm15, %v12556_v56 }
 0x3f7   :  { %v13672_v9 = vpop.permute.xlu0 %2232  ;;  %1855 = vmatprep.subr.bf16.mxu1 %v13315_v19  ;;  %v2046_v5 = vsel %vm18718_vm8, %v13669_v8, %v13614_v45 }
 0x3f8   :  { %1909 = vmatpush1.bf16.msra.mxu0 %v13301_v12  ;;  %2514 = vrot.lane.b32.xlu1 %v13393_v62, %s12786_s24 }
 0x3f9   :  { %2498 = vrot.lane.b32.xlu0 %v13364_v39, %s12786_s24  ;;  %1910 = vmatprep.subr.bf16.mxu0 %v18726_v31 }
 0x3fa   :  { %1856 = vmatpush1.bf16.msra.mxu1 %v13322_v23  ;;  %v13682_v13 = vpop.permute.xlu1 %2008 }
 0x3fb   :  { %v13684_v25 = vpop.permute.xlu0 %2242  ;;  %1857 = vmatprep.subr.bf16.mxu1 %v13371_v42  ;;  %v2045_v27 = vsel %vm18718_vm8, %v13682_v13, %v13669_v8 }
 0x3fc   :  { %1911 = vmatpush1.bf16.msra.mxu0 %v13393_v62  ;;  %2518 = vrot.lane.b32.xlu1 %v13331_v28, %s12786_s24  ;;  %v2033_v62 = vsel %vm18718_vm8, %v13358_v37, %v13402_v0  ;;  %v12559_v37 = vld [vmem:[%s18704_s4 + $0x10] ss:$8 sps:$4 sm:$0xff]  }
 0x3fd   :  { %2512 = vrot.lane.b32.xlu0 %v13371_v42, %s12786_s24  ;;  %1912 = vmatprep.subr.bf16.mxu0 %v18726_v31 }
 0x3fe   :  { %1858 = vmatpush1.bf16.msra.mxu1 %v13381_v46  ;;  %v13694_v12 = vpop.permute.xlu1 %2018 }
 0x3ff   :  { %v13696_v19 = vpop.permute.xlu0 %2254  ;;  %1859 = vmatprep.subr.bf16.mxu1 %v13331_v28 }
 0x400   :  { %1913 = vmatpush1.bf16.msra.mxu0 %v13312_v18  ;;  %2516 = vrot.lane.b32.xlu1 %v13341_v32, %s12786_s24 }
 0x401   :  { %2510 = vrot.lane.b32.xlu0 %v13381_v46, %s12786_s24  ;;  %1914 = vmatprep.subr.bf16.mxu0 %v18726_v31 }
 0x402   :  { %1860 = vmatpush1.bf16.msra.mxu1 %v13341_v32  ;;  %v13706_v23 = vpop.permute.xlu1 %2022 }
 0x403   :  { %v13708_v39 = vpop.permute.xlu0 %2266  ;;  %1861 = vmatprep.subr.bf16.mxu1 %v13396_v59 }
 0x404   :  { %1915 = vmatpush1.bf16.msra.mxu0 %v13417_v10  ;;  %2526 = vrot.lane.b32.xlu1 %v13417_v10, %s12786_s24  ;;  %v2712_v10 = vld [vmem:[%s18705_s5 + $0x8] sm:$0xff] }
 0x405   :  { %2524 = vrot.lane.b32.xlu0 %v13396_v59, %s12786_s24  ;;  %1916 = vmatprep.subr.bf16.mxu0 %v18726_v31  ;;  %v2711_v59 = vld [vmem:[%s18705_s5] sm:$0xff] }
 0x406   :  { %1862 = vmatpush1.bf16.msra.mxu1 %v13407_v2  ;;  %v13718_v18 = vpop.permute.xlu1 %2020 }
 0x407   :  { %v13720_v28 = vpop.permute.xlu0 %1992  ;;  %1863 = vmatprep.subr.bf16.mxu1 %v13348_v35 }
 0x408   :  { %1917 = vmatpush1.bf16.msra.mxu0 %v13324_v24  ;;  %2530 = vrot.lane.b32.xlu1 %v13348_v35, %s12786_s24  ;;  %v2034_v24 = vsel %vm18718_vm8, %v13402_v0, %v13400_v63  ;;  %v2035_v0 = vsel %vm18718_vm8, %v13521_v49, %v13492_v26  ;;  %v2040_v36 = vsel %vm18718_vm8, %v13720_v28, %v13612_v33 }
 0x409   :  { %2522 = vrot.lane.b32.xlu0 %v13407_v2, %s12786_s24  ;;  %1918 = vmatprep.subr.bf16.mxu0 %v18726_v31 }
 0x40a   :  { %1864 = vmatpush1.bf16.msra.mxu1 %v13361_v38  ;;  %v13730_v32 = vpop.permute.xlu1 %2228 }
 0x40b   :  { %v1991_v42 = vpop.permute.xlu0 %1990  ;;  %1865 = vmatprep.subr.bf16.mxu1 %v13422_v11 }
 0x40c   :  { %1919 = vmatpush1.bf16.msra.mxu0 %v13434_v20  ;;  %2528 = vrot.lane.b32.xlu1 %v13361_v38, %s12786_s24  ;;  %v12557_v38 = vld [vmem:[%s18704_s4 + $0x14] ss:$8 sps:$4 sm:$0xff]  }
 0x40d   :  { %2536 = vrot.lane.b32.xlu0 %v13422_v11, %s12786_s24  ;;  %2142 = vmatprep.subr.bf16.mxu0 %v18726_v31 }
 0x40e   :  { %1866 = vmatpush1.bf16.msra.mxu1 %v13438_v22  ;;  %v13746_v35 = vpop.permute.xlu1 %2226 }
 0x40f   :  { %v13748_v46 = vpop.permute.xlu0 %2004  ;;  %1933 = vmatmul.mubr.bf16.vlgmr.msra.gmra.mrb[20].mxu0 %v12554_v43  ;;  %2089 = vmatprep.subr.bf16.mxu1 %v2034_v24 }
 0x410   :  { %2143 = vmatpush1.bf16.msra.mxu0 %v13400_v63  ;;  %2538 = vrot.lane.b32.xlu1 %v13434_v20, %s12786_s24  ;;  %v2036_v63 = vsel %vm18718_vm8, %v13492_v26, %v13553_v34  ;;  %v2713_v20 = vld [vmem:[%s18705_s5 + $0x10] sm:$0xff]  ;;  %v12562_v26 = vld [vmem:[%s18704_s4 + $0x44] ss:$8 sps:$4 sm:$0xff]   ;;  %v2044_v17 = vsel %vm18718_vm8, %v13748_v46, %v13657_v53 }
 0x411   :  { %2534 = vrot.lane.b32.xlu0 %v13438_v22, %s12786_s24  ;;  %1880 = vmatmul.mubr.bf16.vlgmr.msra.gmra.mrb[4].mxu1 %v12554_v43  ;;  %v2038_v22 = vsel %vm18718_vm8, %v13569_v41, %v13527_v52  ;;  %v2042_v41 = vsel %vm18718_vm8, %v13625_v51, %v13589_v58 }
 0x412   :  { %2090 = vmatpush1.bf16.msra.mxu1 %v2033_v62  ;;  %2144 = vmatprep.subr.bf16.mxu0 %v18726_v31  ;;  %v13768_v2 = vpop.permute.xlu1 %2236 }
 0x413   :  { %v2003_v11 = vpop.permute.xlu0 %2002  ;;  %2091 = vmatprep.subr.bf16.mxu1 %v2036_v63  ;;  %11750 = vmatprep.mubr.msk.bf16.mxu0 %vm18719_vm15, %v12557_v38  ;;  %v2290_v63 = vsel %vm18717_vm9, %v13659_v57, %v13768_v2 }
 0x414   :  { %2145 = vmatpush1.bf16.msra.mxu0 %v13553_v34  ;;  %2717 = vperm.xlu1 %12547, %v2711_v59   ;;  %v2714_v34 = vld [vmem:[%s18705_s5 + $0x18] sm:$0xff]  ;;  %v2287_v59 = vsel %vm18717_vm9, %v13746_v35, %v13730_v32  ;;  %v2289_v35 = vsel %vm18717_vm9, %v13672_v9, %v13659_v57 }
 0x415   :  { %2722 = vperm.xlu0 %12546, %v2712_v10   ;;  %2146 = vmatprep.subr.bf16.mxu0 %v18726_v31 }
 0x416   :  { %2092 = vmatpush1.bf16.msra.mxu1 %v2035_v0  ;;  %v13788_v29 = vpop.permute.xlu1 %2240  ;;  %11748 = vmatprep.mubr.msk.bf16.mxu1 %vm18719_vm15, %v12557_v38 }
 0x417   :  { %v2017_v49 = vpop.permute.xlu0 %2016  ;;  %1941 = vmatmul.mubr.bf16.gmra.mrb[24].mxu0 %v12559_v37  ;;  %2093 = vmatprep.subr.bf16.mxu1 %v2038_v22 }
 0x418   :  { %2147 = vmatpush1.bf16.msra.mxu0 %v13527_v52  ;;  %2727 = vperm.xlu1 %12547, %v2713_v20   ;;  %v2039_v52 = vsel %vm18718_vm8, %v1991_v42, %v13720_v28  ;;  %v2048_v56 = vsel %vm18718_vm8, %v2017_v49, %v13694_v12 }
 0x419   :  { %2732 = vperm.xlu0 %12546, %v2714_v34   ;;  %2148 = vmatprep.subr.bf16.mxu0 %v18726_v31 }
 0x41a   :  { %2094 = vmatpush1.bf16.msra.mxu1 %v2037_v30  ;;  %v13805_v40 = vpop.permute.xlu1 %2238  ;;  %11761 = vmatprep.mubr.msk.bf16.mxu0 %vm18719_vm15, %v12562_v26 }
 0x41b   :  { %v2015_v60 = vpop.permute.xlu0 %2014  ;;  %2095 = vmatprep.subr.bf16.mxu1 %v2040_v36  ;;  %1890 = vmatmul.mubr.bf16.gmra.mrb[8].mxu1 %v12559_v37  ;;  %v2292_v37 = vsel %vm18717_vm9, %v13788_v29, %v13684_v25 }
 0x41c   :  { %2149 = vmatpush1.bf16.msra.mxu0 %v13612_v33  ;;  %11759 = vmatprep.mubr.msk.bf16.mxu1 %vm18719_vm15, %v12562_v26  ;;  %v2047_v28 = vsel %vm18718_vm8, %v2015_v60, %v2017_v49 }
 0x41d   :  { %2150 = vmatprep.subr.bf16.mxu0 %v18726_v31 }
 0x41e   :  { %2096 = vmatpush1.bf16.msra.mxu1 %v2039_v52  ;;  %v13816_v50 = vpop.permute.xlu1 %2248 }
 0x41f   :  { %v2029_v4 = vpop.permute.xlu0 %2028  ;;  %2097 = vmatprep.subr.bf16.mxu1 %v2042_v41 }
 0x420   :  { %2151 = vmatpush1.bf16.msra.mxu0 %v13589_v58  ;;  %v2043_v58 = vsel %vm18718_vm8, %v2003_v11, %v13748_v46  ;;  %v12560_v46 = vld [vmem:[%s18704_s4 + $0x40] ss:$8 sps:$4 sm:$0xff]  }
 0x421   :  { %2152 = vmatprep.subr.bf16.mxu0 %v18726_v31 }
 0x422   :  { %2098 = vmatpush1.bf16.msra.mxu1 %v2041_v15  ;;  %v13826_v44 = vpop.permute.xlu1 %2252 }
 0x423   :  { %v13828_v3 = vpop.permute.xlu0 %2278  ;;  %2099 = vmatprep.subr.bf16.mxu1 %v2044_v17 }
 0x424   :  { %2153 = vmatpush1.bf16.msra.mxu0 %v13657_v53 }
 0x425   :  { %2154 = vmatprep.subr.bf16.mxu0 %v18726_v31 }
 0x426   :  { %2100 = vmatpush1.bf16.msra.mxu1 %v2043_v58  ;;  %v13837_v33 = vpop.permute.xlu1 %2250 }
 0x427   :  { %v13839_v51 = vpop.permute.xlu0 %2484  ;;  %2101 = vmatprep.subr.bf16.mxu1 %v2046_v5  ;;  %v2295_v49 = vsel %vm18717_vm9, %v13837_v33, %v13826_v44 }
 0x428   :  { %2155 = vmatpush1.bf16.msra.mxu0 %v13614_v45  ;;  %v2050_v45 = vsel %vm18718_vm8, %v13706_v23, %v13630_v14 }
 0x429   :  { %2156 = vmatprep.subr.bf16.mxu0 %v18726_v31 }
 0x42a   :  { %2102 = vmatpush1.bf16.msra.mxu1 %v2045_v27  ;;  %v13848_v48 = vpop.permute.xlu1 %2260 }
 0x42b   :  { %v13850_v53 = vpop.permute.xlu0 %2488  ;;  %2103 = vmatprep.subr.bf16.mxu1 %v2048_v56 }
 0x42c   :  { %2157 = vmatpush1.bf16.msra.mxu0 %v13694_v12  ;;  %v2049_v12 = vsel %vm18718_vm8, %v13718_v18, %v13706_v23  ;;  %v2288_v23 = vsel %vm18717_vm9, %v13730_v32, %v13646_v54  ;;  %v12568_v32 = vld [vmem:[%s18704_s4 + $0x64] ss:$8 sps:$4 sm:$0xff]  }
 0x42d   :  { %2158 = vmatprep.subr.bf16.mxu0 %v18726_v31 }
 0x42e   :  { %2104 = vmatpush1.bf16.msra.mxu1 %v2047_v28  ;;  %v13858_v8 = vpop.permute.xlu1 %2264  ;;  %v12566_v28 = vld [vmem:[%s18704_s4 + $0x60] ss:$8 sps:$4 sm:$0xff]  }
 0x42f   :  { %v13860_v13 = vpop.permute.xlu0 %2486  ;;  %2105 = vmatprep.subr.bf16.mxu1 %v2050_v45 }
 0x430   :  { %2159 = vmatpush1.bf16.msra.mxu0 %v13630_v14  ;;  %v12563_v14 = vld [vmem:[%s18704_s4 + $0x54] ss:$8 sps:$4 sm:$0xff]  }
 0x431   :  { %2160 = vmatprep.subr.bf16.mxu0 %v18726_v31 }
 0x432   :  { %2106 = vmatpush1.bf16.msra.mxu1 %v2049_v12  ;;  %v2031_v42 = vpop.permute.xlu1 %2030 }
 0x433   :  { %v2027_v43 = vpop.permute.xlu0 %2026  ;;  %v2052_v24 = vsel %vm18718_vm8, %v2029_v4, %v2031_v42 }
 0x434   :  { %v2051_v38 = vsel %vm18718_vm8, %v2027_v43, %v2029_v4  ;;  %2161 = vmatpush1.bf16.msra.mxu0 %v2031_v42  ;;  %2107 = vmatprep.subr.bf16.mxu1 %v2052_v24 }
 0x435   :  { %2396 = vmatprep.subr.bf16.mxu0 %v18726_v31 }
 0x436   :  { %2108 = vmatpush1.bf16.msra.mxu1 %v2051_v38  ;;  %v13879_v18 = vpop.permute.xlu1 %2262 }
 0x437   :  { %v13881_v62 = vpop.permute.xlu0 %2496  ;;  %2175 = vmatmul.mubr.bf16.vlgmr.msra.gmra.mrb[28].mxu0 %v12560_v46  ;;  %2343 = vmatprep.subr.bf16.mxu1 %v2288_v23  ;;  %v2543_v23 = vsel %vm18716_vm10, %v13860_v13, %v13850_v53 }
 0x438   :  { %2397 = vmatpush1.bf16.msra.mxu0 %v13646_v54  ;;  %11762 = vmatprep.mubr.msk.bf16.mxu0 %vm18719_vm15, %v12563_v14  ;;  %v12565_v54 = vld [vmem:[%s18704_s4 + $0x50] ss:$8 sps:$4 sm:$0xff]  }
 0x439   :  { %2122 = vmatmul.mubr.bf16.vlgmr.msra.gmra.mrb[4].mxu1 %v12560_v46  ;;  %2398 = vmatprep.subr.bf16.mxu0 %v18726_v31 }
 0x43a   :  { %2344 = vmatpush1.bf16.msra.mxu1 %v2287_v59  ;;  %v2273_v10 = vpop.permute.xlu1 %2272  ;;  %11760 = vmatprep.mubr.msk.bf16.mxu1 %vm18719_vm15, %v12563_v14  ;;  %v12574_v14 = vld [vmem:[%s18704_s4 + $0x84] ss:$8 sps:$4 sm:$0xff]  }
 0x43b   :  { %v2247_v11 = vpop.permute.xlu0 %2246  ;;  %2345 = vmatprep.subr.bf16.mxu1 %v2290_v63 }
 0x43c   :  { %2399 = vmatpush1.bf16.msra.mxu0 %v13768_v2  ;;  %v2291_v2 = vsel %vm18717_vm9, %v13805_v40, %v13788_v29  ;;  %v2294_v57 = vsel %vm18717_vm9, %v2247_v11, %v13816_v50  ;;  %v2296_v29 = vsel %vm18717_vm9, %v13826_v44, %v13696_v19 }
 0x43d   :  { %2400 = vmatprep.subr.bf16.mxu0 %v18726_v31 }
 0x43e   :  { %2346 = vmatpush1.bf16.msra.mxu1 %v2289_v35  ;;  %v2277_v0 = vpop.permute.xlu1 %2276 }
 0x43f   :  { %v2245_v20 = vpop.permute.xlu0 %2244  ;;  %2183 = vmatmul.mubr.bf16.gmra.mrb[32].mxu0 %v12565_v54  ;;  %2347 = vmatprep.subr.bf16.mxu1 %v2292_v37 }
 0x440   :  { %2401 = vmatpush1.bf16.msra.mxu0 %v13684_v25  ;;  %11773 = vmatprep.mubr.msk.bf16.mxu0 %vm18719_vm15, %v12568_v32  ;;  %v2293_v25 = vsel %vm18717_vm9, %v2245_v20, %v2247_v11 }
 0x441   :  { %2402 = vmatprep.subr.bf16.mxu0 %v18726_v31  ;;  %2132 = vmatmul.mubr.bf16.gmra.mrb[8].mxu1 %v12565_v54 }
 0x442   :  { %2348 = vmatpush1.bf16.msra.mxu1 %v2291_v2  ;;  %v2275_v9 = vpop.permute.xlu1 %2274  ;;  %11771 = vmatprep.mubr.msk.bf16.mxu1 %vm18719_vm15, %v12568_v32 }
 0x443   :  { %v2259_v22 = vpop.permute.xlu0 %2258  ;;  %2349 = vmatprep.subr.bf16.mxu1 %v2294_v57  ;;  %v2303_v33 = vsel %vm18717_vm9, %v2275_v9, %v2277_v0 }
 0x444   :  { %2403 = vmatpush1.bf16.msra.mxu0 %v13816_v50  ;;  %v2298_v30 = vsel %vm18717_vm9, %v2259_v22, %v13848_v48  ;;  %v2299_v50 = vsel %vm18717_vm9, %v13879_v18, %v13858_v8 }
 0x445   :  { %2404 = vmatprep.subr.bf16.mxu0 %v18726_v31 }
 0x446   :  { %2350 = vmatpush1.bf16.msra.mxu1 %v2293_v25  ;;  %v2483_v34 = vpop.permute.xlu1 %2482 }
 0x447   :  { %v2257_v26 = vpop.permute.xlu0 %2256  ;;  %2351 = vmatprep.subr.bf16.mxu1 %v2296_v29 }
 0x448   :  { %2405 = vmatpush1.bf16.msra.mxu0 %v13696_v19  ;;  %v2297_v60 = vsel %vm18717_vm9, %v2257_v26, %v2259_v22  ;;  %v2300_v19 = vsel %vm18717_vm9, %v13858_v8, %v13708_v39  ;;  %v2542_v8 = vsel %vm18716_vm10, %v2483_v34, %v13839_v51 }
 0x449   :  { %2406 = vmatprep.subr.bf16.mxu0 %v18726_v31 }
 0x44a   :  { %2352 = vmatpush1.bf16.msra.mxu1 %v2295_v49  ;;  %v2481_v36 = vpop.permute.xlu1 %2480 }
 0x44b   :  { %v2271_v40 = vpop.permute.xlu0 %2270  ;;  %2353 = vmatprep.subr.bf16.mxu1 %v2298_v30  ;;  %v2541_v43 = vsel %vm18716_vm10, %v2481_v36, %v2483_v34 }
 0x44c   :  { %2407 = vmatpush1.bf16.msra.mxu0 %v13848_v48  ;;  %v2302_v4 = vsel %vm18717_vm9, %v2271_v40, %v2273_v10 }
 0x44d   :  { %2408 = vmatprep.subr.bf16.mxu0 %v18726_v31 }
 0x44e   :  { %2354 = vmatpush1.bf16.msra.mxu1 %v2297_v60  ;;  %v2491_v52 = vpop.permute.xlu1 %2490 }
 0x44f   :  { %v2269_v41 = vpop.permute.xlu0 %2268  ;;  %2355 = vmatprep.subr.bf16.mxu1 %v2300_v19  ;;  %v2544_v24 = vsel %vm18716_vm10, %v13850_v53, %v2491_v52 }
 0x450   :  { %2409 = vmatpush1.bf16.msra.mxu0 %v13708_v39  ;;  %v2301_v44 = vsel %vm18717_vm9, %v2269_v41, %v2271_v40  ;;  %v2304_v39 = vsel %vm18717_vm9, %v2277_v0, %v13828_v3 }
 0x451   :  { %2410 = vmatprep.subr.bf16.mxu0 %v18726_v31 }
 0x452   :  { %2356 = vmatpush1.bf16.msra.mxu1 %v2299_v50  ;;  %v2495_v15 = vpop.permute.xlu1 %2494 }
 0x453   :  { %v2283_v17 = vpop.permute.xlu0 %2282  ;;  %2357 = vmatprep.subr.bf16.mxu1 %v2302_v4  ;;  %v2546_v18 = vsel %vm18716_vm10, %v2495_v15, %v13881_v62  ;;  %v12572_v4 = vld [vmem:[%s18704_s4 + $0x80] ss:$8 sps:$4 sm:$0xff]  }
 0x454   :  { %2411 = vmatpush1.bf16.msra.mxu0 %v2273_v10 }
 0x455   :  { %2412 = vmatprep.subr.bf16.mxu0 %v18726_v31 }
 0x456   :  { %2358 = vmatpush1.bf16.msra.mxu1 %v2301_v44  ;;  %v2493_v58 = vpop.permute.xlu1 %2492  ;;  %v12577_v44 = vld [vmem:[%s18704_s4 + $0x90] ss:$8 sps:$4 sm:$0xff]  }
 0x457   :  { %v2509_v5 = vpop.permute.xlu0 %2508  ;;  %2359 = vmatprep.subr.bf16.mxu1 %v2304_v39  ;;  %v2545_v10 = vsel %vm18716_vm10, %v2493_v58, %v2495_v15 }
 0x458   :  { %2413 = vmatpush1.bf16.msra.mxu0 %v13828_v3  ;;  %v12569_v3 = vld [vmem:[%s18704_s4 + $0x74] ss:$8 sps:$4 sm:$0xff]  }
 0x459   :  { %2414 = vmatprep.subr.bf16.mxu0 %v18726_v31 }
 0x45a   :  { %2360 = vmatpush1.bf16.msra.mxu1 %v2303_v33  ;;  %v2285_v27 = vpop.permute.xlu1 %2284 }
 0x45b   :  { %v2281_v56 = vpop.permute.xlu0 %2280  ;;  %v2306_v48 = vsel %vm18717_vm9, %v2283_v17, %v2285_v27 }
 0x45c   :  { %v2305_v45 = vsel %vm18717_vm9, %v2281_v56, %v2283_v17  ;;  %2415 = vmatpush1.bf16.msra.mxu0 %v2285_v27  ;;  %2361 = vmatprep.subr.bf16.mxu1 %v2306_v48  ;;  %v12575_v17 = vld [vmem:[%s18704_s4 + $0x94] ss:$8 sps:$4 sm:$0xff]  }
 0x45d   :  { %2650 = vmatprep.subr.bf16.mxu0 %v18726_v31 }
 0x45e   :  { %2362 = vmatpush1.bf16.msra.mxu1 %v2305_v45  ;;  %v2503_v12 = vpop.permute.xlu1 %2502 }
 0x45f   :  { %v2521_v42 = vpop.permute.xlu0 %2520  ;;  %2429 = vmatmul.mubr.bf16.vlgmr.msra.gmra.mrb[36].mxu0 %v12566_v28  ;;  %2597 = vmatprep.subr.bf16.mxu1 %v2542_v8 }
 0x460   :  { %2651 = vmatpush1.bf16.msra.mxu0 %v13839_v51  ;;  %11774 = vmatprep.mubr.msk.bf16.mxu0 %vm18719_vm15, %v12569_v3  ;;  %v12571_v51 = vld [vmem:[%s18704_s4 + $0x70] ss:$8 sps:$4 sm:$0xff]  }
 0x461   :  { %2376 = vmatmul.mubr.bf16.vlgmr.msra.gmra.mrb[4].mxu1 %v12566_v28  ;;  %2652 = vmatprep.subr.bf16.mxu0 %v18726_v31 }
 0x462   :  { %2598 = vmatpush1.bf16.msra.mxu1 %v2541_v43  ;;  %v2507_v46 = vpop.permute.xlu1 %2506  ;;  %11772 = vmatprep.mubr.msk.bf16.mxu1 %vm18719_vm15, %v12569_v3 }
 0x463   :  { %v13966_v38 = vpop.permute.xlu0 %2532  ;;  %2599 = vmatprep.subr.bf16.mxu1 %v2544_v24 }
 0x464   :  { %2653 = vmatpush1.bf16.msra.mxu0 %v2491_v52 }
 0x465   :  { %2654 = vmatprep.subr.bf16.mxu0 %v18726_v31 }
 0x466   :  { %2600 = vmatpush1.bf16.msra.mxu1 %v2543_v23  ;;  %v2505_v59 = vpop.permute.xlu1 %2504 }
 0x467   :  { %v2501_v63 = vpop.permute.xlu0 %2500  ;;  %2437 = vmatmul.mubr.bf16.gmra.mrb[40].mxu0 %v12571_v51  ;;  %2601 = vmatprep.subr.bf16.mxu1 %v2546_v18  ;;  %v2549_v37 = vsel %vm18716_vm10, %v2505_v59, %v2507_v46 }
 0x468   :  { %2655 = vmatpush1.bf16.msra.mxu0 %v13881_v62  ;;  %11785 = vmatprep.mubr.msk.bf16.mxu0 %vm18719_vm15, %v12574_v14  ;;  %v2548_v53 = vsel %vm18716_vm10, %v2501_v63, %v2503_v12  ;;  %v2550_v62 = vsel %vm18716_vm10, %v2507_v46, %v2509_v5 }
 0x469   :  { %2656 = vmatprep.subr.bf16.mxu0 %v18726_v31  ;;  %2386 = vmatmul.mubr.bf16.gmra.mrb[8].mxu1 %v12571_v51 }
 0x46a   :  { %2602 = vmatpush1.bf16.msra.mxu1 %v2545_v10  ;;  %v2515_v13 = vpop.permute.xlu1 %2514  ;;  %11783 = vmatprep.mubr.msk.bf16.mxu1 %vm18719_vm15, %v12574_v14 }
 0x46b   :  { %v2499_v11 = vpop.permute.xlu0 %2498  ;;  %2603 = vmatprep.subr.bf16.mxu1 %v2548_v53 }
 0x46c   :  { %v2547_v54 = vsel %vm18716_vm10, %v2499_v11, %v2501_v63  ;;  %2657 = vmatpush1.bf16.msra.mxu0 %v2503_v12 }
 0x46d   :  { %2658 = vmatprep.subr.bf16.mxu0 %v18726_v31 }
 0x46e   :  { %2604 = vmatpush1.bf16.msra.mxu1 %v2547_v54  ;;  %v2519_v32 = vpop.permute.xlu1 %2518 }
 0x46f   :  { %v2513_v35 = vpop.permute.xlu0 %2512  ;;  %2605 = vmatprep.subr.bf16.mxu1 %v2550_v62  ;;  %v2554_v9 = vsel %vm18716_vm10, %v2519_v32, %v2521_v42 }
 0x470   :  { %2659 = vmatpush1.bf16.msra.mxu0 %v2509_v5  ;;  %v2552_v0 = vsel %vm18716_vm10, %v2513_v35, %v2515_v13 }
 0x471   :  { %2660 = vmatprep.subr.bf16.mxu0 %v18726_v31 }
 0x472   :  { %2606 = vmatpush1.bf16.msra.mxu1 %v2549_v37  ;;  %v2517_v20 = vpop.permute.xlu1 %2516 }
 0x473   :  { %v2511_v2 = vpop.permute.xlu0 %2510  ;;  %2607 = vmatprep.subr.bf16.mxu1 %v2552_v0  ;;  %v2553_v29 = vsel %vm18716_vm10, %v2517_v20, %v2519_v32 }
 0x474   :  { %v2551_v57 = vsel %vm18716_vm10, %v2511_v2, %v2513_v35  ;;  %2661 = vmatpush1.bf16.msra.mxu0 %v2515_v13 }
 0x475   :  { %2662 = vmatprep.subr.bf16.mxu0 %v18726_v31 }
 0x476   :  { %2608 = vmatpush1.bf16.msra.mxu1 %v2551_v57  ;;  %v2527_v22 = vpop.permute.xlu1 %2526 }
 0x477   :  { %v2525_v25 = vpop.permute.xlu0 %2524  ;;  %2609 = vmatprep.subr.bf16.mxu1 %v2554_v9 }
 0x478   :  { %2663 = vmatpush1.bf16.msra.mxu0 %v2521_v42  ;;  %v2556_v34 = vsel %vm18716_vm10, %v2525_v25, %v2527_v22 }
 0x479   :  { %2664 = vmatprep.subr.bf16.mxu0 %v18726_v31 }
 0x47a   :  { %2610 = vmatpush1.bf16.msra.mxu1 %v2553_v29  ;;  %v2531_v26 = vpop.permute.xlu1 %2530 }
 0x47b   :  { %v2523_v49 = vpop.permute.xlu0 %2522  ;;  %2611 = vmatprep.subr.bf16.mxu1 %v2556_v34  ;;  %v2558_v36 = vsel %vm18716_vm10, %v2531_v26, %v13966_v38 }
 0x47c   :  { %v2555_v30 = vsel %vm18716_vm10, %v2523_v49, %v2525_v25  ;;  %2665 = vmatpush1.bf16.msra.mxu0 %v2527_v22 }
 0x47d   :  { %2666 = vmatprep.subr.bf16.mxu0 %v18726_v31 }
 0x47e   :  { %2612 = vmatpush1.bf16.msra.mxu1 %v2555_v30  ;;  %v2529_v40 = vpop.permute.xlu1 %2528 }
 0x47f   :  { %v2537_v60 = vpop.permute.xlu0 %2536  ;;  %2613 = vmatprep.subr.bf16.mxu1 %v2558_v36  ;;  %v2557_v19 = vsel %vm18716_vm10, %v2529_v40, %v2531_v26 }
 0x480   :  { %2667 = vmatpush1.bf16.msra.mxu0 %v13966_v38 }
 0x481   :  { %2668 = vmatprep.subr.bf16.mxu0 %v18726_v31 }
 0x482   :  { %2614 = vmatpush1.bf16.msra.mxu1 %v2557_v19  ;;  %v2539_v52 = vpop.permute.xlu1 %2538 }
 0x483   :  { %v2535_v41 = vpop.permute.xlu0 %2534  ;;  %v2560_v50 = vsel %vm18716_vm10, %v2537_v60, %v2539_v52 }
 0x484   :  { %v2559_v15 = vsel %vm18716_vm10, %v2535_v41, %v2537_v60  ;;  %2669 = vmatpush1.bf16.msra.mxu0 %v2539_v52  ;;  %2615 = vmatprep.subr.bf16.mxu1 %v2560_v50 }
 0x485   :  { %3273 = vmatprep.subr.bf16.mxu0 %v18726_v31 }
 0x486   :  { %2616 = vmatpush1.bf16.msra.mxu1 %v2559_v15 }
 0x487   :  { %2683 = vmatmul.mubr.bf16.vlgmr.msra.gmra.mrb[44].mxu0 %v12572_v4 }
 0x488   :  { %11786 = vmatprep.mubr.msk.bf16.mxu0 %vm18719_vm15, %v12575_v17 }
 0x489   :  { %2630 = vmatmul.mubr.bf16.vlgmr.msra.gmra.mrb[4].mxu1 %v12572_v4 }
 0x48a   :  { %11784 = vmatprep.mubr.msk.bf16.mxu1 %vm18719_vm15, %v12575_v17 }
 0x48f   :  { %2691 = vmatmul.mubr.bf16.gmra.mrb[48].mxu0 %v12577_v44 }
 0x491   :  { %2640 = vmatmul.mubr.bf16.gmra.mrb[8].mxu1 %v12577_v44 }
 0x493   :  { %v2718_v40 = vpop.permute.xlu1 %2717 }
 0x4b9   :  { %v1808_v39 = vpop.f32.mrb[12].mxu0 }
 0x4ba   :  { %v1810_v58 = vpop.f32.mrb[13].mxu0 }
 0x4bb   :  { %v1811_v5 = vpop.f32.mrb[14].mxu0 }
 0x4bc   :  { %v1813_v33 = vpop.f32.mrb[15].mxu0 }
 0x4c1   :  { %v1816_v27 = vpop.f32.mrb[16].mxu0 }
 0x4c2   :  { %v1818_v56 = vpop.f32.mrb[17].mxu0 }
 0x4c3   :  { %v1819_v48 = vpop.f32.mrb[18].mxu0 }
 0x4c4   :  { %v1821_v28 = vpop.f32.mrb[19].mxu0 }
 0x4e2   :  { %v1934_v45 = vpop.f32.mrb[20].mxu0 }
 0x4e3   :  { %v1935_v3 = vadd.f32 %v1934_v45, %v1808_v39  ;;  %v1936_v8 = vpop.f32.mrb[21].mxu0 }
 0x4e4   :  { %v1937_v12 = vpop.f32.mrb[22].mxu0 }
 0x4e5   :  { %v1938_v42 = vadd.f32 %v1937_v12, %v1811_v5  ;;  %v1939_v43 = vpop.f32.mrb[23].mxu0  ;;  %v2723_v5 = vpop.permute.xlu0 %2722 }
 0x4ea   :  { %v1942_v24 = vpop.f32.mrb[24].mxu0 }
 0x4eb   :  { %v1943_v46 = vadd.f32 %v1942_v24, %v1816_v27  ;;  %v1944_v38 = vpop.f32.mrb[25].mxu0  ;;  %v2728_v24 = vpop.permute.xlu1 %2727 }
 0x4ec   :  { %v1945_v51 = vpop.f32.mrb[26].mxu0 }
 0x4ed   :  { %v1946_v14 = vadd.f32 %v1945_v51, %v1819_v48  ;;  %v1947_v23 = vpop.f32.mrb[27].mxu0 }
 0x50a   :  { %v2176_v18 = vpop.f32.mrb[28].mxu0 }
 0x50b   :  { %v2193_v59 = vadd.f32 %v2176_v18, %v1935_v3  ;;  %v2178_v63 = vpop.f32.mrb[29].mxu0 }
 0x50c   :  { %v2179_v10 = vpop.f32.mrb[30].mxu0 }
 0x50d   :  { %v2196_v53 = vadd.f32 %v2179_v10, %v1938_v42  ;;  %v2181_v13 = vpop.f32.mrb[31].mxu0 }
 0x512   :  { %v2184_v11 = vpop.f32.mrb[32].mxu0 }
 0x513   :  { %v2199_v54 = vadd.f32 %v2184_v11, %v1943_v46  ;;  %v2186_v62 = vpop.f32.mrb[33].mxu0 }
 0x514   :  { %v2187_v32 = vpop.f32.mrb[34].mxu0 }
 0x515   :  { %v2202_v35 = vadd.f32 %v2187_v32, %v1946_v14  ;;  %v2189_v37 = vpop.f32.mrb[35].mxu0 }
 0x532   :  { %v2430_v0 = vpop.f32.mrb[36].mxu0 }
 0x533   :  { %v2447_v20 = vadd.f32 %v2430_v0, %v2193_v59  ;;  %v2432_v2 = vpop.f32.mrb[37].mxu0 }
 0x534   :  { %v2433_v57 = vpop.f32.mrb[38].mxu0 }
 0x535   :  { %v2450_v9 = vadd.f32 %v2433_v57, %v2196_v53  ;;  %v2435_v22 = vpop.f32.mrb[39].mxu0  ;;  %v2733_v57 = vpop.permute.xlu0 %2732 }
 0x53a   :  { %v2438_v25 = vpop.f32.mrb[40].mxu0 }
 0x53b   :  { %v2453_v29 = vadd.f32 %v2438_v25, %v2199_v54  ;;  %v2440_v34 = vpop.f32.mrb[41].mxu0 }
 0x53c   :  { %v2441_v26 = vpop.f32.mrb[42].mxu0 }
 0x53d   :  { %v2456_v49 = vadd.f32 %v2441_v26, %v2202_v35  ;;  %v2443_v30 = vpop.f32.mrb[43].mxu0 }
 0x55a   :  { %v2684_v36 = vpop.f32.mrb[44].mxu0 }
 0x55b   :  { %v2701_v60 = vadd.f32 %v2684_v36, %v2447_v20  ;;  %v2686_v19 = vpop.f32.mrb[45].mxu0 }
 0x55c   :  { %v2631_v52 = vpop.f32.mrb[4].mxu1  ;;  %v2687_v41 = vpop.f32.mrb[46].mxu0 }
 0x55d   :  { %v2737_v50 = vadd.f32 %v2718_v40, %v2701_v60  ;;  %v2735_v4 = vadd.f32 %v2718_v40, %v2631_v52  ;;  %v2704_v15 = vadd.f32 %v2687_v41, %v2450_v9  ;;  %v2633_v17 = vpop.f32.mrb[5].mxu1  ;;  %v2689_v44 = vpop.f32.mrb[47].mxu0 }
 0x55e   :  { %v2736_v39 = vadd.f32 %v2718_v40, %v2633_v17  ;;  %v2635_v58 = vpop.f32.mrb[6].mxu1 }
 0x55f   :  { %vm2749_vm5 = vcmp.ge.f32.partialorder %v2737_v50, 0.0  ;;  %v2761_v33 = vmul.f32 0.2, %v2737_v50  ;;  %vm2747_vm10 = vcmp.ge.f32.partialorder %v2735_v4, 0.0  ;;  %v2759_v27 = vmul.f32 0.2, %v2735_v4 }
 0x560   :  { %v2740_v56 = vadd.f32 %v2723_v5, %v2704_v15  ;;  %vm2748_vm9 = vcmp.ge.f32.partialorder %v2736_v39, 0.0  ;;  %v2760_v48 = vmul.f32 0.2, %v2736_v39  ;;  %v2738_v28 = vadd.f32 %v2723_v5, %v2635_v58  ;;  %v2637_v45 = vpop.f32.mrb[7].mxu1 }
 0x561   :  { %v2771_v3 = vsel %vm2747_vm10, %v2735_v4, %v2759_v27  ;;  %v2739_v8 = vadd.f32 %v2723_v5, %v2637_v45  ;;  %v2773_v12 = vsel %vm2749_vm5, %v2737_v50, %v2761_v33  ;;  %vm18736_vm10 = vcmp.gt.f32.partialorder %v13138_v16, 0.5 }
 0x562   :  { %vm2752_vm8 = vcmp.ge.f32.partialorder %v2740_v56, 0.0  ;;  %v2764_v42 = vmul.f32 0.2, %v2740_v56  ;;  %v2692_v43 = vpop.f32.mrb[48].mxu0  ;;  %v2772_v46 = vsel %vm2748_vm9, %v2736_v39, %v2760_v48  ;;  %vm2750_vm15 = vcmp.ge.f32.partialorder %v2738_v28, 0.0  ;;  %vm18737_vm5 = vmmov %vm18736_vm10 }
 0x563   :  { %v2762_v38 = vmul.f32 0.2, %v2738_v28  ;;  %vm2751_vm7 = vcmp.ge.f32.partialorder %v2739_v8, 0.0  ;;  %v2694_v51 = vpop.f32.mrb[49].mxu0  ;;  %v2783_v14 = vsel %vm13172_vm13, %v2771_v3, 0.0  ;;  %v2707_v59 = vadd.f32 %v2692_v43, %v2453_v29  ;;  %v2974_v43 = vld [vmem:[#allocation2 + $0x38] sm:$0xff] }
 0x564   :  { %v2776_v23 = vsel %vm2752_vm8, %v2740_v56, %v2764_v42  ;;  %v2763_v18 = vmul.f32 0.2, %v2739_v8  ;;  %v2641_v63 = vpop.f32.mrb[8].mxu1  ;;  %v2695_v10 = vpop.f32.mrb[50].mxu0  ;;  %v2784_v53 = vsel %vm86_vm6, %v2772_v46, 0.0  ;;  %v2785_v41 = vsel %vm18737_vm5, %v2773_v12, 0.0 }
 0x565   :  { %v2774_v13 = vsel %vm2750_vm15, %v2738_v28, %v2762_v38  ;;  %v2741_v11 = vadd.f32 %v2728_v24, %v2641_v63  ;;  %v2710_v54 = vadd.f32 %v2695_v10, %v2456_v49  ;;  %v2643_v62 = vpop.f32.mrb[9].mxu1  ;;  %v2697_v32 = vpop.f32.mrb[51].mxu0  ;;  %v2743_v0 = vadd.f32 %v2728_v24, %v2707_v59  ;;  %v2970_v42 = vld [vmem:[#allocation2 + $0x18] sm:$0xff] }
 0x566   :  { %v2786_v35 = vsel %vm13172_vm13, %v2774_v13, 0.0  ;;  %v2775_v37 = vsel %vm2751_vm7, %v2739_v8, %v2763_v18  ;;  %v2742_v20 = vadd.f32 %v2728_v24, %v2643_v62  ;;  %v2645_v2 = vpop.f32.mrb[10].mxu1  ;;  %v2788_v30 = vsel %vm18736_vm10, %v2776_v23, 0.0 }
 0x567   :  { %v2795_v9 = vpack.c.bf16 %v2786_v35, %v2783_v14  ;;  %v2787_v22 = vsel %vm86_vm6, %v2775_v37, 0.0  ;;  %vm2753_vm8 = vcmp.ge.f32.partialorder %v2741_v11, 0.0  ;;  %v2765_v25 = vmul.f32 0.2, %v2741_v11  ;;  %v2647_v29 = vpop.f32.mrb[11].mxu1 }
 0x568   :  { %v2796_v34 = vpack.c.bf16 %v2787_v22, %v2784_v53  ;;  %vm2755_vm9 = vcmp.ge.f32.partialorder %v2743_v0, 0.0  ;;  %v2767_v26 = vmul.f32 0.2, %v2743_v0  ;;  %v2746_v49 = vadd.f32 %v2733_v57, %v2710_v54 }
 0x569   :  { %v2777_v36 = vsel %vm2753_vm8, %v2741_v11, %v2765_v25  ;;  %v2766_v40 = vmul.f32 0.2, %v2742_v20  ;;  %v2744_v60 = vadd.f32 %v2733_v57, %v2645_v2  ;;  %vm2754_vm15 = vcmp.ge.f32.partialorder %v2742_v20, 0.0  ;;  %vm18738_vm8 = vmmov %vm18737_vm5 }
 0x56a   :  { %v2779_v19 = vsel %vm2755_vm9, %v2743_v0, %v2767_v26  ;;  %vm2758_vm7 = vcmp.ge.f32.partialorder %v2746_v49, 0.0  ;;  %v2770_v52 = vmul.f32 0.2, %v2746_v49  ;;  %2809 = vrot.lane.b32.xlu0 %v2796_v34, %s12788_s1  ;;  %v2789_v4 = vsel %vm13172_vm13, %v2777_v36, 0.0  ;;  %vm18739_vm9 = vmmov %vm18737_vm5 }
 0x56b   :  { %vm2756_vm4 = vcmp.ge.f32.partialorder %v2744_v60, 0.0  ;;  %v2768_v50 = vmul.f32 0.2, %v2744_v60  ;;  %v2745_v17 = vadd.f32 %v2733_v57, %v2647_v29  ;;  %v2797_v44 = vpack.c.bf16 %v2788_v30, %v2785_v41 }
 0x56c   :  { %v2782_v15 = vsel %vm2758_vm7, %v2746_v49, %v2770_v52  ;;  %v2791_v39 = vsel %vm18738_vm8, %v2779_v19, 0.0  ;;  %v2778_v5 = vsel %vm2754_vm15, %v2742_v20, %v2766_v40  ;;  %vm18744_vm8 = vcmask 1039360  }
 0x56d   :  { %v2794_v58 = vsel %vm18739_vm9, %v2782_v15, 0.0  ;;  %v2780_v33 = vsel %vm2756_vm4, %v2744_v60, %v2768_v50  ;;  %vm2757_vm10 = vcmp.ge.f32.partialorder %v2745_v17, 0.0  ;;  %v2769_v56 = vmul.f32 0.2, %v2745_v17  ;;  %2811 = vrot.lane.b32.xlu1 %v2797_v44, %s12788_s1  ;;  %vm18745_vm9 = vmmov %vm18744_vm8 }
 0x56e   :  { %v2792_v27 = vsel %vm13172_vm13, %v2780_v33, 0.0  ;;  %v2800_v48 = vpack.c.bf16 %v2794_v58, %v2791_v39  ;;  %v2790_v3 = vsel %vm86_vm6, %v2778_v5, 0.0  ;;  %vm18740_vm4 = vcmask 719872  }
 0x56f   :  { %v2798_v28 = vpack.c.bf16 %v2792_v27, %v2789_v4  ;;  %v2781_v45 = vsel %vm2757_vm10, %v2745_v17, %v2769_v56  ;;  %vm18741_vm7 = vmmov %vm18740_vm4  ;;  %vm18746_vm10 = vcmask 261120  }
 0x570   :  { %v2793_v8 = vsel %vm86_vm6, %v2781_v45, 0.0  ;;  %vm18742_vm15 = vmmov %vm18740_vm4 }
 0x571   :  { %2813 = vrot.lane.b32.xlu0 %v2798_v28, %s12788_s1  ;;  %v2799_v12 = vpack.c.bf16 %v2793_v8, %v2790_v3  ;;  %2807 = vrot.lane.b32.xlu1 %v2795_v9, %s12788_s1  ;;  %vm18743_vm5 = vmmov %vm18740_vm4 }
 0x575   :  { %2817 = vrot.lane.b32.xlu0 %v2800_v48, %s12788_s1  ;;  %2815 = vrot.lane.b32.xlu1 %v2799_v12, %s12788_s1 }
 0x579   :  { %2989 = vrot.lane.b32.xlu1 %v2970_v42, %s12780_s29 }
 0x57d   :  { %2997 = vrot.lane.b32.xlu1 %v2974_v43, %s12780_s29 }
 0x5dc   :  { %v2810_v24 = vpop.permute.xlu0 %2809 }
 0x5df   :  { %v2812_v46 = vpop.permute.xlu1 %2811 }
 0x5e0   :  { %v2820_v38 = vsel %vm59_vm11, %v2810_v24, %v2812_v46 }
 0x5e1   :  { %2831 = vst.msk [vmem:[#allocation2 + $0x10] sm:$0xff] %vm1325_vm12, %v2820_v38 }
 0x5e3   :  { %v2814_v51 = vpop.permute.xlu0 %2813  ;;  %v2808_v14 = vpop.permute.xlu1 %2807 }
 0x5e4   :  { %2832 = vst.msk [vmem:[#allocation2 + $0x20] sm:$0xff] %vm1322_vm14, %v2814_v51  ;;  %2829 = vst.msk [vmem:[#allocation2] sm:$0xff] %vm1322_vm14, %v2808_v14  ;;  %v14072_v13 = vsel %vm59_vm11, %v2808_v14, %v2810_v24 }
 0x5e7   :  { %v2818_v23 = vpop.permute.xlu0 %2817  ;;  %v2816_v18 = vpop.permute.xlu1 %2815 }
 0x5e8   :  { %v2822_v59 = vsel %vm59_vm11, %v2816_v18, %v2818_v23  ;;  %v2849_v63 = vld [vmem:[#allocation2 + $0x10] sm:$0xff]  ;;  %v14098_v54 = vsel %vm59_vm11, %v2814_v51, %v2816_v18 }
 0x5e9   :  { %2834 = vst.msk [vmem:[#allocation2 + $0x30] sm:$0xff] %vm1325_vm12, %v2822_v59 }
 0x5ea   :  { %2843 = vst.msk [vmem:[#allocation3 + $0x10] sm:$0xff] %vm122_vm1, %v2849_v63 }
 0x5eb   :  { %v14058_v10 = vld [vmem:[#allocation2] sm:$0xff]  ;;  %v2990_v35 = vpop.permute.xlu1 %2989 }
 0x5ec   :  { %2983 = vrot.lane.b32.xlu0 %v14058_v10, %s12780_s29  ;;  %2859 = vrot.lane.b32.xlu1 %v14058_v10, %s12779_s23  ;;  %v14080_v11 = vld [vmem:[#allocation2 + $0x20] sm:$0xff] }
 0x5ef   :  { %v14133_v37 = vpop.permute.xlu1 %2997 }
 0x5f0   :  { %2863 = vrot.lane.b32.xlu0 %v2849_v63, %s12779_s23  ;;  %2899 = vrot.lane.b32.xlu1 %v14058_v10, %s12781_s30  ;;  %v2852_v53 = vld [vmem:[#allocation2 + $0x30] sm:$0xff] }
 0x5f1   :  { %2846 = vst.msk [vmem:[#allocation3 + $0x28] sm:$0xff] %vm122_vm1, %v2852_v53  ;;  %v14113_v62 = vld [vmem:[#allocation3 + $0x10] sm:$0xff] }
 0x5f4   :  { %2903 = vrot.lane.b32.xlu0 %v2849_v63, %s12781_s30  ;;  %2939 = vrot.lane.b32.xlu1 %v14058_v10, %s12778_s22 }
 0x5f8   :  { %2943 = vrot.lane.b32.xlu0 %v2849_v63, %s12778_s22  ;;  %2861 = vrot.lane.b32.xlu1 %v14072_v13, %s12779_s23  ;;  %v14123_v32 = vld [vmem:[#allocation3 + $0x28] sm:$0xff] }
 0x5fc   :  { %2987 = vrot.lane.b32.xlu0 %v2849_v63, %s12780_s29  ;;  %2901 = vrot.lane.b32.xlu1 %v14072_v13, %s12781_s30 }
 0x600   :  { %2865 = vrot.lane.b32.xlu0 %v14080_v11, %s12779_s23  ;;  %2941 = vrot.lane.b32.xlu1 %v14072_v13, %s12778_s22 }
 0x604   :  { %2905 = vrot.lane.b32.xlu0 %v14080_v11, %s12781_s30  ;;  %2985 = vrot.lane.b32.xlu1 %v14072_v13, %s12780_s29 }
 0x608   :  { %2945 = vrot.lane.b32.xlu0 %v14080_v11, %s12778_s22  ;;  %2869 = vrot.lane.b32.xlu1 %v2852_v53, %s12779_s23 }
 0x60c   :  { %2991 = vrot.lane.b32.xlu0 %v14080_v11, %s12780_s29  ;;  %3104 = vrot.lane.b32.xlu1 %v14058_v10, %s12783_s16 }
 0x610   :  { %2909 = vrot.lane.b32.xlu1 %v2852_v53, %s12781_s30  ;;  %2867 = vrot.lane.b32.xlu0 %v14098_v54, %s12779_s23 }
 0x614   :  { %3471 = vrot.lane.b32.xlu1 %v14058_v10, %s12784_s21  ;;  %2907 = vrot.lane.b32.xlu0 %v14098_v54, %s12781_s30 }
 0x618   :  { %2949 = vrot.lane.b32.xlu1 %v2852_v53, %s12778_s22  ;;  %2947 = vrot.lane.b32.xlu0 %v14098_v54, %s12778_s22 }
 0x61c   :  { %2993 = vrot.lane.b32.xlu1 %v14098_v54, %s12780_s29  ;;  %2995 = vrot.lane.b32.xlu0 %v2852_v53, %s12780_s29 }
 0x620   :  { %3106 = vrot.lane.b32.xlu1 %v14072_v13, %s12783_s16  ;;  %3108 = vrot.lane.b32.xlu0 %v14113_v62, %s12783_s16 }
 0x624   :  { %3473 = vrot.lane.b32.xlu1 %v14072_v13, %s12784_s21  ;;  %3475 = vrot.lane.b32.xlu0 %v14113_v62, %s12784_s21 }
 0x628   :  { %3114 = vrot.lane.b32.xlu1 %v14123_v32, %s12783_s16  ;;  %3110 = vrot.lane.b32.xlu0 %v14080_v11, %s12783_s16 }
 0x62c   :  { %3112 = vrot.lane.b32.xlu0 %v14098_v54, %s12783_s16 }
 0x630   :  { %3479 = vrot.lane.b32.xlu0 %v14098_v54, %s12784_s21 }
 0x65e   :  { %v2984_v0 = vpop.permute.xlu0 %2983  ;;  %v2860_v20 = vpop.permute.xlu1 %2859 }
 0x662   :  { %v2864_v2 = vpop.permute.xlu0 %2863  ;;  %v2900_v57 = vpop.permute.xlu1 %2899 }
 0x663   :  { %2883 = vst.msk [vmem:[#allocation3 + $0x40] sm:$0xff] %vm122_vm1, %v2864_v2 }
 0x666   :  { %v2904_v9 = vpop.permute.xlu0 %2903  ;;  %v2940_v22 = vpop.permute.xlu1 %2939 }
 0x667   :  { %2923 = vst.msk [vmem:[#allocation3 + $0x70] sm:$0xff] %vm122_vm1, %v2904_v9 }
 0x66a   :  { %v2944_v25 = vpop.permute.xlu0 %2943  ;;  %v2862_v29 = vpop.permute.xlu1 %2861  ;;  %v14137_v34 = vld [vmem:[#allocation3 + $0x40] sm:$0xff] }
 0x66b   :  { %2963 = vst.msk [vmem:[#allocation3 + $0xa0] sm:$0xff] %vm122_vm1, %v2944_v25  ;;  %v14141_v26 = vsel %vm100_vm2, %v2862_v29, %v2864_v2  ;;  %3120 = vrot.lane.b32.xlu0 %v14137_v34, %s12783_s16  ;;  %v14150_v40 = vsel %vm100_vm2, %v2860_v20, %v2862_v29 }
 0x66c   :  { %3118 = vrot.lane.b32.xlu1 %v14141_v26, %s12783_s16 }
 0x66e   :  { %v2988_v49 = vpop.permute.xlu0 %2987  ;;  %v2902_v30 = vpop.permute.xlu1 %2901  ;;  %v14147_v36 = vld [vmem:[#allocation3 + $0x70] sm:$0xff] }
 0x66f   :  { %v3001_v60 = vsel %vm133_vm3, %v2988_v49, %v2990_v35  ;;  %3132 = vrot.lane.b32.xlu0 %v14147_v36, %s12783_s16  ;;  %v14161_v50 = vsel %vm18740_vm4, %v2902_v30, %v2904_v9  ;;  %v14168_v17 = vsel %vm18741_vm7, %v2900_v57, %v2902_v30  ;;  %vm18747_vm4 = vmmov %vm18746_vm10 }
 0x670   :  { %3013 = vst.msk [vmem:[#allocation3 + $0xd0] sm:$0xff] %vm122_vm1, %v3001_v60  ;;  %3116 = vrot.lane.b32.xlu1 %v14150_v40, %s12783_s16  ;;  %vm18748_vm7 = vmmov %vm18744_vm8 }
 0x672   :  { %v2866_v19 = vpop.permute.xlu0 %2865  ;;  %v2942_v52 = vpop.permute.xlu1 %2941  ;;  %v14158_v41 = vld [vmem:[#allocation3 + $0xa0] sm:$0xff] }
 0x673   :  { %3144 = vrot.lane.b32.xlu0 %v14158_v41, %s12783_s16  ;;  %v14177_v5 = vsel %vm122_vm1, %v2942_v52, %v2944_v25  ;;  %v14187_v56 = vsel %vm122_vm1, %v2940_v22, %v2942_v52  ;;  %v12580_v22 = vld [vmem:[%s18706_s6 + $0x24] ss:$8 sps:$4 sm:$0xff]  }
 0x674   :  { %3130 = vrot.lane.b32.xlu1 %v14161_v50, %s12783_s16  ;;  %11797 = vmatprep.mubr.msk.bf16.mxu0 %vm18746_vm10, %v12580_v22 }
 0x675   :  { %11795 = vmatprep.mubr.msk.bf16.mxu1 %vm18747_vm4, %v12580_v22 }
 0x676   :  { %v2906_v4 = vpop.permute.xlu0 %2905  ;;  %v2986_v15 = vpop.permute.xlu1 %2985 }
 0x677   :  { %v14170_v44 = vld [vmem:[#allocation3 + $0xd0] sm:$0xff]  ;;  %v14194_v45 = vsel %vm133_vm3, %v2986_v15, %v2988_v49  ;;  %v14207_v42 = vsel %vm133_vm3, %v2984_v0, %v2986_v15 }
 0x678   :  { %3156 = vrot.lane.b32.xlu0 %v14170_v44, %s12783_s16  ;;  %3128 = vrot.lane.b32.xlu1 %v14168_v17, %s12783_s16 }
 0x67a   :  { %v2946_v39 = vpop.permute.xlu0 %2945  ;;  %v2870_v58 = vpop.permute.xlu1 %2869 }
 0x67b   :  { %2886 = vst.msk [vmem:[#allocation3 + $0x58] sm:$0xff] %vm122_vm1, %v2870_v58 }
 0x67c   :  { %3477 = vrot.lane.b32.xlu0 %v14080_v11, %s12784_s21  ;;  %3142 = vrot.lane.b32.xlu1 %v14177_v5, %s12783_s16 }
 0x67e   :  { %v14184_v33 = vpop.permute.xlu0 %2991  ;;  %v3105_v27 = vpop.permute.xlu1 %3104 }
 0x680   :  { %3487 = vrot.lane.b32.xlu0 %v14137_v34, %s12784_s21  ;;  %3140 = vrot.lane.b32.xlu1 %v14187_v56, %s12783_s16 }
 0x682   :  { %v2868_v48 = vpop.permute.xlu0 %2867  ;;  %v2910_v28 = vpop.permute.xlu1 %2909  ;;  %v14220_v51 = vld [vmem:[#allocation3 + $0x58] sm:$0xff] }
 0x683   :  { %v14197_v3 = vsel %vm100_vm2, %v2868_v48, %v2870_v58  ;;  %2926 = vst.msk [vmem:[#allocation3 + $0x88] sm:$0xff] %vm122_vm1, %v2910_v28  ;;  %v14210_v43 = vsel %vm100_vm2, %v2866_v19, %v2868_v48 }
 0x684   :  { %3154 = vrot.lane.b32.xlu1 %v14194_v45, %s12783_s16  ;;  %3124 = vrot.lane.b32.xlu0 %v14197_v3, %s12783_s16 }
 0x686   :  { %v2908_v8 = vpop.permute.xlu0 %2907  ;;  %v14204_v12 = vpop.permute.xlu1 %3471 }
 0x687   :  { %v14217_v38 = vsel %vm18742_vm15, %v2908_v8, %v2910_v28  ;;  %v14227_v18 = vsel %vm18743_vm5, %v2906_v4, %v2908_v8  ;;  %vm18749_vm15 = vmmov %vm18748_vm7 }
 0x688   :  { %3152 = vrot.lane.b32.xlu1 %v14207_v42, %s12783_s16  ;;  %3122 = vrot.lane.b32.xlu0 %v14210_v43, %s12783_s16  ;;  %vm18750_vm5 = vmmov %vm18748_vm7 }
 0x689   :  { %vm18753_vm10 = vmmov %vm18750_vm5 }
 0x68a   :  { %v2948_v24 = vpop.permute.xlu0 %2947  ;;  %v2950_v46 = vpop.permute.xlu1 %2949  ;;  %v14239_v20 = vld [vmem:[#allocation3 + $0x88] sm:$0xff]  ;;  %vm18754_vm4 = vmmov %vm18750_vm5 }
 0x68b   :  { %2966 = vst.msk [vmem:[#allocation3 + $0xb8] sm:$0xff] %vm122_vm1, %v2950_v46  ;;  %v14253_v9 = vsel %vm122_vm1, %v2946_v39, %v2948_v24 }
 0x68c   :  { %3126 = vrot.lane.b32.xlu1 %v14220_v51, %s12783_s16  ;;  %3136 = vrot.lane.b32.xlu0 %v14217_v38, %s12783_s16 }
 0x68e   :  { %v2996_v14 = vpop.permute.xlu0 %2995  ;;  %v2994_v23 = vpop.permute.xlu1 %2993 }
 0x68f   :  { %v3004_v59 = vsel %vm133_vm3, %v2996_v14, %v14133_v37  ;;  %v14242_v37 = vsel %vm122_vm1, %v2948_v24, %v2950_v46  ;;  %v14268_v30 = vsel %vm133_vm3, %v2994_v23, %v2996_v14  ;;  %v14284_v15 = vsel %vm133_vm3, %v14184_v33, %v2994_v23 }
 0x690   :  { %3016 = vst.msk [vmem:[#allocation3 + $0xe8] sm:$0xff] %vm122_vm1, %v3004_v59  ;;  %3481 = vrot.lane.b32.xlu1 %v14123_v32, %s12784_s21  ;;  %3134 = vrot.lane.b32.xlu0 %v14227_v18, %s12783_s16 }
 0x692   :  { %v3109_v63 = vpop.permute.xlu0 %3108  ;;  %v3107_v53 = vpop.permute.xlu1 %3106  ;;  %v14263_v49 = vld [vmem:[#allocation3 + $0xb8] sm:$0xff] }
 0x693   :  { %3274 = vmatpush1.bf16.msra.mxu0 %v3109_v63  ;;  %v3165_v35 = vsel %vm18744_vm8, %v3107_v53, %v3109_v63  ;;  %v3164_v0 = vsel %vm18745_vm9, %v3105_v27, %v3107_v53  ;;  %vm18751_vm8 = vmmov %vm18750_vm5 }
 0x694   :  { %3220 = vmatprep.subr.bf16.mxu1 %v3165_v35  ;;  %3275 = vmatprep.subr.bf16.mxu0 %v18726_v31  ;;  %vm18752_vm9 = vmmov %vm18750_vm5 }
 0x695   :  { %3221 = vmatpush1.bf16.msra.mxu1 %v3164_v0  ;;  %3138 = vrot.lane.b32.xlu1 %v14239_v20, %s12783_s16 }
 0x696   :  { %v14246_v2 = vpop.permute.xlu0 %3475  ;;  %v14248_v57 = vpop.permute.xlu1 %3473  ;;  %3148 = vrot.lane.b32.xlu0 %v14242_v37, %s12783_s16 }
 0x697   :  { %v14280_v4 = vld [vmem:[#allocation3 + $0xe8] sm:$0xff] }
 0x699   :  { %3485 = vrot.lane.b32.xlu1 %v14141_v26, %s12784_s21 }
 0x69a   :  { %v3111_v25 = vpop.permute.xlu0 %3110  ;;  %v3115_v29 = vpop.permute.xlu1 %3114  ;;  %3146 = vrot.lane.b32.xlu0 %v14253_v9, %s12783_s16 }
 0x69b   :  { %3276 = vmatpush1.bf16.msra.mxu0 %v3115_v29 }
 0x69c   :  { %3277 = vmatprep.subr.bf16.mxu0 %v18726_v31 }
 0x69d   :  { %3150 = vrot.lane.b32.xlu1 %v14263_v49, %s12783_s16 }
 0x69e   :  { %v3113_v60 = vpop.permute.xlu0 %3112  ;;  %3160 = vrot.lane.b32.xlu0 %v14268_v30, %s12783_s16 }
 0x69f   :  { %v3167_v19 = vsel %vm18748_vm7, %v3113_v60, %v3115_v29  ;;  %v3166_v52 = vsel %vm18749_vm15, %v3111_v25, %v3113_v60  ;;  %vm18755_vm7 = vmmov %vm18754_vm4 }
 0x6a0   :  { %3222 = vmatprep.subr.bf16.mxu1 %v3167_v19  ;;  %vm18756_vm15 = vmmov %vm18754_vm4 }
 0x6a1   :  { %3223 = vmatpush1.bf16.msra.mxu1 %v3166_v52  ;;  %3483 = vrot.lane.b32.xlu1 %v14150_v40, %s12784_s21 }
 0x6a2   :  { %3499 = vrot.lane.b32.xlu0 %v14147_v36, %s12784_s21  ;;  %v14338_v39 = vpop.permute.xlu0 %3479 }
 0x6a5   :  { %3162 = vrot.lane.b32.xlu1 %v14280_v4, %s12783_s16 }
 0x6a6   :  { %3158 = vrot.lane.b32.xlu0 %v14284_v15, %s12783_s16 }
 0x6a9   :  { %3493 = vrot.lane.b32.xlu1 %v14220_v51, %s12784_s21 }
 0x6aa   :  { %3511 = vrot.lane.b32.xlu0 %v14158_v41, %s12784_s21 }
 0x6ad   :  { %3497 = vrot.lane.b32.xlu1 %v14161_v50, %s12784_s21 }
 0x6ae   :  { %3523 = vrot.lane.b32.xlu0 %v14170_v44, %s12784_s21 }
 0x6b1   :  { %3495 = vrot.lane.b32.xlu1 %v14168_v17, %s12784_s21 }
 0x6b2   :  { %3728 = vrot.lane.b32.xlu0 %v14113_v62, %s12785_s8 }
 0x6b5   :  { %3505 = vrot.lane.b32.xlu1 %v14239_v20, %s12784_s21 }
 0x6b6   :  { %3732 = vrot.lane.b32.xlu0 %v14098_v54, %s12785_s8 }
 0x6b9   :  { %3509 = vrot.lane.b32.xlu1 %v14177_v5, %s12784_s21 }
 0x6ba   :  { %3730 = vrot.lane.b32.xlu0 %v14080_v11, %s12785_s8 }
 0x6bd   :  { %3507 = vrot.lane.b32.xlu1 %v14187_v56, %s12784_s21 }
 0x6be   :  { %3740 = vrot.lane.b32.xlu0 %v14137_v34, %s12785_s8 }
 0x6c1   :  { %3517 = vrot.lane.b32.xlu1 %v14263_v49, %s12784_s21 }
 0x6c2   :  { %3752 = vrot.lane.b32.xlu0 %v14147_v36, %s12785_s8 }
 0x6c5   :  { %3521 = vrot.lane.b32.xlu1 %v14194_v45, %s12784_s21 }
 0x6c6   :  { %3764 = vrot.lane.b32.xlu0 %v14158_v41, %s12785_s8 }
 0x6c9   :  { %3519 = vrot.lane.b32.xlu1 %v14207_v42, %s12784_s21 }
 0x6ca   :  { %3491 = vrot.lane.b32.xlu0 %v14197_v3, %s12784_s21 }
 0x6cd   :  { %3726 = vrot.lane.b32.xlu1 %v14072_v13, %s12785_s8 }
 0x6ce   :  { %3489 = vrot.lane.b32.xlu0 %v14210_v43, %s12784_s21 }
 0x6d1   :  { %3724 = vrot.lane.b32.xlu1 %v14058_v10, %s12785_s8 }
 0x6d2   :  { %3503 = vrot.lane.b32.xlu0 %v14217_v38, %s12784_s21 }
 0x6d5   :  { %3734 = vrot.lane.b32.xlu1 %v14123_v32, %s12785_s8 }
 0x6d6   :  { %3501 = vrot.lane.b32.xlu0 %v14227_v18, %s12784_s21 }
 0x6d9   :  { %3738 = vrot.lane.b32.xlu1 %v14141_v26, %s12785_s8 }
 0x6da   :  { %3515 = vrot.lane.b32.xlu0 %v14242_v37, %s12784_s21 }
 0x6dd   :  { %v3121_v58 = vpop.permute.xlu0 %3120  ;;  %3736 = vrot.lane.b32.xlu1 %v14150_v40, %s12785_s8 }
 0x6de   :  { %3278 = vmatpush1.bf16.msra.mxu0 %v3121_v58  ;;  %3513 = vrot.lane.b32.xlu0 %v14253_v9, %s12784_s21  ;;  %v3119_v33 = vpop.permute.xlu1 %3118 }
 0x6df   :  { %v3169_v27 = vsel %vm18750_vm5, %v3119_v33, %v3121_v58  ;;  %3279 = vmatprep.subr.bf16.mxu0 %v18726_v31  ;;  %vm18757_vm5 = vmmov %vm18754_vm4 }
 0x6e0   :  { %3224 = vmatprep.subr.bf16.mxu1 %v3169_v27 }
 0x6e1   :  { %v3133_v48 = vpop.permute.xlu0 %3132  ;;  %3746 = vrot.lane.b32.xlu1 %v14220_v51, %s12785_s8 }
 0x6e2   :  { %3527 = vrot.lane.b32.xlu0 %v14268_v30, %s12784_s21  ;;  %v3117_v28 = vpop.permute.xlu1 %3116 }
 0x6e3   :  { %v3168_v8 = vsel %vm18751_vm8, %v3117_v28, %v3119_v33  ;;  %vm18758_vm8 = vmmov %vm18754_vm4 }
 0x6e4   :  { %3225 = vmatpush1.bf16.msra.mxu1 %v3168_v8 }
 0x6e5   :  { %v3145_v24 = vpop.permute.xlu0 %3144  ;;  %3750 = vrot.lane.b32.xlu1 %v14161_v50, %s12785_s8 }
 0x6e6   :  { %3776 = vrot.lane.b32.xlu0 %v14170_v44, %s12785_s8  ;;  %v3131_v46 = vpop.permute.xlu1 %3130 }
 0x6e7   :  { %v3173_v33 = vsel %vm18754_vm4, %v3131_v46, %v3133_v48 }
 0x6e9   :  { %3748 = vrot.lane.b32.xlu1 %v14168_v17, %s12785_s8 }
 0x6ea   :  { %v14361_v14 = vpop.permute.xlu0 %3156  ;;  %3981 = vrot.lane.b32.xlu0 %v14113_v62, %s12786_s24  ;;  %v3129_v23 = vpop.permute.xlu1 %3128 }
 0x6eb   :  { %v3172_v8 = vsel %vm18755_vm7, %v3129_v23, %v3131_v46  ;;  %vm18761_vm7 = vmmov %vm18754_vm4 }
 0x6ed   :  { %3758 = vrot.lane.b32.xlu1 %v14239_v20, %s12785_s8 }
 0x6ee   :  { %v14367_v59 = vpop.permute.xlu0 %3477  ;;  %3985 = vrot.lane.b32.xlu0 %v14098_v54, %s12786_s24  ;;  %v3143_v63 = vpop.permute.xlu1 %3142 }
 0x6f1   :  { %3762 = vrot.lane.b32.xlu1 %v14177_v5, %s12785_s8 }
 0x6f2   :  { %v14373_v53 = vpop.permute.xlu0 %3487  ;;  %3983 = vrot.lane.b32.xlu0 %v14080_v11, %s12786_s24  ;;  %v3141_v35 = vpop.permute.xlu1 %3140 }
 0x6f5   :  { %3529 = vrot.lane.b32.xlu1 %v14280_v4, %s12784_s21 }
 0x6f6   :  { %3525 = vrot.lane.b32.xlu0 %v14284_v15, %s12784_s21  ;;  %v3125_v0 = vpop.permute.xlu0 %3124  ;;  %v14381_v22 = vpop.permute.xlu1 %3154 }
 0x6f9   :  { %3760 = vrot.lane.b32.xlu1 %v14187_v56, %s12785_s8 }
 0x6fa   :  { %3993 = vrot.lane.b32.xlu0 %v14137_v34, %s12786_s24  ;;  %v3123_v25 = vpop.permute.xlu0 %3122  ;;  %v3153_v29 = vpop.permute.xlu1 %3152 }
 0x6fb   :  { %v3170_v58 = vsel %vm18753_vm10, %v3123_v25, %v3125_v0  ;;  %vm18760_vm10 = vmmov %vm18754_vm4 }
 0x6fd   :  { %3770 = vrot.lane.b32.xlu1 %v14263_v49, %s12785_s8 }
 0x6fe   :  { %3744 = vrot.lane.b32.xlu0 %v14197_v3, %s12785_s8  ;;  %v3137_v60 = vpop.permute.xlu0 %3136  ;;  %v3127_v19 = vpop.permute.xlu1 %3126 }
 0x6ff   :  { %3280 = vmatpush1.bf16.msra.mxu0 %v3127_v19  ;;  %v3171_v52 = vsel %vm18752_vm9, %v3125_v0, %v3127_v19  ;;  %vm18759_vm9 = vmmov %vm18754_vm4 }
 0x700   :  { %3226 = vmatprep.subr.bf16.mxu1 %v3171_v52  ;;  %3281 = vmatprep.subr.bf16.mxu0 %v18726_v31 }
 0x701   :  { %3774 = vrot.lane.b32.xlu1 %v14194_v45, %s12785_s8  ;;  %3227 = vmatpush1.bf16.msra.mxu1 %v3170_v58  ;;  %v3176_v58 = vsel %vm18759_vm9, %v3141_v35, %v3143_v63  ;;  %vm18765_vm9 = vcmask 261120  }
 0x702   :  { %3742 = vrot.lane.b32.xlu0 %v14210_v43, %s12785_s8  ;;  %v3135_v27 = vpop.permute.xlu0 %3134  ;;  %3228 = vmatprep.subr.bf16.mxu1 %v3173_v33  ;;  %v14399_v28 = vpop.permute.xlu1 %3481 }
 0x703   :  { %3282 = vmatpush1.bf16.msra.mxu0 %v3133_v48  ;;  %v3174_v52 = vsel %vm18757_vm5, %v3135_v27, %v3137_v60  ;;  %v3177_v48 = vsel %vm18758_vm8, %v3143_v63, %v3145_v24  ;;  %vm18763_vm5 = vmmov %vm18754_vm4 }
 0x704   :  { %3283 = vmatprep.subr.bf16.mxu0 %v18726_v31  ;;  %vm18764_vm8 = vmmov %vm18754_vm4 }
 0x705   :  { %3772 = vrot.lane.b32.xlu1 %v14207_v42, %s12785_s8  ;;  %3229 = vmatpush1.bf16.msra.mxu1 %v3172_v8 }
 0x706   :  { %3756 = vrot.lane.b32.xlu0 %v14217_v38, %s12785_s8 }
 0x707   :  { %v3139_v0 = vpop.permute.xlu1 %3138 }
 0x708   :  { %v3149_v25 = vpop.permute.xlu0 %3148  ;;  %3284 = vmatpush1.bf16.msra.mxu0 %v3139_v0  ;;  %v3175_v19 = vsel %vm18756_vm15, %v3137_v60, %v3139_v0  ;;  %vm18762_vm15 = vmmov %vm18754_vm4 }
 0x709   :  { %3979 = vrot.lane.b32.xlu1 %v14072_v13, %s12786_s24  ;;  %3230 = vmatprep.subr.bf16.mxu1 %v3175_v19  ;;  %v3180_v0 = vsel %vm18762_vm15, %v3153_v29, %v14381_v22  ;;  %v12578_v19 = vld [vmem:[%s18706_s6 + $0x20] ss:$8 sps:$4 sm:$0xff]   ;;  %vm18769_vm15 = vcmask 1031168  }
 0x70a   :  { %3754 = vrot.lane.b32.xlu0 %v14227_v18, %s12785_s8  ;;  %3231 = vmatpush1.bf16.msra.mxu1 %v3174_v52 }
 0x70b   :  { %3232 = vmatprep.subr.bf16.mxu1 %v3177_v48  ;;  %3285 = vmatprep.subr.bf16.mxu0 %v18726_v31  ;;  %v14415_v46 = vpop.permute.xlu1 %3485 }
 0x70c   :  { %v3147_v23 = vpop.permute.xlu0 %3146  ;;  %3286 = vmatpush1.bf16.msra.mxu0 %v3145_v24  ;;  %v3181_v24 = vsel %vm18761_vm7, %v14381_v22, %v14361_v14  ;;  %v12581_v22 = vld [vmem:[%s18706_s6 + $0x34] ss:$8 sps:$4 sm:$0xff]  }
 0x70d   :  { %3977 = vrot.lane.b32.xlu1 %v14058_v10, %s12786_s24  ;;  %3287 = vmatprep.subr.bf16.mxu0 %v18726_v31  ;;  %v3178_v8 = vsel %vm18754_vm4, %v3147_v23, %v3149_v25  ;;  %vm18767_vm4 = vmmov %vm18765_vm9 }
 0x70e   :  { %3768 = vrot.lane.b32.xlu0 %v14242_v37, %s12785_s8  ;;  %3233 = vmatpush1.bf16.msra.mxu1 %v3176_v58  ;;  %v12583_v58 = vld [vmem:[%s18706_s6 + $0x30] ss:$8 sps:$4 sm:$0xff]   ;;  %vm18768_vm7 = vmmov %vm18767_vm4 }
 0x70f   :  { %v3151_v60 = vpop.permute.xlu1 %3150 }
 0x710   :  { %v3161_v33 = vpop.permute.xlu0 %3160  ;;  %3288 = vmatpush1.bf16.msra.mxu0 %v3151_v60  ;;  %v3179_v27 = vsel %vm18760_vm10, %v3149_v25, %v3151_v60  ;;  %vm18766_vm10 = vmmov %vm18765_vm9 }
 0x711   :  { %3987 = vrot.lane.b32.xlu1 %v14123_v32, %s12786_s24  ;;  %3234 = vmatprep.subr.bf16.mxu1 %v3179_v27 }
 0x712   :  { %3766 = vrot.lane.b32.xlu0 %v14253_v9, %s12785_s8  ;;  %3235 = vmatpush1.bf16.msra.mxu1 %v3178_v8 }
 0x713   :  { %3236 = vmatprep.subr.bf16.mxu1 %v3181_v24  ;;  %3289 = vmatprep.subr.bf16.mxu0 %v18726_v31  ;;  %v14433_v63 = vpop.permute.xlu1 %3483 }
 0x714   :  { %v14435_v35 = vpop.permute.xlu0 %3499  ;;  %3290 = vmatpush1.bf16.msra.mxu0 %v14361_v14 }
 0x715   :  { %3991 = vrot.lane.b32.xlu1 %v14141_v26, %s12786_s24  ;;  %3291 = vmatprep.subr.bf16.mxu0 %v18726_v31 }
 0x716   :  { %3780 = vrot.lane.b32.xlu0 %v14268_v30, %s12785_s8  ;;  %3237 = vmatpush1.bf16.msra.mxu1 %v3180_v0 }
 0x717   :  { %v3163_v25 = vpop.permute.xlu1 %3162 }
 0x718   :  { %v3159_v52 = vpop.permute.xlu0 %3158  ;;  %3292 = vmatpush1.bf16.msra.mxu0 %v3163_v25  ;;  %v3183_v14 = vsel %vm18763_vm5, %v3161_v33, %v3163_v25  ;;  %vm18770_vm5 = vmmov %vm18769_vm15 }
 0x719   :  { %v3182_v29 = vsel %vm18764_vm8, %v3159_v52, %v3161_v33  ;;  %3989 = vrot.lane.b32.xlu1 %v14150_v40, %s12786_s24  ;;  %3238 = vmatprep.subr.bf16.mxu1 %v3183_v14  ;;  %vm18771_vm8 = vmmov %vm18770_vm5 }
 0x71a   :  { %4005 = vrot.lane.b32.xlu0 %v14147_v36, %s12786_s24  ;;  %3239 = vmatpush1.bf16.msra.mxu1 %v3182_v29 }
 0x71b   :  { %3306 = vmatmul.mubr.bf16.vlgmr.msra.gmra.mrb[52].mxu0 %v12578_v19  ;;  %3346 = vmatprep.subr.bf16.mxu1 %v14072_v13  ;;  %v14458_v48 = vpop.permute.xlu1 %3493 }
 0x71c   :  { %v14460_v23 = vpop.permute.xlu0 %3511  ;;  %3399 = vmatprep.subr.bf16.mxu0 %v18726_v31  ;;  %11798 = vmatprep.mubr.msk.bf16.mxu0 %vm18765_vm9, %v12581_v22  ;;  %vm18772_vm9 = vmmov %vm18767_vm4 }
 0x71d   :  { %3400 = vmatpush1.bf16.msra.mxu0 %v14113_v62  ;;  %3782 = vrot.lane.b32.xlu1 %v14280_v4, %s12785_s8  ;;  %v12586_v62 = vld [vmem:[%s18706_s6 + $0x4] ss:$8 sps:$4 sm:$0xff]  }
 0x71e   :  { %3778 = vrot.lane.b32.xlu0 %v14284_v15, %s12785_s8  ;;  %3253 = vmatmul.mubr.bf16.vlgmr.msra.gmra.mrb[12].mxu1 %v12578_v19 }
 0x71f   :  { %3347 = vmatpush1.bf16.msra.mxu1 %v14058_v10  ;;  %3401 = vmatprep.subr.bf16.mxu0 %v18726_v31  ;;  %v14471_v13 = vpop.permute.xlu1 %3497 }
 0x720   :  { %v14476_v60 = vpop.permute.xlu0 %3523  ;;  %3348 = vmatprep.subr.bf16.mxu1 %v14098_v54  ;;  %11796 = vmatprep.mubr.msk.bf16.mxu1 %vm18766_vm10, %v12581_v22  ;;  %vm18773_vm10 = vmmov %vm18770_vm5 }
 0x721   :  { %3402 = vmatpush1.bf16.msra.mxu0 %v14123_v32  ;;  %3999 = vrot.lane.b32.xlu1 %v14220_v51, %s12786_s24 }
 0x722   :  { %4017 = vrot.lane.b32.xlu0 %v14158_v41, %s12786_s24  ;;  %3403 = vmatprep.subr.bf16.mxu0 %v18726_v31 }
 0x723   :  { %3349 = vmatpush1.bf16.msra.mxu1 %v14080_v11  ;;  %v14490_v10 = vpop.permute.xlu1 %3495  ;;  %3314 = vmatmul.mubr.bf16.gmra.mrb[56].mxu0 %v12583_v58 }
 0x724   :  { %v14492_v54 = vpop.permute.xlu0 %3728  ;;  %3350 = vmatprep.subr.bf16.mxu1 %v14141_v26  ;;  %11805 = vmatprep.mubr.msk.bf16.mxu0 %vm18767_vm4, %v12586_v62  ;;  %vm18774_vm4 = vmmov %vm18770_vm5 }
 0x725   :  { %3404 = vmatpush1.bf16.msra.mxu0 %v14137_v34  ;;  %4003 = vrot.lane.b32.xlu1 %v14161_v50, %s12786_s24 }
 0x726   :  { %4029 = vrot.lane.b32.xlu0 %v14170_v44, %s12786_s24  ;;  %3405 = vmatprep.subr.bf16.mxu0 %v18726_v31 }
 0x727   :  { %3351 = vmatpush1.bf16.msra.mxu1 %v14150_v40  ;;  %v14503_v11 = vpop.permute.xlu1 %3505 }
 0x728   :  { %v14505_v32 = vpop.permute.xlu0 %3732  ;;  %3352 = vmatprep.subr.bf16.mxu1 %v14197_v3  ;;  %3263 = vmatmul.mubr.bf16.gmra.mrb[16].mxu1 %v12583_v58 }
 0x729   :  { %3406 = vmatpush1.bf16.msra.mxu0 %v14220_v51  ;;  %4001 = vrot.lane.b32.xlu1 %v14168_v17, %s12786_s24  ;;  %v12584_v51 = vld [vmem:[%s18706_s6] ss:$8 sps:$4 sm:$0xff]  }
 0x72a   :  { %3997 = vrot.lane.b32.xlu0 %v14197_v3, %s12786_s24  ;;  %3407 = vmatprep.subr.bf16.mxu0 %v18726_v31 }
 0x72b   :  { %3353 = vmatpush1.bf16.msra.mxu1 %v14210_v43  ;;  %v14515_v34 = vpop.permute.xlu1 %3509  ;;  %11803 = vmatprep.mubr.msk.bf16.mxu1 %vm18768_vm7, %v12586_v62 }
 0x72c   :  { %v14518_v26 = vpop.permute.xlu0 %3730  ;;  %3354 = vmatprep.subr.bf16.mxu1 %v14161_v50 }
 0x72d   :  { %3408 = vmatpush1.bf16.msra.mxu0 %v14147_v36  ;;  %4011 = vrot.lane.b32.xlu1 %v14239_v20, %s12786_s24 }
 0x72e   :  { %3995 = vrot.lane.b32.xlu0 %v14210_v43, %s12786_s24  ;;  %3409 = vmatprep.subr.bf16.mxu0 %v18726_v31 }
 0x72f   :  { %3355 = vmatpush1.bf16.msra.mxu1 %v14168_v17  ;;  %v14528_v40 = vpop.permute.xlu1 %3507 }
 0x730   :  { %v14530_v3 = vpop.permute.xlu0 %3740  ;;  %3356 = vmatprep.subr.bf16.mxu1 %v14217_v38 }
 0x731   :  { %3410 = vmatpush1.bf16.msra.mxu0 %v14239_v20  ;;  %4015 = vrot.lane.b32.xlu1 %v14177_v5, %s12786_s24  ;;  %v3531_v20 = vsel %vm18770_vm5, %v14204_v12, %v14248_v57  ;;  %v12589_v12 = vld [vmem:[%s18706_s6 + $0x10] ss:$8 sps:$4 sm:$0xff]   ;;  %vm18776_vm5 = vmmov %vm18774_vm4 }
 0x732   :  { %4009 = vrot.lane.b32.xlu0 %v14217_v38, %s12786_s24  ;;  %3411 = vmatprep.subr.bf16.mxu0 %v18726_v31 }
 0x733   :  { %3357 = vmatpush1.bf16.msra.mxu1 %v14227_v18  ;;  %v14540_v36 = vpop.permute.xlu1 %3517 }
 0x734   :  { %v14542_v50 = vpop.permute.xlu0 %3752  ;;  %3358 = vmatprep.subr.bf16.mxu1 %v14177_v5 }
 0x735   :  { %3412 = vmatpush1.bf16.msra.mxu0 %v14158_v41  ;;  %4013 = vrot.lane.b32.xlu1 %v14187_v56, %s12786_s24 }
 0x736   :  { %4007 = vrot.lane.b32.xlu0 %v14227_v18, %s12786_s24  ;;  %3413 = vmatprep.subr.bf16.mxu0 %v18726_v31 }
 0x737   :  { %3359 = vmatpush1.bf16.msra.mxu1 %v14187_v56  ;;  %v14552_v17 = vpop.permute.xlu1 %3521 }
 0x738   :  { %v14554_v43 = vpop.permute.xlu0 %3764  ;;  %3360 = vmatprep.subr.bf16.mxu1 %v14242_v37 }
 0x739   :  { %3414 = vmatpush1.bf16.msra.mxu0 %v14263_v49  ;;  %4023 = vrot.lane.b32.xlu1 %v14263_v49, %s12786_s24  ;;  %v4208_v49 = vld [vmem:[%s18707_s7 + $0x8] sm:$0xff] }
 0x73a   :  { %4021 = vrot.lane.b32.xlu0 %v14242_v37, %s12786_s24  ;;  %3415 = vmatprep.subr.bf16.mxu0 %v18726_v31  ;;  %v4207_v37 = vld [vmem:[%s18707_s7] sm:$0xff] }
 0x73b   :  { %3361 = vmatpush1.bf16.msra.mxu1 %v14253_v9  ;;  %v14564_v41 = vpop.permute.xlu1 %3519 }
 0x73c   :  { %v14566_v5 = vpop.permute.xlu0 %3491  ;;  %3362 = vmatprep.subr.bf16.mxu1 %v14194_v45 }
 0x73d   :  { %3416 = vmatpush1.bf16.msra.mxu0 %v14170_v44  ;;  %4027 = vrot.lane.b32.xlu1 %v14194_v45, %s12786_s24  ;;  %v3532_v44 = vsel %vm18769_vm15, %v14248_v57, %v14246_v2  ;;  %v3533_v57 = vsel %vm18773_vm10, %v14367_v59, %v14338_v39  ;;  %vm18775_vm15 = vmmov %vm18774_vm4  ;;  %v3538_v8 = vsel %vm18776_vm5, %v14566_v5, %v14458_v48 }
 0x73e   :  { %4019 = vrot.lane.b32.xlu0 %v14253_v9, %s12786_s24  ;;  %3417 = vmatprep.subr.bf16.mxu0 %v18726_v31  ;;  %v3535_v27 = vsel %vm18775_vm15, %v14433_v63, %v14415_v46  ;;  %vm18779_vm10 = vmmov %vm18774_vm4 }
 0x73f   :  { %3363 = vmatpush1.bf16.msra.mxu1 %v14207_v42  ;;  %v14576_v56 = vpop.permute.xlu1 %3726  ;;  %vm18781_vm15 = vmmov %vm18774_vm4 }
 0x740   :  { %v3490_v38 = vpop.permute.xlu0 %3489  ;;  %3364 = vmatprep.subr.bf16.mxu1 %v14268_v30  ;;  %vm18782_vm5 = vmmov %vm18774_vm4 }
 0x741   :  { %3418 = vmatpush1.bf16.msra.mxu0 %v14280_v4  ;;  %4025 = vrot.lane.b32.xlu1 %v14207_v42, %s12786_s24  ;;  %v12587_v42 = vld [vmem:[%s18706_s6 + $0x14] ss:$8 sps:$4 sm:$0xff]  }
 0x742   :  { %4033 = vrot.lane.b32.xlu0 %v14268_v30, %s12786_s24  ;;  %3640 = vmatprep.subr.bf16.mxu0 %v18726_v31 }
 0x743   :  { %3365 = vmatpush1.bf16.msra.mxu1 %v14284_v15  ;;  %v14592_v45 = vpop.permute.xlu1 %3724 }
 0x744   :  { %v14594_v18 = vpop.permute.xlu0 %3503  ;;  %3432 = vmatmul.mubr.bf16.vlgmr.msra.gmra.mrb[60].mxu0 %v12584_v51  ;;  %3587 = vmatprep.subr.bf16.mxu1 %v3532_v44 }
 0x745   :  { %3641 = vmatpush1.bf16.msra.mxu0 %v14246_v2  ;;  %4035 = vrot.lane.b32.xlu1 %v14280_v4, %s12786_s24  ;;  %v3534_v2 = vsel %vm18771_vm8, %v14338_v39, %v14399_v28  ;;  %v4209_v4 = vld [vmem:[%s18707_s7 + $0x10] sm:$0xff]  ;;  %v12592_v39 = vld [vmem:[%s18706_s6 + $0x44] ss:$8 sps:$4 sm:$0xff]   ;;  %vm18777_vm8 = vmmov %vm18768_vm7  ;;  %v3542_v52 = vsel %vm18781_vm15, %v14594_v18, %v14503_v11 }
 0x746   :  { %4031 = vrot.lane.b32.xlu0 %v14284_v15, %s12786_s24  ;;  %3379 = vmatmul.mubr.bf16.vlgmr.msra.gmra.mrb[12].mxu1 %v12584_v51  ;;  %v3536_v15 = vsel %vm18774_vm4, %v14415_v46, %v14373_v53  ;;  %v3540_v46 = vsel %vm18774_vm4, %v14471_v13, %v14435_v35  ;;  %vm18787_vm15 = vmmov %vm18774_vm4 }
 0x747   :  { %3588 = vmatpush1.bf16.msra.mxu1 %v3531_v20  ;;  %3642 = vmatprep.subr.bf16.mxu0 %v18726_v31  ;;  %v14614_v9 = vpop.permute.xlu1 %3734 }
 0x748   :  { %v3502_v30 = vpop.permute.xlu0 %3501  ;;  %3589 = vmatprep.subr.bf16.mxu1 %v3534_v2  ;;  %11806 = vmatprep.mubr.msk.bf16.mxu0 %vm18772_vm9, %v12587_v42  ;;  %vm18778_vm9 = vmmov %vm18768_vm7 }
 0x749   :  { %3643 = vmatpush1.bf16.msra.mxu0 %v14399_v28  ;;  %4213 = vperm.xlu1 %12547, %v4207_v37   ;;  %v4210_v28 = vld [vmem:[%s18707_s7 + $0x18] sm:$0xff] }
 0x74a   :  { %4218 = vperm.xlu0 %12546, %v4208_v49   ;;  %3644 = vmatprep.subr.bf16.mxu0 %v18726_v31 }
 0x74b   :  { %3590 = vmatpush1.bf16.msra.mxu1 %v3533_v57  ;;  %v14634_v33 = vpop.permute.xlu1 %3738  ;;  %11804 = vmatprep.mubr.msk.bf16.mxu1 %vm18768_vm7, %v12587_v42  ;;  %vm18780_vm7 = vmmov %vm18774_vm4 }
 0x74c   :  { %v3516_v59 = vpop.permute.xlu0 %3515  ;;  %3440 = vmatmul.mubr.bf16.gmra.mrb[64].mxu0 %v12589_v12  ;;  %3591 = vmatprep.subr.bf16.mxu1 %v3536_v15  ;;  %v3539_v19 = vsel %vm18780_vm7, %v14490_v10, %v14471_v13  ;;  %vm18786_vm7 = vmmov %vm18774_vm4 }
 0x74d   :  { %3645 = vmatpush1.bf16.msra.mxu0 %v14373_v53  ;;  %4223 = vperm.xlu1 %12547, %v4209_v4   ;;  %v3537_v53 = vsel %vm18779_vm10, %v3490_v38, %v14566_v5  ;;  %vm18785_vm10 = vmmov %vm18774_vm4 }
 0x74e   :  { %4228 = vperm.xlu0 %12546, %v4210_v28   ;;  %3646 = vmatprep.subr.bf16.mxu0 %v18726_v31  ;;  %v3546_v62 = vsel %vm18785_vm10, %v3516_v59, %v14540_v36  ;;  %vm18791_vm10 = vcmask 261120  }
 0x74f   :  { %3592 = vmatpush1.bf16.msra.mxu1 %v3535_v27  ;;  %v14651_v24 = vpop.permute.xlu1 %3736  ;;  %11817 = vmatprep.mubr.msk.bf16.mxu0 %vm18777_vm8, %v12592_v39  ;;  %vm18783_vm8 = vmmov %vm18774_vm4 }
 0x750   :  { %v3514_v0 = vpop.permute.xlu0 %3513  ;;  %3593 = vmatprep.subr.bf16.mxu1 %v3538_v8  ;;  %3389 = vmatmul.mubr.bf16.gmra.mrb[16].mxu1 %v12589_v12  ;;  %v3544_v29 = vsel %vm18783_vm8, %v14515_v34, %v14460_v23  ;;  %vm18789_vm8 = vmmov %vm18774_vm4 }
 0x751   :  { %3647 = vmatpush1.bf16.msra.mxu0 %v14458_v48  ;;  %11815 = vmatprep.mubr.msk.bf16.mxu1 %vm18778_vm9, %v12592_v39  ;;  %vm18784_vm9 = vmmov %vm18774_vm4  ;;  %v3545_v5 = vsel %vm18774_vm4, %v3514_v0, %v3516_v59 }
 0x752   :  { %3648 = vmatprep.subr.bf16.mxu0 %v18726_v31  ;;  %v3543_v58 = vsel %vm18784_vm9, %v14528_v40, %v14515_v34  ;;  %vm18790_vm9 = vcmask 1022976  }
 0x753   :  { %3594 = vmatpush1.bf16.msra.mxu1 %v3537_v53  ;;  %v14662_v63 = vpop.permute.xlu1 %3746 }
 0x754   :  { %v3528_v25 = vpop.permute.xlu0 %3527  ;;  %3595 = vmatprep.subr.bf16.mxu1 %v3540_v46 }
 0x755   :  { %3649 = vmatpush1.bf16.msra.mxu0 %v14435_v35  ;;  %v3541_v35 = vsel %vm18782_vm5, %v3502_v30, %v14594_v18  ;;  %vm18788_vm5 = vmmov %vm18774_vm4  ;;  %v12590_v18 = vld [vmem:[%s18706_s6 + $0x40] ss:$8 sps:$4 sm:$0xff]  }
 0x756   :  { %3650 = vmatprep.subr.bf16.mxu0 %v18726_v31  ;;  %vm18792_vm4 = vmmov %vm18790_vm9 }
 0x757   :  { %3596 = vmatpush1.bf16.msra.mxu1 %v3539_v19  ;;  %v14672_v14 = vpop.permute.xlu1 %3750  ;;  %v3784_v37 = vsel %vm18792_vm4, %v14592_v45, %v14576_v56 }
 0x758   :  { %v14674_v22 = vpop.permute.xlu0 %3776  ;;  %3597 = vmatprep.subr.bf16.mxu1 %v3542_v52 }
 0x759   :  { %3651 = vmatpush1.bf16.msra.mxu0 %v14503_v11 }
 0x75a   :  { %3652 = vmatprep.subr.bf16.mxu0 %v18726_v31 }
 0x75b   :  { %3598 = vmatpush1.bf16.msra.mxu1 %v3541_v35  ;;  %v14683_v48 = vpop.permute.xlu1 %3748 }
 0x75c   :  { %v14685_v13 = vpop.permute.xlu0 %3981  ;;  %3599 = vmatprep.subr.bf16.mxu1 %v3544_v29 }
 0x75d   :  { %3653 = vmatpush1.bf16.msra.mxu0 %v14460_v23  ;;  %v3548_v23 = vsel %vm18786_vm7, %v14552_v17, %v14476_v60  ;;  %vm18793_vm7 = vmmov %vm18792_vm4 }
 0x75e   :  { %3654 = vmatprep.subr.bf16.mxu0 %v18726_v31  ;;  %v3787_v2 = vsel %vm18793_vm7, %v14505_v32, %v14614_v9 }
 0x75f   :  { %3600 = vmatpush1.bf16.msra.mxu1 %v3543_v58  ;;  %v14694_v10 = vpop.permute.xlu1 %3758 }
 0x760   :  { %v14696_v11 = vpop.permute.xlu0 %3985  ;;  %3601 = vmatprep.subr.bf16.mxu1 %v3546_v62 }
 0x761   :  { %3655 = vmatpush1.bf16.msra.mxu0 %v14540_v36  ;;  %v3547_v36 = vsel %vm18787_vm15, %v14564_v41, %v14552_v17  ;;  %v3785_v17 = vsel %vm18790_vm9, %v14576_v56, %v14492_v54  ;;  %vm18794_vm15 = vmmov %vm18791_vm10  ;;  %v12598_v56 = vld [vmem:[%s18706_s6 + $0x64] ss:$8 sps:$4 sm:$0xff]  }
 0x762   :  { %3656 = vmatprep.subr.bf16.mxu0 %v18726_v31  ;;  %vm18797_vm9 = vmmov %vm18791_vm10 }
 0x763   :  { %3602 = vmatpush1.bf16.msra.mxu1 %v3545_v5  ;;  %v14704_v34 = vpop.permute.xlu1 %3762  ;;  %vm18799_vm7 = vmmov %vm18797_vm9  ;;  %v12596_v5 = vld [vmem:[%s18706_s6 + $0x60] ss:$8 sps:$4 sm:$0xff]  }
 0x764   :  { %v14706_v40 = vpop.permute.xlu0 %3983  ;;  %3603 = vmatprep.subr.bf16.mxu1 %v3548_v23 }
 0x765   :  { %3657 = vmatpush1.bf16.msra.mxu0 %v14476_v60  ;;  %v12593_v60 = vld [vmem:[%s18706_s6 + $0x54] ss:$8 sps:$4 sm:$0xff]  }
 0x766   :  { %3658 = vmatprep.subr.bf16.mxu0 %v18726_v31 }
 0x767   :  { %3604 = vmatpush1.bf16.msra.mxu1 %v3547_v36  ;;  %v3530_v38 = vpop.permute.xlu1 %3529 }
 0x768   :  { %v3526_v51 = vpop.permute.xlu0 %3525  ;;  %v3550_v44 = vsel %vm18788_vm5, %v3528_v25, %v3530_v38  ;;  %vm18795_vm5 = vmmov %vm18792_vm4 }
 0x769   :  { %v3549_v42 = vsel %vm18789_vm8, %v3526_v51, %v3528_v25  ;;  %3659 = vmatpush1.bf16.msra.mxu0 %v3530_v38  ;;  %3605 = vmatprep.subr.bf16.mxu1 %v3550_v44  ;;  %v3786_v45 = vsel %vm18795_vm5, %v14518_v26, %v14505_v32  ;;  %vm18796_vm8 = vmmov %vm18792_vm4 }
 0x76a   :  { %3893 = vmatprep.subr.bf16.mxu0 %v18726_v31  ;;  %v3789_v12 = vsel %vm18796_vm8, %v14634_v33, %v14530_v3  ;;  %vm18801_vm5 = vmmov %vm18792_vm4 }
 0x76b   :  { %3606 = vmatpush1.bf16.msra.mxu1 %v3549_v42  ;;  %v14725_v41 = vpop.permute.xlu1 %3760  ;;  %vm18802_vm8 = vmmov %vm18792_vm4 }
 0x76c   :  { %v14727_v20 = vpop.permute.xlu0 %3993  ;;  %3673 = vmatmul.mubr.bf16.vlgmr.msra.gmra.mrb[68].mxu0 %v12590_v18  ;;  %3840 = vmatprep.subr.bf16.mxu1 %v3785_v17  ;;  %v3792_v59 = vsel %vm18802_vm8, %v14683_v48, %v14672_v14  ;;  %vm18808_vm8 = vmmov %vm18792_vm4 }
 0x76d   :  { %3894 = vmatpush1.bf16.msra.mxu0 %v14492_v54  ;;  %11818 = vmatprep.mubr.msk.bf16.mxu0 %vm18791_vm10, %v12593_v60  ;;  %v12595_v54 = vld [vmem:[%s18706_s6 + $0x50] ss:$8 sps:$4 sm:$0xff]   ;;  %vm18798_vm10 = vmmov %vm18792_vm4 }
 0x76e   :  { %3620 = vmatmul.mubr.bf16.vlgmr.msra.gmra.mrb[12].mxu1 %v12590_v18  ;;  %3895 = vmatprep.subr.bf16.mxu0 %v18726_v31 }
 0x76f   :  { %3841 = vmatpush1.bf16.msra.mxu1 %v3784_v37  ;;  %v3771_v49 = vpop.permute.xlu1 %3770  ;;  %11816 = vmatprep.mubr.msk.bf16.mxu1 %vm18794_vm15, %v12593_v60  ;;  %vm18800_vm15 = vmmov %vm18792_vm4  ;;  %v12604_v60 = vld [vmem:[%s18706_s6 + $0x84] ss:$8 sps:$4 sm:$0xff]  }
 0x770   :  { %v3745_v30 = vpop.permute.xlu0 %3744  ;;  %3842 = vmatprep.subr.bf16.mxu1 %v3787_v2 }
 0x771   :  { %3896 = vmatpush1.bf16.msra.mxu0 %v14614_v9  ;;  %v3788_v9 = vsel %vm18798_vm10, %v14651_v24, %v14634_v33  ;;  %v3791_v32 = vsel %vm18792_vm4, %v3745_v30, %v14662_v63  ;;  %v3793_v33 = vsel %vm18801_vm5, %v14672_v14, %v14542_v50  ;;  %vm18804_vm10 = vmmov %vm18792_vm4 }
 0x772   :  { %3897 = vmatprep.subr.bf16.mxu0 %v18726_v31  ;;  %vm18807_vm5 = vmmov %vm18792_vm4 }
 0x773   :  { %3843 = vmatpush1.bf16.msra.mxu1 %v3786_v45  ;;  %v3775_v57 = vpop.permute.xlu1 %3774 }
 0x774   :  { %v3743_v4 = vpop.permute.xlu0 %3742  ;;  %3681 = vmatmul.mubr.bf16.gmra.mrb[72].mxu0 %v12595_v54  ;;  %3844 = vmatprep.subr.bf16.mxu1 %v3789_v12 }
 0x775   :  { %3898 = vmatpush1.bf16.msra.mxu0 %v14530_v3  ;;  %11829 = vmatprep.mubr.msk.bf16.mxu0 %vm18797_vm9, %v12598_v56  ;;  %v3790_v3 = vsel %vm18800_vm15, %v3743_v4, %v3745_v30  ;;  %vm18803_vm9 = vmmov %vm18792_vm4 }
 0x776   :  { %3899 = vmatprep.subr.bf16.mxu0 %v18726_v31  ;;  %3630 = vmatmul.mubr.bf16.gmra.mrb[16].mxu1 %v12595_v54  ;;  %vm18806_vm15 = vmmov %vm18792_vm4 }
 0x777   :  { %3845 = vmatpush1.bf16.msra.mxu1 %v3788_v9  ;;  %v3773_v26 = vpop.permute.xlu1 %3772  ;;  %11827 = vmatprep.mubr.msk.bf16.mxu1 %vm18799_vm7, %v12598_v56  ;;  %vm18805_vm7 = vmmov %vm18792_vm4 }
 0x778   :  { %v3757_v15 = vpop.permute.xlu0 %3756  ;;  %3846 = vmatprep.subr.bf16.mxu1 %v3791_v32 }
 0x779   :  { %3900 = vmatpush1.bf16.msra.mxu0 %v14662_v63  ;;  %v3795_v27 = vsel %vm18803_vm9, %v3757_v15, %v14694_v10  ;;  %v3796_v63 = vsel %vm18805_vm7, %v14725_v41, %v14704_v34  ;;  %vm18809_vm9 = vmmov %vm18792_vm4  ;;  %vm18811_vm7 = vcmask 1014784  }
 0x77a   :  { %3901 = vmatprep.subr.bf16.mxu0 %v18726_v31  ;;  %v3800_v48 = vsel %vm18809_vm9, %v3773_v26, %v3775_v57 }
 0x77b   :  { %3847 = vmatpush1.bf16.msra.mxu1 %v3790_v3  ;;  %v3980_v28 = vpop.permute.xlu1 %3979 }
 0x77c   :  { %v3755_v39 = vpop.permute.xlu0 %3754  ;;  %3848 = vmatprep.subr.bf16.mxu1 %v3793_v33 }
 0x77d   :  { %3902 = vmatpush1.bf16.msra.mxu0 %v14542_v50  ;;  %v3794_v0 = vsel %vm18804_vm10, %v3755_v39, %v3757_v15  ;;  %v3797_v50 = vsel %vm18792_vm4, %v14704_v34, %v14554_v43  ;;  %vm18810_vm10 = vmmov %vm18792_vm4  ;;  %v4038_v34 = vsel %vm18811_vm7, %v3980_v28, %v14685_v13 }
 0x77e   :  { %3903 = vmatprep.subr.bf16.mxu0 %v18726_v31 }
 0x77f   :  { %3849 = vmatpush1.bf16.msra.mxu1 %v3792_v59  ;;  %v3978_v8 = vpop.permute.xlu1 %3977 }
 0x780   :  { %v3769_v24 = vpop.permute.xlu0 %3768  ;;  %3850 = vmatprep.subr.bf16.mxu1 %v3795_v27 }
 0x781   :  { %3904 = vmatpush1.bf16.msra.mxu0 %v14694_v10  ;;  %v3799_v25 = vsel %vm18806_vm15, %v3769_v24, %v3771_v49  ;;  %vm18812_vm15 = vcmask 261120  }
 0x782   :  { %3905 = vmatprep.subr.bf16.mxu0 %v18726_v31  ;;  %vm18815_vm9 = vmmov %vm18812_vm15 }
 0x783   :  { %3851 = vmatpush1.bf16.msra.mxu1 %v3794_v0  ;;  %v3988_v53 = vpop.permute.xlu1 %3987 }
 0x784   :  { %v3767_v46 = vpop.permute.xlu0 %3766  ;;  %3852 = vmatprep.subr.bf16.mxu1 %v3797_v50 }
 0x785   :  { %3906 = vmatpush1.bf16.msra.mxu0 %v14554_v43  ;;  %v3798_v14 = vsel %vm18807_vm5, %v3767_v46, %v3769_v24  ;;  %v3801_v43 = vsel %vm18808_vm8, %v3775_v57, %v14674_v22  ;;  %vm18813_vm5 = vmmov %vm18811_vm7 }
 0x786   :  { %3907 = vmatprep.subr.bf16.mxu0 %v18726_v31  ;;  %v4037_v51 = vsel %vm18813_vm5, %v3978_v8, %v3980_v28  ;;  %vm18814_vm8 = vmmov %vm18813_vm5 }
 0x787   :  { %3853 = vmatpush1.bf16.msra.mxu1 %v3796_v63  ;;  %v3992_v19 = vpop.permute.xlu1 %3991  ;;  %v4040_v44 = vsel %vm18814_vm8, %v14696_v11, %v3988_v53  ;;  %vm18818_vm7 = vmmov %vm18815_vm9 }
 0x788   :  { %v3781_v52 = vpop.permute.xlu0 %3780  ;;  %3854 = vmatprep.subr.bf16.mxu1 %v3799_v25  ;;  %vm18821_vm8 = vmmov %vm18818_vm7  ;;  %v12602_v25 = vld [vmem:[%s18706_s6 + $0x80] ss:$8 sps:$4 sm:$0xff]  }
 0x789   :  { %3908 = vmatpush1.bf16.msra.mxu0 %v3771_v49 }
 0x78a   :  { %3909 = vmatprep.subr.bf16.mxu0 %v18726_v31 }
 0x78b   :  { %3855 = vmatpush1.bf16.msra.mxu1 %v3798_v14  ;;  %v3990_v35 = vpop.permute.xlu1 %3989  ;;  %v12607_v14 = vld [vmem:[%s18706_s6 + $0x90] ss:$8 sps:$4 sm:$0xff]  }
 0x78c   :  { %v4006_v29 = vpop.permute.xlu0 %4005  ;;  %3856 = vmatprep.subr.bf16.mxu1 %v3801_v43 }
 0x78d   :  { %3910 = vmatpush1.bf16.msra.mxu0 %v14674_v22  ;;  %v12599_v22 = vld [vmem:[%s18706_s6 + $0x74] ss:$8 sps:$4 sm:$0xff]  }
 0x78e   :  { %3911 = vmatprep.subr.bf16.mxu0 %v18726_v31 }
 0x78f   :  { %3857 = vmatpush1.bf16.msra.mxu1 %v3800_v48  ;;  %v3783_v58 = vpop.permute.xlu1 %3782 }
 0x790   :  { %v3779_v62 = vpop.permute.xlu0 %3778  ;;  %v3803_v10 = vsel %vm18810_vm10, %v3781_v52, %v3783_v58  ;;  %vm18816_vm10 = vmmov %vm18813_vm5 }
 0x791   :  { %v3802_v23 = vsel %vm18792_vm4, %v3779_v62, %v3781_v52  ;;  %3912 = vmatpush1.bf16.msra.mxu0 %v3783_v58  ;;  %3858 = vmatprep.subr.bf16.mxu1 %v3803_v10  ;;  %v4039_v17 = vsel %vm18816_vm10, %v14706_v40, %v14696_v11  ;;  %vm18817_vm4 = vmmov %vm18813_vm5  ;;  %v12605_v52 = vld [vmem:[%s18706_s6 + $0x94] ss:$8 sps:$4 sm:$0xff]  }
 0x792   :  { %4146 = vmatprep.subr.bf16.mxu0 %v18726_v31  ;;  %v4042_v41 = vsel %vm18817_vm4, %v3992_v19, %v14727_v20  ;;  %vm18820_vm5 = vmmov %vm18817_vm4 }
 0x793   :  { %3859 = vmatpush1.bf16.msra.mxu1 %v3802_v23  ;;  %v4000_v36 = vpop.permute.xlu1 %3999  ;;  %vm18823_vm10 = vmmov %vm18817_vm4 }
 0x794   :  { %v4018_v38 = vpop.permute.xlu0 %4017  ;;  %3926 = vmatmul.mubr.bf16.vlgmr.msra.gmra.mrb[76].mxu0 %v12596_v5  ;;  %4093 = vmatprep.subr.bf16.mxu1 %v4038_v34 }
 0x795   :  { %4147 = vmatpush1.bf16.msra.mxu0 %v14685_v13  ;;  %11830 = vmatprep.mubr.msk.bf16.mxu0 %vm18812_vm15, %v12599_v22  ;;  %v12601_v13 = vld [vmem:[%s18706_s6 + $0x70] ss:$8 sps:$4 sm:$0xff]   ;;  %vm18819_vm15 = vmmov %vm18817_vm4 }
 0x796   :  { %3873 = vmatmul.mubr.bf16.vlgmr.msra.gmra.mrb[12].mxu1 %v12596_v5  ;;  %4148 = vmatprep.subr.bf16.mxu0 %v18726_v31  ;;  %v4041_v49 = vsel %vm18819_vm15, %v3990_v35, %v3992_v19  ;;  %vm18825_vm15 = vmmov %vm18817_vm4 }
 0x797   :  { %4094 = vmatpush1.bf16.msra.mxu1 %v4037_v51  ;;  %v4004_v18 = vpop.permute.xlu1 %4003  ;;  %11828 = vmatprep.mubr.msk.bf16.mxu1 %vm18815_vm9, %v12599_v22  ;;  %vm18822_vm9 = vmmov %vm18817_vm4 }
 0x798   :  { %v14812_v42 = vpop.permute.xlu0 %4029  ;;  %4095 = vmatprep.subr.bf16.mxu1 %v4040_v44 }
 0x799   :  { %4149 = vmatpush1.bf16.msra.mxu0 %v3988_v53 }
 0x79a   :  { %4150 = vmatprep.subr.bf16.mxu0 %v18726_v31 }
 0x79b   :  { %4096 = vmatpush1.bf16.msra.mxu1 %v4039_v17  ;;  %v4002_v37 = vpop.permute.xlu1 %4001 }
 0x79c   :  { %v3998_v2 = vpop.permute.xlu0 %3997  ;;  %3934 = vmatmul.mubr.bf16.gmra.mrb[80].mxu0 %v12601_v13  ;;  %4097 = vmatprep.subr.bf16.mxu1 %v4042_v41  ;;  %v4045_v12 = vsel %vm18817_vm4, %v4002_v37, %v4004_v18 }
 0x79d   :  { %4151 = vmatpush1.bf16.msra.mxu0 %v14727_v20  ;;  %11841 = vmatprep.mubr.msk.bf16.mxu0 %vm18818_vm7, %v12604_v60  ;;  %v4044_v11 = vsel %vm18820_vm5, %v3998_v2, %v4000_v36  ;;  %v4046_v20 = vsel %vm18823_vm10, %v4004_v18, %v4006_v29  ;;  %vm18824_vm7 = vmmov %vm18817_vm4 }
 0x79e   :  { %4152 = vmatprep.subr.bf16.mxu0 %v18726_v31  ;;  %3883 = vmatmul.mubr.bf16.gmra.mrb[16].mxu1 %v12601_v13  ;;  %vm18826_vm5 = vmmov %vm18817_vm4 }
 0x79f   :  { %4098 = vmatpush1.bf16.msra.mxu1 %v4041_v49  ;;  %v4012_v40 = vpop.permute.xlu1 %4011  ;;  %11839 = vmatprep.mubr.msk.bf16.mxu1 %vm18821_vm8, %v12604_v60  ;;  %vm18827_vm8 = vmmov %vm18817_vm4 }
 0x7a0   :  { %v3996_v30 = vpop.permute.xlu0 %3995  ;;  %4099 = vmatprep.subr.bf16.mxu1 %v4044_v11  ;;  %vm18829_vm10 = vmmov %vm18817_vm4 }
 0x7a1   :  { %v4043_v54 = vsel %vm18822_vm9, %v3996_v30, %v3998_v2  ;;  %4153 = vmatpush1.bf16.msra.mxu0 %v4000_v36  ;;  %vm18828_vm9 = vmmov %vm18817_vm4 }
 0x7a2   :  { %4154 = vmatprep.subr.bf16.mxu0 %v18726_v31 }
 0x7a3   :  { %4100 = vmatpush1.bf16.msra.mxu1 %v4043_v54  ;;  %v4016_v56 = vpop.permute.xlu1 %4015 }
 0x7a4   :  { %v4010_v45 = vpop.permute.xlu0 %4009  ;;  %4101 = vmatprep.subr.bf16.mxu1 %v4046_v20  ;;  %v4050_v26 = vsel %vm18826_vm5, %v4016_v56, %v4018_v38  ;;  %vm18832_vm5 = vmmov %vm18817_vm4 }
 0x7a5   :  { %4155 = vmatpush1.bf16.msra.mxu0 %v4006_v29  ;;  %v4048_v57 = vsel %vm18824_vm7, %v4010_v45, %v4012_v40  ;;  %vm18830_vm7 = vmmov %vm18817_vm4 }
 0x7a6   :  { %4156 = vmatprep.subr.bf16.mxu0 %v18726_v31 }
 0x7a7   :  { %4102 = vmatpush1.bf16.msra.mxu1 %v4045_v12  ;;  %v4014_v4 = vpop.permute.xlu1 %4013 }
 0x7a8   :  { %v4008_v9 = vpop.permute.xlu0 %4007  ;;  %4103 = vmatprep.subr.bf16.mxu1 %v4048_v57  ;;  %v4049_v33 = vsel %vm18827_vm8, %v4014_v4, %v4016_v56  ;;  %vm18833_vm8 = vcmask 261120  }
 0x7a9   :  { %v4047_v32 = vsel %vm18825_vm15, %v4008_v9, %v4010_v45  ;;  %4157 = vmatpush1.bf16.msra.mxu0 %v4012_v40  ;;  %vm18831_vm15 = vmmov %vm18817_vm4 }
 0x7aa   :  { %4158 = vmatprep.subr.bf16.mxu0 %v18726_v31 }
 0x7ab   :  { %4104 = vmatpush1.bf16.msra.mxu1 %v4047_v32  ;;  %v4024_v15 = vpop.permute.xlu1 %4023 }
 0x7ac   :  { %v4022_v3 = vpop.permute.xlu0 %4021  ;;  %4105 = vmatprep.subr.bf16.mxu1 %v4050_v26 }
 0x7ad   :  { %4159 = vmatpush1.bf16.msra.mxu0 %v4018_v38  ;;  %v4052_v28 = vsel %vm18828_vm9, %v4022_v3, %v4024_v15  ;;  %vm18834_vm9 = vmmov %vm18833_vm8 }
 0x7ae   :  { %4160 = vmatprep.subr.bf16.mxu0 %v18726_v31 }
 0x7af   :  { %4106 = vmatpush1.bf16.msra.mxu1 %v4049_v33  ;;  %v4028_v39 = vpop.permute.xlu1 %4027 }
 0x7b0   :  { %v4020_v59 = vpop.permute.xlu0 %4019  ;;  %4107 = vmatprep.subr.bf16.mxu1 %v4052_v28  ;;  %v4054_v8 = vsel %vm18817_vm4, %v4028_v39, %v14812_v42 }
 0x7b1   :  { %v4051_v27 = vsel %vm18829_vm10, %v4020_v59, %v4022_v3  ;;  %4161 = vmatpush1.bf16.msra.mxu0 %v4024_v15 }
 0x7b2   :  { %4162 = vmatprep.subr.bf16.mxu0 %v18726_v31 }
 0x7b3   :  { %4108 = vmatpush1.bf16.msra.mxu1 %v4051_v27  ;;  %v4026_v24 = vpop.permute.xlu1 %4025 }
 0x7b4   :  { %v4034_v0 = vpop.permute.xlu0 %4033  ;;  %4109 = vmatprep.subr.bf16.mxu1 %v4054_v8  ;;  %v4053_v50 = vsel %vm18830_vm7, %v4026_v24, %v4028_v39 }
 0x7b5   :  { %4163 = vmatpush1.bf16.msra.mxu0 %v14812_v42 }
 0x7b6   :  { %4164 = vmatprep.subr.bf16.mxu0 %v18726_v31 }
 0x7b7   :  { %4110 = vmatpush1.bf16.msra.mxu1 %v4053_v50  ;;  %v4036_v53 = vpop.permute.xlu1 %4035 }
 0x7b8   :  { %v4032_v46 = vpop.permute.xlu0 %4031  ;;  %v4056_v63 = vsel %vm18831_vm15, %v4034_v0, %v4036_v53 }
 0x7b9   :  { %v4055_v19 = vsel %vm18832_vm5, %v4032_v46, %v4034_v0  ;;  %4165 = vmatpush1.bf16.msra.mxu0 %v4036_v53  ;;  %4111 = vmatprep.subr.bf16.mxu1 %v4056_v63 }
 0x7ba   :  { %4769 = vmatprep.subr.bf16.mxu0 %v18726_v31 }
 0x7bb   :  { %4112 = vmatpush1.bf16.msra.mxu1 %v4055_v19 }
 0x7bc   :  { %4179 = vmatmul.mubr.bf16.vlgmr.msra.gmra.mrb[84].mxu0 %v12602_v25 }
 0x7bd   :  { %11842 = vmatprep.mubr.msk.bf16.mxu0 %vm18833_vm8, %v12605_v52 }
 0x7be   :  { %4126 = vmatmul.mubr.bf16.vlgmr.msra.gmra.mrb[12].mxu1 %v12602_v25 }
 0x7bf   :  { %11840 = vmatprep.mubr.msk.bf16.mxu1 %vm18834_vm9, %v12605_v52 }
 0x7c4   :  { %4187 = vmatmul.mubr.bf16.gmra.mrb[88].mxu0 %v12607_v14 }
 0x7c6   :  { %4136 = vmatmul.mubr.bf16.gmra.mrb[16].mxu1 %v12607_v14 }
 0x7c8   :  { %v4214_v24 = vpop.permute.xlu1 %4213 }
 0x7ee   :  { %v3307_v43 = vpop.f32.mrb[52].mxu0 }
 0x7ef   :  { %v3309_v35 = vpop.f32.mrb[53].mxu0 }
 0x7f0   :  { %v3310_v29 = vpop.f32.mrb[54].mxu0 }
 0x7f1   :  { %v3312_v48 = vpop.f32.mrb[55].mxu0 }
 0x7f6   :  { %v3315_v58 = vpop.f32.mrb[56].mxu0 }
 0x7f7   :  { %v3317_v62 = vpop.f32.mrb[57].mxu0 }
 0x7f8   :  { %v3318_v10 = vpop.f32.mrb[58].mxu0 }
 0x7f9   :  { %v3320_v5 = vpop.f32.mrb[59].mxu0 }
 0x817   :  { %v3433_v23 = vpop.f32.mrb[60].mxu0 }
 0x818   :  { %v3434_v22 = vadd.f32 %v3433_v23, %v3307_v43  ;;  %v3435_v34 = vpop.f32.mrb[61].mxu0 }
 0x819   :  { %v3436_v36 = vpop.f32.mrb[62].mxu0 }
 0x81a   :  { %v3437_v38 = vadd.f32 %v3436_v36, %v3310_v29  ;;  %v3438_v51 = vpop.f32.mrb[63].mxu0  ;;  %v4219_v29 = vpop.permute.xlu0 %4218 }
 0x81f   :  { %v3441_v44 = vpop.f32.mrb[64].mxu0 }
 0x820   :  { %v3442_v18 = vadd.f32 %v3441_v44, %v3315_v58  ;;  %v3443_v42 = vpop.f32.mrb[65].mxu0  ;;  %v4224_v44 = vpop.permute.xlu1 %4223 }
 0x821   :  { %v3444_v13 = vpop.f32.mrb[66].mxu0 }
 0x822   :  { %v3445_v60 = vadd.f32 %v3444_v13, %v3318_v10  ;;  %v3446_v17 = vpop.f32.mrb[67].mxu0 }
 0x83f   :  { %v3674_v41 = vpop.f32.mrb[68].mxu0 }
 0x840   :  { %v3691_v37 = vadd.f32 %v3674_v41, %v3434_v22  ;;  %v3676_v2 = vpop.f32.mrb[69].mxu0 }
 0x841   :  { %v3677_v49 = vpop.f32.mrb[70].mxu0 }
 0x842   :  { %v3694_v11 = vadd.f32 %v3677_v49, %v3437_v38  ;;  %v3679_v40 = vpop.f32.mrb[71].mxu0 }
 0x847   :  { %v3682_v30 = vpop.f32.mrb[72].mxu0 }
 0x848   :  { %v3697_v54 = vadd.f32 %v3682_v30, %v3442_v18  ;;  %v3684_v20 = vpop.f32.mrb[73].mxu0 }
 0x849   :  { %v3685_v56 = vpop.f32.mrb[74].mxu0 }
 0x84a   :  { %v3700_v45 = vadd.f32 %v3685_v56, %v3445_v60  ;;  %v3687_v12 = vpop.f32.mrb[75].mxu0 }
 0x867   :  { %v3927_v57 = vpop.f32.mrb[76].mxu0 }
 0x868   :  { %v3944_v4 = vadd.f32 %v3927_v57, %v3691_v37  ;;  %v3929_v9 = vpop.f32.mrb[77].mxu0 }
 0x869   :  { %v3930_v32 = vpop.f32.mrb[78].mxu0 }
 0x86a   :  { %v3947_v26 = vadd.f32 %v3930_v32, %v3694_v11  ;;  %v3932_v15 = vpop.f32.mrb[79].mxu0  ;;  %v4229_v32 = vpop.permute.xlu0 %4228 }
 0x86f   :  { %v3935_v3 = vpop.f32.mrb[80].mxu0 }
 0x870   :  { %v3950_v33 = vadd.f32 %v3935_v3, %v3697_v54  ;;  %v3937_v28 = vpop.f32.mrb[81].mxu0 }
 0x871   :  { %v3938_v39 = vpop.f32.mrb[82].mxu0 }
 0x872   :  { %v3953_v59 = vadd.f32 %v3938_v39, %v3700_v45  ;;  %v3940_v27 = vpop.f32.mrb[83].mxu0 }
 0x88f   :  { %v4180_v8 = vpop.f32.mrb[84].mxu0 }
 0x890   :  { %v4197_v0 = vadd.f32 %v4180_v8, %v3944_v4  ;;  %v4182_v50 = vpop.f32.mrb[85].mxu0 }
 0x891   :  { %v4127_v53 = vpop.f32.mrb[12].mxu1  ;;  %v4183_v46 = vpop.f32.mrb[86].mxu0 }
 0x892   :  { %v4233_v63 = vadd.f32 %v4214_v24, %v4197_v0  ;;  %v4231_v25 = vadd.f32 %v4214_v24, %v4127_v53  ;;  %v4200_v19 = vadd.f32 %v4183_v46, %v3947_v26  ;;  %v4129_v52 = vpop.f32.mrb[13].mxu1  ;;  %v4185_v14 = vpop.f32.mrb[87].mxu0 }
 0x893   :  { %v4232_v43 = vadd.f32 %v4214_v24, %v4129_v52  ;;  %v4131_v35 = vpop.f32.mrb[14].mxu1 }
 0x894   :  { %vm4245_vm10 = vcmp.ge.f32.partialorder %v4233_v63, 0.0  ;;  %v4257_v48 = vmul.f32 0.2, %v4233_v63  ;;  %vm4243_vm4 = vcmp.ge.f32.partialorder %v4231_v25, 0.0  ;;  %v4255_v58 = vmul.f32 0.2, %v4231_v25 }
 0x895   :  { %v4236_v62 = vadd.f32 %v4219_v29, %v4200_v19  ;;  %vm4244_vm7 = vcmp.ge.f32.partialorder %v4232_v43, 0.0  ;;  %v4256_v10 = vmul.f32 0.2, %v4232_v43  ;;  %v4234_v5 = vadd.f32 %v4219_v29, %v4131_v35  ;;  %v4133_v23 = vpop.f32.mrb[15].mxu1 }
 0x896   :  { %v4267_v22 = vsel %vm4243_vm4, %v4231_v25, %v4255_v58  ;;  %v4235_v34 = vadd.f32 %v4219_v29, %v4133_v23  ;;  %v4269_v36 = vsel %vm4245_vm10, %v4233_v63, %v4257_v48  ;;  %vm18835_vm4 = vcmp.gt.f32.partialorder %v13138_v16, 0.5 }
 0x897   :  { %vm4248_vm15 = vcmp.ge.f32.partialorder %v4236_v62, 0.0  ;;  %v4260_v38 = vmul.f32 0.2, %v4236_v62  ;;  %v4188_v51 = vpop.f32.mrb[88].mxu0  ;;  %v4268_v18 = vsel %vm4244_vm7, %v4232_v43, %v4256_v10  ;;  %vm4246_vm5 = vcmp.ge.f32.partialorder %v4234_v5, 0.0 }
 0x898   :  { %v4258_v42 = vmul.f32 0.2, %v4234_v5  ;;  %vm4247_vm8 = vcmp.ge.f32.partialorder %v4235_v34, 0.0  ;;  %v4190_v13 = vpop.f32.mrb[89].mxu0  ;;  %v4279_v60 = vsel %vm13172_vm13, %v4267_v22, 0.0  ;;  %v4203_v37 = vadd.f32 %v4188_v51, %v3950_v33  ;;  %v4470_v51 = vld [vmem:[#allocation2 + $0x38] sm:$0xff] }
 0x899   :  { %v4272_v17 = vsel %vm4248_vm15, %v4236_v62, %v4260_v38  ;;  %v4259_v41 = vmul.f32 0.2, %v4235_v34  ;;  %v4137_v2 = vpop.f32.mrb[16].mxu1  ;;  %v4191_v49 = vpop.f32.mrb[90].mxu0  ;;  %v4280_v11 = vsel %vm86_vm6, %v4268_v18, 0.0  ;;  %v4466_v38 = vld [vmem:[#allocation2 + $0x18] sm:$0xff] }
 0x89a   :  { %v4270_v40 = vsel %vm4246_vm5, %v4234_v5, %v4258_v42  ;;  %v4237_v30 = vadd.f32 %v4224_v44, %v4137_v2  ;;  %v4206_v54 = vadd.f32 %v4191_v49, %v3953_v59  ;;  %v4139_v20 = vpop.f32.mrb[17].mxu1  ;;  %v4193_v56 = vpop.f32.mrb[91].mxu0  ;;  %v4239_v57 = vadd.f32 %v4224_v44, %v4203_v37  ;;  %vm18836_vm5 = vmmov %vm18835_vm4 }
 0x89b   :  { %v4282_v45 = vsel %vm13172_vm13, %v4270_v40, 0.0  ;;  %v4271_v12 = vsel %vm4247_vm8, %v4235_v34, %v4259_v41  ;;  %v4238_v4 = vadd.f32 %v4224_v44, %v4139_v20  ;;  %v4141_v9 = vpop.f32.mrb[18].mxu1  ;;  %v4284_v27 = vsel %vm18835_vm4, %v4272_v17, 0.0 }
 0x89c   :  { %v4291_v26 = vpack.c.bf16 %v4282_v45, %v4279_v60  ;;  %v4283_v15 = vsel %vm86_vm6, %v4271_v12, 0.0  ;;  %vm4249_vm9 = vcmp.ge.f32.partialorder %v4237_v30, 0.0  ;;  %v4261_v3 = vmul.f32 0.2, %v4237_v30  ;;  %v4143_v33 = vpop.f32.mrb[19].mxu1 }
 0x89d   :  { %v4292_v28 = vpack.c.bf16 %v4283_v15, %v4280_v11  ;;  %vm4251_vm10 = vcmp.ge.f32.partialorder %v4239_v57, 0.0  ;;  %v4263_v39 = vmul.f32 0.2, %v4239_v57  ;;  %v4242_v59 = vadd.f32 %v4229_v32, %v4206_v54 }
 0x89e   :  { %v4273_v8 = vsel %vm4249_vm9, %v4237_v30, %v4261_v3  ;;  %v4262_v24 = vmul.f32 0.2, %v4238_v4  ;;  %v4240_v0 = vadd.f32 %v4229_v32, %v4141_v9  ;;  %vm4250_vm15 = vcmp.ge.f32.partialorder %v4238_v4, 0.0  ;;  %vm18837_vm9 = vmmov %vm18835_vm4 }
 0x89f   :  { %v4275_v50 = vsel %vm4251_vm10, %v4239_v57, %v4263_v39  ;;  %vm4254_vm7 = vcmp.ge.f32.partialorder %v4242_v59, 0.0  ;;  %v4266_v53 = vmul.f32 0.2, %v4242_v59  ;;  %4305 = vrot.lane.b32.xlu0 %v4292_v28, %s12788_s1  ;;  %v4281_v46 = vsel %vm18836_vm5, %v4269_v36, 0.0  ;;  %vm18838_vm10 = vmmov %vm18835_vm4 }
 0x8a0   :  { %vm4252_vm8 = vcmp.ge.f32.partialorder %v4240_v0, 0.0  ;;  %v4264_v63 = vmul.f32 0.2, %v4240_v0  ;;  %v4285_v25 = vsel %vm13172_vm13, %v4273_v8, 0.0  ;;  %v4241_v52 = vadd.f32 %v4229_v32, %v4143_v33 }
 0x8a1   :  { %v4278_v19 = vsel %vm4254_vm7, %v4242_v59, %v4266_v53  ;;  %v4293_v14 = vpack.c.bf16 %v4284_v27, %v4281_v46  ;;  %v4287_v43 = vsel %vm18837_vm9, %v4275_v50, 0.0  ;;  %v4274_v29 = vsel %vm4250_vm15, %v4238_v4, %v4262_v24 }
 0x8a2   :  { %v4290_v35 = vsel %vm18838_vm10, %v4278_v19, 0.0  ;;  %v4276_v48 = vsel %vm4252_vm8, %v4240_v0, %v4264_v63  ;;  %vm4253_vm4 = vcmp.ge.f32.partialorder %v4241_v52, 0.0  ;;  %v4265_v62 = vmul.f32 0.2, %v4241_v52 }
 0x8a3   :  { %v4288_v58 = vsel %vm13172_vm13, %v4276_v48, 0.0  ;;  %4307 = vrot.lane.b32.xlu1 %v4293_v14, %s12788_s1  ;;  %v4296_v10 = vpack.c.bf16 %v4290_v35, %v4287_v43  ;;  %v4286_v22 = vsel %vm86_vm6, %v4274_v29, 0.0  ;;  %vm18839_vm7 = vcmask 719872  }
 0x8a4   :  { %v4294_v5 = vpack.c.bf16 %v4288_v58, %v4285_v25  ;;  %v4277_v23 = vsel %vm4253_vm4, %v4241_v52, %v4265_v62  ;;  %vm18840_vm15 = vmmov %vm18839_vm7  ;;  %vm18843_vm9 = vcmask 1039360   ;;  %vm18845_vm4 = vcmask 261120  }
 0x8a5   :  { %v4289_v34 = vsel %vm86_vm6, %v4277_v23, 0.0  ;;  %vm18841_vm5 = vmmov %vm18839_vm7 }
 0x8a6   :  { %4309 = vrot.lane.b32.xlu0 %v4294_v5, %s12788_s1  ;;  %v4295_v36 = vpack.c.bf16 %v4289_v34, %v4286_v22  ;;  %vm18842_vm8 = vmmov %vm18841_vm5 }
 0x8a7   :  { %4303 = vrot.lane.b32.xlu1 %v4291_v26, %s12788_s1  ;;  %vm18844_vm10 = vmmov %vm18843_vm9 }
 0x8aa   :  { %4313 = vrot.lane.b32.xlu0 %v4296_v10, %s12788_s1 }
 0x8ab   :  { %4311 = vrot.lane.b32.xlu1 %v4295_v36, %s12788_s1 }
 0x8af   :  { %4485 = vrot.lane.b32.xlu1 %v4466_v38, %s12780_s29 }
 0x8b3   :  { %4493 = vrot.lane.b32.xlu1 %v4470_v51, %s12780_s29 }
 0x911   :  { %v4306_v44 = vpop.permute.xlu0 %4305 }
 0x915   :  { %v4308_v18 = vpop.permute.xlu1 %4307 }
 0x916   :  { %v4316_v42 = vsel %vm59_vm11, %v4306_v44, %v4308_v18 }
 0x917   :  { %4327 = vst.msk [vmem:[#allocation2 + $0x10] sm:$0xff] %vm1325_vm12, %v4316_v42 }
 0x918   :  { %v4310_v13 = vpop.permute.xlu0 %4309 }
 0x919   :  { %v4304_v60 = vpop.permute.xlu1 %4303  ;;  %4328 = vst.msk [vmem:[#allocation2 + $0x20] sm:$0xff] %vm1322_vm14, %v4310_v13 }
 0x91a   :  { %4325 = vst.msk [vmem:[#allocation2] sm:$0xff] %vm1322_vm14, %v4304_v60  ;;  %v14918_v40 = vsel %vm59_vm11, %v4304_v60, %v4306_v44 }
 0x91c   :  { %v4314_v17 = vpop.permute.xlu0 %4313 }
 0x91d   :  { %v4312_v41 = vpop.permute.xlu1 %4311 }
 0x91e   :  { %v4318_v37 = vsel %vm59_vm11, %v4312_v41, %v4314_v17  ;;  %v4345_v2 = vld [vmem:[#allocation2 + $0x10] sm:$0xff]  ;;  %v14945_v54 = vsel %vm59_vm11, %v4310_v13, %v4312_v41 }
 0x91f   :  { %4330 = vst.msk [vmem:[#allocation2 + $0x30] sm:$0xff] %vm1325_vm12, %v4318_v37 }
 0x920   :  { %4339 = vst.msk [vmem:[#allocation3 + $0x10] sm:$0xff] %vm122_vm1, %v4345_v2  ;;  %v14926_v30 = vld [vmem:[#allocation2 + $0x20] sm:$0xff] }
 0x921   :  { %v14904_v49 = vld [vmem:[#allocation2] sm:$0xff]  ;;  %v4486_v45 = vpop.permute.xlu1 %4485 }
 0x922   :  { %4479 = vrot.lane.b32.xlu0 %v14904_v49, %s12780_s29  ;;  %4355 = vrot.lane.b32.xlu1 %v14904_v49, %s12779_s23 }
 0x925   :  { %v14983_v12 = vpop.permute.xlu1 %4493 }
 0x926   :  { %4359 = vrot.lane.b32.xlu0 %v4345_v2, %s12779_s23  ;;  %4395 = vrot.lane.b32.xlu1 %v14904_v49, %s12781_s30  ;;  %v4348_v11 = vld [vmem:[#allocation2 + $0x30] sm:$0xff] }
 0x927   :  { %4342 = vst.msk [vmem:[#allocation3 + $0x28] sm:$0xff] %vm122_vm1, %v4348_v11  ;;  %v14959_v20 = vld [vmem:[#allocation3 + $0x10] sm:$0xff] }
 0x92a   :  { %4399 = vrot.lane.b32.xlu0 %v4345_v2, %s12781_s30  ;;  %4435 = vrot.lane.b32.xlu1 %v14904_v49, %s12778_s22 }
 0x92e   :  { %4439 = vrot.lane.b32.xlu0 %v4345_v2, %s12778_s22  ;;  %4357 = vrot.lane.b32.xlu1 %v14918_v40, %s12779_s23  ;;  %v14969_v56 = vld [vmem:[#allocation3 + $0x28] sm:$0xff] }
 0x932   :  { %4483 = vrot.lane.b32.xlu0 %v4345_v2, %s12780_s29  ;;  %4397 = vrot.lane.b32.xlu1 %v14918_v40, %s12781_s30 }
 0x936   :  { %4361 = vrot.lane.b32.xlu0 %v14926_v30, %s12779_s23  ;;  %4437 = vrot.lane.b32.xlu1 %v14918_v40, %s12778_s22 }
 0x93a   :  { %4401 = vrot.lane.b32.xlu0 %v14926_v30, %s12781_s30  ;;  %4481 = vrot.lane.b32.xlu1 %v14918_v40, %s12780_s29 }
 0x93e   :  { %4441 = vrot.lane.b32.xlu0 %v14926_v30, %s12778_s22  ;;  %4600 = vrot.lane.b32.xlu1 %v14904_v49, %s12783_s16 }
 0x942   :  { %4487 = vrot.lane.b32.xlu0 %v14926_v30, %s12780_s29  ;;  %4967 = vrot.lane.b32.xlu1 %v14904_v49, %s12784_s21 }
 0x946   :  { %4365 = vrot.lane.b32.xlu1 %v4348_v11, %s12779_s23  ;;  %4363 = vrot.lane.b32.xlu0 %v14945_v54, %s12779_s23 }
 0x94a   :  { %4405 = vrot.lane.b32.xlu1 %v4348_v11, %s12781_s30  ;;  %4403 = vrot.lane.b32.xlu0 %v14945_v54, %s12781_s30 }
 0x94e   :  { %4445 = vrot.lane.b32.xlu1 %v4348_v11, %s12778_s22  ;;  %4443 = vrot.lane.b32.xlu0 %v14945_v54, %s12778_s22 }
 0x952   :  { %4489 = vrot.lane.b32.xlu1 %v14945_v54, %s12780_s29  ;;  %4491 = vrot.lane.b32.xlu0 %v4348_v11, %s12780_s29 }
 0x956   :  { %4602 = vrot.lane.b32.xlu1 %v14918_v40, %s12783_s16  ;;  %4604 = vrot.lane.b32.xlu0 %v14959_v20, %s12783_s16 }
 0x95a   :  { %4969 = vrot.lane.b32.xlu1 %v14918_v40, %s12784_s21  ;;  %4971 = vrot.lane.b32.xlu0 %v14959_v20, %s12784_s21 }
 0x95e   :  { %4610 = vrot.lane.b32.xlu1 %v14969_v56, %s12783_s16  ;;  %4606 = vrot.lane.b32.xlu0 %v14926_v30, %s12783_s16 }
 0x962   :  { %4977 = vrot.lane.b32.xlu1 %v14969_v56, %s12784_s21  ;;  %4973 = vrot.lane.b32.xlu0 %v14926_v30, %s12784_s21 }
 0x966   :  { %4608 = vrot.lane.b32.xlu0 %v14945_v54, %s12783_s16 }
 0x96a   :  { %4975 = vrot.lane.b32.xlu0 %v14945_v54, %s12784_s21 }
 0x994   :  { %v4480_v57 = vpop.permute.xlu0 %4479  ;;  %v4356_v4 = vpop.permute.xlu1 %4355 }
 0x998   :  { %v4360_v9 = vpop.permute.xlu0 %4359  ;;  %v4396_v32 = vpop.permute.xlu1 %4395 }
 0x999   :  { %4379 = vst.msk [vmem:[#allocation3 + $0x40] sm:$0xff] %vm122_vm1, %v4360_v9 }
 0x99c   :  { %v4400_v26 = vpop.permute.xlu0 %4399  ;;  %v4436_v15 = vpop.permute.xlu1 %4435 }
 0x99d   :  { %4419 = vst.msk [vmem:[#allocation3 + $0x70] sm:$0xff] %vm122_vm1, %v4400_v26 }
 0x9a0   :  { %v4440_v3 = vpop.permute.xlu0 %4439  ;;  %v4358_v33 = vpop.permute.xlu1 %4357  ;;  %v14987_v28 = vld [vmem:[#allocation3 + $0x40] sm:$0xff] }
 0x9a1   :  { %4459 = vst.msk [vmem:[#allocation3 + $0xa0] sm:$0xff] %vm122_vm1, %v4440_v3  ;;  %v14991_v39 = vsel %vm100_vm2, %v4358_v33, %v4360_v9  ;;  %4616 = vrot.lane.b32.xlu0 %v14987_v28, %s12783_s16  ;;  %v15000_v24 = vsel %vm100_vm2, %v4356_v4, %v4358_v33 }
 0x9a2   :  { %4614 = vrot.lane.b32.xlu1 %v14991_v39, %s12783_s16 }
 0x9a4   :  { %v4484_v59 = vpop.permute.xlu0 %4483  ;;  %v4398_v27 = vpop.permute.xlu1 %4397  ;;  %v14997_v8 = vld [vmem:[#allocation3 + $0x70] sm:$0xff] }
 0x9a5   :  { %v4497_v0 = vsel %vm133_vm3, %v4484_v59, %v4486_v45  ;;  %4628 = vrot.lane.b32.xlu0 %v14997_v8, %s12783_s16  ;;  %v15011_v63 = vsel %vm18839_vm7, %v4398_v27, %v4400_v26  ;;  %v15018_v52 = vsel %vm18840_vm15, %v4396_v32, %v4398_v27  ;;  %v12610_v27 = vld [vmem:[#allocation6 + $0x24] ss:$8 sps:$4 sm:$0xff]   ;;  %vm18846_vm7 = vmmov %vm18845_vm4 }
 0x9a6   :  { %4509 = vst.msk [vmem:[#allocation3 + $0xd0] sm:$0xff] %vm122_vm1, %v4497_v0  ;;  %4612 = vrot.lane.b32.xlu1 %v15000_v24, %s12783_s16  ;;  %11849 = vmatprep.mubr.msk.bf16.mxu0 %vm18845_vm4, %v12610_v27  ;;  %vm18847_vm15 = vmmov %vm18843_vm9 }
 0x9a7   :  { %11847 = vmatprep.mubr.msk.bf16.mxu1 %vm18846_vm7, %v12610_v27 }
 0x9a8   :  { %v4362_v50 = vpop.permute.xlu0 %4361  ;;  %v4438_v53 = vpop.permute.xlu1 %4437  ;;  %v15008_v46 = vld [vmem:[#allocation3 + $0xa0] sm:$0xff] }
 0x9a9   :  { %4640 = vrot.lane.b32.xlu0 %v15008_v46, %s12783_s16  ;;  %v15027_v29 = vsel %vm122_vm1, %v4438_v53, %v4440_v3  ;;  %v15038_v62 = vsel %vm122_vm1, %v4436_v15, %v4438_v53 }
 0x9aa   :  { %4626 = vrot.lane.b32.xlu1 %v15011_v63, %s12783_s16 }
 0x9ac   :  { %v4402_v25 = vpop.permute.xlu0 %4401  ;;  %v4482_v19 = vpop.permute.xlu1 %4481 }
 0x9ad   :  { %4983 = vrot.lane.b32.xlu0 %v14987_v28, %s12784_s21  ;;  %v15024_v35 = vld [vmem:[#allocation3 + $0xd0] sm:$0xff]  ;;  %v15045_v23 = vsel %vm133_vm3, %v4482_v19, %v4484_v59  ;;  %v15056_v38 = vsel %vm133_vm3, %v4480_v57, %v4482_v19 }
 0x9ae   :  { %4624 = vrot.lane.b32.xlu1 %v15018_v52, %s12783_s16 }
 0x9b0   :  { %v4442_v14 = vpop.permute.xlu0 %4441  ;;  %v4601_v43 = vpop.permute.xlu1 %4600 }
 0x9b1   :  { %4652 = vrot.lane.b32.xlu0 %v15024_v35, %s12783_s16 }
 0x9b2   :  { %4638 = vrot.lane.b32.xlu1 %v15027_v29, %s12783_s16 }
 0x9b4   :  { %v15033_v48 = vpop.permute.xlu0 %4487  ;;  %v15035_v58 = vpop.permute.xlu1 %4967 }
 0x9b5   :  { %4995 = vrot.lane.b32.xlu0 %v14997_v8, %s12784_s21 }
 0x9b6   :  { %4636 = vrot.lane.b32.xlu1 %v15038_v62, %s12783_s16 }
 0x9b8   :  { %v4364_v10 = vpop.permute.xlu0 %4363  ;;  %v4366_v5 = vpop.permute.xlu1 %4365 }
 0x9b9   :  { %v15048_v22 = vsel %vm100_vm2, %v4364_v10, %v4366_v5  ;;  %4382 = vst.msk [vmem:[#allocation3 + $0x58] sm:$0xff] %vm122_vm1, %v4366_v5  ;;  %v15059_v51 = vsel %vm100_vm2, %v4362_v50, %v4364_v10 }
 0x9ba   :  { %4650 = vrot.lane.b32.xlu1 %v15045_v23, %s12783_s16  ;;  %4620 = vrot.lane.b32.xlu0 %v15048_v22, %s12783_s16 }
 0x9bc   :  { %v4404_v34 = vpop.permute.xlu0 %4403  ;;  %v4406_v36 = vpop.permute.xlu1 %4405 }
 0x9bd   :  { %4422 = vst.msk [vmem:[#allocation3 + $0x88] sm:$0xff] %vm122_vm1, %v4406_v36  ;;  %v15067_v42 = vsel %vm18841_vm5, %v4404_v34, %v4406_v36  ;;  %v15075_v17 = vsel %vm18842_vm8, %v4402_v25, %v4404_v34  ;;  %vm18848_vm5 = vmmov %vm18843_vm9 }
 0x9be   :  { %4648 = vrot.lane.b32.xlu1 %v15056_v38, %s12783_s16  ;;  %4618 = vrot.lane.b32.xlu0 %v15059_v51, %s12783_s16  ;;  %vm18849_vm8 = vmmov %vm18848_vm5 }
 0x9bf   :  { %vm18852_vm4 = vmmov %vm18848_vm5 }
 0x9c0   :  { %v4444_v44 = vpop.permute.xlu0 %4443  ;;  %v4446_v18 = vpop.permute.xlu1 %4445  ;;  %v15079_v37 = vld [vmem:[#allocation3 + $0x58] sm:$0xff]  ;;  %vm18853_vm7 = vmmov %vm18852_vm4 }
 0x9c1   :  { %4462 = vst.msk [vmem:[#allocation3 + $0xb8] sm:$0xff] %vm122_vm1, %v4446_v18  ;;  %v15103_v26 = vsel %vm122_vm1, %v4442_v14, %v4444_v44 }
 0x9c2   :  { %4981 = vrot.lane.b32.xlu1 %v14991_v39, %s12784_s21  ;;  %4632 = vrot.lane.b32.xlu0 %v15067_v42, %s12783_s16 }
 0x9c4   :  { %v4492_v13 = vpop.permute.xlu0 %4491  ;;  %v4490_v60 = vpop.permute.xlu1 %4489  ;;  %v15100_v32 = vld [vmem:[#allocation3 + $0x88] sm:$0xff] }
 0x9c5   :  { %v4500_v41 = vsel %vm133_vm3, %v4492_v13, %v14983_v12  ;;  %v15090_v12 = vsel %vm122_vm1, %v4444_v44, %v4446_v18  ;;  %v15111_v33 = vsel %vm133_vm3, %v4490_v60, %v4492_v13  ;;  %v15137_v14 = vsel %vm133_vm3, %v15033_v48, %v4490_v60  ;;  %v11886_v48 = vld [vmem:[%s18700_s0 + $0x4] sm:$0x7] }
 0x9c6   :  { %4512 = vst.msk [vmem:[#allocation3 + $0xe8] sm:$0xff] %vm122_vm1, %v4500_v41  ;;  %4622 = vrot.lane.b32.xlu1 %v15079_v37, %s12783_s16  ;;  %4630 = vrot.lane.b32.xlu0 %v15075_v17, %s12783_s16 }
 0x9c8   :  { %v4605_v2 = vpop.permute.xlu0 %4604  ;;  %v4603_v11 = vpop.permute.xlu1 %4602  ;;  %v15119_v0 = vld [vmem:[#allocation3 + $0xb8] sm:$0xff] }
 0x9c9   :  { %4770 = vmatpush1.bf16.msra.mxu0 %v4605_v2  ;;  %v4661_v45 = vsel %vm18843_vm9, %v4603_v11, %v4605_v2  ;;  %v4660_v57 = vsel %vm18844_vm10, %v4601_v43, %v4603_v11  ;;  %v11884_v43 = vld [vmem:[%s18700_s0 + $0x4] sm:$0x7]  ;;  %vm18850_vm9 = vmmov %vm18848_vm5 }
 0x9ca   :  { %4716 = vmatprep.subr.bf16.mxu1 %v4661_v45  ;;  %4771 = vmatprep.subr.bf16.mxu0 %v18726_v31  ;;  %vm18851_vm10 = vmmov %vm18848_vm5 }
 0x9cb   :  { %4717 = vmatpush1.bf16.msra.mxu1 %v4660_v57  ;;  %4979 = vrot.lane.b32.xlu1 %v15000_v24, %s12784_s21 }
 0x9cc   :  { %v15094_v4 = vpop.permute.xlu0 %4971  ;;  %v15096_v9 = vpop.permute.xlu1 %4969  ;;  %4644 = vrot.lane.b32.xlu0 %v15090_v12, %s12783_s16 }
 0x9cd   :  { %v15133_v19 = vld [vmem:[#allocation3 + $0xe8] sm:$0xff] }
 0x9cf   :  { %4634 = vrot.lane.b32.xlu1 %v15100_v32, %s12783_s16 }
 0x9d0   :  { %v4607_v15 = vpop.permute.xlu0 %4606  ;;  %v4611_v3 = vpop.permute.xlu1 %4610  ;;  %4642 = vrot.lane.b32.xlu0 %v15103_v26, %s12783_s16 }
 0x9d1   :  { %4772 = vmatpush1.bf16.msra.mxu0 %v4611_v3 }
 0x9d2   :  { %4773 = vmatprep.subr.bf16.mxu0 %v18726_v31 }
 0x9d3   :  { %4993 = vrot.lane.b32.xlu1 %v15011_v63, %s12784_s21 }
 0x9d4   :  { %v15115_v59 = vpop.permute.xlu0 %4973  ;;  %4656 = vrot.lane.b32.xlu0 %v15111_v33, %s12783_s16  ;;  %v15195_v5 = vpop.permute.xlu1 %4977 }
 0x9d7   :  { %4646 = vrot.lane.b32.xlu1 %v15119_v0, %s12783_s16 }
 0x9d8   :  { %v4609_v50 = vpop.permute.xlu0 %4608  ;;  %5007 = vrot.lane.b32.xlu0 %v15008_v46, %s12784_s21 }
 0x9d9   :  { %v4663_v53 = vsel %vm18847_vm15, %v4609_v50, %v4611_v3  ;;  %v4662_v25 = vsel %vm18848_vm5, %v4607_v15, %v4609_v50  ;;  %v11885_v50 = vld [vmem:[%s18700_s0 + $0x4] sm:$0x7]  ;;  %vm18854_vm15 = vmmov %vm18852_vm4 }
 0x9da   :  { %4718 = vmatprep.subr.bf16.mxu1 %v4663_v53  ;;  %v11883_v53 = vld [vmem:[%s18700_s0 + $0x4] sm:$0x7]  ;;  %vm18855_vm5 = vmmov %vm18852_vm4 }
 0x9db   :  { %4719 = vmatpush1.bf16.msra.mxu1 %v4662_v25  ;;  %4989 = vrot.lane.b32.xlu1 %v15079_v37, %s12784_s21  ;;  %5891 = vst.msk [vmem:[#allocation4] ss:$8 sm:$0x7] %vm12887_vm0, %v11883_v53 }
 0x9dc   :  { %5019 = vrot.lane.b32.xlu0 %v15024_v35, %s12784_s21  ;;  %v15191_v10 = vpop.permute.xlu0 %4975 }
 0x9df   :  { %4658 = vrot.lane.b32.xlu1 %v15133_v19, %s12783_s16 }
 0x9e0   :  { %4654 = vrot.lane.b32.xlu0 %v15137_v14, %s12783_s16 }
 0x9e3   :  { %4991 = vrot.lane.b32.xlu1 %v15018_v52, %s12784_s21 }
 0x9e4   :  { %5224 = vrot.lane.b32.xlu0 %v14959_v20, %s12785_s8 }
 0x9e7   :  { %5001 = vrot.lane.b32.xlu1 %v15100_v32, %s12784_s21 }
 0x9e8   :  { %5228 = vrot.lane.b32.xlu0 %v14945_v54, %s12785_s8 }
 0x9eb   :  { %5005 = vrot.lane.b32.xlu1 %v15027_v29, %s12784_s21 }
 0x9ec   :  { %5226 = vrot.lane.b32.xlu0 %v14926_v30, %s12785_s8 }
 0x9ef   :  { %5003 = vrot.lane.b32.xlu1 %v15038_v62, %s12784_s21 }
 0x9f0   :  { %5236 = vrot.lane.b32.xlu0 %v14987_v28, %s12785_s8 }
 0x9f3   :  { %5013 = vrot.lane.b32.xlu1 %v15119_v0, %s12784_s21 }
 0x9f4   :  { %5248 = vrot.lane.b32.xlu0 %v14997_v8, %s12785_s8 }
 0x9f7   :  { %5017 = vrot.lane.b32.xlu1 %v15045_v23, %s12784_s21 }
 0x9f8   :  { %5260 = vrot.lane.b32.xlu0 %v15008_v46, %s12785_s8 }
 0x9fb   :  { %5015 = vrot.lane.b32.xlu1 %v15056_v38, %s12784_s21 }
 0x9fc   :  { %5895 = vrot.lane.b32.xlu0 %v11884_v43, %s12779_s23 }
 0x9ff   :  { %5222 = vrot.lane.b32.xlu1 %v14918_v40, %s12785_s8 }
 0xa00   :  { %5913 = vrot.lane.b32.xlu0 %v11886_v48, %s12778_s22 }
 0xa03   :  { %5220 = vrot.lane.b32.xlu1 %v14904_v49, %s12785_s8 }
 0xa04   :  { %4987 = vrot.lane.b32.xlu0 %v15048_v22, %s12784_s21 }
 0xa07   :  { %5230 = vrot.lane.b32.xlu1 %v14969_v56, %s12785_s8 }
 0xa08   :  { %4985 = vrot.lane.b32.xlu0 %v15059_v51, %s12784_s21 }
 0xa0b   :  { %5234 = vrot.lane.b32.xlu1 %v14991_v39, %s12785_s8 }
 0xa0c   :  { %4999 = vrot.lane.b32.xlu0 %v15067_v42, %s12784_s21 }
 0xa0f   :  { %5232 = vrot.lane.b32.xlu1 %v15000_v24, %s12785_s8 }
 0xa10   :  { %4997 = vrot.lane.b32.xlu0 %v15075_v17, %s12784_s21 }
 0xa13   :  { %v4617_v34 = vpop.permute.xlu0 %4616  ;;  %5242 = vrot.lane.b32.xlu1 %v15079_v37, %s12785_s8 }
 0xa14   :  { %4774 = vmatpush1.bf16.msra.mxu0 %v4617_v34  ;;  %5011 = vrot.lane.b32.xlu0 %v15090_v12, %s12784_s21  ;;  %v4615_v36 = vpop.permute.xlu1 %4614 }
 0xa15   :  { %v4665_v44 = vsel %vm18849_vm8, %v4615_v36, %v4617_v34  ;;  %4775 = vmatprep.subr.bf16.mxu0 %v18726_v31  ;;  %vm18856_vm8 = vmmov %vm18852_vm4 }
 0xa16   :  { %4720 = vmatprep.subr.bf16.mxu1 %v4665_v44 }
 0xa17   :  { %v4629_v18 = vpop.permute.xlu0 %4628  ;;  %5246 = vrot.lane.b32.xlu1 %v15011_v63, %s12785_s8 }
 0xa18   :  { %5009 = vrot.lane.b32.xlu0 %v15103_v26, %s12784_s21  ;;  %v4613_v13 = vpop.permute.xlu1 %4612 }
 0xa19   :  { %v4664_v60 = vsel %vm18850_vm9, %v4613_v13, %v4615_v36  ;;  %v11887_v36 = vld [vmem:[%s18700_s0 + $0x4] sm:$0xf]  ;;  %vm18857_vm9 = vmmov %vm18852_vm4 }
 0xa1a   :  { %4721 = vmatpush1.bf16.msra.mxu1 %v4664_v60 }
 0xa1b   :  { %v15210_v41 = vpop.permute.xlu0 %4640  ;;  %5244 = vrot.lane.b32.xlu1 %v15018_v52, %s12785_s8 }
 0xa1c   :  { %5023 = vrot.lane.b32.xlu0 %v15111_v33, %s12784_s21  ;;  %v4627_v2 = vpop.permute.xlu1 %4626 }
 0xa1f   :  { %v15216_v11 = vpop.permute.xlu0 %4983  ;;  %5254 = vrot.lane.b32.xlu1 %v15100_v32, %s12785_s8 }
 0xa20   :  { %5272 = vrot.lane.b32.xlu0 %v15024_v35, %s12785_s8  ;;  %v4625_v45 = vpop.permute.xlu1 %4624 }
 0xa23   :  { %v15222_v57 = vpop.permute.xlu0 %4652  ;;  %5258 = vrot.lane.b32.xlu1 %v15027_v29, %s12785_s8 }
 0xa24   :  { %5477 = vrot.lane.b32.xlu0 %v14959_v20, %s12786_s24  ;;  %v4639_v15 = vpop.permute.xlu1 %4638 }
 0xa27   :  { %v15228_v3 = vpop.permute.xlu0 %4995  ;;  %5256 = vrot.lane.b32.xlu1 %v15038_v62, %s12785_s8 }
 0xa28   :  { %5481 = vrot.lane.b32.xlu0 %v14945_v54, %s12786_s24  ;;  %v4637_v27 = vpop.permute.xlu1 %4636 }
 0xa2b   :  { %5904 = vrot.lane.b32.xlu1 %v11885_v50, %s12781_s30 }
 0xa2c   :  { %5479 = vrot.lane.b32.xlu0 %v14926_v30, %s12786_s24  ;;  %v4621_v25 = vpop.permute.xlu0 %4620  ;;  %v15245_v43 = vpop.permute.xlu1 %4650 }
 0xa2f   :  { %5025 = vrot.lane.b32.xlu1 %v15133_v19, %s12784_s21 }
 0xa30   :  { %5021 = vrot.lane.b32.xlu0 %v15137_v14, %s12784_s21  ;;  %v4619_v48 = vpop.permute.xlu0 %4618  ;;  %v15251_v34 = vpop.permute.xlu1 %4648 }
 0xa31   :  { %v4666_v1 = vsel %vm18852_vm4, %v4619_v48, %v4621_v25 }
 0xa33   :  { %5922 = vrot.lane.b32.xlu1 %v11887_v36, %s12780_s29  ;;  %v4669_v36 = vsel %vm18853_vm7, %v4627_v2, %v4629_v18  ;;  %vm18859_vm7 = vmmov %vm18852_vm4 }
 0xa34   :  { %5489 = vrot.lane.b32.xlu0 %v14987_v28, %s12786_s24  ;;  %v4633_v44 = vpop.permute.xlu0 %4632  ;;  %v15259_v13 = vpop.permute.xlu1 %4981 }
 0xa37   :  { %5266 = vrot.lane.b32.xlu1 %v15119_v0, %s12785_s8 }
 0xa38   :  { %5240 = vrot.lane.b32.xlu0 %v15048_v22, %s12785_s8  ;;  %v4631_v60 = vpop.permute.xlu0 %4630  ;;  %v4623_v50 = vpop.permute.xlu1 %4622 }
 0xa39   :  { %4776 = vmatpush1.bf16.msra.mxu0 %v4623_v50  ;;  %v4667_v53 = vsel %vm18851_vm10, %v4621_v25, %v4623_v50  ;;  %v4668_v50 = vsel %vm18854_vm15, %v4625_v45, %v4627_v2  ;;  %vm18858_vm10 = vmmov %vm18852_vm4 }
 0xa3a   :  { %4722 = vmatprep.subr.bf16.mxu1 %v4667_v53  ;;  %4777 = vmatprep.subr.bf16.mxu0 %v18726_v31  ;;  %v4670_v53 = vsel %vm18856_vm8, %v4631_v60, %v4633_v44  ;;  %vm18860_vm15 = vmmov %vm18852_vm4 }
 0xa3b   :  { %5270 = vrot.lane.b32.xlu1 %v15045_v23, %s12785_s8  ;;  %4723 = vmatpush1.bf16.msra.mxu1 %v4666_v1  ;;  %vm18862_vm8 = vmmov %vm18852_vm4 }
 0xa3c   :  { %5238 = vrot.lane.b32.xlu0 %v15059_v51, %s12785_s8  ;;  %4724 = vmatprep.subr.bf16.mxu1 %v4669_v36 }
 0xa3d   :  { %v15273_v21 = vpop.permute.xlu1 %4979  ;;  %4778 = vmatpush1.bf16.msra.mxu0 %v4629_v18  ;;  %v4673_v18 = vsel %vm18857_vm9, %v4639_v15, %v15210_v41  ;;  %vm18863_vm9 = vmmov %vm18852_vm4 }
 0xa3e   :  { %v4645_v7 = vpop.permute.xlu0 %4644  ;;  %4779 = vmatprep.subr.bf16.mxu0 %v18726_v31 }
 0xa3f   :  { %5268 = vrot.lane.b32.xlu1 %v15056_v38, %s12785_s8  ;;  %4725 = vmatpush1.bf16.msra.mxu1 %v4668_v50 }
 0xa40   :  { %5252 = vrot.lane.b32.xlu0 %v15067_v42, %s12785_s8 }
 0xa41   :  { %v4635_v1 = vpop.permute.xlu1 %4634 }
 0xa42   :  { %v4643_v25 = vpop.permute.xlu0 %4642  ;;  %4780 = vmatpush1.bf16.msra.mxu0 %v4635_v1  ;;  %v4671_v48 = vsel %vm18855_vm5, %v4633_v44, %v4635_v1  ;;  %v4672_v44 = vsel %vm18858_vm10, %v4637_v27, %v4639_v15  ;;  %vm18861_vm5 = vmmov %vm18852_vm4  ;;  %vm18864_vm10 = vcmask 261120  }
 0xa43   :  { %5475 = vrot.lane.b32.xlu1 %v14918_v40, %s12786_s24  ;;  %4726 = vmatprep.subr.bf16.mxu1 %v4671_v48  ;;  %v4674_v1 = vsel %vm18859_vm7, %v4643_v25, %v4645_v7 }
 0xa44   :  { %5250 = vrot.lane.b32.xlu0 %v15075_v17, %s12785_s8  ;;  %4727 = vmatpush1.bf16.msra.mxu1 %v4670_v53 }
 0xa45   :  { %4728 = vmatprep.subr.bf16.mxu1 %v4673_v18  ;;  %4781 = vmatprep.subr.bf16.mxu0 %v18726_v31  ;;  %v15290_v2 = vpop.permute.xlu1 %4993  ;;  %v12608_v18 = vld [vmem:[#allocation6 + $0x20] ss:$8 sps:$4 sm:$0xff]  }
 0xa46   :  { %v4657_v45 = vpop.permute.xlu0 %4656  ;;  %4782 = vmatpush1.bf16.msra.mxu0 %v15210_v41  ;;  %v4677_v41 = vsel %vm18860_vm15, %v15245_v43, %v15222_v57 }
 0xa47   :  { %5473 = vrot.lane.b32.xlu1 %v14904_v49, %s12786_s24  ;;  %4783 = vmatprep.subr.bf16.mxu0 %v18726_v31 }
 0xa48   :  { %5264 = vrot.lane.b32.xlu0 %v15090_v12, %s12785_s8  ;;  %4729 = vmatpush1.bf16.msra.mxu1 %v4672_v44  ;;  %v12611_v44 = vld [vmem:[#allocation6 + $0x34] ss:$8 sps:$4 sm:$0xff]  }
 0xa49   :  { %v4647_v60 = vpop.permute.xlu1 %4646 }
 0xa4a   :  { %v15299_v36 = vpop.permute.xlu0 %5007  ;;  %4784 = vmatpush1.bf16.msra.mxu0 %v4647_v60  ;;  %v4675_v50 = vsel %vm18852_vm4, %v4645_v7, %v4647_v60  ;;  %v4676_v7 = vsel %vm18861_vm5, %v15251_v34, %v15245_v43  ;;  %vm18865_vm4 = vmmov %vm18864_vm10  ;;  %vm18868_vm5 = vcmask 1031168  }
 0xa4b   :  { %5483 = vrot.lane.b32.xlu1 %v14969_v56, %s12786_s24  ;;  %4730 = vmatprep.subr.bf16.mxu1 %v4675_v50  ;;  %vm18866_vm7 = vmmov %vm18865_vm4  ;;  %v12617_v50 = vld [vmem:[#allocation6 + $0x14] ss:$8 sps:$4 sm:$0xff]  }
 0xa4c   :  { %5262 = vrot.lane.b32.xlu0 %v15103_v26, %s12785_s8  ;;  %4731 = vmatpush1.bf16.msra.mxu1 %v4674_v1  ;;  %vm18867_vm15 = vmmov %vm18865_vm4 }
 0xa4d   :  { %4732 = vmatprep.subr.bf16.mxu1 %v4677_v41  ;;  %4785 = vmatprep.subr.bf16.mxu0 %v18726_v31  ;;  %v15311_v15 = vpop.permute.xlu1 %4989 }
 0xa4e   :  { %v15313_v27 = vpop.permute.xlu0 %5019  ;;  %4786 = vmatpush1.bf16.msra.mxu0 %v15222_v57 }
 0xa4f   :  { %5487 = vrot.lane.b32.xlu1 %v14991_v39, %s12786_s24  ;;  %4787 = vmatprep.subr.bf16.mxu0 %v18726_v31 }
 0xa50   :  { %5276 = vrot.lane.b32.xlu0 %v15111_v33, %s12785_s8  ;;  %4733 = vmatpush1.bf16.msra.mxu1 %v4676_v7 }
 0xa51   :  { %v4659_v25 = vpop.permute.xlu1 %4658 }
 0xa52   :  { %v4655_v48 = vpop.permute.xlu0 %4654  ;;  %4788 = vmatpush1.bf16.msra.mxu0 %v4659_v25  ;;  %v4679_v53 = vsel %vm18862_vm8, %v4657_v45, %v4659_v25  ;;  %vm18869_vm8 = vmmov %vm18868_vm5 }
 0xa53   :  { %v4678_v57 = vsel %vm18863_vm9, %v4655_v48, %v4657_v45  ;;  %5485 = vrot.lane.b32.xlu1 %v15000_v24, %s12786_s24  ;;  %4734 = vmatprep.subr.bf16.mxu1 %v4679_v53  ;;  %v5027_v1 = vsel %vm18869_vm8, %v15035_v58, %v15096_v9  ;;  %vm18870_vm9 = vmmov %vm18868_vm5 }
 0xa54   :  { %5501 = vrot.lane.b32.xlu0 %v14997_v8, %s12786_s24  ;;  %4735 = vmatpush1.bf16.msra.mxu1 %v4678_v57  ;;  %v5030_v41 = vsel %vm18870_vm9, %v15191_v10, %v15195_v5 }
 0xa55   :  { %4842 = vmatprep.subr.bf16.mxu1 %v14918_v40  ;;  %4895 = vmatprep.subr.bf16.mxu0 %v18726_v31  ;;  %v15332_v43 = vpop.permute.xlu1 %4991 }
 0xa56   :  { %v15334_v34 = vpop.permute.xlu0 %5224  ;;  %4802 = vmatmul.mubr.bf16.vlgmr.msra.gmra.mrb[92].mxu0 %v12608_v18 }
 0xa57   :  { %4896 = vmatpush1.bf16.msra.mxu0 %v14959_v20  ;;  %5278 = vrot.lane.b32.xlu1 %v15133_v19, %s12785_s8  ;;  %v12613_v20 = vld [vmem:[#allocation6 + $0x30] ss:$8 sps:$4 sm:$0xff]  }
 0xa58   :  { %5274 = vrot.lane.b32.xlu0 %v15137_v14, %s12785_s8  ;;  %4749 = vmatmul.mubr.bf16.vlgmr.msra.gmra.mrb[20].mxu1 %v12608_v18 }
 0xa59   :  { %4843 = vmatpush1.bf16.msra.mxu1 %v14904_v49  ;;  %4897 = vmatprep.subr.bf16.mxu0 %v18726_v31  ;;  %v15343_v40 = vpop.permute.xlu1 %5001 }
 0xa5a   :  { %v15345_v45 = vpop.permute.xlu0 %5228  ;;  %4844 = vmatprep.subr.bf16.mxu1 %v14945_v54  ;;  %11850 = vmatprep.mubr.msk.bf16.mxu0 %vm18864_vm10, %v12611_v44  ;;  %v12616_v54 = vld [vmem:[#allocation6 + $0x4] ss:$8 sps:$4 sm:$0xff]   ;;  %vm18871_vm10 = vmmov %vm18865_vm4 }
 0xa5b   :  { %4898 = vmatpush1.bf16.msra.mxu0 %v14969_v56  ;;  %5495 = vrot.lane.b32.xlu1 %v15079_v37, %s12786_s24 }
 0xa5c   :  { %5513 = vrot.lane.b32.xlu0 %v15008_v46, %s12786_s24  ;;  %4899 = vmatprep.subr.bf16.mxu0 %v18726_v31 }
 0xa5d   :  { %4845 = vmatpush1.bf16.msra.mxu1 %v14926_v30  ;;  %v15356_v49 = vpop.permute.xlu1 %5005  ;;  %11848 = vmatprep.mubr.msk.bf16.mxu1 %vm18865_vm4, %v12611_v44 }
 0xa5e   :  { %v15359_v60 = vpop.permute.xlu0 %5226  ;;  %4846 = vmatprep.subr.bf16.mxu1 %v14991_v39  ;;  %4810 = vmatmul.mubr.bf16.gmra.mrb[96].mxu0 %v12613_v20 }
 0xa5f   :  { %4900 = vmatpush1.bf16.msra.mxu0 %v14987_v28  ;;  %5499 = vrot.lane.b32.xlu1 %v15011_v63, %s12786_s24 }
 0xa60   :  { %5525 = vrot.lane.b32.xlu0 %v15024_v35, %s12786_s24  ;;  %4901 = vmatprep.subr.bf16.mxu0 %v18726_v31 }
 0xa61   :  { %4847 = vmatpush1.bf16.msra.mxu1 %v15000_v24  ;;  %v15369_v30 = vpop.permute.xlu1 %5003  ;;  %11857 = vmatprep.mubr.msk.bf16.mxu0 %vm18866_vm7, %v12616_v54  ;;  %vm18872_vm7 = vmmov %vm18868_vm5 }
 0xa62   :  { %v15372_v56 = vpop.permute.xlu0 %5236  ;;  %4848 = vmatprep.subr.bf16.mxu1 %v15048_v22  ;;  %4759 = vmatmul.mubr.bf16.gmra.mrb[24].mxu1 %v12613_v20  ;;  %v5029_v58 = vsel %vm18872_vm7, %v15115_v59, %v15191_v10  ;;  %vm18875_vm8 = vmmov %vm18872_vm7 }
 0xa63   :  { %4902 = vmatpush1.bf16.msra.mxu0 %v15079_v37  ;;  %5497 = vrot.lane.b32.xlu1 %v15018_v52, %s12786_s24  ;;  %v5031_v59 = vsel %vm18875_vm8, %v15273_v21, %v15259_v13  ;;  %vm18876_vm9 = vmmov %vm18872_vm7 }
 0xa64   :  { %5493 = vrot.lane.b32.xlu0 %v15048_v22, %s12786_s24  ;;  %4903 = vmatprep.subr.bf16.mxu0 %v18726_v31 }
 0xa65   :  { %4849 = vmatpush1.bf16.msra.mxu1 %v15059_v51  ;;  %v15382_v28 = vpop.permute.xlu1 %5013  ;;  %11855 = vmatprep.mubr.msk.bf16.mxu1 %vm18867_vm15, %v12616_v54  ;;  %vm18873_vm15 = vmmov %vm18868_vm5 }
 0xa66   :  { %v15385_v39 = vpop.permute.xlu0 %5248  ;;  %4850 = vmatprep.subr.bf16.mxu1 %v15011_v63 }
 0xa67   :  { %4904 = vmatpush1.bf16.msra.mxu0 %v14997_v8  ;;  %5507 = vrot.lane.b32.xlu1 %v15100_v32, %s12786_s24 }
 0xa68   :  { %5491 = vrot.lane.b32.xlu0 %v15059_v51, %s12786_s24  ;;  %4905 = vmatprep.subr.bf16.mxu0 %v18726_v31 }
 0xa69   :  { %4851 = vmatpush1.bf16.msra.mxu1 %v15018_v52  ;;  %v15395_v24 = vpop.permute.xlu1 %5017 }
 0xa6a   :  { %v15397_v22 = vpop.permute.xlu0 %5260  ;;  %4852 = vmatprep.subr.bf16.mxu1 %v15067_v42 }
 0xa6b   :  { %4906 = vmatpush1.bf16.msra.mxu0 %v15100_v32  ;;  %5511 = vrot.lane.b32.xlu1 %v15027_v29, %s12786_s24 }
 0xa6c   :  { %5505 = vrot.lane.b32.xlu0 %v15067_v42, %s12786_s24  ;;  %4907 = vmatprep.subr.bf16.mxu0 %v18726_v31 }
 0xa6d   :  { %4853 = vmatpush1.bf16.msra.mxu1 %v15075_v17  ;;  %v15407_v8 = vpop.permute.xlu1 %5015 }
 0xa6e   :  { %v5896_v63 = vpop.permute.xlu0 %5895  ;;  %4854 = vmatprep.subr.bf16.mxu1 %v15027_v29 }
 0xa6f   :  { %v5897_v52 = vrot.slane %v5896_v63, 1  ;;  %4908 = vmatpush1.bf16.msra.mxu0 %v15008_v46  ;;  %5509 = vrot.lane.b32.xlu1 %v15038_v62, %s12786_s24 }
 0xa70   :  { %5503 = vrot.lane.b32.xlu0 %v15075_v17, %s12786_s24  ;;  %4909 = vmatprep.subr.bf16.mxu0 %v18726_v31 }
 0xa71   :  { %v5898_v51 = vsel %vm100_vm2, %v5896_v63, %v5897_v52  ;;  %4855 = vmatpush1.bf16.msra.mxu1 %v15038_v62  ;;  %v15418_v42 = vpop.permute.xlu1 %5222 }
 0xa72   :  { %5900 = vst.msk [vmem:[#allocation4 + $0x1] ss:$8 sm:$0x7] %vm12887_vm0, %v5898_v51  ;;  %v5914_v29 = vpop.permute.xlu0 %5913  ;;  %4856 = vmatprep.subr.bf16.mxu1 %v15090_v12 }
 0xa73   :  { %v5915_v46 = vrot.slane %v5914_v29, 1  ;;  %4910 = vmatpush1.bf16.msra.mxu0 %v15119_v0  ;;  %5519 = vrot.lane.b32.xlu1 %v15119_v0, %s12786_s24  ;;  %v12614_v0 = vld [vmem:[#allocation6] ss:$8 sps:$4 sm:$0xff]  }
 0xa74   :  { %5517 = vrot.lane.b32.xlu0 %v15090_v12, %s12786_s24  ;;  %4911 = vmatprep.subr.bf16.mxu0 %v18726_v31 }
 0xa75   :  { %v5916_v62 = vsel %vm122_vm1, %v5914_v29, %v5915_v46  ;;  %4857 = vmatpush1.bf16.msra.mxu1 %v15103_v26  ;;  %v15431_v17 = vpop.permute.xlu1 %5220 }
 0xa76   :  { %5918 = vst.msk [vmem:[#allocation4 + $0x3] ss:$8 sm:$0x7] %vm12887_vm0, %v5916_v62  ;;  %v4988_v37 = vpop.permute.xlu0 %4987  ;;  %4858 = vmatprep.subr.bf16.mxu1 %v15045_v23 }
 0xa77   :  { %4912 = vmatpush1.bf16.msra.mxu0 %v15024_v35  ;;  %5523 = vrot.lane.b32.xlu1 %v15045_v23, %s12786_s24  ;;  %v5028_v35 = vsel %vm18868_vm5, %v15096_v9, %v15094_v4  ;;  %v5032_v9 = vsel %vm18873_vm15, %v15259_v13, %v15216_v11  ;;  %vm18874_vm5 = vmmov %vm18865_vm4  ;;  %v5034_v10 = vsel %vm18876_vm9, %v4988_v37, %v15311_v15 }
 0xa78   :  { %5515 = vrot.lane.b32.xlu0 %v15103_v26, %s12786_s24  ;;  %4913 = vmatprep.subr.bf16.mxu0 %v18726_v31 }
 0xa79   :  { %4859 = vmatpush1.bf16.msra.mxu1 %v15056_v38  ;;  %v15443_v12 = vpop.permute.xlu1 %5230 }
 0xa7a   :  { %v4986_v32 = vpop.permute.xlu0 %4985  ;;  %4860 = vmatprep.subr.bf16.mxu1 %v15111_v33 }
 0xa7b   :  { %4914 = vmatpush1.bf16.msra.mxu0 %v15133_v19  ;;  %5521 = vrot.lane.b32.xlu1 %v15056_v38, %s12786_s24  ;;  %v4515_v38 = vld [vmem:[#allocation6 + $0x10] sm:$0xff] }
 0xa7c   :  { %5529 = vrot.lane.b32.xlu0 %v15111_v33, %s12786_s24  ;;  %5136 = vmatprep.subr.bf16.mxu0 %v18726_v31  ;;  %v4516_v33 = vld [vmem:[#allocation6 + $0x18] sm:$0xff] }
 0xa7d   :  { %4861 = vmatpush1.bf16.msra.mxu1 %v15137_v14  ;;  %v15456_v23 = vpop.permute.xlu1 %5234  ;;  %v11853_v7 = vcombine.low %v4515_v38, %v4516_v33 }
 0xa7e   :  { %v5000_v26 = vpop.permute.xlu0 %4999  ;;  %5083 = vmatprep.subr.bf16.mxu1 %v5028_v35  ;;  %4928 = vmatmul.mubr.bf16.vlgmr.msra.gmra.mrb[100].mxu0 %v12614_v0  ;;  %v12619_v35 = vld [vmem:[#allocation6 + $0x40] ss:$8 sps:$4 sm:$0xff]  }
 0xa7f   :  { %5137 = vmatpush1.bf16.msra.mxu0 %v15094_v4  ;;  %5531 = vrot.lane.b32.xlu1 %v15133_v19, %s12786_s24 }
 0xa80   :  { %5527 = vrot.lane.b32.xlu0 %v15137_v14, %s12786_s24  ;;  %4875 = vmatmul.mubr.bf16.vlgmr.msra.gmra.mrb[20].mxu1 %v12614_v0  ;;  %v12621_v14 = vld [vmem:[#allocation6 + $0x44] ss:$8 sps:$4 sm:$0xff]  }
 0xa81   :  { %5084 = vmatpush1.bf16.msra.mxu1 %v5027_v1  ;;  %5138 = vmatprep.subr.bf16.mxu0 %v18726_v31  ;;  %v15470_v4 = vpop.permute.xlu1 %5232 }
 0xa82   :  { %v4998_v19 = vpop.permute.xlu0 %4997  ;;  %5085 = vmatprep.subr.bf16.mxu1 %v5030_v41  ;;  %11858 = vmatprep.mubr.msk.bf16.mxu0 %vm18871_vm10, %v12617_v50  ;;  %vm18877_vm10 = vmmov %vm18865_vm4 }
 0xa83   :  { %5139 = vmatpush1.bf16.msra.mxu0 %v15195_v5  ;;  %11856 = vmatprep.mubr.msk.bf16.mxu1 %vm18865_vm4, %v12617_v50  ;;  %vm18878_vm4 = vmmov %vm18872_vm7 }
 0xa84   :  { %5140 = vmatprep.subr.bf16.mxu0 %v18726_v31  ;;  %vm18879_vm7 = vmmov %vm18878_vm4 }
 0xa85   :  { %5086 = vmatpush1.bf16.msra.mxu1 %v5029_v58  ;;  %v15482_v25 = vpop.permute.xlu1 %5242  ;;  %v5036_v21 = vsel %vm18879_vm7, %v15290_v2, %v15228_v3  ;;  %vm18880_vm15 = vmmov %vm18878_vm4 }
 0xa86   :  { %v5012_v48 = vpop.permute.xlu0 %5011  ;;  %5087 = vmatprep.subr.bf16.mxu1 %v5032_v9  ;;  %4936 = vmatmul.mubr.bf16.gmra.mrb[104].mxu0 %v11853_v7  ;;  %v5035_v57 = vsel %vm18880_vm15, %v15332_v43, %v15290_v2  ;;  %vm18882_vm8 = vmmov %vm18878_vm4 }
 0xa87   :  { %5141 = vmatpush1.bf16.msra.mxu0 %v15216_v11  ;;  %11865 = vmatprep.mubr.msk.bf16.mxu0 %vm18874_vm5, %v12621_v14  ;;  %v5033_v11 = vsel %vm18878_vm4, %v4986_v32, %v4988_v37  ;;  %vm18881_vm5 = vmmov %vm18878_vm4  ;;  %v5037_v54 = vsel %vm18882_vm8, %v4998_v19, %v5000_v26  ;;  %v5042_v63 = vsel %vm18878_vm4, %v5012_v48, %v15382_v28  ;;  %vm18888_vm8 = vcmask 719872  }
 0xa88   :  { %5142 = vmatprep.subr.bf16.mxu0 %v18726_v31  ;;  %4885 = vmatmul.mubr.bf16.gmra.mrb[24].mxu1 %v11853_v7  ;;  %vm18883_vm9 = vmmov %vm18878_vm4 }
 0xa89   :  { %5088 = vmatpush1.bf16.msra.mxu1 %v5031_v59  ;;  %v15492_v5 = vpop.permute.xlu1 %5246  ;;  %11863 = vmatprep.mubr.msk.bf16.mxu1 %vm18877_vm10, %v12621_v14  ;;  %vm18884_vm10 = vmmov %vm18878_vm4 }
 0xa8a   :  { %v5010_v53 = vpop.permute.xlu0 %5009  ;;  %5089 = vmatprep.subr.bf16.mxu1 %v5034_v10  ;;  %vm18885_vm7 = vmmov %vm18878_vm4 }
 0xa8b   :  { %5143 = vmatpush1.bf16.msra.mxu0 %v15311_v15  ;;  %v5038_v15 = vsel %vm18881_vm5, %v5000_v26, %v15343_v40  ;;  %v5041_v29 = vsel %vm18885_vm7, %v5010_v53, %v5012_v48  ;;  %vm18886_vm15 = vmmov %vm18878_vm4  ;;  %vm18892_vm7 = vcmask 261120  }
 0xa8c   :  { %5144 = vmatprep.subr.bf16.mxu0 %v18726_v31  ;;  %vm18887_vm5 = vmmov %vm18878_vm4 }
 0xa8d   :  { %5090 = vmatpush1.bf16.msra.mxu1 %v5033_v11  ;;  %v15501_v13 = vpop.permute.xlu1 %5244 }
 0xa8e   :  { %v5024_v18 = vpop.permute.xlu0 %5023  ;;  %5091 = vmatprep.subr.bf16.mxu1 %v5036_v21 }
 0xa8f   :  { %5145 = vmatpush1.bf16.msra.mxu0 %v15228_v3  ;;  %v5040_v3 = vsel %vm18883_vm9, %v15356_v49, %v15299_v36  ;;  %vm18889_vm9 = vmmov %vm18878_vm4 }
 0xa90   :  { %5146 = vmatprep.subr.bf16.mxu0 %v18726_v31 }
 0xa91   :  { %5092 = vmatpush1.bf16.msra.mxu1 %v5035_v57  ;;  %v15510_v44 = vpop.permute.xlu1 %5254 }
 0xa92   :  { %v15512_v20 = vpop.permute.xlu0 %5272  ;;  %5093 = vmatprep.subr.bf16.mxu1 %v5038_v15 }
 0xa93   :  { %5147 = vmatpush1.bf16.msra.mxu0 %v15343_v40  ;;  %v5039_v40 = vsel %vm18884_vm10, %v15369_v30, %v15356_v49  ;;  %vm18890_vm10 = vmmov %vm18878_vm4  ;;  %vm18891_vm4 = vcmask 1022976  }
 0xa94   :  { %5148 = vmatprep.subr.bf16.mxu0 %v18726_v31 }
 0xa95   :  { %5094 = vmatpush1.bf16.msra.mxu1 %v5037_v54  ;;  %v15520_v2 = vpop.permute.xlu1 %5258 }
 0xa96   :  { %v15522_v43 = vpop.permute.xlu0 %5477  ;;  %5095 = vmatprep.subr.bf16.mxu1 %v5040_v3 }
 0xa97   :  { %5149 = vmatpush1.bf16.msra.mxu0 %v15299_v36  ;;  %v5044_v36 = vsel %vm18886_vm15, %v15395_v24, %v15313_v27  ;;  %vm18893_vm15 = vmmov %vm18891_vm4 }
 0xa98   :  { %5150 = vmatprep.subr.bf16.mxu0 %v18726_v31  ;;  %v5280_v33 = vsel %vm18893_vm15, %v15431_v17, %v15418_v42  ;;  %v12627_v17 = vld [vmem:[#allocation6 + $0x64] ss:$8 sps:$4 sm:$0xff]  }
 0xa99   :  { %5096 = vmatpush1.bf16.msra.mxu1 %v5039_v40  ;;  %v15531_v52 = vpop.permute.xlu1 %5256 }
 0xa9a   :  { %v15533_v51 = vpop.permute.xlu0 %5481  ;;  %5097 = vmatprep.subr.bf16.mxu1 %v5042_v63 }
 0xa9b   :  { %5151 = vmatpush1.bf16.msra.mxu0 %v15382_v28  ;;  %v5043_v28 = vsel %vm18887_vm5, %v15407_v8, %v15395_v24  ;;  %v5281_v24 = vsel %vm18891_vm4, %v15418_v42, %v15334_v34  ;;  %vm18894_vm5 = vmmov %vm18891_vm4  ;;  %v12624_v42 = vld [vmem:[#allocation6 + $0x50] ss:$8 sps:$4 sm:$0xff]  }
 0xa9c   :  { %5152 = vmatprep.subr.bf16.mxu0 %v18726_v31  ;;  %v5283_v41 = vsel %vm18894_vm5, %v15345_v45, %v15443_v12 }
 0xa9d   :  { %5098 = vmatpush1.bf16.msra.mxu1 %v5041_v29  ;;  %v5905_v49 = vpop.permute.xlu1 %5904  ;;  %v6983_v29 = vld [vmem:[%s18703_s3] sm:$0xff] }
 0xa9e   :  { %v15541_v30 = vpop.permute.xlu0 %5479  ;;  %5099 = vmatprep.subr.bf16.mxu1 %v5044_v36  ;;  %v5906_v46 = vrot.slane %v5905_v49, 1 }
 0xa9f   :  { %5153 = vmatpush1.bf16.msra.mxu0 %v15313_v27  ;;  %v12622_v27 = vld [vmem:[#allocation6 + $0x54] ss:$8 sps:$4 sm:$0xff]  }
 0xaa0   :  { %v5907_v62 = vsel %vm18888_vm8, %v5905_v49, %v5906_v46  ;;  %5154 = vmatprep.subr.bf16.mxu0 %v18726_v31  ;;  %vm18895_vm8 = vmmov %vm18892_vm7 }
 0xaa1   :  { %5909 = vst.msk [vmem:[#allocation4 + $0x2] ss:$8 sm:$0x7] %vm12887_vm0, %v5907_v62  ;;  %5100 = vmatpush1.bf16.msra.mxu1 %v5043_v28  ;;  %v5026_v37 = vpop.permute.xlu1 %5025  ;;  %vm18901_vm15 = vmmov %vm18895_vm8 }
 0xaa2   :  { %v5022_v32 = vpop.permute.xlu0 %5021  ;;  %v5046_v0 = vsel %vm18889_vm9, %v5024_v18, %v5026_v37  ;;  %vm18896_vm9 = vmmov %vm18891_vm4 }
 0xaa3   :  { %v5045_v26 = vsel %vm18890_vm10, %v5022_v32, %v5024_v18  ;;  %5155 = vmatpush1.bf16.msra.mxu0 %v5026_v37  ;;  %5101 = vmatprep.subr.bf16.mxu1 %v5046_v0  ;;  %v5282_v6 = vsel %vm18896_vm9, %v15359_v60, %v15345_v45  ;;  %vm18898_vm10 = vmmov %vm18892_vm7  ;;  %v12625_v37 = vld [vmem:[#allocation6 + $0x60] ss:$8 sps:$4 sm:$0xff]  }
 0xaa4   :  { %5389 = vmatprep.subr.bf16.mxu0 %v18726_v31  ;;  %v6985_v32 = vld [vmem:[%s18703_s3 + $0x10] sm:$0xff] }
 0xaa5   :  { %5102 = vmatpush1.bf16.msra.mxu1 %v5045_v26  ;;  %v5923_v8 = vpop.permute.xlu1 %5922 }
 0xaa6   :  { %v15557_v50 = vpop.permute.xlu0 %5489  ;;  %5336 = vmatprep.subr.bf16.mxu1 %v5281_v24  ;;  %v5924_v38 = vrot.slane %v5923_v8, 1  ;;  %5169 = vmatmul.mubr.bf16.vlgmr.msra.gmra.mrb[108].mxu0 %v12619_v35 }
 0xaa7   :  { %5390 = vmatpush1.bf16.msra.mxu0 %v15334_v34  ;;  %11866 = vmatprep.mubr.msk.bf16.mxu0 %vm18892_vm7, %v12622_v27 }
 0xaa8   :  { %v5925_v1 = vsel %vm133_vm3, %v5923_v8, %v5924_v38  ;;  %5116 = vmatmul.mubr.bf16.vlgmr.msra.gmra.mrb[20].mxu1 %v12619_v35  ;;  %5391 = vmatprep.subr.bf16.mxu0 %v18726_v31 }
 0xaa9   :  { %5927 = vst.msk [vmem:[#allocation4 + $0x4] ss:$8 sm:$0x7] %vm12887_vm0, %v5925_v1  ;;  %5337 = vmatpush1.bf16.msra.mxu1 %v5280_v33  ;;  %v15571_v34 = vpop.permute.xlu1 %5266  ;;  %11864 = vmatprep.mubr.msk.bf16.mxu1 %vm18895_vm8, %v12622_v27  ;;  %vm18897_vm0 = vmmov %vm18891_vm4  ;;  %v12628_v27 = vld [vmem:[#allocation6 + $0x74] ss:$8 sps:$4 sm:$0xff]  }
 0xaaa   :  { %v5241_v19 = vpop.permute.xlu0 %5240  ;;  %5338 = vmatprep.subr.bf16.mxu1 %v5283_v41  ;;  %v5285_v7 = vsel %vm18897_vm0, %v15456_v23, %v15372_v56  ;;  %vm18899_vm4 = vmmov %vm18897_vm0  ;;  %v12630_v1 = vld [vmem:[#allocation6 + $0x70] ss:$8 sps:$4 sm:$0xff]  }
 0xaab   :  { %5392 = vmatpush1.bf16.msra.mxu0 %v15443_v12  ;;  %v5284_v45 = vsel %vm18899_vm4, %v15470_v4, %v15456_v23  ;;  %vm18900_vm7 = vmmov %vm18897_vm0 }
 0xaac   :  { %5393 = vmatprep.subr.bf16.mxu0 %v18726_v31  ;;  %v5287_v9 = vsel %vm18900_vm7, %v5241_v19, %v15482_v25  ;;  %vm18902_vm5 = vmmov %vm18897_vm0 }
 0xaad   :  { %5339 = vmatpush1.bf16.msra.mxu1 %v5282_v6  ;;  %v15582_v14 = vpop.permute.xlu1 %5270  ;;  %vm18903_vm8 = vmmov %vm18897_vm0 }
 0xaae   :  { %v5239_v58 = vpop.permute.xlu0 %5238  ;;  %5340 = vmatprep.subr.bf16.mxu1 %v5285_v7  ;;  %5177 = vmatmul.mubr.bf16.gmra.mrb[112].mxu0 %v12624_v42  ;;  %v5289_v4 = vsel %vm18903_vm8, %v15492_v5, %v15385_v39  ;;  %vm18904_vm9 = vmmov %vm18897_vm0 }
 0xaaf   :  { %5394 = vmatpush1.bf16.msra.mxu0 %v15372_v56  ;;  %11873 = vmatprep.mubr.msk.bf16.mxu0 %vm18898_vm10, %v12627_v17  ;;  %v5286_v23 = vsel %vm18902_vm5, %v5239_v58, %v5241_v19  ;;  %vm18905_vm10 = vmmov %vm18897_vm0 }
 0xab0   :  { %5395 = vmatprep.subr.bf16.mxu0 %v18726_v31  ;;  %v15590_v60 = vld [vmem:[#allocation4 + $0x10] sm:$0x1f]  ;;  %v15592_v12 = vld [vmem:[#allocation4 + $0x8] sm:$0x1f]  ;;  %5126 = vmatmul.mubr.bf16.gmra.mrb[24].mxu1 %v12624_v42  ;;  %v15609_v59 = vld [vmem:[#allocation4] sm:$0x1f] }
 0xab1   :  { %5341 = vmatpush1.bf16.msra.mxu1 %v5284_v45  ;;  %5947 = vrot.lane.b32.xlu0 %v15590_v60, %s12783_s16  ;;  %v5269_v56 = vpop.permute.xlu1 %5268  ;;  %vm18906_vm4 = vmmov %vm18897_vm0  ;;  %v12633_v42 = vld [vmem:[#allocation6 + $0x84] ss:$8 sps:$4 sm:$0xff]  }
 0xab2   :  { %v5253_v48 = vpop.permute.xlu0 %5252  ;;  %5342 = vmatprep.subr.bf16.mxu1 %v5287_v9  ;;  %5945 = vrot.lane.b32.xlu1 %v15592_v12, %s12783_s16  ;;  %vm18907_vm7 = vmmov %vm18897_vm0 }
 0xab3   :  { %5396 = vmatpush1.bf16.msra.mxu0 %v15482_v25  ;;  %11871 = vmatprep.mubr.msk.bf16.mxu1 %vm18901_vm15, %v12627_v17  ;;  %v5288_v25 = vsel %vm18904_vm9, %v15501_v13, %v15492_v5  ;;  %v5291_v11 = vsel %vm18897_vm0, %v5253_v48, %v15510_v44  ;;  %v5293_v5 = vsel %vm18906_vm4, %v15520_v2, %v15397_v22  ;;  %vm18908_vm15 = vmmov %vm18897_vm0  ;;  %vm18913_vm4 = vcmask 1014784  }
 0xab4   :  { %5397 = vmatprep.subr.bf16.mxu0 %v18726_v31  ;;  %v5292_v15 = vsel %vm18907_vm7, %v15531_v52, %v15520_v2  ;;  %vm18909_vm5 = vmmov %vm18897_vm0  ;;  %v6984_v52 = vld [vmem:[%s18703_s3 + $0x8] sm:$0xff] }
 0xab5   :  { %5343 = vmatpush1.bf16.msra.mxu1 %v5286_v23  ;;  %6341 = vrot.lane.b32.xlu0 %v15592_v12, %s12784_s21  ;;  %v15611_v10 = vpop.permute.xlu1 %5475  ;;  %vm18910_vm8 = vmmov %vm18897_vm0 }
 0xab6   :  { %v5251_v53 = vpop.permute.xlu0 %5250  ;;  %5344 = vmatprep.subr.bf16.mxu1 %v5289_v4  ;;  %5943 = vrot.lane.b32.xlu1 %v15609_v59, %s12783_s16  ;;  %v5297_v2 = vsel %vm18910_vm8, %v15582_v14, %v15512_v20  ;;  %vm18911_vm9 = vmmov %vm18897_vm0  ;;  %v5534_v0 = vsel %vm18913_vm4, %v15611_v10, %v15522_v43 }
 0xab7   :  { %5398 = vmatpush1.bf16.msra.mxu0 %v15385_v39  ;;  %v5290_v39 = vsel %vm18905_vm10, %v5251_v53, %v5253_v48  ;;  %v5296_v36 = vsel %vm18911_vm9, %v5269_v56, %v15582_v14  ;;  %vm18912_vm10 = vmmov %vm18897_vm0 }
 0xab8   :  { %5399 = vmatprep.subr.bf16.mxu0 %v18726_v31  ;;  %vm18914_vm7 = vmmov %vm18913_vm4 }
 0xab9   :  { %5345 = vmatpush1.bf16.msra.mxu1 %v5288_v25  ;;  %6339 = vrot.lane.b32.xlu0 %v15609_v59, %s12784_s21  ;;  %v5474_v21 = vpop.permute.xlu1 %5473  ;;  %vm18918_vm9 = vmmov %vm18913_vm4 }
 0xaba   :  { %v5265_v18 = vpop.permute.xlu0 %5264  ;;  %5346 = vmatprep.subr.bf16.mxu1 %v5291_v11  ;;  %6343 = vrot.lane.b32.xlu1 %v15590_v60, %s12784_s21  ;;  %v5533_v24 = vsel %vm18914_vm7, %v5474_v21, %v15611_v10 }
 0xabb   :  { %5400 = vmatpush1.bf16.msra.mxu0 %v15510_v44  ;;  %v5295_v44 = vsel %vm18908_vm15, %v5265_v18, %v15571_v34  ;;  %vm18915_vm15 = vmmov %vm18913_vm4 }
 0xabc   :  { %5401 = vmatprep.subr.bf16.mxu0 %v18726_v31 }
 0xabd   :  { %5347 = vmatpush1.bf16.msra.mxu1 %v5290_v39  ;;  %6559 = vrot.lane.b32.xlu0 %v15590_v60, %s12785_s8  ;;  %v15634_v13 = vpop.permute.xlu1 %5483 }
 0xabe   :  { %v5263_v57 = vpop.permute.xlu0 %5262  ;;  %5348 = vmatprep.subr.bf16.mxu1 %v5293_v5  ;;  %6557 = vrot.lane.b32.xlu1 %v15592_v12, %s12785_s8  ;;  %v5536_v8 = vsel %vm18915_vm15, %v15533_v51, %v15634_v13 }
 0xabf   :  { %5402 = vmatpush1.bf16.msra.mxu0 %v15397_v22  ;;  %v5294_v22 = vsel %vm18909_vm5, %v5263_v57, %v5265_v18  ;;  %vm18916_vm5 = vcmask 261120  }
 0xac0   :  { %5403 = vmatprep.subr.bf16.mxu0 %v18726_v31  ;;  %vm18917_vm8 = vmmov %vm18916_vm5 }
 0xac1   :  { %5349 = vmatpush1.bf16.msra.mxu1 %v5292_v15  ;;  %6773 = vrot.lane.b32.xlu0 %v15592_v12, %s12786_s24  ;;  %v15647_v54 = vpop.permute.xlu1 %5487  ;;  %vm18922_vm7 = vmmov %vm18916_vm5 }
 0xac2   :  { %v5277_v3 = vpop.permute.xlu0 %5276  ;;  %6555 = vrot.lane.b32.xlu1 %v15609_v59, %s12785_s8  ;;  %5350 = vmatprep.subr.bf16.mxu1 %v5295_v44 }
 0xac3   :  { %5404 = vmatpush1.bf16.msra.mxu0 %v15571_v34 }
 0xac4   :  { %5405 = vmatprep.subr.bf16.mxu0 %v18726_v31 }
 0xac5   :  { %5351 = vmatpush1.bf16.msra.mxu1 %v5294_v22  ;;  %6771 = vrot.lane.b32.xlu0 %v15609_v59, %s12786_s24  ;;  %v5486_v40 = vpop.permute.xlu1 %5485 }
 0xac6   :  { %v15659_v63 = vpop.permute.xlu0 %5501  ;;  %6775 = vrot.lane.b32.xlu1 %v15590_v60, %s12786_s24  ;;  %5352 = vmatprep.subr.bf16.mxu1 %v5297_v2  ;;  %v12631_v2 = vld [vmem:[#allocation6 + $0x80] ss:$8 sps:$4 sm:$0xff]  }
 0xac7   :  { %5406 = vmatpush1.bf16.msra.mxu0 %v15512_v20  ;;  %v6986_v20 = vld [vmem:[%s18703_s3 + $0x18] sm:$0xff] }
 0xac8   :  { %5407 = vmatprep.subr.bf16.mxu0 %v18726_v31 }
 0xac9   :  { %5353 = vmatpush1.bf16.msra.mxu1 %v5296_v36  ;;  %6994 = vperm.xlu0 %12546, %v6984_v52   ;;  %v5279_v49 = vpop.permute.xlu1 %5278  ;;  %v18936_v52 = vmov 0.0  }
 0xaca   :  { %v5275_v46 = vpop.permute.xlu0 %5274  ;;  %6989 = vperm.xlu1 %12547, %v6983_v29   ;;  %v5299_v28 = vsel %vm18897_vm0, %v5277_v3, %v5279_v49  ;;  %vm18919_vm0 = vmmov %vm18913_vm4 }
 0xacb   :  { %v5298_v62 = vsel %vm18912_vm10, %v5275_v46, %v5277_v3  ;;  %5408 = vmatpush1.bf16.msra.mxu0 %v5279_v49  ;;  %5354 = vmatprep.subr.bf16.mxu1 %v5299_v28  ;;  %v5538_v41 = vsel %vm18919_vm0, %v15647_v54, %v15557_v50  ;;  %vm18920_vm10 = vmmov %vm18919_vm0  ;;  %v11888_v28 = vld [vmem:[%s18702_s2 + $0x20] sm:$0xff] }
 0xacc   :  { %5642 = vmatprep.subr.bf16.mxu0 %v18726_v31  ;;  %v5537_v17 = vsel %vm18920_vm10, %v5486_v40, %v15647_v54  ;;  %vm18921_vm4 = vmmov %vm18919_vm0  ;;  %v12634_v40 = vld [vmem:[#allocation6 + $0x94] ss:$8 sps:$4 sm:$0xff]  }
 0xacd   :  { %5355 = vmatpush1.bf16.msra.mxu1 %v5298_v62  ;;  %7004 = vperm.xlu0 %12546, %v6986_v20   ;;  %v5496_v35 = vpop.permute.xlu1 %5495  ;;  %vm18923_vm15 = vmmov %vm18919_vm0  ;;  %v11889_v62 = vld [vmem:[%s18702_s2 + $0x28] sm:$0xff] }
 0xace   :  { %v15685_v26 = vpop.permute.xlu0 %5513  ;;  %6999 = vperm.xlu1 %12547, %v6985_v32   ;;  %5589 = vmatprep.subr.bf16.mxu1 %v5534_v0  ;;  %vm18926_vm10 = vmmov %vm18919_vm0  ;;  %v11891_v32 = vld [vmem:[%s18702_s2 + $0x38] sm:$0xff] }
 0xacf   :  { %5422 = vmatmul.mubr.bf16.vlgmr.msra.gmra.mrb[116].mxu0 %v12625_v37 }
 0xad0   :  { %5643 = vmatpush1.bf16.msra.mxu0 %v15522_v43  ;;  %5369 = vmatmul.mubr.bf16.vlgmr.msra.gmra.mrb[20].mxu1 %v12625_v37  ;;  %v5535_v43 = vsel %vm18918_vm9, %v15541_v30, %v15533_v51  ;;  %vm18925_vm9 = vmmov %vm18919_vm0  ;;  %v11890_v37 = vld [vmem:[%s18702_s2 + $0x30] sm:$0xff] }
 0xad1   :  { %5590 = vmatpush1.bf16.msra.mxu1 %v5533_v24  ;;  %5644 = vmatprep.subr.bf16.mxu0 %v18726_v31  ;;  %v5500_v38 = vpop.permute.xlu1 %5499 }
 0xad2   :  { %v15694_v33 = vpop.permute.xlu0 %5525  ;;  %5591 = vmatprep.subr.bf16.mxu1 %v5536_v8  ;;  %11872 = vmatprep.mubr.msk.bf16.mxu1 %vm18916_vm5, %v12628_v27 }
 0xad3   :  { %11874 = vmatprep.mubr.msk.bf16.mxu0 %vm18917_vm8, %v12628_v27  ;;  %vm18924_vm8 = vmmov %vm18919_vm0  ;;  %v5931_v27 = vld [vmem:[%s18702_s2 + $0x10] sm:$0xff] }
 0xad4   :  { %5645 = vmatpush1.bf16.msra.mxu0 %v15634_v13 }
 0xad5   :  { %5592 = vmatpush1.bf16.msra.mxu1 %v5535_v43  ;;  %5646 = vmatprep.subr.bf16.mxu0 %v18726_v31  ;;  %v5498_v34 = vpop.permute.xlu1 %5497 }
 0xad6   :  { %v5494_v19 = vpop.permute.xlu0 %5493  ;;  %5593 = vmatprep.subr.bf16.mxu1 %v5538_v41  ;;  %v5541_v45 = vsel %vm18925_vm9, %v5498_v34, %v5500_v38  ;;  %vm18932_vm9 = vmmov %vm18919_vm0  ;;  %v11915_v41 = vld [vmem:[%s18702_s2 + $0x48] sm:$0xff]  ;;  %v11916_v34 = vld [vmem:[%s18702_s2 + $0x50] sm:$0xff] }
 0xad7   :  { %5430 = vmatmul.mubr.bf16.gmra.mrb[120].mxu0 %v12630_v1  ;;  %v5540_v51 = vsel %vm18921_vm4, %v5494_v19, %v5496_v35  ;;  %vm18927_vm4 = vmmov %vm18919_vm0 }
 0xad8   :  { %5647 = vmatpush1.bf16.msra.mxu0 %v15557_v50  ;;  %5379 = vmatmul.mubr.bf16.gmra.mrb[24].mxu1 %v12630_v1  ;;  %v5542_v50 = vsel %vm18924_vm8, %v5500_v38, %v15659_v63  ;;  %vm18931_vm8 = vmmov %vm18919_vm0  ;;  %v11914_v38 = vld [vmem:[%s18702_s2 + $0x40] sm:$0xff] }
 0xad9   :  { %5594 = vmatpush1.bf16.msra.mxu1 %v5537_v17  ;;  %5648 = vmatprep.subr.bf16.mxu0 %v18726_v31  ;;  %v5508_v30 = vpop.permute.xlu1 %5507 }
 0xada   :  { %v5492_v6 = vpop.permute.xlu0 %5491  ;;  %5595 = vmatprep.subr.bf16.mxu1 %v5540_v51  ;;  %11879 = vmatprep.mubr.msk.bf16.mxu1 %vm18922_vm7, %v12633_v42  ;;  %vm18928_vm7 = vmmov %vm18919_vm0  ;;  %v11929_v51 = vld [vmem:[%s18702_s2 + $0x60] sm:$0xff] }
 0xadb   :  { %v5539_v7 = vsel %vm18923_vm15, %v5492_v6, %v5494_v19  ;;  %11881 = vmatprep.mubr.msk.bf16.mxu0 %vm18916_vm5, %v12633_v42  ;;  %vm18929_vm15 = vmmov %vm18919_vm0  ;;  %v11917_v19 = vld [vmem:[%s18702_s2 + $0x58] sm:$0xff] }
 0xadc   :  { %5649 = vmatpush1.bf16.msra.mxu0 %v5496_v35  ;;  %vm18930_vm5 = vmmov %vm18919_vm0 }
 0xadd   :  { %5596 = vmatpush1.bf16.msra.mxu1 %v5539_v7  ;;  %5650 = vmatprep.subr.bf16.mxu0 %v18726_v31  ;;  %v5512_v14 = vpop.permute.xlu1 %5511 }
 0xade   :  { %v5506_v58 = vpop.permute.xlu0 %5505  ;;  %5597 = vmatprep.subr.bf16.mxu1 %v5542_v50  ;;  %v5546_v4 = vsel %vm18927_vm4, %v5512_v14, %v15685_v26  ;;  %vm18934_vm4 = vcmask 261120   ;;  %v11930_v50 = vld [vmem:[%s18702_s2 + $0x68] sm:$0xff] }
 0xadf   :  { %v5544_v9 = vsel %vm18919_vm0, %v5506_v58, %v5508_v30 }
 0xae0   :  { %5651 = vmatpush1.bf16.msra.mxu0 %v15659_v63  ;;  %v12636_v63 = vld [vmem:[#allocation6 + $0x90] ss:$8 sps:$4 sm:$0xff]  }
 0xae1   :  { %5598 = vmatpush1.bf16.msra.mxu1 %v5541_v45  ;;  %5652 = vmatprep.subr.bf16.mxu0 %v18726_v31  ;;  %v5510_v56 = vpop.permute.xlu1 %5509 }
 0xae2   :  { %v5504_v48 = vpop.permute.xlu0 %5503  ;;  %5599 = vmatprep.subr.bf16.mxu1 %v5544_v9  ;;  %v5545_v25 = vsel %vm18928_vm7, %v5510_v56, %v5512_v14  ;;  %vm18935_vm7 = vmmov %vm18934_vm4  ;;  %v11931_v14 = vld [vmem:[%s18702_s2 + $0x70] sm:$0xff]  ;;  %v11944_v56 = vld [vmem:[%s18702_s2 + $0x80] sm:$0xff] }
 0xae3   :  { %v5543_v23 = vsel %vm18926_vm10, %v5504_v48, %v5506_v58  ;;  %vm18933_vm10 = vmmov %vm18919_vm0  ;;  %v11932_v58 = vld [vmem:[%s18702_s2 + $0x78] sm:$0xff]  ;;  %v11945_v48 = vld [vmem:[%s18702_s2 + $0x88] sm:$0xff] }
 0xae4   :  { %5653 = vmatpush1.bf16.msra.mxu0 %v5508_v30 }
 0xae5   :  { %5600 = vmatpush1.bf16.msra.mxu1 %v5543_v23  ;;  %5654 = vmatprep.subr.bf16.mxu0 %v18726_v31  ;;  %v5520_v10 = vpop.permute.xlu1 %5519  ;;  %v11946_v23 = vld [vmem:[%s18702_s2 + $0x90] sm:$0xff] }
 0xae6   :  { %v5518_v53 = vpop.permute.xlu0 %5517  ;;  %5601 = vmatprep.subr.bf16.mxu1 %v5546_v4  ;;  %v11947_v4 = vld [vmem:[%s18702_s2 + $0x98] sm:$0xff] }
 0xae7   :  { %v5548_v11 = vsel %vm18929_vm15, %v5518_v53, %v5520_v10  ;;  %vm18937_vm15 = vcmask 1039360  }
 0xae8   :  { %5655 = vmatpush1.bf16.msra.mxu0 %v15685_v26  ;;  %v5930_v26 = vld [vmem:[%s18702_s2 + $0x8] sm:$0xff] }
 0xae9   :  { %5602 = vmatpush1.bf16.msra.mxu1 %v5545_v25  ;;  %5656 = vmatprep.subr.bf16.mxu0 %v18726_v31  ;;  %v5524_v21 = vpop.permute.xlu1 %5523 }
 0xaea   :  { %v5516_v18 = vpop.permute.xlu0 %5515  ;;  %5603 = vmatprep.subr.bf16.mxu1 %v5548_v11  ;;  %v5550_v5 = vsel %vm18931_vm8, %v5524_v21, %v15694_v33  ;;  %vm18939_vm8 = vmmov %vm18937_vm15 }
 0xaeb   :  { %v5547_v39 = vsel %vm18930_vm5, %v5516_v18, %v5518_v53  ;;  %vm18938_vm5 = vcmask 1044480  }
 0xaec   :  { %5657 = vmatpush1.bf16.msra.mxu0 %v5520_v10 }
 0xaed   :  { %5604 = vmatpush1.bf16.msra.mxu1 %v5547_v39  ;;  %5658 = vmatprep.subr.bf16.mxu0 %v18726_v31  ;;  %v5522_v13 = vpop.permute.xlu1 %5521 }
 0xaee   :  { %v5530_v57 = vpop.permute.xlu0 %5529  ;;  %5605 = vmatprep.subr.bf16.mxu1 %v5550_v5  ;;  %v5549_v15 = vsel %vm18932_vm9, %v5522_v13, %v5524_v21  ;;  %vm18940_vm9 = vmmov %vm18938_vm5 }
 0xaf0   :  { %5659 = vmatpush1.bf16.msra.mxu0 %v15694_v33 }
 0xaf1   :  { %5606 = vmatpush1.bf16.msra.mxu1 %v5549_v15  ;;  %5660 = vmatprep.subr.bf16.mxu0 %v18726_v31  ;;  %v5532_v44 = vpop.permute.xlu1 %5531 }
 0xaf2   :  { %v5528_v54 = vpop.permute.xlu0 %5527  ;;  %v5552_v3 = vsel %vm18919_vm0, %v5530_v57, %v5532_v44  ;;  %vm18941_vm0 = vcmask 39936  }
 0xaf3   :  { %v5551_v22 = vsel %vm18933_vm10, %v5528_v54, %v5530_v57  ;;  %5607 = vmatprep.subr.bf16.mxu1 %v5552_v3  ;;  %vm18942_vm10 = vmmov %vm18938_vm5 }
 0xaf4   :  { %5661 = vmatpush1.bf16.msra.mxu0 %v5532_v44 }
 0xaf5   :  { %5608 = vmatpush1.bf16.msra.mxu1 %v5551_v22 }
 0xaf7   :  { %5675 = vmatmul.mubr.bf16.vlgmr.msra.gmra.mrb[124].mxu0 %v12631_v2 }
 0xaf8   :  { %5622 = vmatmul.mubr.bf16.vlgmr.msra.gmra.mrb[20].mxu1 %v12631_v2  ;;  %11882 = vmatprep.mubr.msk.bf16.mxu0 %vm18934_vm4, %v12634_v40  ;;  %vm18943_vm4 = vmmov %vm18938_vm5 }
 0xaf9   :  { %11880 = vmatprep.mubr.msk.bf16.mxu1 %vm18935_vm7, %v12634_v40  ;;  %vm18944_vm7 = vmmov %vm18943_vm4 }
 0xaff   :  { %5683 = vmatmul.mubr.bf16.gmra.mrb[128].mxu0 %v12636_v63 }
 0xb00   :  { %5632 = vmatmul.mubr.bf16.gmra.mrb[24].mxu1 %v12636_v63 }
 0xb01   :  { %6033 = vmatprep.mubr.f32.mxu1 %v18936_v52 }
 0xb23   :  { %v5948_v29 = vpop.permute.xlu0 %5947 }
 0xb24   :  { %v5946_v36 = vpop.permute.xlu1 %5945 }
 0xb25   :  { %v5950_v49 = vsel %vm18937_vm15, %v5946_v36, %v5948_v29  ;;  %vm18945_vm15 = vmmov %vm18941_vm0 }
 0xb26   :  { %11892 = vmatprep.subr.msk.mxu1 %vm18938_vm5, %v5950_v49  ;;  %vm18946_vm5 = vmmov %vm18941_vm0 }
 0xb27   :  { %v6342_v35 = vpop.permute.xlu0 %6341 }
 0xb28   :  { %v5944_v46 = vpop.permute.xlu1 %5943 }
 0xb29   :  { %v5949_v20 = vsel %vm18939_vm8, %v5944_v46, %v5946_v36  ;;  %vm18947_vm8 = vmmov %vm18941_vm0 }
 0xb2a   :  { %11893 = vmatpush1.msk.msra.mxu1 %vm18940_vm9, %v5949_v20  ;;  %vm18948_vm9 = vmmov %vm18941_vm0 }
 0xb2b   :  { %11894 = vmatmul.mubr.msk.f32.vlgmr.msra.gmra.mrb[28].mxu1 %vm18941_vm0, %v11888_v28  ;;  %12201 = vmatprep.subr.msk.mxu1 %vm18942_vm10, %v5948_v29  ;;  %vm18949_vm10 = vmmov %vm18943_vm4  ;;  %v6340_v24 = vpop.permute.xlu0 %6339 }
 0xb2c   :  { %12202 = vmatpush3.msk.msra.mxu1 %vm18943_vm4, %v5948_v29  ;;  %6039 = vmatprep.mubr.f32.mxu1 %v18936_v52  ;;  %vm18950_vm4 = vmmov %vm18941_vm0  ;;  %v6344_v0 = vpop.permute.xlu1 %6343 }
 0xb2d   :  { %11903 = vmatprep.subr.msk.mxu1 %vm18944_vm7, %v15592_v12  ;;  %v5929_v12 = vld [vmem:[%s18702_s2] sm:$0xff] }
 0xb2f   :  { %11895 = vmatmul.mubr.msk.f32.gmra.mrb[30].mxu1 %vm18945_vm15, %v11889_v62  ;;  %vm18951_vm15 = vmmov %vm18941_vm0  ;;  %v6560_v33 = vpop.permute.xlu0 %6559 }
 0xb30   :  { %6045 = vmatprep.mubr.f32.mxu1 %v18936_v52  ;;  %v6558_v43 = vpop.permute.xlu1 %6557 }
 0xb33   :  { %11896 = vmatmul.mubr.msk.f32.gmra.mrb[32].mxu1 %vm18946_vm5, %v11890_v37  ;;  %vm18952_vm5 = vmmov %vm18941_vm0  ;;  %v6774_v6 = vpop.permute.xlu0 %6773 }
 0xb34   :  { %6051 = vmatprep.mubr.f32.mxu1 %v18936_v52  ;;  %v6556_v42 = vpop.permute.xlu1 %6555 }
 0xb37   :  { %11897 = vmatmul.mubr.msk.f32.gmra.mrb[34].mxu1 %vm18947_vm8, %v11891_v32  ;;  %vm18953_vm8 = vmmov %vm18944_vm7  ;;  %v6772_v45 = vpop.permute.xlu0 %6771 }
 0xb38   :  { %12203 = vmatprep.mubr.msk.f32.mxu1 %vm18948_vm9, %v11888_v28  ;;  %vm18954_vm9 = vcmask 1031168   ;;  %v6776_v30 = vpop.permute.xlu1 %6775 }
 0xb3b   :  { %12204 = vmatmul.mubr.msk.f32.vlgmr.msra.gmra.mrb[36].mxu1 %vm18941_vm0, %v11889_v62  ;;  %vm18955_vm0 = vmmov %vm18944_vm7 }
 0xb3c   :  { %11904 = vmatpush1.msk.msra.mxu1 %vm18949_vm10, %v15609_v59  ;;  %12206 = vmatprep.mubr.msk.f32.mxu1 %vm18950_vm4, %v11890_v37  ;;  %v6346_v59 = vsel %vm18954_vm9, %v6342_v35, %v6344_v0  ;;  %vm18956_vm10 = vmmov %vm18950_vm4 }
 0xb3d   :  { %12209 = vmatprep.subr.msk.mxu1 %vm18944_vm7, %v15590_v60  ;;  %vm18957_vm7 = vmmov %vm18950_vm4 }
 0xb3f   :  { %12207 = vmatmul.mubr.msk.f32.gmra.mrb[38].mxu1 %vm18951_vm15, %v11891_v32  ;;  %vm18958_vm15 = vmmov %vm18950_vm4 }
 0xb40   :  { %6225 = vmatprep.mubr.f32.mxu1 %v18936_v52 }
 0xb43   :  { %11905 = vmatmul.mubr.msk.f32.vlgmr.msra.gmra.mrb[28].mxu1 %vm18952_vm5, %v5929_v12  ;;  %vm18959_vm5 = vmmov %vm18954_vm9 }
 0xb44   :  { %12210 = vmatpush3.msk.msra.mxu1 %vm18953_vm8, %v15590_v60  ;;  %6231 = vmatprep.mubr.f32.mxu1 %v18936_v52  ;;  %v5932_v60 = vld [vmem:[%s18702_s2 + $0x18] sm:$0xff]  ;;  %v6345_v8 = vsel %vm18959_vm5, %v6340_v24, %v6342_v35  ;;  %vm18960_vm8 = vmmov %vm18950_vm4  ;;  %vm18967_vm5 = vcmask 1022976  }
 0xb45   :  { %11918 = vmatprep.subr.msk.mxu1 %vm18955_vm0, %v6346_v59  ;;  %vm18961_vm9 = vmmov %vm18955_vm0  ;;  %v6562_v1 = vsel %vm18967_vm5, %v6558_v43, %v6560_v33 }
 0xb46   :  { %vm18962_vm0 = vmmov %vm18950_vm4 }
 0xb47   :  { %11906 = vmatmul.mubr.msk.f32.gmra.mrb[30].mxu1 %vm18956_vm10, %v5930_v26  ;;  %vm18963_vm10 = vmmov %vm18961_vm9 }
 0xb48   :  { %6237 = vmatprep.mubr.f32.mxu1 %v18936_v52  ;;  %v6995_v22 = vpop.permute.xlu0 %6994 }
 0xb49   :  { %v6990_v13 = vpop.permute.xlu1 %6989 }
 0xb4b   :  { %11907 = vmatmul.mubr.msk.f32.gmra.mrb[32].mxu1 %vm18950_vm4, %v5931_v27  ;;  %vm18964_vm4 = vmmov %vm18962_vm0 }
 0xb4c   :  { %6243 = vmatprep.mubr.f32.mxu1 %v18936_v52 }
 0xb4d   :  { %v7000_v28 = vpop.permute.xlu1 %6999 }
 0xb4f   :  { %11908 = vmatmul.mubr.msk.f32.gmra.mrb[34].mxu1 %vm18957_vm7, %v5932_v60  ;;  %vm18965_vm7 = vmmov %vm18962_vm0 }
 0xb50   :  { %12211 = vmatprep.mubr.msk.f32.mxu1 %vm18958_vm15, %v5929_v12  ;;  %vm18966_vm15 = vmmov %vm18961_vm9 }
 0xb53   :  { %12212 = vmatmul.mubr.msk.f32.vlgmr.msra.gmra.mrb[36].mxu1 %vm18960_vm8, %v5930_v26  ;;  %vm18968_vm8 = vmmov %vm18961_vm9 }
 0xb54   :  { %11919 = vmatpush1.msk.msra.mxu1 %vm18961_vm9, %v6345_v8  ;;  %12214 = vmatprep.mubr.msk.f32.mxu1 %vm18962_vm0, %v5931_v27  ;;  %vm18969_vm9 = vmmov %vm18962_vm0 }
 0xb55   :  { %12217 = vmatprep.subr.msk.mxu1 %vm18963_vm10, %v6344_v0  ;;  %vm18970_vm10 = vmmov %vm18962_vm0 }
 0xb57   :  { %12215 = vmatmul.mubr.msk.f32.gmra.mrb[38].mxu1 %vm18964_vm4, %v5932_v60  ;;  %vm18971_vm4 = vmmov %vm18962_vm0 }
 0xb58   :  { %6429 = vmatprep.mubr.f32.mxu1 %v18936_v52 }
 0xb5b   :  { %11920 = vmatmul.mubr.msk.f32.vlgmr.msra.gmra.mrb[28].mxu1 %vm18965_vm7, %v11914_v38  ;;  %vm18972_vm7 = vmmov %vm18967_vm5 }
 0xb5c   :  { %12218 = vmatpush3.msk.msra.mxu1 %vm18966_vm15, %v6344_v0  ;;  %6435 = vmatprep.mubr.f32.mxu1 %v18936_v52  ;;  %v6561_v17 = vsel %vm18972_vm7, %v6556_v42, %v6558_v43  ;;  %vm18973_vm15 = vmmov %vm18962_vm0  ;;  %vm18979_vm7 = vcmask 1014784  }
 0xb5d   :  { %11933 = vmatprep.subr.msk.mxu1 %vm18968_vm8, %v6562_v1  ;;  %vm18974_vm5 = vmmov %vm18968_vm8  ;;  %v6778_v7 = vsel %vm18979_vm7, %v6774_v6, %v6776_v30 }
 0xb5e   :  { %vm18975_vm8 = vmmov %vm18962_vm0 }
 0xb5f   :  { %11921 = vmatmul.mubr.msk.f32.gmra.mrb[30].mxu1 %vm18969_vm9, %v11915_v41  ;;  %vm18976_vm9 = vmmov %vm18974_vm5 }
 0xb60   :  { %6441 = vmatprep.mubr.f32.mxu1 %v18936_v52 }
 0xb63   :  { %11922 = vmatmul.mubr.msk.f32.gmra.mrb[32].mxu1 %vm18962_vm0, %v11916_v34 }
 0xb64   :  { %6447 = vmatprep.mubr.f32.mxu1 %v18936_v52 }
 0xb67   :  { %11923 = vmatmul.mubr.msk.f32.gmra.mrb[34].mxu1 %vm18970_vm10, %v11917_v19  ;;  %vm18977_vm10 = vmmov %vm18962_vm0 }
 0xb68   :  { %12219 = vmatprep.mubr.msk.f32.mxu1 %vm18971_vm4, %v11914_v38  ;;  %vm18978_vm4 = vmmov %vm18974_vm5  ;;  %v7005_v38 = vpop.permute.xlu0 %7004 }
 0xb6b   :  { %12220 = vmatmul.mubr.msk.f32.vlgmr.msra.gmra.mrb[36].mxu1 %vm18973_vm15, %v11915_v41  ;;  %vm18980_vm15 = vmmov %vm18978_vm4 }
 0xb6c   :  { %11934 = vmatpush1.msk.msra.mxu1 %vm18974_vm5, %v6561_v17  ;;  %12222 = vmatprep.mubr.msk.f32.mxu1 %vm18975_vm8, %v11916_v34  ;;  %vm18981_vm5 = vmmov %vm18962_vm0 }
 0xb6d   :  { %12225 = vmatprep.subr.msk.mxu1 %vm18976_vm9, %v6560_v33  ;;  %vm18982_vm8 = vmmov %vm18962_vm0 }
 0xb6e   :  { %vm18983_vm9 = vmmov %vm18962_vm0 }
 0xb6f   :  { %12223 = vmatmul.mubr.msk.f32.gmra.mrb[38].mxu1 %vm18962_vm0, %v11917_v19 }
 0xb70   :  { %6645 = vmatprep.mubr.f32.mxu1 %v18936_v52 }
 0xb73   :  { %11935 = vmatmul.mubr.msk.f32.vlgmr.msra.gmra.mrb[28].mxu1 %vm18977_vm10, %v11929_v51  ;;  %vm18984_vm10 = vmmov %vm18979_vm7 }
 0xb74   :  { %12226 = vmatpush3.msk.msra.mxu1 %vm18978_vm4, %v6560_v33  ;;  %6651 = vmatprep.mubr.f32.mxu1 %v18936_v52  ;;  %v6777_v9 = vsel %vm18984_vm10, %v6772_v45, %v6774_v6  ;;  %vm18985_vm4 = vmmov %vm18962_vm0 }
 0xb75   :  { %11948 = vmatprep.subr.msk.mxu1 %vm18980_vm15, %v6778_v7  ;;  %vm18986_vm7 = vmmov %vm18980_vm15 }
 0xb76   :  { %vm18987_vm15 = vmmov %vm18962_vm0 }
 0xb77   :  { %11936 = vmatmul.mubr.msk.f32.gmra.mrb[30].mxu1 %vm18981_vm5, %v11930_v50  ;;  %vm18988_vm5 = vmmov %vm18986_vm7 }
 0xb78   :  { %6657 = vmatprep.mubr.f32.mxu1 %v18936_v52  ;;  %vm18992_vm10 = vmmov %vm18985_vm4 }
 0xb7b   :  { %11937 = vmatmul.mubr.msk.f32.gmra.mrb[32].mxu1 %vm18982_vm8, %v11931_v14  ;;  %vm18989_vm8 = vmmov %vm18962_vm0 }
 0xb7c   :  { %6663 = vmatprep.mubr.f32.mxu1 %v18936_v52 }
 0xb7f   :  { %11938 = vmatmul.mubr.msk.f32.gmra.mrb[34].mxu1 %vm18983_vm9, %v11932_v58  ;;  %vm18990_vm9 = vmmov %vm18962_vm0 }
 0xb80   :  { %12227 = vmatprep.mubr.msk.f32.mxu1 %vm18962_vm0, %v11929_v51  ;;  %vm18991_vm0 = vmmov %vm18988_vm5 }
 0xb83   :  { %12228 = vmatmul.mubr.msk.f32.vlgmr.msra.gmra.mrb[36].mxu1 %vm18985_vm4, %v11930_v50 }
 0xb84   :  { %11949 = vmatpush1.msk.msra.mxu1 %vm18986_vm7, %v6777_v9  ;;  %12230 = vmatprep.mubr.msk.f32.mxu1 %vm18987_vm15, %v11931_v14  ;;  %vm18993_vm7 = vmmov %vm18985_vm4 }
 0xb85   :  { %12233 = vmatprep.subr.msk.mxu1 %vm18988_vm5, %v6776_v30  ;;  %vm18994_vm15 = vmmov %vm18985_vm4 }
 0xb86   :  { %vm18995_vm5 = vmmov %vm18985_vm4 }
 0xb87   :  { %12231 = vmatmul.mubr.msk.f32.gmra.mrb[38].mxu1 %vm18989_vm8, %v11932_v58  ;;  %vm18996_vm8 = vmmov %vm18985_vm4 }
 0xb88   :  { %6861 = vmatprep.mubr.f32.mxu1 %v18936_v52 }
 0xb8b   :  { %11950 = vmatmul.mubr.msk.f32.vlgmr.msra.gmra.mrb[28].mxu1 %vm18990_vm9, %v11944_v56  ;;  %vm18997_vm9 = vmmov %vm18985_vm4 }
 0xb8c   :  { %12234 = vmatpush3.msk.msra.mxu1 %vm18991_vm0, %v6776_v30  ;;  %6867 = vmatprep.mubr.f32.mxu1 %v18936_v52 }
 0xb8d   :  { %7670 = vmatprep.subr.bf16.mxu1 %v18726_v31 }
 0xb8f   :  { %11951 = vmatmul.mubr.msk.f32.gmra.mrb[30].mxu1 %vm18992_vm10, %v11945_v48 }
 0xb90   :  { %6873 = vmatprep.mubr.f32.mxu1 %v18936_v52 }
 0xb93   :  { %11952 = vmatmul.mubr.msk.f32.gmra.mrb[32].mxu1 %vm18985_vm4, %v11946_v23 }
 0xb94   :  { %6879 = vmatprep.mubr.f32.mxu1 %v18936_v52 }
 0xb97   :  { %11953 = vmatmul.mubr.msk.f32.gmra.mrb[34].mxu1 %vm18993_vm7, %v11947_v4 }
 0xb98   :  { %12235 = vmatprep.mubr.msk.f32.mxu1 %vm18994_vm15, %v11944_v56 }
 0xb9b   :  { %12236 = vmatmul.mubr.msk.f32.vlgmr.msra.gmra.mrb[36].mxu1 %vm18995_vm5, %v11945_v48 }
 0xb9c   :  { %12238 = vmatprep.mubr.msk.f32.mxu1 %vm18996_vm8, %v11946_v23 }
 0xb9f   :  { %12239 = vmatmul.mubr.msk.f32.gmra.mrb[38].mxu1 %vm18997_vm9, %v11947_v4 }
 0xbcb   :  { %v15893_v10 = vpop.f32.mrb[20].mxu1 }
 0xbcc   :  { %v15895_v53 = vpop.f32.mrb[21].mxu1 }
 0xbcd   :  { %v15897_v25 = vpop.f32.mrb[22].mxu1 }
 0xbce   :  { %18998 = vst [vmem:[#allocation14_spill] sm:$0xff] %v15897_v25  ;;  %v15899_v11 = vpop.f32.mrb[23].mxu1 }
 0xbcf   :  { %18999 = vst [vmem:[#allocation15_spill] sm:$0xff] %v15899_v11 }
 0xbd3   :  { %v15901_v21 = vpop.f32.mrb[24].mxu1 }
 0xbd4   :  { %19000 = vst [vmem:[#allocation16_spill] sm:$0xff] %v15901_v21  ;;  %v15903_v18 = vpop.f32.mrb[25].mxu1 }
 0xbd5   :  { %19001 = vst [vmem:[#allocation17_spill] sm:$0xff] %v15903_v18  ;;  %v15905_v39 = vpop.f32.mrb[26].mxu1 }
 0xbd6   :  { %19002 = vst [vmem:[#allocation18_spill] sm:$0xff] %v15905_v39  ;;  %v15907_v5 = vpop.f32.mrb[27].mxu1 }
 0xbd7   :  { %19003 = vst [vmem:[#allocation19_spill] sm:$0xff] %v15907_v5 }
 0xc5e   :  { %v6863_v57 = vpop.f32.mrb[28].mxu1 }
 0xc5f   :  { %v7007_v15 = vadd.f32 %v6990_v13, %v6863_v57  ;;  %v6865_v44 = vpop.f32.mrb[29].mxu1 }
 0xc60   :  { %v7008_v54 = vadd.f32 %v6990_v13, %v6865_v44 }
 0xc61   :  { %vm7019_vm0 = vcmp.ge.f32.partialorder %v7007_v15, 0.0  ;;  %v7031_v3 = vmul.f32 0.2, %v7007_v15 }
 0xc62   :  { %vm7020_vm10 = vcmp.ge.f32.partialorder %v7008_v54, 0.0  ;;  %v7032_v2 = vmul.f32 0.2, %v7008_v54  ;;  %v6869_v40 = vpop.f32.mrb[30].mxu1 }
 0xc63   :  { %v7010_v63 = vadd.f32 %v6995_v22, %v6869_v40  ;;  %v6871_v52 = vpop.f32.mrb[31].mxu1  ;;  %v7043_v29 = vsel %vm7019_vm0, %v7007_v15, %v7031_v3 }
 0xc64   :  { %v7011_v36 = vadd.f32 %v6995_v22, %v6871_v52  ;;  %v7044_v49 = vsel %vm7020_vm10, %v7008_v54, %v7032_v2  ;;  %v7055_v37 = vsel %vm13172_vm13, %v7043_v29, 0.0 }
 0xc65   :  { %vm7022_vm4 = vcmp.ge.f32.partialorder %v7010_v63, 0.0  ;;  %v7034_v46 = vmul.f32 0.2, %v7010_v63  ;;  %v7056_v35 = vsel %vm86_vm6, %v7044_v49, 0.0 }
 0xc66   :  { %vm7023_vm7 = vcmp.ge.f32.partialorder %v7011_v36, 0.0  ;;  %v7035_v20 = vmul.f32 0.2, %v7011_v36  ;;  %v6875_v62 = vpop.f32.mrb[32].mxu1 }
 0xc67   :  { %v7046_v32 = vsel %vm7022_vm4, %v7010_v63, %v7034_v46  ;;  %v7013_v12 = vadd.f32 %v7000_v28, %v6875_v62  ;;  %v6877_v0 = vpop.f32.mrb[33].mxu1  ;;  %vm19004_vm4 = vcmp.gt.f32.partialorder %v13138_v16, 0.5 }
 0xc68   :  { %v7058_v59 = vsel %vm13172_vm13, %v7046_v32, 0.0  ;;  %v7047_v26 = vsel %vm7023_vm7, %v7011_v36, %v7035_v20  ;;  %v7014_v27 = vadd.f32 %v7000_v28, %v6877_v0  ;;  %vm19005_vm7 = vmmov %vm19004_vm4 }
 0xc69   :  { %v7067_v60 = vpack.c.bf16 %v7058_v59, %v7055_v37  ;;  %v7059_v24 = vsel %vm86_vm6, %v7047_v26, 0.0  ;;  %vm7025_vm15 = vcmp.ge.f32.partialorder %v7013_v12, 0.0  ;;  %v7037_v8 = vmul.f32 0.2, %v7013_v12 }
 0xc6a   :  { %v7068_v33 = vpack.c.bf16 %v7059_v24, %v7056_v35  ;;  %vm7026_vm5 = vcmp.ge.f32.partialorder %v7014_v27, 0.0  ;;  %v7038_v43 = vmul.f32 0.2, %v7014_v27  ;;  %v6881_v1 = vpop.f32.mrb[34].mxu1 }
 0xc6b   :  { %v7016_v41 = vadd.f32 %v7005_v38, %v6881_v1  ;;  %v6883_v34 = vpop.f32.mrb[35].mxu1  ;;  %7079 = vrot.lane.b32.xlu1 %v7067_v60, %s12788_s1  ;;  %v7049_v19 = vsel %vm7025_vm15, %v7013_v12, %v7037_v8 }
 0xc6c   :  { %v7017_v42 = vadd.f32 %v7005_v38, %v6883_v34  ;;  %7081 = vrot.lane.b32.xlu0 %v7068_v33, %s12788_s1  ;;  %v7050_v17 = vsel %vm7026_vm5, %v7014_v27, %v7038_v43  ;;  %v7061_v7 = vsel %vm13172_vm13, %v7049_v19, 0.0  ;;  %v7242_v19 = vld [vmem:[#allocation2 + $0x18] sm:$0xff] }
 0xc6d   :  { %vm7028_vm8 = vcmp.ge.f32.partialorder %v7016_v41, 0.0  ;;  %v7040_v51 = vmul.f32 0.2, %v7016_v41  ;;  %v7062_v45 = vsel %vm86_vm6, %v7050_v17, 0.0 }
 0xc6e   :  { %vm7029_vm9 = vcmp.ge.f32.partialorder %v7017_v42, 0.0  ;;  %v7041_v30 = vmul.f32 0.2, %v7017_v42  ;;  %v12237_v6 = vpop.f32.mrb[36].mxu1 }
 0xc6f   :  { %v7052_v50 = vsel %vm7028_vm8, %v7016_v41, %v7040_v51  ;;  %v7012_v14 = vadd.f32 %v12237_v6, %v6995_v22  ;;  %v6952_v58 = vpop.f32.mrb[37].mxu1  ;;  %vm19006_vm8 = vmmov %vm19004_vm4 }
 0xc70   :  { %v7064_v9 = vsel %vm13172_vm13, %v7052_v50, 0.0  ;;  %v7053_v56 = vsel %vm7029_vm9, %v7017_v42, %v7041_v30  ;;  %v7009_v48 = vadd.f32 %v6990_v13, %v6952_v58  ;;  %vm19007_vm9 = vmmov %vm19004_vm4  ;;  %v7246_v42 = vld [vmem:[#allocation2 + $0x38] sm:$0xff] }
 0xc71   :  { %v7070_v23 = vpack.c.bf16 %v7064_v9, %v7061_v7  ;;  %v7065_v4 = vsel %vm86_vm6, %v7053_v56, 0.0  ;;  %vm7024_vm0 = vcmp.ge.f32.partialorder %v7012_v14, 0.0  ;;  %v7036_v57 = vmul.f32 0.2, %v7012_v14 }
 0xc72   :  { %v7071_v15 = vpack.c.bf16 %v7065_v4, %v7062_v45  ;;  %vm7021_vm10 = vcmp.ge.f32.partialorder %v7009_v48, 0.0  ;;  %v7033_v44 = vmul.f32 0.2, %v7009_v48  ;;  %v12240_v54 = vpop.f32.mrb[38].mxu1 }
 0xc73   :  { %v7048_v3 = vsel %vm7024_vm0, %v7012_v14, %v7036_v57  ;;  %v7018_v22 = vadd.f32 %v12240_v54, %v7005_v38  ;;  %v6962_v2 = vpop.f32.mrb[39].mxu1  ;;  %7085 = vrot.lane.b32.xlu0 %v7070_v23, %s12788_s1  ;;  %vm19008_vm0 = vcmask 719872  }
 0xc74   :  { %v7060_v40 = vsel %vm19004_vm4, %v7048_v3, 0.0  ;;  %v7045_v63 = vsel %vm7021_vm10, %v7009_v48, %v7033_v44  ;;  %v7015_v13 = vadd.f32 %v7000_v28, %v6962_v2  ;;  %vm19009_vm10 = vmmov %vm19008_vm0 }
 0xc75   :  { %v7057_v52 = vsel %vm19005_vm7, %v7045_v63, 0.0  ;;  %vm7030_vm15 = vcmp.ge.f32.partialorder %v7018_v22, 0.0  ;;  %v7042_v29 = vmul.f32 0.2, %v7018_v22  ;;  %vm19010_vm4 = vmmov %vm19008_vm0 }
 0xc76   :  { %v7069_v36 = vpack.c.bf16 %v7060_v40, %v7057_v52  ;;  %vm7027_vm5 = vcmp.ge.f32.partialorder %v7015_v13, 0.0  ;;  %v7039_v49 = vmul.f32 0.2, %v7015_v13  ;;  %vm19011_vm7 = vmmov %vm19008_vm0 }
 0xc77   :  { %v7054_v46 = vsel %vm7030_vm15, %v7018_v22, %v7042_v29  ;;  %vm19012_vm15 = vcmask 261120  }
 0xc78   :  { %v7066_v20 = vsel %vm19006_vm8, %v7054_v46, 0.0  ;;  %v7051_v62 = vsel %vm7027_vm5, %v7015_v13, %v7039_v49  ;;  %7083 = vrot.lane.b32.xlu1 %v7069_v36, %s12788_s1  ;;  %vm19013_vm5 = vmmov %vm19012_vm15  ;;  %vm19014_vm8 = vcmask 1039360  }
 0xc79   :  { %v7063_v37 = vsel %vm19007_vm9, %v7051_v62, 0.0  ;;  %vm19015_vm9 = vmmov %vm19014_vm8 }
 0xc7a   :  { %v7072_v32 = vpack.c.bf16 %v7066_v20, %v7063_v37 }
 0xc7c   :  { %7087 = vrot.lane.b32.xlu1 %v7071_v15, %s12788_s1  ;;  %7089 = vrot.lane.b32.xlu0 %v7072_v32, %s12788_s1 }
 0xcdd   :  { %v7080_v28 = vpop.permute.xlu1 %7079 }
 0xcde   :  { %7101 = vst.msk [vmem:[#allocation2] sm:$0xff] %vm1322_vm14, %v7080_v28  ;;  %v7082_v12 = vpop.permute.xlu0 %7081 }
 0xcdf   :  { %v15958_v38 = vsel %vm59_vm11, %v7080_v28, %v7082_v12 }
 0xce5   :  { %v7086_v0 = vpop.permute.xlu0 %7085  ;;  %v15940_v35 = vld [vmem:[#allocation2] sm:$0xff] }
 0xce6   :  { %7104 = vst.msk [vmem:[#allocation2 + $0x20] sm:$0xff] %vm1322_vm14, %v7086_v0  ;;  %7131 = vrot.lane.b32.xlu1 %v15940_v35, %s12779_s23 }
 0xcea   :  { %7171 = vrot.lane.b32.xlu1 %v15940_v35, %s12781_s30  ;;  %v7084_v59 = vpop.permute.xlu1 %7083 }
 0xceb   :  { %v7092_v26 = vsel %vm59_vm11, %v7082_v12, %v7084_v59 }
 0xcec   :  { %7103 = vst.msk [vmem:[#allocation2 + $0x10] sm:$0xff] %vm1325_vm12, %v7092_v26  ;;  %v16102_v26 = vpop.f32.mrb[92].mxu0 }
 0xced   :  { %v15949_v27 = vld [vmem:[#allocation2 + $0x20] sm:$0xff] }
 0xcee   :  { %7137 = vrot.lane.b32.xlu0 %v15949_v27, %s12779_s23  ;;  %v7090_v60 = vpop.permute.xlu0 %7089  ;;  %7211 = vrot.lane.b32.xlu1 %v15940_v35, %s12778_s22  ;;  %v7088_v24 = vpop.permute.xlu1 %7087 }
 0xcef   :  { %v7094_v8 = vsel %vm59_vm11, %v7088_v24, %v7090_v60  ;;  %v15966_v43 = vsel %vm59_vm11, %v7086_v0, %v7088_v24  ;;  %v4805_v60 = vpop.f32.mrb[93].mxu0 }
 0xcf0   :  { %7106 = vst.msk [vmem:[#allocation2 + $0x30] sm:$0xff] %vm1325_vm12, %v7094_v8  ;;  %v16107_v8 = vpop.f32.mrb[94].mxu0 }
 0xcf2   :  { %7177 = vrot.lane.b32.xlu0 %v15949_v27, %s12781_s30  ;;  %7133 = vrot.lane.b32.xlu1 %v15958_v38, %s12779_s23 }
 0xcf3   :  { %v7109_v33 = vld [vmem:[#allocation2 + $0x10] sm:$0xff] }
 0xcf4   :  { %7115 = vst.msk [vmem:[#allocation3 + $0x10] sm:$0xff] %vm122_vm1, %v7109_v33 }
 0xcf6   :  { %7173 = vrot.lane.b32.xlu1 %v15958_v38, %s12781_s30  ;;  %7139 = vrot.lane.b32.xlu0 %v15966_v43, %s12779_s23 }
 0xcf7   :  { %v7124_v1 = vld [vmem:[#allocation2 + $0x30] sm:$0xff] }
 0xcf8   :  { %7118 = vst.msk [vmem:[#allocation3 + $0x28] sm:$0xff] %vm122_vm1, %v7124_v1 }
 0xcfa   :  { %7213 = vrot.lane.b32.xlu1 %v15958_v38, %s12778_s22  ;;  %7179 = vrot.lane.b32.xlu0 %v15966_v43, %s12781_s30 }
 0xcfb   :  { %v15977_v41 = vld [vmem:[#allocation3 + $0x10] sm:$0xff] }
 0xcfc   :  { %7671 = vmatpush1.bf16.msra.mxu1 %v15977_v41 }
 0xcfd   :  { %7672 = vmatprep.subr.bf16.mxu1 %v18726_v31 }
 0xcfe   :  { %7141 = vrot.lane.b32.xlu1 %v7124_v1, %s12779_s23  ;;  %7135 = vrot.lane.b32.xlu0 %v7109_v33, %s12779_s23 }
 0xcff   :  { %v15983_v34 = vld [vmem:[#allocation3 + $0x28] sm:$0xff] }
 0xd00   :  { %7673 = vmatpush1.bf16.msra.mxu1 %v15983_v34 }
 0xd01   :  { %7674 = vmatprep.subr.bf16.mxu1 %v18726_v31 }
 0xd02   :  { %7257 = vrot.lane.b32.xlu1 %v15958_v38, %s12780_s29  ;;  %7219 = vrot.lane.b32.xlu0 %v15966_v43, %s12778_s22 }
 0xd06   :  { %7181 = vrot.lane.b32.xlu1 %v7124_v1, %s12781_s30  ;;  %7175 = vrot.lane.b32.xlu0 %v7109_v33, %s12781_s30 }
 0xd0a   :  { %7261 = vrot.lane.b32.xlu1 %v7242_v19, %s12780_s29  ;;  %7217 = vrot.lane.b32.xlu0 %v15949_v27, %s12778_s22 }
 0xd0e   :  { %7221 = vrot.lane.b32.xlu1 %v7124_v1, %s12778_s22  ;;  %7215 = vrot.lane.b32.xlu0 %v7109_v33, %s12778_s22 }
 0xd12   :  { %7265 = vrot.lane.b32.xlu1 %v15966_v43, %s12780_s29  ;;  %7259 = vrot.lane.b32.xlu0 %v7109_v33, %s12780_s29 }
 0xd16   :  { %7269 = vrot.lane.b32.xlu1 %v7246_v42, %s12780_s29  ;;  %7255 = vrot.lane.b32.xlu0 %v15940_v35, %s12780_s29 }
 0xd1a   :  { %7377 = vrot.lane.b32.xlu1 %v15958_v38, %s12783_s16  ;;  %7267 = vrot.lane.b32.xlu0 %v7124_v1, %s12780_s29 }
 0xd1e   :  { %7375 = vrot.lane.b32.xlu1 %v15940_v35, %s12783_s16  ;;  %7263 = vrot.lane.b32.xlu0 %v15949_v27, %s12780_s29 }
 0xd22   :  { %7385 = vrot.lane.b32.xlu1 %v15983_v34, %s12783_s16  ;;  %7381 = vrot.lane.b32.xlu0 %v15949_v27, %s12783_s16 }
 0xd26   :  { %7383 = vrot.lane.b32.xlu0 %v15966_v43, %s12783_s16 }
 0xd2a   :  { %7379 = vrot.lane.b32.xlu0 %v15977_v41, %s12783_s16 }
 0xd58   :  { %v7132_v17 = vpop.permute.xlu1 %7131 }
 0xd5c   :  { %v7172_v51 = vpop.permute.xlu1 %7171 }
 0xd60   :  { %v7138_v30 = vpop.permute.xlu0 %7137  ;;  %v16019_v6 = vpop.permute.xlu1 %7211 }
 0xd64   :  { %v7178_v7 = vpop.permute.xlu0 %7177  ;;  %v7134_v50 = vpop.permute.xlu1 %7133 }
 0xd65   :  { %v16022_v14 = vsel %vm100_vm2, %v7132_v17, %v7134_v50 }
 0xd66   :  { %7387 = vrot.lane.b32.xlu1 %v16022_v14, %s12783_s16 }
 0xd68   :  { %v7174_v58 = vpop.permute.xlu1 %7173  ;;  %v7140_v45 = vpop.permute.xlu0 %7139 }
 0xd69   :  { %v16027_v9 = vsel %vm19008_vm0, %v7172_v51, %v7174_v58  ;;  %v16030_v56 = vsel %vm100_vm2, %v7138_v30, %v7140_v45  ;;  %v4808_v51 = vpop.f32.mrb[95].mxu0  ;;  %vm19016_vm0 = vmmov %vm19014_vm8 }
 0xd6a   :  { %7399 = vrot.lane.b32.xlu1 %v16027_v9, %s12783_s16  ;;  %7393 = vrot.lane.b32.xlu0 %v16030_v56, %s12783_s16  ;;  %v16126_v30 = vpop.f32.mrb[96].mxu0 }
 0xd6c   :  { %v7214_v48 = vpop.permute.xlu1 %7213  ;;  %v7180_v23 = vpop.permute.xlu0 %7179 }
 0xd6d   :  { %v16037_v4 = vsel %vm19009_vm10, %v7178_v7, %v7180_v23  ;;  %v16116_v42 = vsel %vm122_vm1, %v16019_v6, %v7214_v48  ;;  %v4813_v7 = vpop.f32.mrb[97].mxu0  ;;  %vm19017_vm10 = vmmov %vm19016_vm0 }
 0xd6e   :  { %7405 = vrot.lane.b32.xlu0 %v16037_v4, %s12783_s16 }
 0xd70   :  { %v7142_v57 = vpop.permute.xlu1 %7141  ;;  %v7136_v15 = vpop.permute.xlu0 %7135 }
 0xd71   :  { %7158 = vst.msk [vmem:[#allocation3 + $0x58] sm:$0xff] %vm122_vm1, %v7142_v57  ;;  %v16043_v44 = vsel %vm100_vm2, %v7134_v50, %v7136_v15  ;;  %7155 = vst.msk [vmem:[#allocation3 + $0x40] sm:$0xff] %vm122_vm1, %v7136_v15  ;;  %v16083_v62 = vsel %vm100_vm2, %v7140_v45, %v7142_v57 }
 0xd72   :  { %7389 = vrot.lane.b32.xlu1 %v16043_v44, %s12783_s16 }
 0xd74   :  { %v16048_v54 = vpop.permute.xlu1 %7257  ;;  %v16050_v3 = vpop.permute.xlu0 %7219 }
 0xd78   :  { %v7182_v22 = vpop.permute.xlu1 %7181  ;;  %v7176_v2 = vpop.permute.xlu0 %7175  ;;  %v16052_v40 = vld [vmem:[#allocation3 + $0x40] sm:$0xff]  ;;  %v16065_v29 = vld [vmem:[#allocation3 + $0x58] sm:$0xff] }
 0xd79   :  { %7198 = vst.msk [vmem:[#allocation3 + $0x88] sm:$0xff] %vm122_vm1, %v7182_v22  ;;  %v16056_v63 = vsel %vm19010_vm4, %v7174_v58, %v7176_v2  ;;  %7195 = vst.msk [vmem:[#allocation3 + $0x70] sm:$0xff] %vm122_vm1, %v7176_v2  ;;  %7675 = vmatpush1.bf16.msra.mxu1 %v16052_v40  ;;  %7391 = vrot.lane.b32.xlu0 %v16052_v40, %s12783_s16  ;;  %v16110_v33 = vsel %vm19011_vm7, %v7180_v23, %v7182_v22 }
 0xd7a   :  { %7676 = vmatprep.subr.bf16.mxu1 %v18726_v31  ;;  %7401 = vrot.lane.b32.xlu1 %v16056_v63, %s12783_s16  ;;  %vm19020_vm4 = vmmov %vm19013_vm5 }
 0xd7b   :  { %vm19021_vm7 = vmmov %vm19016_vm0 }
 0xd7c   :  { %v7262_v13 = vpop.permute.xlu1 %7261  ;;  %v7218_v52 = vpop.permute.xlu0 %7217 }
 0xd7d   :  { %7677 = vmatpush1.bf16.msra.mxu1 %v16065_v29  ;;  %v16130_v6 = vsel %vm122_vm1, %v7218_v52, %v16050_v3  ;;  %v16157_v52 = vld [vmem:[%s18704_s4] ss:$8 sps:$4 sm:$0xff]  }
 0xd7e   :  { %7678 = vmatprep.subr.bf16.mxu1 %v18726_v31 }
 0xd80   :  { %v7222_v36 = vpop.permute.xlu1 %7221  ;;  %v7216_v49 = vpop.permute.xlu0 %7215  ;;  %v16069_v46 = vld [vmem:[#allocation3 + $0x70] sm:$0xff]  ;;  %v16085_v32 = vld [vmem:[#allocation3 + $0x88] sm:$0xff] }
 0xd81   :  { %7238 = vst.msk [vmem:[#allocation3 + $0xb8] sm:$0xff] %vm122_vm1, %v7222_v36  ;;  %v16073_v20 = vsel %vm122_vm1, %v7214_v48, %v7216_v49  ;;  %7235 = vst.msk [vmem:[#allocation3 + $0xa0] sm:$0xff] %vm122_vm1, %v7216_v49  ;;  %7403 = vrot.lane.b32.xlu0 %v16069_v46, %s12783_s16  ;;  %7679 = vmatpush1.bf16.msra.mxu1 %v16069_v46  ;;  %v16137_v48 = vpop.f32.mrb[98].mxu0  ;;  %v16144_v15 = vsel %vm122_vm1, %v16050_v3, %v7222_v36  ;;  %v16162_v3 = vld [vmem:[%s18704_s4 + $0x4] ss:$8 sps:$4 sm:$0xff]  }
 0xd82   :  { %7680 = vmatprep.subr.bf16.mxu1 %v18726_v31  ;;  %7413 = vrot.lane.b32.xlu1 %v16073_v20, %s12783_s16  ;;  %v4816_v23 = vpop.f32.mrb[99].mxu0 }
 0xd83   :  { %v4929_v57 = vpop.f32.mrb[100].mxu0  ;;  %11977 = vmatprep.mubr.msk.bf16.mxu1 %vm19012_vm15, %v16162_v3  ;;  %vm19022_vm15 = vmmov %vm19016_vm0 }
 0xd84   :  { %v7260_v37 = vpop.permute.xlu0 %7259  ;;  %v16087_v28 = vpop.permute.xlu1 %7265 }
 0xd85   :  { %v7273_v12 = vsel %vm133_vm3, %v7260_v37, %v7262_v13  ;;  %7395 = vrot.lane.b32.xlu0 %v16083_v62, %s12783_s16  ;;  %7681 = vmatpush1.bf16.msra.mxu1 %v16085_v32  ;;  %v16148_v2 = vsel %vm133_vm3, %v16048_v54, %v7260_v37  ;;  %v4931_v36 = vpop.f32.mrb[101].mxu0 }
 0xd86   :  { %7285 = vst.msk [vmem:[#allocation3 + $0xd0] sm:$0xff] %vm122_vm1, %v7273_v12  ;;  %7682 = vmatprep.subr.bf16.mxu1 %v18726_v31  ;;  %7397 = vrot.lane.b32.xlu1 %v16065_v29, %s12783_s16  ;;  %v4932_v49 = vpop.f32.mrb[102].mxu0  ;;  %v16173_v12 = vld [vmem:[%s18704_s4 + $0x24] ss:$8 sps:$4 sm:$0xff]  }
 0xd87   :  { %v4934_v60 = vpop.f32.mrb[103].mxu0  ;;  %11967 = vmatprep.mubr.msk.bf16.mxu0 %vm19013_vm5, %v16173_v12  ;;  %vm19023_vm5 = vmmov %vm19020_vm4 }
 0xd88   :  { %v7256_v0 = vpop.permute.xlu0 %7255  ;;  %v16097_v59 = vld [vmem:[#allocation3 + $0xa0] sm:$0xff]  ;;  %v7270_v24 = vpop.permute.xlu1 %7269  ;;  %v16112_v19 = vld [vmem:[#allocation3 + $0xb8] sm:$0xff] }
 0xd89   :  { %7415 = vrot.lane.b32.xlu0 %v16097_v59, %s12783_s16  ;;  %7683 = vmatpush1.bf16.msra.mxu1 %v16097_v59  ;;  %v16177_v51 = vsel %vm133_vm3, %v7256_v0, %v16048_v54 }
 0xd8a   :  { %7684 = vmatprep.subr.bf16.mxu1 %v18726_v31  ;;  %7409 = vrot.lane.b32.xlu1 %v16085_v32, %s12783_s16 }
 0xd8c   :  { %v7268_v1 = vpop.permute.xlu0 %7267  ;;  %v7378_v45 = vpop.permute.xlu1 %7377 }
 0xd8d   :  { %v7276_v17 = vsel %vm133_vm3, %v7268_v1, %v7270_v24  ;;  %7407 = vrot.lane.b32.xlu0 %v16110_v33, %s12783_s16  ;;  %7685 = vmatpush1.bf16.msra.mxu1 %v16112_v19  ;;  %v16132_v58 = vld [vmem:[#allocation3 + $0xd0] sm:$0xff]  ;;  %v16188_v60 = vsel %vm133_vm3, %v16087_v28, %v7268_v1 }
 0xd8e   :  { %7288 = vst.msk [vmem:[#allocation3 + $0xe8] sm:$0xff] %vm122_vm1, %v7276_v17  ;;  %7686 = vmatprep.subr.bf16.mxu1 %v18726_v31  ;;  %7411 = vrot.lane.b32.xlu1 %v16116_v42, %s12783_s16  ;;  %v4937_v17 = vpop.f32.mrb[104].mxu0 }
 0xd8f   :  { %v4939_v7 = vpop.f32.mrb[105].mxu0 }
 0xd90   :  { %v7264_v50 = vpop.permute.xlu0 %7263  ;;  %v7376_v37 = vpop.permute.xlu1 %7375 }
 0xd91   :  { %7417 = vrot.lane.b32.xlu0 %v16130_v6, %s12783_s16  ;;  %7687 = vmatpush1.bf16.msra.mxu1 %v16132_v58  ;;  %v4940_v23 = vpop.f32.mrb[106].mxu0  ;;  %v7435_v47 = vsel %vm19015_vm9, %v7376_v37, %v7378_v45  ;;  %v16205_v18 = vsel %vm133_vm3, %v7264_v50, %v16087_v28  ;;  %v4933_v28 = vadd.f32 %v4932_v49, %v16107_v8  ;;  %vm19025_vm9 = vmmov %vm19016_vm0 }
 0xd92   :  { %7688 = vmatprep.subr.bf16.mxu1 %v18726_v31  ;;  %7421 = vrot.lane.b32.xlu1 %v16112_v19, %s12783_s16  ;;  %v4942_v36 = vpop.f32.mrb[107].mxu0 }
 0xd93   :  { %v5170_v0 = vpop.f32.mrb[108].mxu0 }
 0xd94   :  { %v7382_v22 = vpop.permute.xlu0 %7381  ;;  %v16197_v5 = vpop.permute.xlu1 %7385 }
 0xd95   :  { %7419 = vrot.lane.b32.xlu0 %v16144_v15, %s12783_s16  ;;  %v16152_v13 = vld [vmem:[#allocation3 + $0xe8] sm:$0xff] }
 0xd96   :  { %7689 = vmatpush1.bf16.msra.mxu1 %v16152_v13  ;;  %7425 = vrot.lane.b32.xlu1 %v16148_v2, %s12783_s16 }
 0xd97   :  { %7910 = vmatprep.subr.bf16.mxu1 %v18726_v31  ;;  %v5172_v31 = vpop.f32.mrb[109].mxu0 }
 0xd98   :  { %v7384_v24 = vpop.permute.xlu0 %7383  ;;  %v5173_v1 = vpop.f32.mrb[110].mxu0 }
 0xd99   :  { %7427 = vrot.lane.b32.xlu0 %v16132_v58, %s12783_s16  ;;  %7703 = vmatmul.mubr.bf16.vlgmr.msra.gmra.mrb[40].mxu1 %v16157_v52  ;;  %v7438_v36 = vsel %vm19016_vm0, %v7384_v24, %v16197_v5  ;;  %v5175_v39 = vpop.f32.mrb[111].mxu0  ;;  %v7437_v37 = vsel %vm19017_vm10, %v7382_v22, %v7384_v24  ;;  %v4938_v22 = vadd.f32 %v4937_v17, %v16126_v30  ;;  %vm19026_vm10 = vmmov %vm19016_vm0 }
 0xd9a   :  { %7423 = vrot.lane.b32.xlu1 %v16177_v51, %s12783_s16  ;;  %v5178_v31 = vpop.f32.mrb[112].mxu0  ;;  %v5190_v11 = vadd.f32 %v5173_v1, %v4933_v28 }
 0xd9c   :  { %v16190_v54 = vpop.permute.xlu0 %7379 }
 0xd9d   :  { %7431 = vrot.lane.b32.xlu0 %v16188_v60, %s12783_s16  ;;  %v7436_v7 = vsel %vm19014_vm8, %v7378_v45, %v16190_v54  ;;  %v5180_v45 = vpop.f32.mrb[113].mxu0  ;;  %vm19024_vm8 = vmmov %vm19016_vm0 }
 0xd9e   :  { %7491 = vmatprep.subr.bf16.mxu0 %v7436_v7  ;;  %7433 = vrot.lane.b32.xlu1 %v16152_v13, %s12783_s16  ;;  %v4930_v7 = vadd.f32 %v4929_v57, %v16102_v26  ;;  %v4941_v26 = vadd.f32 %v4940_v23, %v16137_v48  ;;  %v5193_v48 = vadd.f32 %v5178_v31, %v4938_v22 }
 0xd9f   :  { %7492 = vmatpush1.bf16.msra.mxu0 %v7435_v47  ;;  %v5181_v47 = vpop.f32.mrb[114].mxu0 }
 0xda0   :  { %7493 = vmatprep.subr.bf16.mxu0 %v7438_v36  ;;  %v5183_v39 = vpop.f32.mrb[115].mxu0  ;;  %v5187_v45 = vadd.f32 %v5170_v0, %v4930_v7 }
 0xda1   :  { %7429 = vrot.lane.b32.xlu0 %v16205_v18, %s12783_s16  ;;  %v5423_v21 = vpop.f32.mrb[116].mxu0 }
 0xda2   :  { %7743 = vrot.lane.b32.xlu1 %v15958_v38, %s12784_s21  ;;  %v5425_v50 = vpop.f32.mrb[117].mxu0  ;;  %v5440_v8 = vadd.f32 %v5423_v21, %v5187_v45  ;;  %v16292_v45 = vld [vmem:[%s18704_s4 + $0x10] ss:$8 sps:$4 sm:$0xff]  }
 0xda3   :  { %7494 = vmatpush1.bf16.msra.mxu0 %v7437_v37  ;;  %v5426_v36 = vpop.f32.mrb[118].mxu0 }
 0xda4   :  { %v5428_v24 = vpop.f32.mrb[119].mxu0  ;;  %v5443_v49 = vadd.f32 %v5426_v36, %v5190_v11  ;;  %v5196_v11 = vadd.f32 %v5181_v47, %v4941_v26 }
 0xda5   :  { %7745 = vrot.lane.b32.xlu0 %v15977_v41, %s12784_s21  ;;  %v5431_v37 = vpop.f32.mrb[120].mxu0  ;;  %v16285_v24 = vld [vmem:[%s18704_s4 + $0x14] ss:$8 sps:$4 sm:$0xff]  }
 0xda6   :  { %7741 = vrot.lane.b32.xlu1 %v15940_v35, %s12784_s21  ;;  %v5433_v57 = vpop.f32.mrb[121].mxu0  ;;  %11978 = vmatprep.mubr.msk.bf16.mxu1 %vm19020_vm4, %v16285_v24  ;;  %vm19027_vm4 = vmmov %vm19016_vm0 }
 0xda7   :  { %v5434_v39 = vpop.f32.mrb[122].mxu0  ;;  %7711 = vmatmul.mubr.bf16.gmra.mrb[44].mxu1 %v16292_v45 }
 0xda8   :  { %v5436_v50 = vpop.f32.mrb[123].mxu0  ;;  %v5449_v21 = vadd.f32 %v5434_v39, %v5196_v11  ;;  %v16331_v11 = vld [vmem:[%s18704_s4 + $0x44] ss:$8 sps:$4 sm:$0xff]  }
 0xda9   :  { %7749 = vrot.lane.b32.xlu0 %v15966_v43, %s12784_s21  ;;  %v5676_v25 = vpop.f32.mrb[124].mxu0  ;;  %11989 = vmatprep.mubr.msk.bf16.mxu1 %vm19023_vm5, %v16331_v11  ;;  %vm19030_vm5 = vmmov %vm19016_vm0 }
 0xdaa   :  { %7751 = vrot.lane.b32.xlu1 %v15983_v34, %s12784_s21  ;;  %v16226_v30 = vadd.f32 %v5676_v25, %v5440_v8  ;;  %v5678_v17 = vpop.f32.mrb[125].mxu0  ;;  %v5446_v25 = vadd.f32 %v5431_v37, %v5193_v48 }
 0xdab   :  { %v5679_v0 = vpop.f32.mrb[126].mxu0 }
 0xdac   :  { %v16230_v23 = vadd.f32 %v5679_v0, %v5443_v49  ;;  %v5681_v1 = vpop.f32.mrb[127].mxu0 }
 0xdad   :  { %7747 = vrot.lane.b32.xlu0 %v15949_v27, %s12784_s21  ;;  %v5684_v31 = vpop.f32.mrb[128].mxu0 }
 0xdae   :  { %7755 = vrot.lane.b32.xlu1 %v16043_v44, %s12784_s21  ;;  %v5686_v47 = vpop.f32.mrb[129].mxu0  ;;  %v16260_v28 = vadd.f32 %v5684_v31, %v5446_v25 }
 0xdaf   :  { %v5687_v7 = vpop.f32.mrb[130].mxu0 }
 0xdb0   :  { %19018 = vst [vmem:[#allocation20_spill] sm:$0xff] %v16260_v28  ;;  %v16262_v36 = vadd.f32 %v5687_v7, %v5449_v21  ;;  %v5689_v22 = vpop.f32.mrb[131].mxu0 }
 0xdb1   :  { %7757 = vrot.lane.b32.xlu0 %v16052_v40, %s12784_s21 }
 0xdb2   :  { %7753 = vrot.lane.b32.xlu1 %v16022_v14, %s12784_s21  ;;  %19019 = vst [vmem:[#allocation21_spill] sm:$0xff] %v16262_v36 }
 0xdb5   :  { %7759 = vrot.lane.b32.xlu0 %v16030_v56, %s12784_s21 }
 0xdb6   :  { %7763 = vrot.lane.b32.xlu1 %v16065_v29, %s12784_s21 }
 0xdb9   :  { %7769 = vrot.lane.b32.xlu0 %v16069_v46, %s12784_s21 }
 0xdba   :  { %7767 = vrot.lane.b32.xlu1 %v16056_v63, %s12784_s21 }
 0xdbd   :  { %7771 = vrot.lane.b32.xlu0 %v16037_v4, %s12784_s21 }
 0xdbe   :  { %7765 = vrot.lane.b32.xlu1 %v16027_v9, %s12784_s21 }
 0xdc1   :  { %7781 = vrot.lane.b32.xlu0 %v16097_v59, %s12784_s21 }
 0xdc2   :  { %7775 = vrot.lane.b32.xlu1 %v16085_v32, %s12784_s21 }
 0xdc5   :  { %7783 = vrot.lane.b32.xlu0 %v16130_v6, %s12784_s21 }
 0xdc6   :  { %7779 = vrot.lane.b32.xlu1 %v16073_v20, %s12784_s21 }
 0xdc9   :  { %7793 = vrot.lane.b32.xlu0 %v16132_v58, %s12784_s21 }
 0xdca   :  { %7777 = vrot.lane.b32.xlu1 %v16116_v42, %s12784_s21 }
 0xdcd   :  { %7795 = vrot.lane.b32.xlu0 %v16205_v18, %s12784_s21 }
 0xdce   :  { %7787 = vrot.lane.b32.xlu1 %v16112_v19, %s12784_s21 }
 0xdd1   :  { %7997 = vrot.lane.b32.xlu0 %v15977_v41, %s12785_s8 }
 0xdd2   :  { %7791 = vrot.lane.b32.xlu1 %v16148_v2, %s12784_s21 }
 0xdd5   :  { %8001 = vrot.lane.b32.xlu0 %v15966_v43, %s12785_s8 }
 0xdd6   :  { %7789 = vrot.lane.b32.xlu1 %v16177_v51, %s12784_s21 }
 0xdd8   :  { %v7388_v37 = vpop.permute.xlu1 %7387 }
 0xdd9   :  { %7999 = vrot.lane.b32.xlu0 %v15949_v27, %s12785_s8 }
 0xdda   :  { %7995 = vrot.lane.b32.xlu1 %v15958_v38, %s12785_s8 }
 0xddc   :  { %v7394_v26 = vpop.permute.xlu0 %7393  ;;  %v7400_v57 = vpop.permute.xlu1 %7399 }
 0xddd   :  { %8009 = vrot.lane.b32.xlu0 %v16052_v40, %s12785_s8 }
 0xdde   :  { %7993 = vrot.lane.b32.xlu1 %v15940_v35, %s12785_s8 }
 0xde0   :  { %v7406_v8 = vpop.permute.xlu0 %7405 }
 0xde1   :  { %8011 = vrot.lane.b32.xlu0 %v16030_v56, %s12785_s8 }
 0xde2   :  { %8003 = vrot.lane.b32.xlu1 %v15983_v34, %s12785_s8 }
 0xde4   :  { %v7390_v49 = vpop.permute.xlu1 %7389 }
 0xde5   :  { %8021 = vrot.lane.b32.xlu0 %v16069_v46, %s12785_s8  ;;  %v7439_v17 = vsel %vm19022_vm15, %v7388_v37, %v7390_v49  ;;  %vm19029_vm15 = vmmov %vm19016_vm0 }
 0xde6   :  { %8007 = vrot.lane.b32.xlu1 %v16043_v44, %s12785_s8 }
 0xde9   :  { %7761 = vrot.lane.b32.xlu0 %v16083_v62, %s12784_s21 }
 0xdea   :  { %8005 = vrot.lane.b32.xlu1 %v16022_v14, %s12785_s8 }
 0xdeb   :  { %v16309_v39 = vpop.permute.xlu0 %7391 }
 0xdec   :  { %v7440_v50 = vsel %vm19021_vm7, %v7390_v49, %v16309_v39  ;;  %v7402_v0 = vpop.permute.xlu1 %7401  ;;  %vm19028_vm7 = vmmov %vm19016_vm0 }
 0xded   :  { %8023 = vrot.lane.b32.xlu0 %v16037_v4, %s12785_s8  ;;  %7495 = vmatprep.subr.bf16.mxu0 %v7440_v50  ;;  %v7443_v49 = vsel %vm19026_vm10, %v7400_v57, %v7402_v0  ;;  %vm19033_vm10 = vmmov %vm19016_vm0 }
 0xdee   :  { %7496 = vmatpush1.bf16.msra.mxu0 %v7439_v17  ;;  %8015 = vrot.lane.b32.xlu1 %v16065_v29, %s12785_s8 }
 0xdf1   :  { %7773 = vrot.lane.b32.xlu0 %v16110_v33, %s12784_s21 }
 0xdf2   :  { %8019 = vrot.lane.b32.xlu1 %v16056_v63, %s12785_s8 }
 0xdf3   :  { %v16322_v48 = vpop.permute.xlu0 %7403 }
 0xdf4   :  { %v7414_v1 = vpop.permute.xlu1 %7413  ;;  %v7444_v22 = vsel %vm19016_vm0, %v7402_v0, %v16322_v48 }
 0xdf5   :  { %8033 = vrot.lane.b32.xlu0 %v16097_v59, %s12785_s8 }
 0xdf6   :  { %8017 = vrot.lane.b32.xlu1 %v16027_v9, %s12785_s8 }
 0xdf7   :  { %v7396_v25 = vpop.permute.xlu0 %7395 }
 0xdf8   :  { %v16333_v21 = vpop.permute.xlu1 %7397  ;;  %v7441_v47 = vsel %vm19025_vm9, %v7394_v26, %v7396_v25  ;;  %vm19032_vm9 = vmmov %vm19016_vm0 }
 0xdf9   :  { %7785 = vrot.lane.b32.xlu0 %v16144_v15, %s12784_s21  ;;  %v7442_v31 = vsel %vm19024_vm8, %v7396_v25, %v16333_v21  ;;  %vm19031_vm8 = vmmov %vm19016_vm0 }
 0xdfa   :  { %8027 = vrot.lane.b32.xlu1 %v16085_v32, %s12785_s8  ;;  %7497 = vmatprep.subr.bf16.mxu0 %v7442_v31 }
 0xdfb   :  { %v16344_v7 = vpop.permute.xlu0 %7415  ;;  %7498 = vmatpush1.bf16.msra.mxu0 %v7441_v47 }
 0xdfc   :  { %7499 = vmatprep.subr.bf16.mxu0 %v7444_v22  ;;  %v16348_v37 = vpop.permute.xlu1 %7409  ;;  %v7448_v57 = vsel %vm19029_vm15, %v7414_v1, %v16344_v7  ;;  %vm19037_vm15 = vcmask 261120  }
 0xdfd   :  { %7797 = vrot.lane.b32.xlu0 %v16188_v60, %s12784_s21 }
 0xdfe   :  { %8031 = vrot.lane.b32.xlu1 %v16073_v20, %s12785_s8 }
 0xdff   :  { %v7408_v50 = vpop.permute.xlu0 %7407  ;;  %7500 = vmatpush1.bf16.msra.mxu0 %v7443_v49 }
 0xe00   :  { %v7446_v26 = vsel %vm19027_vm4, %v7408_v50, %v16348_v37  ;;  %v7412_v17 = vpop.permute.xlu1 %7411  ;;  %v7445_v25 = vsel %vm19028_vm7, %v7406_v8, %v7408_v50  ;;  %vm19034_vm4 = vmmov %vm19016_vm0 }
 0xe01   :  { %8035 = vrot.lane.b32.xlu0 %v16130_v6, %s12785_s8  ;;  %7501 = vmatprep.subr.bf16.mxu0 %v7446_v26  ;;  %v7447_v47 = vsel %vm19030_vm5, %v7412_v17, %v7414_v1  ;;  %vm19035_vm7 = vmmov %vm19016_vm0 }
 0xe02   :  { %7799 = vrot.lane.b32.xlu1 %v16152_v13, %s12784_s21  ;;  %vm19038_vm5 = vmmov %vm19037_vm15 }
 0xe03   :  { %v7418_v31 = vpop.permute.xlu0 %7417  ;;  %7502 = vmatpush1.bf16.msra.mxu0 %v7445_v25 }
 0xe04   :  { %7503 = vmatprep.subr.bf16.mxu0 %v7448_v57  ;;  %v16364_v0 = vpop.permute.xlu1 %7421 }
 0xe05   :  { %8045 = vrot.lane.b32.xlu0 %v16132_v58, %s12785_s8 }
 0xe06   :  { %8029 = vrot.lane.b32.xlu1 %v16116_v42, %s12785_s8 }
 0xe07   :  { %v7420_v22 = vpop.permute.xlu0 %7419  ;;  %7504 = vmatpush1.bf16.msra.mxu0 %v7447_v47 }
 0xe08   :  { %v7450_v8 = vsel %vm19031_vm8, %v7420_v22, %v16364_v0  ;;  %v7426_v49 = vpop.permute.xlu1 %7425  ;;  %v7449_v50 = vsel %vm19032_vm9, %v7418_v31, %v7420_v22  ;;  %vm19039_vm8 = vmmov %vm19038_vm5 }
 0xe09   :  { %8047 = vrot.lane.b32.xlu0 %v16205_v18, %s12785_s8  ;;  %7505 = vmatprep.subr.bf16.mxu0 %v7450_v8  ;;  %vm19040_vm9 = vmmov %vm19038_vm5 }
 0xe0a   :  { %8039 = vrot.lane.b32.xlu1 %v16112_v19, %s12785_s8 }
 0xe0b   :  { %v16378_v26 = vpop.permute.xlu0 %7427  ;;  %7506 = vmatpush1.bf16.msra.mxu0 %v7449_v50  ;;  %v19036_v50 = vmov 0  }
 0xe0c   :  { %v7452_v1 = vsel %vm19016_vm0, %v7426_v49, %v16378_v26  ;;  %v7424_v17 = vpop.permute.xlu1 %7423  ;;  %vm19041_vm0 = vcmask 1031168  }
 0xe0d   :  { %8249 = vrot.lane.b32.xlu0 %v15977_v41, %s12786_s24  ;;  %7507 = vmatprep.subr.bf16.mxu0 %v7452_v1  ;;  %v7451_v25 = vsel %vm19033_vm10, %v7424_v17, %v7426_v49  ;;  %v16401_v49 = vld [vmem:[%s18704_s4 + $0x20] ss:$8 sps:$4 sm:$0xff]   ;;  %v16413_v17 = vld [vmem:[%s18704_s4 + $0x34] ss:$8 sps:$4 sm:$0xff]   ;;  %vm19042_vm10 = vmmov %vm19041_vm0 }
 0xe0e   :  { %8043 = vrot.lane.b32.xlu1 %v16148_v2, %s12785_s8 }
 0xe0f   :  { %v7432_v57 = vpop.permute.xlu0 %7431  ;;  %7508 = vmatpush1.bf16.msra.mxu0 %v7451_v25 }
 0xe10   :  { %v16387_v47 = vpop.permute.xlu1 %7433 }
 0xe11   :  { %8013 = vrot.lane.b32.xlu0 %v16083_v62, %s12785_s8  ;;  %v7454_v31 = vsel %vm19034_vm4, %v7432_v57, %v16387_v47  ;;  %vm19043_vm4 = vmmov %vm19041_vm0 }
 0xe12   :  { %8041 = vrot.lane.b32.xlu1 %v16177_v51, %s12785_s8  ;;  %7509 = vmatprep.subr.bf16.mxu0 %v7454_v31 }
 0xe13   :  { %v7430_v41 = vpop.permute.xlu0 %7429 }
 0xe14   :  { %v7453_v22 = vsel %vm19035_vm7, %v7430_v41, %v7432_v57  ;;  %v16396_v8 = vpop.permute.xlu1 %7743  ;;  %v16435_v41 = vld [vmem:[%s18704_s4 + $0x30] ss:$8 sps:$4 sm:$0xff]   ;;  %vm19044_vm7 = vmmov %vm19038_vm5 }
 0xe15   :  { %8253 = vrot.lane.b32.xlu0 %v15966_v43, %s12786_s24  ;;  %7510 = vmatpush1.bf16.msra.mxu0 %v7453_v22 }
 0xe16   :  { %8247 = vrot.lane.b32.xlu1 %v15958_v38, %s12786_s24  ;;  %7544 = vmatprep.subr.bf16.mxu0 %v19036_v50 }
 0xe17   :  { %v16408_v1 = vpop.permute.xlu0 %7745 }
 0xe18   :  { %7911 = vmatpush1.bf16.msra.mxu1 %v16408_v1  ;;  %7524 = vmatmul.mubr.bf16.vlgmr.msra.gmra.mrb[132].mxu0 %v16401_v49  ;;  %v16417_v25 = vpop.permute.xlu1 %7741 }
 0xe19   :  { %8025 = vrot.lane.b32.xlu0 %v16110_v33, %s12785_s8  ;;  %7545 = vmatpush1.bf16.msra.mxu0 %v16190_v54 }
 0xe1a   :  { %8245 = vrot.lane.b32.xlu1 %v15940_v35, %s12786_s24  ;;  %7546 = vmatprep.subr.bf16.mxu0 %v19036_v50 }
 0xe1b   :  { %v16425_v57 = vpop.permute.xlu0 %7749  ;;  %7912 = vmatprep.subr.bf16.mxu1 %v19036_v50  ;;  %11968 = vmatprep.mubr.msk.bf16.mxu0 %vm19037_vm15, %v16413_v17  ;;  %vm19045_vm15 = vmmov %vm19041_vm0 }
 0xe1c   :  { %v16430_v31 = vpop.permute.xlu1 %7751 }
 0xe1d   :  { %8251 = vrot.lane.b32.xlu0 %v15949_v27, %s12786_s24  ;;  %7547 = vmatpush1.bf16.msra.mxu0 %v16197_v5 }
 0xe1e   :  { %7913 = vmatpush1.bf16.msra.mxu1 %v16430_v31  ;;  %8255 = vrot.lane.b32.xlu1 %v15983_v34, %s12786_s24 }
 0xe1f   :  { %v16443_v54 = vpop.permute.xlu0 %7747  ;;  %7548 = vmatprep.subr.bf16.mxu0 %v19036_v50  ;;  %7914 = vmatprep.subr.bf16.mxu1 %v19036_v50 }
 0xe20   :  { %v16447_v22 = vpop.permute.xlu1 %7755  ;;  %7534 = vmatmul.mubr.bf16.gmra.mrb[136].mxu0 %v16435_v41 }
 0xe21   :  { %8037 = vrot.lane.b32.xlu0 %v16144_v15, %s12785_s8  ;;  %7549 = vmatpush1.bf16.msra.mxu0 %v16309_v39 }
 0xe22   :  { %8259 = vrot.lane.b32.xlu1 %v16043_v44, %s12786_s24  ;;  %7550 = vmatprep.subr.bf16.mxu0 %v19036_v50 }
 0xe23   :  { %v16456_v5 = vpop.permute.xlu0 %7757  ;;  %11969 = vmatprep.mubr.msk.bf16.mxu0 %vm19038_vm5, %v16173_v12  ;;  %vm19046_vm5 = vmmov %vm19041_vm0 }
 0xe24   :  { %7915 = vmatpush1.bf16.msra.mxu1 %v16456_v5  ;;  %v16461_v34 = vpop.permute.xlu1 %7753 }
 0xe25   :  { %8261 = vrot.lane.b32.xlu0 %v16052_v40, %s12786_s24  ;;  %7551 = vmatpush1.bf16.msra.mxu0 %v16333_v21 }
 0xe26   :  { %8257 = vrot.lane.b32.xlu1 %v16022_v14, %s12786_s24  ;;  %7552 = vmatprep.subr.bf16.mxu0 %v19036_v50 }
 0xe27   :  { %v16469_v39 = vpop.permute.xlu0 %7759  ;;  %7916 = vmatprep.subr.bf16.mxu1 %v19036_v50 }
 0xe28   :  { %v16472_v36 = vpop.permute.xlu1 %7763 }
 0xe29   :  { %8049 = vrot.lane.b32.xlu0 %v16188_v60, %s12785_s8  ;;  %7553 = vmatpush1.bf16.msra.mxu0 %v16322_v48 }
 0xe2a   :  { %7917 = vmatpush1.bf16.msra.mxu1 %v16472_v36  ;;  %8051 = vrot.lane.b32.xlu1 %v16152_v13, %s12785_s8 }
 0xe2b   :  { %v16480_v40 = vpop.permute.xlu0 %7769  ;;  %7554 = vmatprep.subr.bf16.mxu0 %v19036_v50  ;;  %7918 = vmatprep.subr.bf16.mxu1 %v19036_v50 }
 0xe2c   :  { %v16484_v12 = vpop.permute.xlu1 %7767 }
 0xe2d   :  { %8263 = vrot.lane.b32.xlu0 %v16030_v56, %s12786_s24  ;;  %7555 = vmatpush1.bf16.msra.mxu0 %v16348_v37 }
 0xe2e   :  { %7919 = vmatpush1.bf16.msra.mxu1 %v16480_v40  ;;  %8267 = vrot.lane.b32.xlu1 %v16065_v29, %s12786_s24 }
 0xe2f   :  { %v16492_v48 = vpop.permute.xlu0 %7771  ;;  %7556 = vmatprep.subr.bf16.mxu0 %v19036_v50  ;;  %7920 = vmatprep.subr.bf16.mxu1 %v19036_v50 }
 0xe30   :  { %v16496_v21 = vpop.permute.xlu1 %7765 }
 0xe31   :  { %8273 = vrot.lane.b32.xlu0 %v16069_v46, %s12786_s24  ;;  %7557 = vmatpush1.bf16.msra.mxu0 %v16344_v7 }
 0xe32   :  { %8271 = vrot.lane.b32.xlu1 %v16056_v63, %s12786_s24  ;;  %7558 = vmatprep.subr.bf16.mxu0 %v19036_v50 }
 0xe33   :  { %v16504_v37 = vpop.permute.xlu0 %7781 }
 0xe34   :  { %v16506_v29 = vpop.permute.xlu1 %7775 }
 0xe35   :  { %8275 = vrot.lane.b32.xlu0 %v16037_v4, %s12786_s24  ;;  %7559 = vmatpush1.bf16.msra.mxu0 %v16364_v0 }
 0xe36   :  { %7921 = vmatpush1.bf16.msra.mxu1 %v16506_v29  ;;  %8269 = vrot.lane.b32.xlu1 %v16027_v9, %s12786_s24 }
 0xe37   :  { %v16514_v46 = vpop.permute.xlu0 %7783  ;;  %7560 = vmatprep.subr.bf16.mxu0 %v19036_v50  ;;  %7922 = vmatprep.subr.bf16.mxu1 %v19036_v50 }
 0xe38   :  { %v16518_v7 = vpop.permute.xlu1 %7779 }
 0xe39   :  { %8265 = vrot.lane.b32.xlu0 %v16083_v62, %s12786_s24  ;;  %7561 = vmatpush1.bf16.msra.mxu0 %v16378_v26 }
 0xe3a   :  { %7923 = vmatpush1.bf16.msra.mxu1 %v16504_v37  ;;  %8279 = vrot.lane.b32.xlu1 %v16085_v32, %s12786_s24 }
 0xe3b   :  { %v16526_v0 = vpop.permute.xlu0 %7793  ;;  %7562 = vmatprep.subr.bf16.mxu0 %v19036_v50  ;;  %7924 = vmatprep.subr.bf16.mxu1 %v19036_v50 }
 0xe3c   :  { %v16530_v28 = vpop.permute.xlu1 %7777 }
 0xe3d   :  { %8285 = vrot.lane.b32.xlu0 %v16097_v59, %s12786_s24  ;;  %7563 = vmatpush1.bf16.msra.mxu0 %v16387_v47 }
 0xe3e   :  { %7617 = vmatprep.subr.bf16.mxu0 %v15958_v38  ;;  %8283 = vrot.lane.b32.xlu1 %v16073_v20, %s12786_s24 }
 0xe3f   :  { %v16538_v26 = vpop.permute.xlu0 %7795 }
 0xe40   :  { %7577 = vmatmul.mubr.bf16.vlgmr.msra.gmra.mrb[140].mxu0 %v16401_v49  ;;  %v16541_v32 = vpop.permute.xlu1 %7787 }
 0xe41   :  { %8277 = vrot.lane.b32.xlu0 %v16110_v33, %s12786_s24  ;;  %7618 = vmatpush1.bf16.msra.mxu0 %v15940_v35 }
 0xe42   :  { %7619 = vmatprep.subr.bf16.mxu0 %v15966_v43  ;;  %7925 = vmatpush1.bf16.msra.mxu1 %v16541_v32 }
 0xe43   :  { %v16548_v59 = vpop.permute.xlu0 %7997  ;;  %8281 = vrot.lane.b32.xlu1 %v16116_v42, %s12786_s24  ;;  %7926 = vmatprep.subr.bf16.mxu1 %v19036_v50 }
 0xe44   :  { %v16553_v38 = vpop.permute.xlu1 %7791  ;;  %11970 = vmatprep.mubr.msk.bf16.mxu0 %vm19039_vm8, %v16413_v17  ;;  %vm19047_vm8 = vmmov %vm19041_vm0 }
 0xe45   :  { %8287 = vrot.lane.b32.xlu0 %v16130_v6, %s12786_s24  ;;  %7620 = vmatpush1.bf16.msra.mxu0 %v15949_v27 }
 0xe46   :  { %7621 = vmatprep.subr.bf16.mxu0 %v16043_v44  ;;  %7927 = vmatpush1.bf16.msra.mxu1 %v16526_v0 }
 0xe47   :  { %v16562_v35 = vpop.permute.xlu0 %8001  ;;  %8291 = vrot.lane.b32.xlu1 %v16112_v19, %s12786_s24  ;;  %7928 = vmatprep.subr.bf16.mxu1 %v19036_v50 }
 0xe48   :  { %v16567_v43 = vpop.permute.xlu1 %7789  ;;  %7585 = vmatmul.mubr.bf16.gmra.mrb[144].mxu0 %v16435_v41 }
 0xe49   :  { %8289 = vrot.lane.b32.xlu0 %v16144_v15, %s12786_s24  ;;  %7622 = vmatpush1.bf16.msra.mxu0 %v16022_v14 }
 0xe4a   :  { %7623 = vmatprep.subr.bf16.mxu0 %v16083_v62  ;;  %11975 = vmatprep.mubr.msk.bf16.mxu0 %vm19040_vm9, %v16162_v3  ;;  %vm19048_vm9 = vmmov %vm19041_vm0 }
 0xe4b   :  { %v16576_v27 = vpop.permute.xlu0 %7999  ;;  %8295 = vrot.lane.b32.xlu1 %v16148_v2, %s12786_s24 }
 0xe4c   :  { %v16580_v44 = vpop.permute.xlu1 %7995 }
 0xe4d   :  { %8297 = vrot.lane.b32.xlu0 %v16132_v58, %s12786_s24  ;;  %7624 = vmatpush1.bf16.msra.mxu0 %v16030_v56 }
 0xe4e   :  { %7625 = vmatprep.subr.bf16.mxu0 %v16056_v63  ;;  %v8475_v63 = vld [vmem:[%s18705_s5] sm:$0xff] }
 0xe4f   :  { %v16586_v14 = vpop.permute.xlu0 %8009  ;;  %8293 = vrot.lane.b32.xlu1 %v16177_v51, %s12786_s24 }
 0xe50   :  { %v16590_v62 = vpop.permute.xlu1 %7993 }
 0xe51   :  { %8301 = vrot.lane.b32.xlu0 %v16188_v60, %s12786_s24  ;;  %7626 = vmatpush1.bf16.msra.mxu0 %v16027_v9  ;;  %v8476_v9 = vld [vmem:[%s18705_s5 + $0x8] sm:$0xff] }
 0xe52   :  { %7627 = vmatprep.subr.bf16.mxu0 %v16110_v33 }
 0xe53   :  { %v16596_v19 = vpop.permute.xlu0 %8011  ;;  %8303 = vrot.lane.b32.xlu1 %v16152_v13, %s12786_s24  ;;  %v8477_v13 = vld [vmem:[%s18705_s5 + $0x10] sm:$0xff] }
 0xe54   :  { %v16600_v56 = vpop.permute.xlu1 %8003 }
 0xe55   :  { %8299 = vrot.lane.b32.xlu0 %v16205_v18, %s12786_s24  ;;  %7628 = vmatpush1.bf16.msra.mxu0 %v16037_v4  ;;  %v8478_v4 = vld [vmem:[%s18705_s5 + $0x18] sm:$0xff] }
 0xe56   :  { %7629 = vmatprep.subr.bf16.mxu0 %v16073_v20 }
 0xe57   :  { %v16612_v33 = vpop.permute.xlu0 %8021  ;;  %8481 = vperm.xlu1 %12547, %v8475_v63  }
 0xe58   :  { %v16614_v58 = vpop.permute.xlu1 %8007 }
 0xe59   :  { %8486 = vperm.xlu0 %12546, %v8476_v9   ;;  %7630 = vmatpush1.bf16.msra.mxu0 %v16116_v42  ;;  %v16714_v9 = vld [vmem:[%s18704_s4 + $0x50] ss:$8 sps:$4 sm:$0xff]  }
 0xe5a   :  { %7631 = vmatprep.subr.bf16.mxu0 %v16144_v15  ;;  %v7802_v15 = vsel %vm19041_vm0, %v16396_v8, %v16408_v1  ;;  %v7803_v1 = vsel %vm19045_vm15, %v16443_v54, %v16425_v57  ;;  %vm19049_vm0 = vmmov %vm19044_vm7 }
 0xe5b   :  { %v7762_v3 = vpop.permute.xlu0 %7761  ;;  %8491 = vperm.xlu1 %12547, %v8477_v13   ;;  %vm19052_vm15 = vmmov %vm19043_vm4 }
 0xe5c   :  { %v16624_v20 = vpop.permute.xlu1 %8005 }
 0xe5d   :  { %8496 = vperm.xlu0 %12546, %v8478_v4   ;;  %7632 = vmatpush1.bf16.msra.mxu0 %v16130_v6 }
 0xe5e   :  { %7633 = vmatprep.subr.bf16.mxu0 %v16148_v2  ;;  %v7801_v2 = vsel %vm19042_vm10, %v16417_v25, %v16396_v8  ;;  %vm19050_vm10 = vmmov %vm19043_vm4 }
 0xe5f   :  { %v16628_v47 = vpop.permute.xlu0 %8023  ;;  %v7807_v54 = vsel %vm19050_vm10, %v16469_v39, %v7762_v3 }
 0xe60   :  { %v16630_v49 = vpop.permute.xlu1 %8015 }
 0xe61   :  { %7634 = vmatpush1.bf16.msra.mxu0 %v16177_v51 }
 0xe62   :  { %7635 = vmatprep.subr.bf16.mxu0 %v16188_v60 }
 0xe63   :  { %v7774_v42 = vpop.permute.xlu0 %7773 }
 0xe64   :  { %v16634_v17 = vpop.permute.xlu1 %8019 }
 0xe65   :  { %7636 = vmatpush1.bf16.msra.mxu0 %v16205_v18  ;;  %v7804_v18 = vsel %vm19043_vm4, %v16425_v57, %v16430_v31  ;;  %v7808_v57 = vsel %vm19048_vm9, %v7762_v3, %v16472_v36  ;;  %v7810_v36 = vsel %vm19043_vm4, %v16484_v12, %v16480_v40  ;;  %v7812_v40 = vsel %vm19052_vm15, %v7774_v42, %v16506_v29  ;;  %vm19055_vm9 = vmmov %vm19043_vm4 }
 0xe66   :  { %7857 = vmatprep.subr.bf16.mxu0 %v7802_v15  ;;  %v7814_v29 = vsel %vm19055_vm9, %v16518_v7, %v16504_v37 }
 0xe67   :  { %v16640_v6 = vpop.permute.xlu0 %8033 }
 0xe68   :  { %7650 = vmatmul.mubr.bf16.vlgmr.msra.gmra.mrb[132].mxu0 %v16157_v52  ;;  %v16646_v51 = vpop.permute.xlu1 %8017  ;;  %v7806_v52 = vsel %vm19046_vm5, %v16447_v22, %v16456_v5  ;;  %vm19053_vm5 = vmmov %vm19049_vm0 }
 0xe69   :  { %7858 = vmatpush1.bf16.msra.mxu0 %v7801_v2  ;;  %11976 = vmatprep.mubr.msk.bf16.mxu0 %vm19044_vm7, %v16285_v24  ;;  %v7805_v24 = vsel %vm19047_vm8, %v16461_v34, %v16447_v22  ;;  %v16680_v22 = vld [vmem:[%s18704_s4 + $0x40] ss:$8 sps:$4 sm:$0xff]   ;;  %vm19051_vm7 = vmmov %vm19043_vm4 }
 0xe6a   :  { %7859 = vmatprep.subr.bf16.mxu0 %v7804_v18  ;;  %v7809_v34 = vsel %vm19051_vm7, %v16496_v21, %v16484_v12  ;;  %vm19054_vm8 = vmmov %vm19043_vm4 }
 0xe6b   :  { %v7786_v60 = vpop.permute.xlu0 %7785  ;;  %v7811_v12 = vsel %vm19054_vm8, %v16492_v48, %v7774_v42  ;;  %v16726_v48 = vld [vmem:[%s18704_s4 + $0x64] ss:$8 sps:$4 sm:$0xff]  }
 0xe6c   :  { %v16656_v41 = vpop.permute.xlu1 %8027 }
 0xe6d   :  { %7860 = vmatpush1.bf16.msra.mxu0 %v7803_v1 }
 0xe6e   :  { %7861 = vmatprep.subr.bf16.mxu0 %v7806_v52 }
 0xe6f   :  { %v16661_v8 = vpop.permute.xlu0 %7797 }
 0xe70   :  { %v16666_v25 = vpop.permute.xlu1 %8031  ;;  %7660 = vmatmul.mubr.bf16.gmra.mrb[136].mxu0 %v16292_v45 }
 0xe71   :  { %7862 = vmatpush1.bf16.msra.mxu0 %v7805_v24  ;;  %11987 = vmatprep.mubr.msk.bf16.mxu0 %vm19049_vm0, %v16331_v11  ;;  %v16691_v11 = vld [vmem:[%s18704_s4 + $0x54] ss:$8 sps:$4 sm:$0xff]   ;;  %vm19056_vm0 = vmmov %vm19043_vm4  ;;  %v16792_v24 = vpop.f32.mrb[40].mxu1 }
 0xe72   :  { %7863 = vmatprep.subr.bf16.mxu0 %v7808_v57  ;;  %v7813_v4 = vsel %vm19056_vm0, %v16530_v28, %v16518_v7  ;;  %vm19057_vm10 = vmmov %vm19056_vm0  ;;  %v7706_v57 = vpop.f32.mrb[41].mxu1 }
 0xe73   :  { %v16673_v31 = vpop.permute.xlu0 %8035  ;;  %v7816_v37 = vsel %vm19057_vm10, %v7786_v60, %v16541_v32  ;;  %vm19058_vm4 = vmmov %vm19053_vm5 }
 0xe74   :  { %v7800_v5 = vpop.permute.xlu1 %7799  ;;  %vm19059_vm7 = vmmov %vm19056_vm0 }
 0xe75   :  { %7864 = vmatpush1.bf16.msra.mxu0 %v7807_v54  ;;  %7929 = vmatpush1.bf16.msra.mxu1 %v7800_v5  ;;  %v7815_v28 = vsel %vm19059_vm7, %v16514_v46, %v7786_v60  ;;  %vm19060_vm15 = vmmov %vm19056_vm0  ;;  %vm19067_vm7 = vcmask 261120   ;;  %v16799_v54 = vpop.f32.mrb[42].mxu1 }
 0xe76   :  { %7865 = vmatprep.subr.bf16.mxu0 %v7810_v36  ;;  %8162 = vmatprep.subr.bf16.mxu1 %v19036_v50  ;;  %v7818_v15 = vsel %vm19060_vm15, %v16553_v38, %v16526_v0  ;;  %vm19062_vm8 = vmmov %vm19056_vm0 }
 0xe77   :  { %v16686_v45 = vpop.permute.xlu0 %8045  ;;  %v7820_v46 = vsel %vm19062_vm8, %v16661_v8, %v7800_v5  ;;  %vm19063_vm9 = vmmov %vm19056_vm0 }
 0xe78   :  { %7943 = vmatmul.mubr.bf16.vlgmr.msra.gmra.mrb[48].mxu1 %v16680_v22  ;;  %v16697_v39 = vpop.permute.xlu1 %8029  ;;  %v7819_v60 = vsel %vm19063_vm9, %v16538_v26, %v16661_v8 }
 0xe79   :  { %7866 = vmatpush1.bf16.msra.mxu0 %v7809_v34  ;;  %8163 = vmatpush1.bf16.msra.mxu1 %v16548_v59 }
 0xe7a   :  { %7867 = vmatprep.subr.bf16.mxu0 %v7812_v40  ;;  %8164 = vmatprep.subr.bf16.mxu1 %v19036_v50 }
 0xe7b   :  { %v16703_v63 = vpop.permute.xlu0 %8047  ;;  %11990 = vmatprep.mubr.msk.bf16.mxu1 %vm19053_vm5, %v16691_v11  ;;  %vm19061_vm5 = vmmov %vm19056_vm0  ;;  %vm19064_vm0 = vcmask 1022976  }
 0xe7c   :  { %v16709_v21 = vpop.permute.xlu1 %8039  ;;  %v7817_v2 = vsel %vm19061_vm5, %v16567_v43, %v16553_v38  ;;  %v8054_v38 = vsel %vm19064_vm0, %v16580_v44, %v16548_v59  ;;  %vm19065_vm10 = vmmov %vm19064_vm0 }
 0xe7d   :  { %7868 = vmatpush1.bf16.msra.mxu0 %v7811_v12  ;;  %8165 = vmatpush1.bf16.msra.mxu1 %v16600_v56  ;;  %v8053_v52 = vsel %vm19065_vm10, %v16590_v62, %v16580_v44  ;;  %vm19068_vm15 = vmmov %vm19064_vm0 }
 0xe7e   :  { %7869 = vmatprep.subr.bf16.mxu0 %v7814_v29  ;;  %8166 = vmatprep.subr.bf16.mxu1 %v19036_v50  ;;  %v8055_v44 = vsel %vm19068_vm15, %v16576_v27, %v16562_v35  ;;  %vm19069_vm5 = vmmov %vm19064_vm0  ;;  %v16854_v29 = vld [vmem:[%s18704_s4 + $0x70] ss:$8 sps:$4 sm:$0xff]  }
 0xe7f   :  { %v16721_v13 = vpop.permute.xlu0 %8249  ;;  %vm19070_vm8 = vmmov %vm19064_vm0 }
 0xe80   :  { %7951 = vmatmul.mubr.bf16.gmra.mrb[52].mxu1 %v16714_v9  ;;  %v16732_v3 = vpop.permute.xlu1 %8043  ;;  %v8057_v27 = vsel %vm19070_vm8, %v16624_v20, %v16614_v58  ;;  %vm19071_vm9 = vmmov %vm19064_vm0 }
 0xe81   :  { %7870 = vmatpush1.bf16.msra.mxu0 %v7813_v4  ;;  %8167 = vmatpush1.bf16.msra.mxu1 %v16586_v14 }
 0xe82   :  { %7871 = vmatprep.subr.bf16.mxu0 %v7816_v37  ;;  %8168 = vmatprep.subr.bf16.mxu1 %v19036_v50 }
 0xe83   :  { %v8014_v42 = vpop.permute.xlu0 %8013  ;;  %12001 = vmatprep.mubr.msk.bf16.mxu1 %vm19058_vm4, %v16726_v48  ;;  %vm19066_vm4 = vmmov %vm19064_vm0 }
 0xe84   :  { %v16742_v7 = vpop.permute.xlu1 %8041  ;;  %v8056_v59 = vsel %vm19066_vm4, %v16562_v35, %v16600_v56  ;;  %v8058_v56 = vsel %vm19069_vm5, %v16614_v58, %v16586_v14  ;;  %v7709_v35 = vpop.f32.mrb[43].mxu1  ;;  %v8060_v14 = vsel %vm19071_vm9, %v8014_v42, %v16630_v49  ;;  %vm19072_vm0 = vmmov %vm19067_vm7 }
 0xe85   :  { %7872 = vmatpush1.bf16.msra.mxu0 %v7815_v28  ;;  %8169 = vmatpush1.bf16.msra.mxu1 %v16630_v49  ;;  %vm19073_vm10 = vmmov %vm19066_vm4  ;;  %v8062_v49 = vsel %vm19066_vm4, %v16634_v17, %v16612_v33 }
 0xe86   :  { %7873 = vmatprep.subr.bf16.mxu0 %v7818_v15  ;;  %8170 = vmatprep.subr.bf16.mxu1 %v19036_v50  ;;  %v8059_v58 = vsel %vm19073_vm10, %v16596_v19, %v8014_v42  ;;  %v16831_v19 = vld [vmem:[%s18704_s4 + $0x74] ss:$8 sps:$4 sm:$0xff]   ;;  %vm19075_vm15 = vmmov %vm19066_vm4 }
 0xe87   :  { %v16749_v32 = vpop.permute.xlu0 %8253  ;;  %vm19076_vm5 = vmmov %vm19072_vm0 }
 0xe88   :  { %v16754_v18 = vpop.permute.xlu1 %8247  ;;  %vm19077_vm8 = vmmov %vm19066_vm4 }
 0xe89   :  { %7874 = vmatpush1.bf16.msra.mxu0 %v7817_v2  ;;  %8171 = vmatpush1.bf16.msra.mxu1 %v16612_v33  ;;  %vm19078_vm9 = vmmov %vm19066_vm4 }
 0xe8a   :  { %7875 = vmatprep.subr.bf16.mxu0 %v7820_v46  ;;  %8172 = vmatprep.subr.bf16.mxu1 %v19036_v50  ;;  %v16901_v46 = vpop.f32.mrb[44].mxu1 }
 0xe8b   :  { %v8026_v0 = vpop.permute.xlu0 %8025 }
 0xe8c   :  { %v16763_v1 = vpop.permute.xlu1 %8245  ;;  %v8064_v33 = vsel %vm19075_vm15, %v8026_v0, %v16656_v41 }
 0xe8d   :  { %7876 = vmatpush1.bf16.msra.mxu0 %v7819_v60  ;;  %8173 = vmatpush1.bf16.msra.mxu1 %v16656_v41  ;;  %v8066_v41 = vsel %vm19078_vm9, %v16666_v25, %v16640_v6  ;;  %v7714_v60 = vpop.f32.mrb[45].mxu1 }
 0xe8e   :  { %8109 = vmatprep.subr.bf16.mxu0 %v8054_v38  ;;  %8174 = vmatprep.subr.bf16.mxu1 %v19036_v50  ;;  %v16909_v38 = vpop.f32.mrb[46].mxu1 }
 0xe8f   :  { %v16770_v43 = vpop.permute.xlu0 %8251 }
 0xe90   :  { %7890 = vmatmul.mubr.bf16.vlgmr.msra.gmra.mrb[132].mxu0 %v16680_v22  ;;  %v16776_v26 = vpop.permute.xlu1 %8255 }
 0xe91   :  { %8110 = vmatpush1.bf16.msra.mxu0 %v8053_v52  ;;  %8175 = vmatpush1.bf16.msra.mxu1 %v16640_v6  ;;  %v7717_v52 = vpop.f32.mrb[47].mxu1 }
 0xe92   :  { %8111 = vmatprep.subr.bf16.mxu0 %v8056_v59  ;;  %8176 = vmatprep.subr.bf16.mxu1 %v19036_v50 }
 0xe93   :  { %v16783_v8 = vpop.permute.xlu0 %8037  ;;  %11988 = vmatprep.mubr.msk.bf16.mxu0 %vm19067_vm7, %v16691_v11  ;;  %v16820_v11 = vld [vmem:[%s18704_s4 + $0x60] ss:$8 sps:$4 sm:$0xff]   ;;  %vm19074_vm7 = vmmov %vm19066_vm4 }
 0xe94   :  { %v16790_v62 = vpop.permute.xlu1 %8259  ;;  %v8061_v40 = vsel %vm19074_vm7, %v16646_v51, %v16634_v17  ;;  %v8063_v17 = vsel %vm19077_vm8, %v16628_v47, %v8026_v0  ;;  %v16866_v47 = vld [vmem:[%s18704_s4 + $0x84] ss:$8 sps:$4 sm:$0xff]  }
 0xe95   :  { %8112 = vmatpush1.bf16.msra.mxu0 %v8055_v44  ;;  %8177 = vmatpush1.bf16.msra.mxu1 %v16709_v21 }
 0xe96   :  { %8113 = vmatprep.subr.bf16.mxu0 %v8058_v56  ;;  %8178 = vmatprep.subr.bf16.mxu1 %v19036_v50 }
 0xe97   :  { %v16801_v5 = vpop.permute.xlu0 %8261 }
 0xe98   :  { %v16806_v22 = vpop.permute.xlu1 %8257  ;;  %7900 = vmatmul.mubr.bf16.gmra.mrb[136].mxu0 %v16714_v9 }
 0xe99   :  { %8114 = vmatpush1.bf16.msra.mxu0 %v8057_v27  ;;  %8179 = vmatpush1.bf16.msra.mxu1 %v16686_v45  ;;  %v12661_v27 = vld [vmem:[%s18704_s4 + $0x80] ss:$8 sps:$4 sm:$0xff]  }
 0xe9a   :  { %8115 = vmatprep.subr.bf16.mxu0 %v8060_v14  ;;  %8180 = vmatprep.subr.bf16.mxu1 %v19036_v50 }
 0xe9b   :  { %v8050_v36 = vpop.permute.xlu0 %8049  ;;  %11999 = vmatprep.mubr.msk.bf16.mxu0 %vm19072_vm0, %v16726_v48  ;;  %vm19079_vm0 = vmmov %vm19066_vm4 }
 0xe9c   :  { %v8052_v20 = vpop.permute.xlu1 %8051  ;;  %v8065_v4 = vsel %vm19079_vm0, %v16697_v39, %v16666_v25  ;;  %vm19080_vm10 = vmmov %vm19079_vm0 }
 0xe9d   :  { %8116 = vmatpush1.bf16.msra.mxu0 %v8059_v58  ;;  %8181 = vmatpush1.bf16.msra.mxu1 %v8052_v20  ;;  %v8068_v6 = vsel %vm19080_vm10, %v16783_v8, %v16709_v21  ;;  %vm19081_vm4 = vmmov %vm19076_vm5 }
 0xe9e   :  { %8117 = vmatprep.subr.bf16.mxu0 %v8062_v49  ;;  %8414 = vmatprep.subr.bf16.mxu1 %v19036_v50  ;;  %vm19082_vm7 = vmmov %vm19079_vm0 }
 0xe9f   :  { %v16826_v34 = vpop.permute.xlu0 %8263  ;;  %v8067_v25 = vsel %vm19082_vm7, %v16673_v31, %v16783_v8  ;;  %vm19083_vm15 = vmmov %vm19079_vm0  ;;  %vm19090_vm7 = vcmask 261120  }
 0xea0   :  { %8195 = vmatmul.mubr.bf16.vlgmr.msra.gmra.mrb[56].mxu1 %v16820_v11  ;;  %v16837_v12 = vpop.permute.xlu1 %8267  ;;  %v8070_v21 = vsel %vm19083_vm15, %v16732_v3, %v16686_v45  ;;  %vm19085_vm8 = vmmov %vm19079_vm0 }
 0xea1   :  { %8118 = vmatpush1.bf16.msra.mxu0 %v8061_v40  ;;  %8415 = vmatpush1.bf16.msra.mxu1 %v16721_v13  ;;  %v8072_v31 = vsel %vm19085_vm8, %v8050_v36, %v8052_v20  ;;  %vm19086_vm9 = vmmov %vm19079_vm0 }
 0xea2   :  { %8119 = vmatprep.subr.bf16.mxu0 %v8064_v33  ;;  %8416 = vmatprep.subr.bf16.mxu1 %v19036_v50  ;;  %v8071_v0 = vsel %vm19086_vm9, %v16703_v63, %v8050_v36 }
 0xea3   :  { %v16843_v9 = vpop.permute.xlu0 %8273  ;;  %12002 = vmatprep.mubr.msk.bf16.mxu1 %vm19076_vm5, %v16831_v19  ;;  %vm19084_vm5 = vmmov %vm19079_vm0  ;;  %vm19087_vm0 = vcmask 1014784  }
 0xea4   :  { %v16849_v51 = vpop.permute.xlu1 %8271  ;;  %v8069_v15 = vsel %vm19084_vm5, %v16742_v7, %v16732_v3  ;;  %v8306_v3 = vsel %vm19087_vm0, %v16754_v18, %v16721_v13  ;;  %vm19088_vm10 = vmmov %vm19087_vm0 }
 0xea5   :  { %8120 = vmatpush1.bf16.msra.mxu0 %v8063_v17  ;;  %8417 = vmatpush1.bf16.msra.mxu1 %v16776_v26  ;;  %v8305_v63 = vsel %vm19088_vm10, %v16763_v1, %v16754_v18  ;;  %vm19091_vm15 = vmmov %vm19087_vm0 }
 0xea6   :  { %8121 = vmatprep.subr.bf16.mxu0 %v8066_v41  ;;  %8418 = vmatprep.subr.bf16.mxu1 %v19036_v50  ;;  %v8307_v18 = vsel %vm19091_vm15, %v16770_v43, %v16749_v32  ;;  %vm19092_vm5 = vmmov %vm19087_vm0 }
 0xea7   :  { %v16861_v48 = vpop.permute.xlu0 %8275  ;;  %v8310_v1 = vsel %vm19092_vm5, %v16790_v62, %v16801_v5  ;;  %vm19093_vm8 = vmmov %vm19087_vm0 }
 0xea8   :  { %8203 = vmatmul.mubr.bf16.gmra.mrb[60].mxu1 %v16854_v29  ;;  %v16872_v37 = vpop.permute.xlu1 %8269  ;;  %v8309_v57 = vsel %vm19093_vm8, %v16806_v22, %v16790_v62  ;;  %vm19094_vm9 = vmmov %vm19087_vm0  ;;  %v12664_v22 = vld [vmem:[%s18704_s4 + $0x94] ss:$8 sps:$4 sm:$0xff]  }
 0xea9   :  { %8122 = vmatpush1.bf16.msra.mxu0 %v8065_v4  ;;  %8419 = vmatpush1.bf16.msra.mxu1 %v16801_v5 }
 0xeaa   :  { %8123 = vmatprep.subr.bf16.mxu0 %v8068_v6  ;;  %8420 = vmatprep.subr.bf16.mxu1 %v19036_v50 }
 0xeab   :  { %v8266_v42 = vpop.permute.xlu0 %8265  ;;  %12013 = vmatprep.mubr.msk.bf16.mxu1 %vm19081_vm4, %v16866_v47  ;;  %vm19089_vm4 = vmmov %vm19087_vm0 }
 0xeac   :  { %v16884_v39 = vpop.permute.xlu1 %8279  ;;  %v8308_v13 = vsel %vm19089_vm4, %v16749_v32, %v16776_v26  ;;  %v8312_v32 = vsel %vm19094_vm9, %v8266_v42, %v16837_v12  ;;  %vm19095_vm0 = vmmov %vm19090_vm7  ;;  %v8314_v62 = vsel %vm19089_vm4, %v16849_v51, %v16843_v9 }
 0xead   :  { %8124 = vmatpush1.bf16.msra.mxu0 %v8067_v25  ;;  %8421 = vmatpush1.bf16.msra.mxu1 %v16837_v12  ;;  %vm19096_vm10 = vmmov %vm19089_vm4 }
 0xeae   :  { %8125 = vmatprep.subr.bf16.mxu0 %v8070_v21  ;;  %8422 = vmatprep.subr.bf16.mxu1 %v19036_v50  ;;  %v8311_v5 = vsel %vm19096_vm10, %v16826_v34, %v8266_v42  ;;  %vm19098_vm15 = vmmov %vm19089_vm4 }
 0xeaf   :  { %v16891_v28 = vpop.permute.xlu0 %8285  ;;  %vm19099_vm5 = vmmov %vm19095_vm0 }
 0xeb0   :  { %v16896_v2 = vpop.permute.xlu1 %8283  ;;  %vm19100_vm8 = vmmov %vm19089_vm4 }
 0xeb1   :  { %8126 = vmatpush1.bf16.msra.mxu0 %v8069_v15  ;;  %8423 = vmatpush1.bf16.msra.mxu1 %v16843_v9  ;;  %vm19101_vm9 = vmmov %vm19089_vm4 }
 0xeb2   :  { %8127 = vmatprep.subr.bf16.mxu0 %v8072_v31  ;;  %8424 = vmatprep.subr.bf16.mxu1 %v19036_v50  ;;  %v8318_v20 = vsel %vm19101_vm9, %v16896_v2, %v16891_v28  ;;  %vm19109_vm9 = vcmask 261120  }
 0xeb3   :  { %v8278_v45 = vpop.permute.xlu0 %8277 }
 0xeb4   :  { %v8316_v36 = vsel %vm19098_vm15, %v8278_v45, %v16884_v39  ;;  %v8315_v58 = vsel %vm19100_vm8, %v16861_v48, %v8278_v45 }
 0xeb5   :  { %8128 = vmatpush1.bf16.msra.mxu0 %v8071_v0  ;;  %v8282_v7 = vpop.permute.xlu1 %8281  ;;  %8425 = vmatpush1.bf16.msra.mxu1 %v16884_v39 }
 0xeb6   :  { %8361 = vmatprep.subr.bf16.mxu0 %v8306_v3  ;;  %8426 = vmatprep.subr.bf16.mxu1 %v19036_v50 }
 0xeb7   :  { %v8288_v59 = vpop.permute.xlu0 %8287 }
 0xeb8   :  { %8142 = vmatmul.mubr.bf16.vlgmr.msra.gmra.mrb[132].mxu0 %v16820_v11  ;;  %v12666_v11 = vld [vmem:[%s18704_s4 + $0x90] ss:$8 sps:$4 sm:$0xff]  }
 0xeb9   :  { %8362 = vmatpush1.bf16.msra.mxu0 %v8305_v63  ;;  %v8292_v8 = vpop.permute.xlu1 %8291  ;;  %8427 = vmatpush1.bf16.msra.mxu1 %v16891_v28 }
 0xeba   :  { %8363 = vmatprep.subr.bf16.mxu0 %v8308_v13  ;;  %8428 = vmatprep.subr.bf16.mxu1 %v19036_v50 }
 0xebb   :  { %v8290_v44 = vpop.permute.xlu0 %8289  ;;  %12000 = vmatprep.mubr.msk.bf16.mxu0 %vm19090_vm7, %v16831_v19  ;;  %vm19097_vm7 = vmmov %vm19089_vm4 }
 0xebc   :  { %v8313_v14 = vsel %vm19097_vm7, %v16872_v37, %v16849_v51 }
 0xebd   :  { %8364 = vmatpush1.bf16.msra.mxu0 %v8307_v18  ;;  %v8296_v26 = vpop.permute.xlu1 %8295  ;;  %8429 = vmatpush1.bf16.msra.mxu1 %v8292_v8 }
 0xebe   :  { %8365 = vmatprep.subr.bf16.mxu0 %v8310_v1  ;;  %8430 = vmatprep.subr.bf16.mxu1 %v19036_v50 }
 0xebf   :  { %v8298_v56 = vpop.permute.xlu0 %8297 }
 0xec0   :  { %8152 = vmatmul.mubr.bf16.gmra.mrb[136].mxu0 %v16854_v29 }
 0xec1   :  { %8366 = vmatpush1.bf16.msra.mxu0 %v8309_v57  ;;  %v8294_v43 = vpop.permute.xlu1 %8293  ;;  %8431 = vmatpush1.bf16.msra.mxu1 %v8298_v56 }
 0xec2   :  { %8367 = vmatprep.subr.bf16.mxu0 %v8312_v32  ;;  %8432 = vmatprep.subr.bf16.mxu1 %v19036_v50 }
 0xec3   :  { %12011 = vmatprep.mubr.msk.bf16.mxu0 %vm19095_vm0, %v16866_v47  ;;  %vm19102_vm0 = vmmov %vm19089_vm4  ;;  %v8302_v19 = vpop.permute.xlu0 %8301 }
 0xec4   :  { %v8317_v49 = vsel %vm19102_vm0, %v8282_v7, %v16896_v2  ;;  %vm19103_vm10 = vmmov %vm19102_vm0 }
 0xec5   :  { %8368 = vmatpush1.bf16.msra.mxu0 %v8311_v5  ;;  %v8304_v35 = vpop.permute.xlu1 %8303  ;;  %v8320_v34 = vsel %vm19103_vm10, %v8290_v44, %v8292_v8  ;;  %vm19104_vm4 = vmmov %vm19102_vm0 }
 0xec6   :  { %8369 = vmatprep.subr.bf16.mxu0 %v8314_v62  ;;  %8433 = vmatpush1.bf16.msra.mxu1 %v8304_v35  ;;  %v8319_v40 = vsel %vm19104_vm4, %v8288_v59, %v8290_v44  ;;  %vm19105_vm7 = vmmov %vm19102_vm0  ;;  %vm19110_vm4 = vcmp.gt.f32.partialorder %v13138_v16, 0.5 }
 0xec7   :  { %9036 = vmatprep.subr.bf16.mxu1 %v19036_v50  ;;  %v8322_v12 = vsel %vm19105_vm7, %v8296_v26, %v8298_v56  ;;  %vm19106_vm15 = vmmov %vm19102_vm0  ;;  %v8300_v9 = vpop.permute.xlu0 %8299 }
 0xec8   :  { %v8321_v33 = vsel %vm19106_vm15, %v8294_v43, %v8296_v26  ;;  %vm19108_vm8 = vmmov %vm19102_vm0 }
 0xec9   :  { %8370 = vmatpush1.bf16.msra.mxu0 %v8313_v14  ;;  %8447 = vmatmul.mubr.bf16.vlgmr.msra.gmra.mrb[64].mxu1 %v12661_v27  ;;  %v8323_v51 = vsel %vm19108_vm8, %v8300_v9, %v8302_v19  ;;  %vm19111_vm7 = vmmov %vm19110_vm4 }
 0xeca   :  { %8371 = vmatprep.subr.bf16.mxu0 %v8316_v36  ;;  %12014 = vmatprep.mubr.msk.bf16.mxu1 %vm19099_vm5, %v12664_v22  ;;  %vm19107_vm5 = vmmov %vm19102_vm0 }
 0xecb   :  { %v8324_v17 = vsel %vm19107_vm5, %v8302_v19, %v8304_v35  ;;  %vm19112_vm8 = vmmov %vm19110_vm4 }
 0xecd   :  { %8372 = vmatpush1.bf16.msra.mxu0 %v8315_v58 }
 0xece   :  { %8373 = vmatprep.subr.bf16.mxu0 %v8318_v20 }
 0xed1   :  { %8374 = vmatpush1.bf16.msra.mxu0 %v8317_v49  ;;  %8455 = vmatmul.mubr.bf16.gmra.mrb[68].mxu1 %v12666_v11 }
 0xed2   :  { %8375 = vmatprep.subr.bf16.mxu0 %v8320_v34 }
 0xed5   :  { %8376 = vmatpush1.bf16.msra.mxu0 %v8319_v40 }
 0xed6   :  { %8377 = vmatprep.subr.bf16.mxu0 %v8322_v12  ;;  %v8482_v35 = vpop.permute.xlu1 %8481 }
 0xed8   :  { %v8487_v58 = vpop.permute.xlu0 %8486 }
 0xed9   :  { %8378 = vmatpush1.bf16.msra.mxu0 %v8321_v33 }
 0xeda   :  { %8379 = vmatprep.subr.bf16.mxu0 %v8324_v17  ;;  %v8492_v9 = vpop.permute.xlu1 %8491 }
 0xedd   :  { %8380 = vmatpush1.bf16.msra.mxu0 %v8323_v51 }
 0xee0   :  { %8394 = vmatmul.mubr.bf16.vlgmr.msra.gmra.mrb[132].mxu0 %v12661_v27 }
 0xee1   :  { %12012 = vmatprep.mubr.msk.bf16.mxu0 %vm19109_vm9, %v12664_v22  ;;  %vm19113_vm9 = vmmov %vm19110_vm4 }
 0xee8   :  { %8404 = vmatmul.mubr.bf16.gmra.mrb[136].mxu0 %v12666_v11 }
 0xf13   :  { %v7578_v29 = vpop.f32.mrb[140].mxu0 }
 0xf14   :  { %v7580_v41 = vpop.f32.mrb[141].mxu0  ;;  %v7705_v48 = vadd.f32 %v16792_v24, %v7578_v29 }
 0xf15   :  { %v7581_v47 = vpop.f32.mrb[142].mxu0 }
 0xf16   :  { %v7583_v4 = vpop.f32.mrb[143].mxu0  ;;  %v7708_v37 = vadd.f32 %v16799_v54, %v7581_v47 }
 0xf1b   :  { %v7586_v6 = vpop.f32.mrb[144].mxu0 }
 0xf1c   :  { %v7588_v42 = vpop.f32.mrb[145].mxu0  ;;  %v7713_v25 = vadd.f32 %v16901_v46, %v7586_v6 }
 0xf1d   :  { %v7589_v39 = vpop.f32.mrb[146].mxu0 }
 0xf1e   :  { %v7591_v21 = vpop.f32.mrb[147].mxu0  ;;  %v7716_v28 = vadd.f32 %v16909_v38, %v7589_v39 }
 0xf4b   :  { %v7944_v15 = vpop.f32.mrb[48].mxu1 }
 0xf4c   :  { %v7961_v2 = vadd.f32 %v7944_v15, %v7705_v48  ;;  %v7946_v31 = vpop.f32.mrb[49].mxu1 }
 0xf4d   :  { %v7947_v45 = vpop.f32.mrb[50].mxu1 }
 0xf4e   :  { %v7964_v0 = vadd.f32 %v7947_v45, %v7708_v37  ;;  %v7949_v60 = vpop.f32.mrb[51].mxu1  ;;  %v8497_v37 = vpop.permute.xlu0 %8496 }
 0xf53   :  { %v7952_v3 = vpop.f32.mrb[52].mxu1 }
 0xf54   :  { %v7967_v24 = vadd.f32 %v7952_v3, %v7713_v25  ;;  %v7954_v7 = vpop.f32.mrb[53].mxu1 }
 0xf55   :  { %v7955_v52 = vpop.f32.mrb[54].mxu1 }
 0xf56   :  { %v7970_v59 = vadd.f32 %v7955_v52, %v7716_v28  ;;  %v7957_v54 = vpop.f32.mrb[55].mxu1 }
 0xf73   :  { %v8196_v63 = vpop.f32.mrb[56].mxu1 }
 0xf74   :  { %v8213_v13 = vadd.f32 %v8196_v63, %v7961_v2  ;;  %v8198_v8 = vpop.f32.mrb[57].mxu1 }
 0xf75   :  { %v8199_v46 = vpop.f32.mrb[58].mxu1 }
 0xf76   :  { %v8216_v44 = vadd.f32 %v8199_v46, %v7964_v0  ;;  %v8201_v18 = vpop.f32.mrb[59].mxu1 }
 0xf7b   :  { %v8204_v1 = vpop.f32.mrb[60].mxu1 }
 0xf7c   :  { %v8219_v38 = vadd.f32 %v8204_v1, %v7967_v24  ;;  %v8206_v26 = vpop.f32.mrb[61].mxu1 }
 0xf7d   :  { %v8207_v56 = vpop.f32.mrb[62].mxu1 }
 0xf7e   :  { %v8222_v57 = vadd.f32 %v8207_v56, %v7970_v59  ;;  %v8209_v32 = vpop.f32.mrb[63].mxu1 }
 0xf9c   :  { %v8448_v43 = vpop.f32.mrb[64].mxu1 }
 0xf9d   :  { %v8465_v5 = vadd.f32 %v8448_v43, %v8213_v13  ;;  %v8450_v62 = vpop.f32.mrb[65].mxu1 }
 0xf9e   :  { %v8451_v27 = vpop.f32.mrb[66].mxu1 }
 0xf9f   :  { %v8501_v22 = vadd.f32 %v8482_v35, %v8465_v5  ;;  %v8468_v14 = vadd.f32 %v8451_v27, %v8216_v44  ;;  %v8453_v36 = vpop.f32.mrb[67].mxu1 }
 0xfa1   :  { %vm8513_vm0 = vcmp.ge.f32.partialorder %v8501_v22, 0.0  ;;  %v8525_v20 = vmul.f32 0.2, %v8501_v22  ;;  %v8504_v11 = vadd.f32 %v8487_v58, %v8468_v14 }
 0xfa3   :  { %v8537_v49 = vsel %vm8513_vm0, %v8501_v22, %v8525_v20  ;;  %vm8516_vm10 = vcmp.ge.f32.partialorder %v8504_v11, 0.0  ;;  %v8528_v34 = vmul.f32 0.2, %v8504_v11 }
 0xfa4   :  { %v8456_v19 = vpop.f32.mrb[68].mxu1  ;;  %v8549_v17 = vsel %vm19110_vm4, %v8537_v49, 0.0 }
 0xfa5   :  { %v8540_v40 = vsel %vm8516_vm10, %v8504_v11, %v8528_v34  ;;  %v8471_v12 = vadd.f32 %v8456_v19, %v8219_v38  ;;  %v8458_v33 = vpop.f32.mrb[69].mxu1 }
 0xfa6   :  { %v8552_v51 = vsel %vm19111_vm7, %v8540_v40, 0.0  ;;  %v8459_v29 = vpop.f32.mrb[70].mxu1 }
 0xfa7   :  { %v8507_v41 = vadd.f32 %v8492_v9, %v8471_v12  ;;  %v8474_v48 = vadd.f32 %v8459_v29, %v8222_v57  ;;  %v8561_v47 = vpack.c.bf16 %v8552_v51, %v8549_v17  ;;  %v8461_v4 = vpop.f32.mrb[71].mxu1 }
 0xfa9   :  { %vm8519_vm15 = vcmp.ge.f32.partialorder %v8507_v41, 0.0  ;;  %v8531_v6 = vmul.f32 0.2, %v8507_v41  ;;  %v8510_v42 = vadd.f32 %v8497_v37, %v8474_v48  ;;  %8575 = vrot.lane.b32.xlu1 %v8561_v47, %s12788_s1  ;;  %v8734_v48 = vld [vmem:[#allocation2 + $0x18] sm:$0xff] }
 0xfaa   :  { %v8738_v47 = vld [vmem:[#allocation2 + $0x38] sm:$0xff] }
 0xfab   :  { %v8543_v25 = vsel %vm8519_vm15, %v8507_v41, %v8531_v6  ;;  %vm8522_vm5 = vcmp.ge.f32.partialorder %v8510_v42, 0.0  ;;  %v8534_v39 = vmul.f32 0.2, %v8510_v42 }
 0xfac   :  { %v8555_v28 = vsel %vm19112_vm8, %v8543_v25, 0.0 }
 0xfad   :  { %v8546_v21 = vsel %vm8522_vm5, %v8510_v42, %v8534_v39 }
 0xfae   :  { %v8558_v15 = vsel %vm19113_vm9, %v8546_v21, 0.0 }
 0xfaf   :  { %v8564_v2 = vpack.c.bf16 %v8558_v15, %v8555_v28 }
 0xfb3   :  { %v8395_v31 = vpop.f32.mrb[132].mxu0 }
 0xfb4   :  { %v8499_v45 = vadd.f32 %v8482_v35, %v8395_v31  ;;  %v8397_v0 = vpop.f32.mrb[133].mxu0 }
 0xfb5   :  { %v8500_v60 = vadd.f32 %v8482_v35, %v8397_v0  ;;  %v8399_v3 = vpop.f32.mrb[134].mxu0 }
 0xfb6   :  { %vm8511_vm0 = vcmp.ge.f32.partialorder %v8499_v45, 0.0  ;;  %v8523_v24 = vmul.f32 0.2, %v8499_v45  ;;  %v8502_v7 = vadd.f32 %v8487_v58, %v8399_v3  ;;  %v8401_v52 = vpop.f32.mrb[135].mxu0 }
 0xfb7   :  { %vm8512_vm10 = vcmp.ge.f32.partialorder %v8500_v60, 0.0  ;;  %v8524_v59 = vmul.f32 0.2, %v8500_v60  ;;  %v8503_v54 = vadd.f32 %v8487_v58, %v8401_v52 }
 0xfb8   :  { %v8535_v63 = vsel %vm8511_vm0, %v8499_v45, %v8523_v24  ;;  %vm8514_vm4 = vcmp.ge.f32.partialorder %v8502_v7, 0.0  ;;  %v8526_v13 = vmul.f32 0.2, %v8502_v7  ;;  %vm19114_vm0 = vcmask 719872  }
 0xfb9   :  { %v8536_v8 = vsel %vm8512_vm10, %v8500_v60, %v8524_v59  ;;  %vm8515_vm7 = vcmp.ge.f32.partialorder %v8503_v54, 0.0  ;;  %v8527_v46 = vmul.f32 0.2, %v8503_v54  ;;  %v8547_v18 = vsel %vm13172_vm13, %v8535_v63, 0.0  ;;  %vm19115_vm10 = vmmov %vm19114_vm0 }
 0xfba   :  { %v8538_v44 = vsel %vm8514_vm4, %v8502_v7, %v8526_v13  ;;  %v8548_v56 = vsel %vm86_vm6, %v8536_v8, 0.0  ;;  %vm19116_vm4 = vmmov %vm19114_vm0 }
 0xfbb   :  { %v8550_v1 = vsel %vm13172_vm13, %v8538_v44, 0.0  ;;  %v8539_v38 = vsel %vm8515_vm7, %v8503_v54, %v8527_v46  ;;  %v8405_v26 = vpop.f32.mrb[136].mxu0  ;;  %vm19117_vm7 = vmmov %vm19114_vm0 }
 0xfbc   :  { %v8559_v57 = vpack.c.bf16 %v8550_v1, %v8547_v18  ;;  %v8551_v32 = vsel %vm86_vm6, %v8539_v38, 0.0  ;;  %v8505_v43 = vadd.f32 %v8492_v9, %v8405_v26  ;;  %v8407_v5 = vpop.f32.mrb[137].mxu0 }
 0xfbd   :  { %v8560_v62 = vpack.c.bf16 %v8551_v32, %v8548_v56  ;;  %v8506_v35 = vadd.f32 %v8492_v9, %v8407_v5  ;;  %v8409_v27 = vpop.f32.mrb[138].mxu0 }
 0xfbe   :  { %vm8517_vm15 = vcmp.ge.f32.partialorder %v8505_v43, 0.0  ;;  %v8529_v22 = vmul.f32 0.2, %v8505_v43  ;;  %v8508_v14 = vadd.f32 %v8497_v37, %v8409_v27  ;;  %v8411_v36 = vpop.f32.mrb[139].mxu0  ;;  %8571 = vrot.lane.b32.xlu1 %v8559_v57, %s12788_s1 }
 0xfbf   :  { %vm8518_vm5 = vcmp.ge.f32.partialorder %v8506_v35, 0.0  ;;  %v8530_v58 = vmul.f32 0.2, %v8506_v35  ;;  %v8509_v20 = vadd.f32 %v8497_v37, %v8411_v36  ;;  %8573 = vrot.lane.b32.xlu0 %v8560_v62, %s12788_s1 }
 0xfc0   :  { %v8541_v11 = vsel %vm8517_vm15, %v8505_v43, %v8529_v22  ;;  %vm8520_vm8 = vcmp.ge.f32.partialorder %v8508_v14, 0.0  ;;  %v8532_v49 = vmul.f32 0.2, %v8508_v14  ;;  %vm19118_vm15 = vcmask 1039360  }
 0xfc1   :  { %v8542_v34 = vsel %vm8518_vm5, %v8506_v35, %v8530_v58  ;;  %vm8521_vm9 = vcmp.ge.f32.partialorder %v8509_v20, 0.0  ;;  %v8533_v19 = vmul.f32 0.2, %v8509_v20  ;;  %v8553_v12 = vsel %vm13172_vm13, %v8541_v11, 0.0  ;;  %vm19119_vm5 = vmmov %vm19118_vm15 }
 0xfc2   :  { %v8544_v40 = vsel %vm8520_vm8, %v8508_v14, %v8532_v49  ;;  %v8554_v17 = vsel %vm86_vm6, %v8542_v34, 0.0  ;;  %vm19120_vm8 = vcmask 261120  }
 0xfc3   :  { %v8556_v33 = vsel %vm13172_vm13, %v8544_v40, 0.0  ;;  %v8545_v9 = vsel %vm8521_vm9, %v8509_v20, %v8533_v19  ;;  %vm19121_vm9 = vmmov %vm19120_vm8 }
 0xfc4   :  { %v8562_v51 = vpack.c.bf16 %v8556_v33, %v8553_v12  ;;  %v8557_v29 = vsel %vm86_vm6, %v8545_v9, 0.0 }
 0xfc5   :  { %v8563_v41 = vpack.c.bf16 %v8557_v29, %v8554_v17 }
 0xfc6   :  { %8577 = vrot.lane.b32.xlu0 %v8562_v51, %s12788_s1 }
 0xfc7   :  { %8579 = vrot.lane.b32.xlu1 %v8563_v41, %s12788_s1 }
 0xfca   :  { %8581 = vrot.lane.b32.xlu0 %v8564_v2, %s12788_s1 }
 0xfcb   :  { %8753 = vrot.lane.b32.xlu1 %v8734_v48, %s12780_s29 }
 0xfcf   :  { %8761 = vrot.lane.b32.xlu1 %v8738_v47, %s12780_s29 }
0x101b   :  { %v8576_v4 = vpop.permute.xlu1 %8575 }
0x1030   :  { %v8572_v37 = vpop.permute.xlu1 %8571 }
0x1031   :  { %8593 = vst.msk [vmem:[#allocation2] sm:$0xff] %vm1322_vm14, %v8572_v37  ;;  %v8574_v6 = vpop.permute.xlu0 %8573 }
0x1032   :  { %v8584_v42 = vsel %vm59_vm11, %v8574_v6, %v8576_v4  ;;  %v17030_v31 = vsel %vm59_vm11, %v8572_v37, %v8574_v6 }
0x1033   :  { %8595 = vst.msk [vmem:[#allocation2 + $0x10] sm:$0xff] %vm1325_vm12, %v8584_v42 }
0x1038   :  { %v8578_v25 = vpop.permute.xlu0 %8577  ;;  %v17013_v39 = vld [vmem:[#allocation2] sm:$0xff] }
0x1039   :  { %8596 = vst.msk [vmem:[#allocation2 + $0x20] sm:$0xff] %vm1322_vm14, %v8578_v25  ;;  %8747 = vrot.lane.b32.xlu0 %v17013_v39, %s12780_s29  ;;  %8623 = vrot.lane.b32.xlu1 %v17013_v39, %s12779_s23  ;;  %v8580_v28 = vpop.permute.xlu1 %8579 }
0x103a   :  { %v8613_v21 = vld [vmem:[#allocation2 + $0x10] sm:$0xff]  ;;  %v17057_v60 = vsel %vm59_vm11, %v8578_v25, %v8580_v28 }
0x103b   :  { %8607 = vst.msk [vmem:[#allocation3 + $0x10] sm:$0xff] %vm122_vm1, %v8613_v21 }
0x103c   :  { %v8582_v15 = vpop.permute.xlu0 %8581 }
0x103d   :  { %v8586_v2 = vsel %vm59_vm11, %v8580_v28, %v8582_v15  ;;  %8627 = vrot.lane.b32.xlu0 %v8613_v21, %s12779_s23  ;;  %8663 = vrot.lane.b32.xlu1 %v17013_v39, %s12781_s30  ;;  %v8754_v7 = vpop.permute.xlu1 %8753 }
0x103e   :  { %8598 = vst.msk [vmem:[#allocation2 + $0x30] sm:$0xff] %vm1325_vm12, %v8586_v2 }
0x1040   :  { %v17039_v0 = vld [vmem:[#allocation2 + $0x20] sm:$0xff] }
0x1041   :  { %8667 = vrot.lane.b32.xlu0 %v8613_v21, %s12781_s30  ;;  %8703 = vrot.lane.b32.xlu1 %v17013_v39, %s12778_s22  ;;  %v17092_v52 = vpop.permute.xlu1 %8761 }
0x1042   :  { %v17072_v3 = vld [vmem:[#allocation3 + $0x10] sm:$0xff] }
0x1045   :  { %8707 = vrot.lane.b32.xlu0 %v8613_v21, %s12778_s22  ;;  %8625 = vrot.lane.b32.xlu1 %v17030_v31, %s12779_s23  ;;  %v8616_v45 = vld [vmem:[#allocation2 + $0x30] sm:$0xff] }
0x1046   :  { %8610 = vst.msk [vmem:[#allocation3 + $0x28] sm:$0xff] %vm122_vm1, %v8616_v45 }
0x1049   :  { %8751 = vrot.lane.b32.xlu0 %v8613_v21, %s12780_s29  ;;  %8665 = vrot.lane.b32.xlu1 %v17030_v31, %s12781_s30 }
0x104d   :  { %8629 = vrot.lane.b32.xlu0 %v17039_v0, %s12779_s23  ;;  %8705 = vrot.lane.b32.xlu1 %v17030_v31, %s12778_s22  ;;  %v17082_v24 = vld [vmem:[#allocation3 + $0x28] sm:$0xff] }
0x1051   :  { %8669 = vrot.lane.b32.xlu0 %v17039_v0, %s12781_s30  ;;  %8749 = vrot.lane.b32.xlu1 %v17030_v31, %s12780_s29 }
0x1055   :  { %8709 = vrot.lane.b32.xlu0 %v17039_v0, %s12778_s22  ;;  %8633 = vrot.lane.b32.xlu1 %v8616_v45, %s12779_s23 }
0x1059   :  { %8755 = vrot.lane.b32.xlu0 %v17039_v0, %s12780_s29  ;;  %8867 = vrot.lane.b32.xlu1 %v17013_v39, %s12783_s16 }
0x105d   :  { %8673 = vrot.lane.b32.xlu1 %v8616_v45, %s12781_s30  ;;  %8631 = vrot.lane.b32.xlu0 %v17057_v60, %s12779_s23 }
0x1061   :  { %9233 = vrot.lane.b32.xlu1 %v17013_v39, %s12784_s21  ;;  %8671 = vrot.lane.b32.xlu0 %v17057_v60, %s12781_s30 }
0x1065   :  { %8713 = vrot.lane.b32.xlu1 %v8616_v45, %s12778_s22  ;;  %8711 = vrot.lane.b32.xlu0 %v17057_v60, %s12778_s22 }
0x1069   :  { %8757 = vrot.lane.b32.xlu1 %v17057_v60, %s12780_s29  ;;  %8759 = vrot.lane.b32.xlu0 %v8616_v45, %s12780_s29 }
0x106d   :  { %8869 = vrot.lane.b32.xlu1 %v17030_v31, %s12783_s16  ;;  %8871 = vrot.lane.b32.xlu0 %v17072_v3, %s12783_s16 }
0x1071   :  { %9235 = vrot.lane.b32.xlu1 %v17030_v31, %s12784_s21  ;;  %9237 = vrot.lane.b32.xlu0 %v17072_v3, %s12784_s21 }
0x1075   :  { %8877 = vrot.lane.b32.xlu1 %v17082_v24, %s12783_s16  ;;  %8873 = vrot.lane.b32.xlu0 %v17039_v0, %s12783_s16 }
0x1079   :  { %8875 = vrot.lane.b32.xlu0 %v17057_v60, %s12783_s16 }
0x107d   :  { %9241 = vrot.lane.b32.xlu0 %v17057_v60, %s12784_s21 }
0x10ab   :  { %v8748_v59 = vpop.permute.xlu0 %8747  ;;  %v8624_v54 = vpop.permute.xlu1 %8623 }
0x10af   :  { %v8628_v63 = vpop.permute.xlu0 %8627  ;;  %v8664_v13 = vpop.permute.xlu1 %8663 }
0x10b0   :  { %8647 = vst.msk [vmem:[#allocation3 + $0x40] sm:$0xff] %vm122_vm1, %v8628_v63 }
0x10b3   :  { %v8668_v8 = vpop.permute.xlu0 %8667  ;;  %v8704_v46 = vpop.permute.xlu1 %8703 }
0x10b4   :  { %8687 = vst.msk [vmem:[#allocation3 + $0x70] sm:$0xff] %vm122_vm1, %v8668_v8 }
0x10b7   :  { %v8708_v44 = vpop.permute.xlu0 %8707  ;;  %v8626_v18 = vpop.permute.xlu1 %8625  ;;  %v17096_v1 = vld [vmem:[#allocation3 + $0x40] sm:$0xff] }
0x10b8   :  { %8727 = vst.msk [vmem:[#allocation3 + $0xa0] sm:$0xff] %vm122_vm1, %v8708_v44  ;;  %v17100_v38 = vsel %vm100_vm2, %v8626_v18, %v8628_v63  ;;  %8883 = vrot.lane.b32.xlu0 %v17096_v1, %s12783_s16  ;;  %v17109_v32 = vsel %vm100_vm2, %v8624_v54, %v8626_v18 }
0x10b9   :  { %8881 = vrot.lane.b32.xlu1 %v17100_v38, %s12783_s16 }
0x10bb   :  { %v8752_v26 = vpop.permute.xlu0 %8751  ;;  %v8666_v56 = vpop.permute.xlu1 %8665  ;;  %v17106_v57 = vld [vmem:[#allocation3 + $0x70] sm:$0xff] }
0x10bc   :  { %v8765_v43 = vsel %vm133_vm3, %v8752_v26, %v8754_v7  ;;  %8895 = vrot.lane.b32.xlu0 %v17106_v57, %s12783_s16  ;;  %v17120_v27 = vsel %vm19114_vm0, %v8666_v56, %v8668_v8  ;;  %v17127_v36 = vsel %vm19115_vm10, %v8664_v13, %v8666_v56  ;;  %v12669_v8 = vld [vmem:[%s18706_s6 + $0x24] ss:$8 sps:$4 sm:$0xff]   ;;  %vm19122_vm0 = vmmov %vm19119_vm5 }
0x10bd   :  { %8777 = vst.msk [vmem:[#allocation3 + $0xd0] sm:$0xff] %vm122_vm1, %v8765_v43  ;;  %8879 = vrot.lane.b32.xlu1 %v17109_v32, %s12783_s16  ;;  %12025 = vmatprep.mubr.msk.bf16.mxu1 %vm19120_vm8, %v12669_v8  ;;  %vm19123_vm10 = vmmov %vm19122_vm0 }
0x10be   :  { %12023 = vmatprep.mubr.msk.bf16.mxu0 %vm19121_vm9, %v12669_v8  ;;  %vm19128_vm8 = vmmov %vm19122_vm0 }
0x10bf   :  { %v8630_v5 = vpop.permute.xlu0 %8629  ;;  %v8706_v62 = vpop.permute.xlu1 %8705  ;;  %v17117_v35 = vld [vmem:[#allocation3 + $0xa0] sm:$0xff]  ;;  %vm19129_vm9 = vmmov %vm19122_vm0 }
0x10c0   :  { %8907 = vrot.lane.b32.xlu0 %v17117_v35, %s12783_s16  ;;  %v17136_v49 = vsel %vm122_vm1, %v8706_v62, %v8708_v44  ;;  %v17146_v40 = vsel %vm122_vm1, %v8704_v46, %v8706_v62 }
0x10c1   :  { %8893 = vrot.lane.b32.xlu1 %v17120_v27, %s12783_s16 }
0x10c3   :  { %v8670_v22 = vpop.permute.xlu0 %8669  ;;  %v8750_v14 = vpop.permute.xlu1 %8749 }
0x10c4   :  { %v17129_v58 = vld [vmem:[#allocation3 + $0xd0] sm:$0xff]  ;;  %v17153_v9 = vsel %vm133_vm3, %v8750_v14, %v8752_v26  ;;  %v17166_v41 = vsel %vm133_vm3, %v8748_v59, %v8750_v14 }
0x10c5   :  { %8919 = vrot.lane.b32.xlu0 %v17129_v58, %s12783_s16  ;;  %8891 = vrot.lane.b32.xlu1 %v17127_v36, %s12783_s16 }
0x10c7   :  { %v8710_v20 = vpop.permute.xlu0 %8709  ;;  %v8634_v11 = vpop.permute.xlu1 %8633 }
0x10c8   :  { %8650 = vst.msk [vmem:[#allocation3 + $0x58] sm:$0xff] %vm122_vm1, %v8634_v11 }
0x10c9   :  { %9239 = vrot.lane.b32.xlu0 %v17039_v0, %s12784_s21  ;;  %8905 = vrot.lane.b32.xlu1 %v17136_v49, %s12783_s16 }
0x10cb   :  { %v17143_v34 = vpop.permute.xlu0 %8755  ;;  %v8868_v19 = vpop.permute.xlu1 %8867 }
0x10cd   :  { %9249 = vrot.lane.b32.xlu0 %v17096_v1, %s12784_s21  ;;  %8903 = vrot.lane.b32.xlu1 %v17146_v40, %s12783_s16 }
0x10cf   :  { %v8632_v12 = vpop.permute.xlu0 %8631  ;;  %v8674_v33 = vpop.permute.xlu1 %8673  ;;  %v17179_v6 = vld [vmem:[#allocation3 + $0x58] sm:$0xff] }
0x10d0   :  { %v17156_v17 = vsel %vm100_vm2, %v8632_v12, %v8634_v11  ;;  %8690 = vst.msk [vmem:[#allocation3 + $0x88] sm:$0xff] %vm122_vm1, %v8674_v33  ;;  %v17169_v48 = vsel %vm100_vm2, %v8630_v5, %v8632_v12 }
0x10d1   :  { %8917 = vrot.lane.b32.xlu1 %v17153_v9, %s12783_s16  ;;  %8887 = vrot.lane.b32.xlu0 %v17156_v17, %s12783_s16 }
0x10d3   :  { %v8672_v51 = vpop.permute.xlu0 %8671  ;;  %v17163_v29 = vpop.permute.xlu1 %9233 }
0x10d4   :  { %v17176_v37 = vsel %vm19116_vm4, %v8672_v51, %v8674_v33  ;;  %v17186_v21 = vsel %vm19117_vm7, %v8670_v22, %v8672_v51  ;;  %vm19124_vm4 = vmmov %vm19122_vm0 }
0x10d5   :  { %8915 = vrot.lane.b32.xlu1 %v17166_v41, %s12783_s16  ;;  %8885 = vrot.lane.b32.xlu0 %v17169_v48, %s12783_s16  ;;  %vm19125_vm7 = vmmov %vm19122_vm0 }
0x10d7   :  { %v8712_v47 = vpop.permute.xlu0 %8711  ;;  %v8714_v4 = vpop.permute.xlu1 %8713  ;;  %v17198_v59 = vld [vmem:[#allocation3 + $0x88] sm:$0xff] }
0x10d8   :  { %8730 = vst.msk [vmem:[#allocation3 + $0xb8] sm:$0xff] %vm122_vm1, %v8714_v4  ;;  %v17212_v13 = vsel %vm122_vm1, %v8710_v20, %v8712_v47 }
0x10d9   :  { %8889 = vrot.lane.b32.xlu1 %v17179_v6, %s12783_s16  ;;  %8899 = vrot.lane.b32.xlu0 %v17176_v37, %s12783_s16 }
0x10db   :  { %v8760_v42 = vpop.permute.xlu0 %8759  ;;  %v8758_v25 = vpop.permute.xlu1 %8757 }
0x10dc   :  { %v8768_v28 = vsel %vm133_vm3, %v8760_v42, %v17092_v52  ;;  %v17201_v52 = vsel %vm122_vm1, %v8712_v47, %v8714_v4  ;;  %v17227_v26 = vsel %vm133_vm3, %v8758_v25, %v8760_v42  ;;  %v17243_v22 = vsel %vm133_vm3, %v17143_v34, %v8758_v25 }
0x10dd   :  { %8780 = vst.msk [vmem:[#allocation3 + $0xe8] sm:$0xff] %vm122_vm1, %v8768_v28  ;;  %9243 = vrot.lane.b32.xlu1 %v17082_v24, %s12784_s21  ;;  %8897 = vrot.lane.b32.xlu0 %v17186_v21, %s12783_s16 }
0x10df   :  { %v8872_v15 = vpop.permute.xlu0 %8871  ;;  %v8870_v2 = vpop.permute.xlu1 %8869  ;;  %v17222_v18 = vld [vmem:[#allocation3 + $0xb8] sm:$0xff] }
0x10e0   :  { %9037 = vmatpush1.bf16.msra.mxu1 %v8872_v15  ;;  %v8928_v45 = vsel %vm19118_vm15, %v8870_v2, %v8872_v15  ;;  %v8927_v7 = vsel %vm19119_vm5, %v8868_v19, %v8870_v2  ;;  %vm19126_vm15 = vmmov %vm19122_vm0 }
0x10e1   :  { %8983 = vmatprep.subr.bf16.mxu0 %v8928_v45  ;;  %9038 = vmatprep.subr.bf16.mxu1 %v19036_v50  ;;  %vm19127_vm5 = vmmov %vm19122_vm0 }
0x10e2   :  { %8984 = vmatpush1.bf16.msra.mxu0 %v8927_v7  ;;  %8901 = vrot.lane.b32.xlu1 %v17198_v59, %s12783_s16 }
0x10e3   :  { %v17205_v54 = vpop.permute.xlu0 %9237  ;;  %v17207_v63 = vpop.permute.xlu1 %9235  ;;  %8911 = vrot.lane.b32.xlu0 %v17201_v52, %s12783_s16 }
0x10e4   :  { %v17239_v62 = vld [vmem:[#allocation3 + $0xe8] sm:$0xff] }
0x10e6   :  { %9247 = vrot.lane.b32.xlu1 %v17100_v38, %s12784_s21 }
0x10e7   :  { %v8874_v46 = vpop.permute.xlu0 %8873  ;;  %v8878_v44 = vpop.permute.xlu1 %8877  ;;  %8909 = vrot.lane.b32.xlu0 %v17212_v13, %s12783_s16 }
0x10e8   :  { %9039 = vmatpush1.bf16.msra.mxu1 %v8878_v44 }
0x10e9   :  { %9040 = vmatprep.subr.bf16.mxu1 %v19036_v50 }
0x10ea   :  { %8913 = vrot.lane.b32.xlu1 %v17222_v18, %s12783_s16 }
0x10eb   :  { %v8876_v56 = vpop.permute.xlu0 %8875  ;;  %8923 = vrot.lane.b32.xlu0 %v17227_v26, %s12783_s16 }
0x10ec   :  { %v8930_v43 = vsel %vm19122_vm0, %v8876_v56, %v8878_v44  ;;  %v8929_v5 = vsel %vm19123_vm10, %v8874_v46, %v8876_v56  ;;  %vm19130_vm10 = vmmov %vm19122_vm0 }
0x10ed   :  { %8985 = vmatprep.subr.bf16.mxu0 %v8930_v43 }
0x10ee   :  { %8986 = vmatpush1.bf16.msra.mxu0 %v8929_v5  ;;  %9245 = vrot.lane.b32.xlu1 %v17109_v32, %s12784_s21 }
0x10ef   :  { %9261 = vrot.lane.b32.xlu0 %v17106_v57, %s12784_s21  ;;  %v17297_v14 = vpop.permute.xlu0 %9241 }
0x10f2   :  { %8925 = vrot.lane.b32.xlu1 %v17239_v62, %s12783_s16 }
0x10f3   :  { %8921 = vrot.lane.b32.xlu0 %v17243_v22, %s12783_s16 }
0x10f6   :  { %9255 = vrot.lane.b32.xlu1 %v17179_v6, %s12784_s21 }
0x10f7   :  { %9273 = vrot.lane.b32.xlu0 %v17117_v35, %s12784_s21 }
0x10fa   :  { %9259 = vrot.lane.b32.xlu1 %v17120_v27, %s12784_s21 }
0x10fb   :  { %9285 = vrot.lane.b32.xlu0 %v17129_v58, %s12784_s21 }
0x10fe   :  { %9257 = vrot.lane.b32.xlu1 %v17127_v36, %s12784_s21 }
0x10ff   :  { %9489 = vrot.lane.b32.xlu0 %v17072_v3, %s12785_s8 }
0x1102   :  { %9267 = vrot.lane.b32.xlu1 %v17198_v59, %s12784_s21 }
0x1103   :  { %9493 = vrot.lane.b32.xlu0 %v17057_v60, %s12785_s8 }
0x1106   :  { %9271 = vrot.lane.b32.xlu1 %v17136_v49, %s12784_s21 }
0x1107   :  { %9491 = vrot.lane.b32.xlu0 %v17039_v0, %s12785_s8 }
0x110a   :  { %9269 = vrot.lane.b32.xlu1 %v17146_v40, %s12784_s21 }
0x110b   :  { %9501 = vrot.lane.b32.xlu0 %v17096_v1, %s12785_s8 }
0x110e   :  { %9279 = vrot.lane.b32.xlu1 %v17222_v18, %s12784_s21 }
0x110f   :  { %9513 = vrot.lane.b32.xlu0 %v17106_v57, %s12785_s8 }
0x1112   :  { %9283 = vrot.lane.b32.xlu1 %v17153_v9, %s12784_s21 }
0x1113   :  { %9525 = vrot.lane.b32.xlu0 %v17117_v35, %s12785_s8 }
0x1116   :  { %9281 = vrot.lane.b32.xlu1 %v17166_v41, %s12784_s21 }
0x1117   :  { %9253 = vrot.lane.b32.xlu0 %v17156_v17, %s12784_s21 }
0x111a   :  { %9487 = vrot.lane.b32.xlu1 %v17030_v31, %s12785_s8 }
0x111b   :  { %9251 = vrot.lane.b32.xlu0 %v17169_v48, %s12784_s21 }
0x111e   :  { %9485 = vrot.lane.b32.xlu1 %v17013_v39, %s12785_s8 }
0x111f   :  { %9265 = vrot.lane.b32.xlu0 %v17176_v37, %s12784_s21 }
0x1122   :  { %9495 = vrot.lane.b32.xlu1 %v17082_v24, %s12785_s8 }
0x1123   :  { %9263 = vrot.lane.b32.xlu0 %v17186_v21, %s12784_s21 }
0x1126   :  { %9499 = vrot.lane.b32.xlu1 %v17100_v38, %s12785_s8 }
0x1127   :  { %9277 = vrot.lane.b32.xlu0 %v17201_v52, %s12784_s21 }
0x112a   :  { %v8884_v20 = vpop.permute.xlu0 %8883  ;;  %9497 = vrot.lane.b32.xlu1 %v17109_v32, %s12785_s8 }
0x112b   :  { %9041 = vmatpush1.bf16.msra.mxu1 %v8884_v20  ;;  %9275 = vrot.lane.b32.xlu0 %v17212_v13, %s12784_s21  ;;  %v8882_v11 = vpop.permute.xlu1 %8881 }
0x112c   :  { %v8932_v34 = vsel %vm19124_vm4, %v8882_v11, %v8884_v20  ;;  %9042 = vmatprep.subr.bf16.mxu1 %v19036_v50  ;;  %vm19131_vm4 = vmmov %vm19122_vm0 }
0x112d   :  { %8987 = vmatprep.subr.bf16.mxu0 %v8932_v34 }
0x112e   :  { %v8896_v19 = vpop.permute.xlu0 %8895  ;;  %9507 = vrot.lane.b32.xlu1 %v17179_v6, %s12785_s8 }
0x112f   :  { %9289 = vrot.lane.b32.xlu0 %v17227_v26, %s12784_s21  ;;  %v8880_v12 = vpop.permute.xlu1 %8879 }
0x1130   :  { %v8931_v33 = vsel %vm19125_vm7, %v8880_v12, %v8882_v11  ;;  %vm19132_vm7 = vmmov %vm19122_vm0 }
0x1131   :  { %8988 = vmatpush1.bf16.msra.mxu0 %v8931_v33 }
0x1132   :  { %v8908_v51 = vpop.permute.xlu0 %8907  ;;  %9511 = vrot.lane.b32.xlu1 %v17120_v27, %s12785_s8 }
0x1133   :  { %9537 = vrot.lane.b32.xlu0 %v17129_v58, %s12785_s8  ;;  %v8894_v47 = vpop.permute.xlu1 %8893 }
0x1134   :  { %v8936_v20 = vsel %vm19128_vm8, %v8894_v47, %v8896_v19  ;;  %vm19135_vm8 = vmmov %vm19122_vm0 }
0x1136   :  { %9509 = vrot.lane.b32.xlu1 %v17127_v36, %s12785_s8 }
0x1137   :  { %v17320_v4 = vpop.permute.xlu0 %8919  ;;  %9741 = vrot.lane.b32.xlu0 %v17072_v3, %s12786_s24  ;;  %v8892_v42 = vpop.permute.xlu1 %8891 }
0x1138   :  { %v8935_v12 = vsel %vm19129_vm9, %v8892_v42, %v8894_v47  ;;  %vm19136_vm9 = vmmov %vm19122_vm0 }
0x113a   :  { %9519 = vrot.lane.b32.xlu1 %v17198_v59, %s12785_s8 }
0x113b   :  { %v17326_v25 = vpop.permute.xlu0 %9239  ;;  %9745 = vrot.lane.b32.xlu0 %v17057_v60, %s12786_s24  ;;  %v8906_v28 = vpop.permute.xlu1 %8905 }
0x113e   :  { %9523 = vrot.lane.b32.xlu1 %v17136_v49, %s12785_s8 }
0x113f   :  { %v17332_v15 = vpop.permute.xlu0 %9249  ;;  %9743 = vrot.lane.b32.xlu0 %v17039_v0, %s12786_s24  ;;  %v8904_v2 = vpop.permute.xlu1 %8903 }
0x1142   :  { %9291 = vrot.lane.b32.xlu1 %v17239_v62, %s12784_s21 }
0x1143   :  { %9287 = vrot.lane.b32.xlu0 %v17243_v22, %s12784_s21  ;;  %v8888_v45 = vpop.permute.xlu0 %8887  ;;  %v17340_v7 = vpop.permute.xlu1 %8917 }
0x1146   :  { %9521 = vrot.lane.b32.xlu1 %v17146_v40, %s12785_s8 }
0x1147   :  { %9753 = vrot.lane.b32.xlu0 %v17096_v1, %s12786_s24  ;;  %v8886_v8 = vpop.permute.xlu0 %8885  ;;  %v8916_v46 = vpop.permute.xlu1 %8915 }
0x1148   :  { %v8933_v5 = vsel %vm19127_vm5, %v8886_v8, %v8888_v45  ;;  %vm19134_vm5 = vmmov %vm19122_vm0 }
0x114a   :  { %9531 = vrot.lane.b32.xlu1 %v17222_v18, %s12785_s8 }
0x114b   :  { %9505 = vrot.lane.b32.xlu0 %v17156_v17, %s12785_s8  ;;  %v8900_v44 = vpop.permute.xlu0 %8899  ;;  %v8890_v56 = vpop.permute.xlu1 %8889 }
0x114c   :  { %9043 = vmatpush1.bf16.msra.mxu1 %v8890_v56  ;;  %v8934_v43 = vsel %vm19126_vm15, %v8888_v45, %v8890_v56  ;;  %vm19133_vm15 = vmmov %vm19122_vm0 }
0x114d   :  { %8989 = vmatprep.subr.bf16.mxu0 %v8934_v43  ;;  %9044 = vmatprep.subr.bf16.mxu1 %v19036_v50  ;;  %v8939_v43 = vsel %vm19132_vm7, %v8904_v2, %v8906_v28 }
0x114e   :  { %9535 = vrot.lane.b32.xlu1 %v17153_v9, %s12785_s8  ;;  %8990 = vmatpush1.bf16.msra.mxu0 %v8933_v5 }
0x114f   :  { %9503 = vrot.lane.b32.xlu0 %v17169_v48, %s12785_s8  ;;  %v8898_v11 = vpop.permute.xlu0 %8897  ;;  %8991 = vmatprep.subr.bf16.mxu0 %v8936_v20  ;;  %v17358_v34 = vpop.permute.xlu1 %9243 }
0x1150   :  { %9045 = vmatpush1.bf16.msra.mxu1 %v8896_v19  ;;  %v8937_v56 = vsel %vm19130_vm10, %v8898_v11, %v8900_v44  ;;  %v8940_v19 = vsel %vm19131_vm4, %v8906_v28, %v8908_v51  ;;  %vm19137_vm10 = vmmov %vm19122_vm0  ;;  %vm19138_vm4 = vcmask 261120  }
0x1151   :  { %9046 = vmatprep.subr.bf16.mxu1 %v19036_v50  ;;  %vm19139_vm7 = vmmov %vm19138_vm4 }
0x1152   :  { %9533 = vrot.lane.b32.xlu1 %v17166_v41, %s12785_s8  ;;  %8992 = vmatpush1.bf16.msra.mxu0 %v8935_v12  ;;  %v8943_v12 = vsel %vm19136_vm9, %v8916_v46, %v17340_v7 }
0x1153   :  { %9517 = vrot.lane.b32.xlu0 %v17176_v37, %s12785_s8 }
0x1154   :  { %v8902_v33 = vpop.permute.xlu1 %8901 }
0x1155   :  { %v8912_v45 = vpop.permute.xlu0 %8911  ;;  %9047 = vmatpush1.bf16.msra.mxu1 %v8902_v33  ;;  %v8938_v8 = vsel %vm19122_vm0, %v8900_v44, %v8902_v33 }
0x1156   :  { %9739 = vrot.lane.b32.xlu1 %v17030_v31, %s12786_s24  ;;  %8993 = vmatprep.subr.bf16.mxu0 %v8938_v8 }
0x1157   :  { %9515 = vrot.lane.b32.xlu0 %v17186_v21, %s12785_s8  ;;  %8994 = vmatpush1.bf16.msra.mxu0 %v8937_v56 }
0x1158   :  { %8995 = vmatprep.subr.bf16.mxu0 %v8940_v19  ;;  %9048 = vmatprep.subr.bf16.mxu1 %v19036_v50  ;;  %v17374_v47 = vpop.permute.xlu1 %9247  ;;  %v12670_v19 = vld [vmem:[%s18706_s6 + $0x34] ss:$8 sps:$4 sm:$0xff]  }
0x1159   :  { %v8910_v42 = vpop.permute.xlu0 %8909  ;;  %9049 = vmatpush1.bf16.msra.mxu1 %v8908_v51  ;;  %v8944_v51 = vsel %vm19135_vm8, %v17340_v7, %v17320_v4  ;;  %vm19142_vm8 = vcmask 1031168  }
0x115a   :  { %9737 = vrot.lane.b32.xlu1 %v17013_v39, %s12786_s24  ;;  %9050 = vmatprep.subr.bf16.mxu1 %v19036_v50  ;;  %v8941_v11 = vsel %vm19134_vm5, %v8910_v42, %v8912_v45  ;;  %vm19141_vm5 = vmmov %vm19138_vm4 }
0x115b   :  { %9529 = vrot.lane.b32.xlu0 %v17201_v52, %s12785_s8  ;;  %8996 = vmatpush1.bf16.msra.mxu0 %v8939_v43  ;;  %vm19143_vm9 = vmmov %vm19142_vm8 }
0x115c   :  { %v8914_v44 = vpop.permute.xlu1 %8913 }
0x115d   :  { %v8924_v5 = vpop.permute.xlu0 %8923  ;;  %9051 = vmatpush1.bf16.msra.mxu1 %v8914_v44  ;;  %v8942_v20 = vsel %vm19133_vm15, %v8912_v45, %v8914_v44  ;;  %vm19140_vm15 = vmmov %vm19138_vm4 }
0x115e   :  { %9747 = vrot.lane.b32.xlu1 %v17082_v24, %s12786_s24  ;;  %8997 = vmatprep.subr.bf16.mxu0 %v8942_v20 }
0x115f   :  { %9527 = vrot.lane.b32.xlu0 %v17212_v13, %s12785_s8  ;;  %8998 = vmatpush1.bf16.msra.mxu0 %v8941_v11 }
0x1160   :  { %8999 = vmatprep.subr.bf16.mxu0 %v8944_v51  ;;  %9052 = vmatprep.subr.bf16.mxu1 %v19036_v50  ;;  %v17392_v28 = vpop.permute.xlu1 %9245 }
0x1161   :  { %v17394_v2 = vpop.permute.xlu0 %9261  ;;  %9053 = vmatpush1.bf16.msra.mxu1 %v17320_v4  ;;  %v12667_v4 = vld [vmem:[%s18706_s6 + $0x20] ss:$8 sps:$4 sm:$0xff]  }
0x1162   :  { %9751 = vrot.lane.b32.xlu1 %v17100_v38, %s12786_s24  ;;  %9054 = vmatprep.subr.bf16.mxu1 %v19036_v50 }
0x1163   :  { %9541 = vrot.lane.b32.xlu0 %v17227_v26, %s12785_s8  ;;  %9000 = vmatpush1.bf16.msra.mxu0 %v8943_v12 }
0x1164   :  { %v8926_v33 = vpop.permute.xlu1 %8925 }
0x1165   :  { %v8922_v45 = vpop.permute.xlu0 %8921  ;;  %9055 = vmatpush1.bf16.msra.mxu1 %v8926_v33  ;;  %v8946_v8 = vsel %vm19122_vm0, %v8924_v5, %v8926_v33  ;;  %vm19144_vm0 = vmmov %vm19142_vm8 }
0x1166   :  { %v8945_v7 = vsel %vm19137_vm10, %v8922_v45, %v8924_v5  ;;  %9749 = vrot.lane.b32.xlu1 %v17109_v32, %s12786_s24  ;;  %9001 = vmatprep.subr.bf16.mxu0 %v8946_v8  ;;  %vm19145_vm10 = vmmov %vm19138_vm4 }
0x1167   :  { %9765 = vrot.lane.b32.xlu0 %v17106_v57, %s12786_s24  ;;  %9002 = vmatpush1.bf16.msra.mxu0 %v8945_v7 }
0x1168   :  { %9109 = vmatprep.subr.bf16.mxu0 %v17030_v31  ;;  %9162 = vmatprep.subr.bf16.mxu1 %v19036_v50  ;;  %v17415_v46 = vpop.permute.xlu1 %9255 }
0x1169   :  { %v17417_v56 = vpop.permute.xlu0 %9273  ;;  %9069 = vmatmul.mubr.bf16.vlgmr.msra.gmra.mrb[72].mxu1 %v12667_v4 }
0x116a   :  { %9163 = vmatpush1.bf16.msra.mxu1 %v17072_v3  ;;  %9543 = vrot.lane.b32.xlu1 %v17239_v62, %s12785_s8  ;;  %v12672_v3 = vld [vmem:[%s18706_s6 + $0x30] ss:$8 sps:$4 sm:$0xff]  }
0x116b   :  { %9539 = vrot.lane.b32.xlu0 %v17243_v22, %s12785_s8  ;;  %9016 = vmatmul.mubr.bf16.vlgmr.msra.gmra.mrb[148].mxu0 %v12667_v4 }
0x116c   :  { %9110 = vmatpush1.bf16.msra.mxu0 %v17013_v39  ;;  %9164 = vmatprep.subr.bf16.mxu1 %v19036_v50  ;;  %v17429_v31 = vpop.permute.xlu1 %9259 }
0x116d   :  { %v17431_v42 = vpop.permute.xlu0 %9285  ;;  %9111 = vmatprep.subr.bf16.mxu0 %v17057_v60  ;;  %12026 = vmatprep.mubr.msk.bf16.mxu1 %vm19138_vm4, %v12670_v19  ;;  %v12675_v60 = vld [vmem:[%s18706_s6 + $0x4] ss:$8 sps:$4 sm:$0xff]   ;;  %vm19146_vm4 = vmmov %vm19144_vm0 }
0x116e   :  { %9165 = vmatpush1.bf16.msra.mxu1 %v17082_v24  ;;  %9759 = vrot.lane.b32.xlu1 %v17179_v6, %s12786_s24 }
0x116f   :  { %9777 = vrot.lane.b32.xlu0 %v17117_v35, %s12786_s24  ;;  %9166 = vmatprep.subr.bf16.mxu1 %v19036_v50 }
0x1170   :  { %9112 = vmatpush1.bf16.msra.mxu0 %v17039_v0  ;;  %v17445_v39 = vpop.permute.xlu1 %9257  ;;  %12024 = vmatprep.mubr.msk.bf16.mxu0 %vm19139_vm7, %v12670_v19  ;;  %vm19147_vm7 = vmmov %vm19144_vm0 }
0x1171   :  { %v17451_v43 = vpop.permute.xlu0 %9489  ;;  %9113 = vmatprep.subr.bf16.mxu0 %v17100_v38  ;;  %9077 = vmatmul.mubr.bf16.gmra.mrb[76].mxu1 %v12672_v3 }
0x1172   :  { %9167 = vmatpush1.bf16.msra.mxu1 %v17096_v1  ;;  %9763 = vrot.lane.b32.xlu1 %v17120_v27, %s12786_s24 }
0x1173   :  { %9789 = vrot.lane.b32.xlu0 %v17129_v58, %s12786_s24  ;;  %9168 = vmatprep.subr.bf16.mxu1 %v19036_v50 }
0x1174   :  { %9114 = vmatpush1.bf16.msra.mxu0 %v17109_v32  ;;  %v17461_v0 = vpop.permute.xlu1 %9267  ;;  %12033 = vmatprep.mubr.msk.bf16.mxu1 %vm19140_vm15, %v12675_v60  ;;  %vm19148_vm15 = vmmov %vm19141_vm5 }
0x1175   :  { %v17464_v24 = vpop.permute.xlu0 %9493  ;;  %9115 = vmatprep.subr.bf16.mxu0 %v17156_v17  ;;  %9026 = vmatmul.mubr.bf16.gmra.mrb[152].mxu0 %v12672_v3 }
0x1176   :  { %9169 = vmatpush1.bf16.msra.mxu1 %v17179_v6  ;;  %9761 = vrot.lane.b32.xlu1 %v17127_v36, %s12786_s24  ;;  %v12673_v6 = vld [vmem:[%s18706_s6] ss:$8 sps:$4 sm:$0xff]  }
0x1177   :  { %9757 = vrot.lane.b32.xlu0 %v17156_v17, %s12786_s24  ;;  %9170 = vmatprep.subr.bf16.mxu1 %v19036_v50 }
0x1178   :  { %9116 = vmatpush1.bf16.msra.mxu0 %v17169_v48  ;;  %v17474_v1 = vpop.permute.xlu1 %9271  ;;  %12031 = vmatprep.mubr.msk.bf16.mxu0 %vm19141_vm5, %v12675_v60  ;;  %vm19149_vm5 = vmmov %vm19144_vm0 }
0x1179   :  { %v17477_v38 = vpop.permute.xlu0 %9491  ;;  %9117 = vmatprep.subr.bf16.mxu0 %v17120_v27  ;;  %v9297_v5 = vsel %vm19149_vm5, %v17392_v28, %v17374_v47  ;;  %vm19156_vm5 = vmmov %vm19146_vm4 }
0x117a   :  { %9171 = vmatpush1.bf16.msra.mxu1 %v17106_v57  ;;  %9771 = vrot.lane.b32.xlu1 %v17198_v59, %s12786_s24 }
0x117b   :  { %9755 = vrot.lane.b32.xlu0 %v17169_v48, %s12786_s24  ;;  %9172 = vmatprep.subr.bf16.mxu1 %v19036_v50 }
0x117c   :  { %9118 = vmatpush1.bf16.msra.mxu0 %v17127_v36  ;;  %v17487_v32 = vpop.permute.xlu1 %9269 }
0x117d   :  { %v17489_v17 = vpop.permute.xlu0 %9501  ;;  %9119 = vmatprep.subr.bf16.mxu0 %v17176_v37 }
0x117e   :  { %9173 = vmatpush1.bf16.msra.mxu1 %v17198_v59  ;;  %9775 = vrot.lane.b32.xlu1 %v17136_v49, %s12786_s24  ;;  %v9293_v59 = vsel %vm19143_vm9, %v17163_v29, %v17207_v63  ;;  %v12678_v29 = vld [vmem:[%s18706_s6 + $0x10] ss:$8 sps:$4 sm:$0xff]   ;;  %vm19151_vm9 = vmmov %vm19145_vm10 }
0x117f   :  { %9769 = vrot.lane.b32.xlu0 %v17176_v37, %s12786_s24  ;;  %9174 = vmatprep.subr.bf16.mxu1 %v19036_v50 }
0x1180   :  { %9120 = vmatpush1.bf16.msra.mxu0 %v17186_v21  ;;  %v17499_v57 = vpop.permute.xlu1 %9279 }
0x1181   :  { %v17501_v27 = vpop.permute.xlu0 %9513  ;;  %9121 = vmatprep.subr.bf16.mxu0 %v17136_v49 }
0x1182   :  { %9175 = vmatpush1.bf16.msra.mxu1 %v17117_v35  ;;  %9773 = vrot.lane.b32.xlu1 %v17146_v40, %s12786_s24 }
0x1183   :  { %9767 = vrot.lane.b32.xlu0 %v17186_v21, %s12786_s24  ;;  %9176 = vmatprep.subr.bf16.mxu1 %v19036_v50 }
0x1184   :  { %9122 = vmatpush1.bf16.msra.mxu0 %v17146_v40  ;;  %v17511_v36 = vpop.permute.xlu1 %9283 }
0x1185   :  { %v17513_v48 = vpop.permute.xlu0 %9525  ;;  %9123 = vmatprep.subr.bf16.mxu0 %v17201_v52 }
0x1186   :  { %9177 = vmatpush1.bf16.msra.mxu1 %v17222_v18  ;;  %9783 = vrot.lane.b32.xlu1 %v17222_v18, %s12786_s24  ;;  %v9968_v18 = vld [vmem:[%s18707_s7 + $0x8] sm:$0xff] }
0x1187   :  { %9781 = vrot.lane.b32.xlu0 %v17201_v52, %s12786_s24  ;;  %9178 = vmatprep.subr.bf16.mxu1 %v19036_v50  ;;  %v9967_v52 = vld [vmem:[%s18707_s7] sm:$0xff] }
0x1188   :  { %9124 = vmatpush1.bf16.msra.mxu0 %v17212_v13  ;;  %v17523_v35 = vpop.permute.xlu1 %9281 }
0x1189   :  { %v17525_v49 = vpop.permute.xlu0 %9253  ;;  %9125 = vmatprep.subr.bf16.mxu0 %v17153_v9 }
0x118a   :  { %9179 = vmatpush1.bf16.msra.mxu1 %v17129_v58  ;;  %9787 = vrot.lane.b32.xlu1 %v17153_v9, %s12786_s24  ;;  %v9294_v58 = vsel %vm19142_vm8, %v17207_v63, %v17205_v54  ;;  %v9295_v63 = vsel %vm19146_vm4, %v17326_v25, %v17297_v14  ;;  %vm19150_vm8 = vmmov %vm19144_vm0 }
0x118b   :  { %9779 = vrot.lane.b32.xlu0 %v17212_v13, %s12786_s24  ;;  %9180 = vmatprep.subr.bf16.mxu1 %v19036_v50  ;;  %v9300_v20 = vsel %vm19150_vm8, %v17525_v49, %v17415_v46  ;;  %vm19157_vm8 = vmmov %vm19146_vm4 }
0x118c   :  { %9126 = vmatpush1.bf16.msra.mxu0 %v17166_v41  ;;  %v17535_v40 = vpop.permute.xlu1 %9487  ;;  %v9306_v7 = vsel %vm19157_vm8, %v17474_v1, %v17417_v56  ;;  %vm19165_vm8 = vcmask 1022976  }
0x118d   :  { %v9252_v37 = vpop.permute.xlu0 %9251  ;;  %9127 = vmatprep.subr.bf16.mxu0 %v17227_v26 }
0x118e   :  { %9181 = vmatpush1.bf16.msra.mxu1 %v17239_v62  ;;  %9785 = vrot.lane.b32.xlu1 %v17166_v41, %s12786_s24  ;;  %v12676_v41 = vld [vmem:[%s18706_s6 + $0x14] ss:$8 sps:$4 sm:$0xff]  }
0x118f   :  { %9793 = vrot.lane.b32.xlu0 %v17227_v26, %s12786_s24  ;;  %9402 = vmatprep.subr.bf16.mxu1 %v19036_v50 }
0x1190   :  { %9128 = vmatpush1.bf16.msra.mxu0 %v17243_v22  ;;  %v17551_v9 = vpop.permute.xlu1 %9485 }
0x1191   :  { %v17553_v21 = vpop.permute.xlu0 %9265  ;;  %9195 = vmatmul.mubr.bf16.vlgmr.msra.gmra.mrb[80].mxu1 %v12673_v6  ;;  %9349 = vmatprep.subr.bf16.mxu0 %v9294_v58  ;;  %v12679_v58 = vld [vmem:[%s18706_s6 + $0x40] ss:$8 sps:$4 sm:$0xff]  }
0x1192   :  { %9403 = vmatpush1.bf16.msra.mxu1 %v17205_v54  ;;  %9795 = vrot.lane.b32.xlu1 %v17239_v62, %s12786_s24  ;;  %v9296_v54 = vsel %vm19144_vm0, %v17297_v14, %v17358_v34  ;;  %v9969_v62 = vld [vmem:[%s18707_s7 + $0x10] sm:$0xff]  ;;  %v12681_v14 = vld [vmem:[%s18706_s6 + $0x44] ss:$8 sps:$4 sm:$0xff]   ;;  %vm19152_vm0 = vmmov %vm19151_vm9 }
0x1193   :  { %9791 = vrot.lane.b32.xlu0 %v17243_v22, %s12786_s24  ;;  %9142 = vmatmul.mubr.bf16.vlgmr.msra.gmra.mrb[148].mxu0 %v12673_v6  ;;  %v9298_v22 = vsel %vm19147_vm7, %v17374_v47, %v17332_v15  ;;  %v9302_v47 = vsel %vm19146_vm4, %v17429_v31, %v17394_v2  ;;  %vm19154_vm7 = vmmov %vm19146_vm4 }
0x1194   :  { %9350 = vmatpush1.bf16.msra.mxu0 %v9293_v59  ;;  %9404 = vmatprep.subr.bf16.mxu1 %v19036_v50  ;;  %v17573_v13 = vpop.permute.xlu1 %9495  ;;  %v9301_v33 = vsel %vm19154_vm7, %v17445_v39, %v17429_v31 }
0x1195   :  { %v9264_v26 = vpop.permute.xlu0 %9263  ;;  %9351 = vmatprep.subr.bf16.mxu0 %v9296_v54  ;;  %12034 = vmatprep.mubr.msk.bf16.mxu1 %vm19145_vm10, %v12676_v41  ;;  %vm19153_vm10 = vmmov %vm19146_vm4 }
0x1196   :  { %9405 = vmatpush1.bf16.msra.mxu1 %v17358_v34  ;;  %9973 = vperm.xlu1 %12547, %v9967_v52   ;;  %v9970_v34 = vld [vmem:[%s18707_s7 + $0x18] sm:$0xff] }
0x1197   :  { %9978 = vperm.xlu0 %12546, %v9968_v18   ;;  %9406 = vmatprep.subr.bf16.mxu1 %v19036_v50 }
0x1198   :  { %9352 = vmatpush1.bf16.msra.mxu0 %v9295_v63  ;;  %v17593_v44 = vpop.permute.xlu1 %9499  ;;  %12032 = vmatprep.mubr.msk.bf16.mxu0 %vm19148_vm15, %v12676_v41  ;;  %vm19155_vm15 = vmmov %vm19146_vm4 }
0x1199   :  { %v9278_v25 = vpop.permute.xlu0 %9277  ;;  %9203 = vmatmul.mubr.bf16.gmra.mrb[84].mxu1 %v12678_v29  ;;  %9353 = vmatprep.subr.bf16.mxu0 %v9298_v22  ;;  %v9304_v45 = vsel %vm19155_vm15, %v17553_v21, %v17461_v0 }
0x119a   :  { %9407 = vmatpush1.bf16.msra.mxu1 %v17332_v15  ;;  %9983 = vperm.xlu1 %12547, %v9969_v62   ;;  %v9299_v15 = vsel %vm19153_vm10, %v9252_v37, %v17525_v49 }
0x119b   :  { %9988 = vperm.xlu0 %12546, %v9970_v34   ;;  %9408 = vmatprep.subr.bf16.mxu1 %v19036_v50 }
0x119c   :  { %9354 = vmatpush1.bf16.msra.mxu0 %v9297_v5  ;;  %v17610_v11 = vpop.permute.xlu1 %9497  ;;  %12045 = vmatprep.mubr.msk.bf16.mxu1 %vm19151_vm9, %v12681_v14  ;;  %vm19158_vm9 = vmmov %vm19146_vm4 }
0x119d   :  { %v9276_v51 = vpop.permute.xlu0 %9275  ;;  %9355 = vmatprep.subr.bf16.mxu0 %v9300_v20  ;;  %9152 = vmatmul.mubr.bf16.gmra.mrb[152].mxu0 %v12678_v29  ;;  %v9305_v31 = vsel %vm19158_vm9, %v17487_v32, %v17474_v1  ;;  %vm19166_vm9 = vcmask 261120  }
0x119e   :  { %9409 = vmatpush1.bf16.msra.mxu1 %v17415_v46  ;;  %12043 = vmatprep.mubr.msk.bf16.mxu0 %vm19152_vm0, %v12681_v14  ;;  %vm19159_vm0 = vmmov %vm19146_vm4 }
0x119f   :  { %9410 = vmatprep.subr.bf16.mxu1 %v19036_v50  ;;  %v9308_v3 = vsel %vm19159_vm0, %v9278_v25, %v17499_v57  ;;  %vm19160_vm10 = vmmov %vm19159_vm0 }
0x11a0   :  { %9356 = vmatpush1.bf16.msra.mxu0 %v9299_v15  ;;  %v17621_v28 = vpop.permute.xlu1 %9507  ;;  %vm19161_vm4 = vmmov %vm19159_vm0 }
0x11a1   :  { %v9290_v12 = vpop.permute.xlu0 %9289  ;;  %9357 = vmatprep.subr.bf16.mxu0 %v9302_v47  ;;  %vm19162_vm7 = vmmov %vm19159_vm0 }
0x11a2   :  { %9411 = vmatpush1.bf16.msra.mxu1 %v17394_v2  ;;  %v9303_v2 = vsel %vm19156_vm5, %v9264_v26, %v17553_v21  ;;  %vm19163_vm15 = vmmov %vm19159_vm0 }
0x11a3   :  { %9412 = vmatprep.subr.bf16.mxu1 %v19036_v50  ;;  %vm19164_vm5 = vmmov %vm19159_vm0 }
0x11a4   :  { %9358 = vmatpush1.bf16.msra.mxu0 %v9301_v33  ;;  %v17631_v8 = vpop.permute.xlu1 %9511  ;;  %vm19167_vm0 = vmmov %vm19165_vm8 }
0x11a5   :  { %v17633_v4 = vpop.permute.xlu0 %9537  ;;  %9359 = vmatprep.subr.bf16.mxu0 %v9304_v45  ;;  %v9545_v59 = vsel %vm19167_vm0, %v17551_v9, %v17535_v40 }
0x11a6   :  { %9413 = vmatpush1.bf16.msra.mxu1 %v17461_v0  ;;  %v9307_v0 = vsel %vm19160_vm10, %v9276_v51, %v9278_v25  ;;  %vm19168_vm10 = vmmov %vm19167_vm0 }
0x11a7   :  { %9414 = vmatprep.subr.bf16.mxu1 %v19036_v50  ;;  %v9548_v52 = vsel %vm19168_vm10, %v17464_v24, %v17573_v13 }
0x11a8   :  { %9360 = vmatpush1.bf16.msra.mxu0 %v9303_v2  ;;  %v17642_v46 = vpop.permute.xlu1 %9509 }
0x11a9   :  { %v17644_v19 = vpop.permute.xlu0 %9741  ;;  %9361 = vmatprep.subr.bf16.mxu0 %v9306_v7 }
0x11aa   :  { %9415 = vmatpush1.bf16.msra.mxu1 %v17417_v56  ;;  %v9310_v56 = vsel %vm19161_vm4, %v17511_v36, %v17431_v42  ;;  %vm19169_vm4 = vmmov %vm19166_vm9 }
0x11ab   :  { %9416 = vmatprep.subr.bf16.mxu1 %v19036_v50 }
0x11ac   :  { %9362 = vmatpush1.bf16.msra.mxu0 %v9305_v31  ;;  %v17653_v39 = vpop.permute.xlu1 %9519 }
0x11ad   :  { %v17655_v60 = vpop.permute.xlu0 %9745  ;;  %9363 = vmatprep.subr.bf16.mxu0 %v9308_v3 }
0x11ae   :  { %9417 = vmatpush1.bf16.msra.mxu1 %v17499_v57  ;;  %v9309_v57 = vsel %vm19162_vm7, %v17523_v35, %v17511_v36  ;;  %v9546_v36 = vsel %vm19165_vm8, %v17535_v40, %v17451_v43  ;;  %v12687_v40 = vld [vmem:[%s18706_s6 + $0x64] ss:$8 sps:$4 sm:$0xff]   ;;  %vm19170_vm7 = vmmov %vm19167_vm0 }
0x11af   :  { %9418 = vmatprep.subr.bf16.mxu1 %v19036_v50  ;;  %v9547_v9 = vsel %vm19170_vm7, %v17477_v38, %v17464_v24  ;;  %vm19173_vm8 = vmmov %vm19167_vm0 }
0x11b0   :  { %9364 = vmatpush1.bf16.msra.mxu0 %v9307_v0  ;;  %v17663_v1 = vpop.permute.xlu1 %9523  ;;  %vm19176_vm10 = vmmov %vm19170_vm7 }
0x11b1   :  { %v17665_v32 = vpop.permute.xlu0 %9743  ;;  %9365 = vmatprep.subr.bf16.mxu0 %v9310_v56 }
0x11b2   :  { %9419 = vmatpush1.bf16.msra.mxu1 %v17431_v42  ;;  %v12682_v42 = vld [vmem:[%s18706_s6 + $0x54] ss:$8 sps:$4 sm:$0xff]  }
0x11b3   :  { %9420 = vmatprep.subr.bf16.mxu1 %v19036_v50 }
0x11b4   :  { %9366 = vmatpush1.bf16.msra.mxu0 %v9309_v57  ;;  %v9292_v49 = vpop.permute.xlu1 %9291 }
0x11b5   :  { %v9288_v37 = vpop.permute.xlu0 %9287  ;;  %v9312_v6 = vsel %vm19163_vm15, %v9290_v12, %v9292_v49  ;;  %vm19171_vm15 = vmmov %vm19167_vm0 }
0x11b6   :  { %v9311_v21 = vsel %vm19164_vm5, %v9288_v37, %v9290_v12  ;;  %9421 = vmatpush1.bf16.msra.mxu1 %v9292_v49  ;;  %9367 = vmatprep.subr.bf16.mxu0 %v9312_v6  ;;  %v9550_v26 = vsel %vm19171_vm15, %v17593_v44, %v17489_v17  ;;  %vm19172_vm5 = vmmov %vm19169_vm4 }
0x11b7   :  { %9654 = vmatprep.subr.bf16.mxu1 %v19036_v50 }
0x11b8   :  { %9368 = vmatpush1.bf16.msra.mxu0 %v9311_v21  ;;  %v17684_v35 = vpop.permute.xlu1 %9521  ;;  %v12693_v21 = vld [vmem:[%s18706_s6 + $0x84] ss:$8 sps:$4 sm:$0xff]  }
0x11b9   :  { %v17686_v41 = vpop.permute.xlu0 %9753  ;;  %9435 = vmatmul.mubr.bf16.vlgmr.msra.gmra.mrb[88].mxu1 %v12679_v58  ;;  %9601 = vmatprep.subr.bf16.mxu0 %v9546_v36 }
0x11ba   :  { %9655 = vmatpush1.bf16.msra.mxu1 %v17451_v43  ;;  %12046 = vmatprep.mubr.msk.bf16.mxu1 %vm19166_vm9, %v12682_v42  ;;  %v12684_v43 = vld [vmem:[%s18706_s6 + $0x50] ss:$8 sps:$4 sm:$0xff]   ;;  %vm19174_vm9 = vmmov %vm19167_vm0 }
0x11bb   :  { %9382 = vmatmul.mubr.bf16.vlgmr.msra.gmra.mrb[148].mxu0 %v12679_v58  ;;  %9656 = vmatprep.subr.bf16.mxu1 %v19036_v50  ;;  %vm19175_vm0 = vmmov %vm19169_vm4 }
0x11bc   :  { %9602 = vmatpush1.bf16.msra.mxu0 %v9545_v59  ;;  %v9532_v54 = vpop.permute.xlu1 %9531  ;;  %12044 = vmatprep.mubr.msk.bf16.mxu0 %vm19169_vm4, %v12682_v42  ;;  %vm19177_vm4 = vmmov %vm19170_vm7 }
0x11bd   :  { %v9506_v18 = vpop.permute.xlu0 %9505  ;;  %9603 = vmatprep.subr.bf16.mxu0 %v9548_v52  ;;  %v9554_v22 = vsel %vm19177_vm4, %v17631_v8, %v17501_v27  ;;  %vm19178_vm7 = vmmov %vm19177_vm4 }
0x11be   :  { %9657 = vmatpush1.bf16.msra.mxu1 %v17573_v13  ;;  %v9549_v13 = vsel %vm19173_vm8, %v17610_v11, %v17593_v44  ;;  %v9552_v24 = vsel %vm19174_vm9, %v9506_v18, %v17621_v28  ;;  %v9553_v14 = vsel %vm19178_vm7, %v17642_v46, %v17631_v8  ;;  %vm19179_vm15 = vmmov %vm19177_vm4 }
0x11bf   :  { %9658 = vmatprep.subr.bf16.mxu1 %v19036_v50  ;;  %vm19181_vm8 = vmmov %vm19177_vm4 }
0x11c0   :  { %9604 = vmatpush1.bf16.msra.mxu0 %v9547_v9  ;;  %v9536_v29 = vpop.permute.xlu1 %9535  ;;  %vm19182_vm9 = vmmov %vm19177_vm4 }
0x11c1   :  { %v9504_v63 = vpop.permute.xlu0 %9503  ;;  %9443 = vmatmul.mubr.bf16.gmra.mrb[92].mxu1 %v12684_v43  ;;  %9605 = vmatprep.subr.bf16.mxu0 %v9550_v26  ;;  %v9557_v47 = vsel %vm19182_vm9, %v17684_v35, %v17663_v1  ;;  %vm19190_vm9 = vcmask 261120  }
0x11c2   :  { %9659 = vmatpush1.bf16.msra.mxu1 %v17489_v17  ;;  %12057 = vmatprep.mubr.msk.bf16.mxu1 %vm19172_vm5, %v12687_v40  ;;  %v9551_v17 = vsel %vm19176_vm10, %v9504_v63, %v9506_v18  ;;  %vm19180_vm5 = vmmov %vm19177_vm4 }
0x11c3   :  { %9660 = vmatprep.subr.bf16.mxu1 %v19036_v50  ;;  %9392 = vmatmul.mubr.bf16.gmra.mrb[152].mxu0 %v12684_v43 }
0x11c4   :  { %9606 = vmatpush1.bf16.msra.mxu0 %v9549_v13  ;;  %v9534_v38 = vpop.permute.xlu1 %9533  ;;  %12055 = vmatprep.mubr.msk.bf16.mxu0 %vm19175_vm0, %v12687_v40  ;;  %vm19183_vm0 = vmmov %vm19177_vm4 }
0x11c5   :  { %v9518_v62 = vpop.permute.xlu0 %9517  ;;  %9607 = vmatprep.subr.bf16.mxu0 %v9552_v24  ;;  %vm19184_vm10 = vmmov %vm19183_vm0 }
0x11c6   :  { %9661 = vmatpush1.bf16.msra.mxu1 %v17621_v28  ;;  %v9556_v25 = vsel %vm19179_vm15, %v9518_v62, %v17653_v39  ;;  %vm19185_vm4 = vmmov %vm19183_vm0 }
0x11c7   :  { %9662 = vmatprep.subr.bf16.mxu1 %v19036_v50  ;;  %vm19186_vm7 = vmmov %vm19183_vm0 }
0x11c8   :  { %9608 = vmatpush1.bf16.msra.mxu0 %v9551_v17  ;;  %v9740_v44 = vpop.permute.xlu1 %9739  ;;  %v9561_v7 = vsel %vm19186_vm7, %v9534_v38, %v9536_v29  ;;  %vm19187_vm15 = vmmov %vm19183_vm0 }
0x11c9   :  { %v9516_v34 = vpop.permute.xlu0 %9515  ;;  %9609 = vmatprep.subr.bf16.mxu0 %v9554_v22 }
0x11ca   :  { %9663 = vmatpush1.bf16.msra.mxu1 %v17501_v27  ;;  %v9555_v11 = vsel %vm19180_vm5, %v9516_v34, %v9518_v62  ;;  %v9558_v27 = vsel %vm19181_vm8, %v17663_v1, %v17513_v48  ;;  %vm19188_vm5 = vmmov %vm19183_vm0  ;;  %vm19189_vm8 = vcmask 1014784  }
0x11cb   :  { %9664 = vmatprep.subr.bf16.mxu1 %v19036_v50  ;;  %v9798_v56 = vsel %vm19189_vm8, %v9740_v44, %v17644_v19 }
0x11cc   :  { %9610 = vmatpush1.bf16.msra.mxu0 %v9553_v14  ;;  %v9738_v5 = vpop.permute.xlu1 %9737 }
0x11cd   :  { %v9530_v20 = vpop.permute.xlu0 %9529  ;;  %9611 = vmatprep.subr.bf16.mxu0 %v9556_v25 }
0x11ce   :  { %9665 = vmatpush1.bf16.msra.mxu1 %v17653_v39  ;;  %v9560_v28 = vsel %vm19183_vm0, %v9530_v20, %v9532_v54  ;;  %v12685_v39 = vld [vmem:[%s18706_s6 + $0x60] ss:$8 sps:$4 sm:$0xff]   ;;  %vm19191_vm0 = vmmov %vm19189_vm8 }
0x11cf   :  { %9666 = vmatprep.subr.bf16.mxu1 %v19036_v50  ;;  %v9797_v49 = vsel %vm19191_vm0, %v9738_v5, %v9740_v44  ;;  %vm19194_vm7 = vmmov %vm19191_vm0 }
0x11d0   :  { %9612 = vmatpush1.bf16.msra.mxu0 %v9555_v11  ;;  %v9748_v51 = vpop.permute.xlu1 %9747  ;;  %v9799_v42 = vsel %vm19194_vm7, %v17665_v32, %v17655_v60  ;;  %vm19197_vm8 = vmmov %vm19191_vm0 }
0x11d1   :  { %v9528_v15 = vpop.permute.xlu0 %9527  ;;  %9613 = vmatprep.subr.bf16.mxu0 %v9558_v27 }
0x11d2   :  { %9667 = vmatpush1.bf16.msra.mxu1 %v17513_v48  ;;  %v9559_v45 = vsel %vm19184_vm10, %v9528_v15, %v9530_v20  ;;  %v9562_v48 = vsel %vm19185_vm4, %v9536_v29, %v17633_v4  ;;  %vm19192_vm10 = vmmov %vm19191_vm0 }
0x11d3   :  { %9668 = vmatprep.subr.bf16.mxu1 %v19036_v50  ;;  %v9800_v37 = vsel %vm19192_vm10, %v17655_v60, %v9748_v51  ;;  %vm19193_vm4 = vmmov %vm19190_vm9 }
0x11d4   :  { %9614 = vmatpush1.bf16.msra.mxu0 %v9557_v47  ;;  %v9752_v12 = vpop.permute.xlu1 %9751  ;;  %vm19200_vm10 = vmmov %vm19194_vm7  ;;  %v12691_v47 = vld [vmem:[%s18706_s6 + $0x80] ss:$8 sps:$4 sm:$0xff]  }
0x11d5   :  { %v9542_v33 = vpop.permute.xlu0 %9541  ;;  %9615 = vmatprep.subr.bf16.mxu0 %v9560_v28 }
0x11d6   :  { %9669 = vmatpush1.bf16.msra.mxu1 %v9532_v54 }
0x11d7   :  { %9670 = vmatprep.subr.bf16.mxu1 %v19036_v50 }
0x11d8   :  { %9616 = vmatpush1.bf16.msra.mxu0 %v9559_v45  ;;  %v9750_v8 = vpop.permute.xlu1 %9749 }
0x11d9   :  { %v9766_v2 = vpop.permute.xlu0 %9765  ;;  %9617 = vmatprep.subr.bf16.mxu0 %v9562_v48  ;;  %v9801_v52 = vsel %vm19197_vm8, %v9750_v8, %v9752_v12 }
0x11da   :  { %9671 = vmatpush1.bf16.msra.mxu1 %v17633_v4  ;;  %v12688_v4 = vld [vmem:[%s18706_s6 + $0x74] ss:$8 sps:$4 sm:$0xff]  }
0x11db   :  { %9672 = vmatprep.subr.bf16.mxu1 %v19036_v50 }
0x11dc   :  { %9618 = vmatpush1.bf16.msra.mxu0 %v9561_v7  ;;  %v9544_v46 = vpop.permute.xlu1 %9543 }
0x11dd   :  { %v9540_v31 = vpop.permute.xlu0 %9539  ;;  %v9564_v3 = vsel %vm19187_vm15, %v9542_v33, %v9544_v46  ;;  %vm19195_vm15 = vmmov %vm19191_vm0 }
0x11de   :  { %v9563_v0 = vsel %vm19188_vm5, %v9540_v31, %v9542_v33  ;;  %9673 = vmatpush1.bf16.msra.mxu1 %v9544_v46  ;;  %9619 = vmatprep.subr.bf16.mxu0 %v9564_v3  ;;  %v9802_v36 = vsel %vm19195_vm15, %v9752_v12, %v17686_v41  ;;  %vm19196_vm5 = vmmov %vm19193_vm4  ;;  %v12694_v12 = vld [vmem:[%s18706_s6 + $0x94] ss:$8 sps:$4 sm:$0xff]   ;;  %v12696_v33 = vld [vmem:[%s18706_s6 + $0x90] ss:$8 sps:$4 sm:$0xff]  }
0x11df   :  { %9906 = vmatprep.subr.bf16.mxu1 %v19036_v50 }
0x11e0   :  { %9620 = vmatpush1.bf16.msra.mxu0 %v9563_v0  ;;  %v9760_v1 = vpop.permute.xlu1 %9759 }
0x11e1   :  { %v9778_v57 = vpop.permute.xlu0 %9777  ;;  %9687 = vmatmul.mubr.bf16.vlgmr.msra.gmra.mrb[96].mxu1 %v12685_v39  ;;  %9853 = vmatprep.subr.bf16.mxu0 %v9798_v56 }
0x11e2   :  { %9907 = vmatpush1.bf16.msra.mxu1 %v17644_v19  ;;  %12058 = vmatprep.mubr.msk.bf16.mxu1 %vm19190_vm9, %v12688_v4  ;;  %v12690_v19 = vld [vmem:[%s18706_s6 + $0x70] ss:$8 sps:$4 sm:$0xff]   ;;  %vm19198_vm9 = vmmov %vm19191_vm0 }
0x11e3   :  { %9634 = vmatmul.mubr.bf16.vlgmr.msra.gmra.mrb[148].mxu0 %v12685_v39  ;;  %9908 = vmatprep.subr.bf16.mxu1 %v19036_v50  ;;  %vm19199_vm0 = vmmov %vm19193_vm4 }
0x11e4   :  { %9854 = vmatpush1.bf16.msra.mxu0 %v9797_v49  ;;  %v9764_v6 = vpop.permute.xlu1 %9763  ;;  %12056 = vmatprep.mubr.msk.bf16.mxu0 %vm19193_vm4, %v12688_v4  ;;  %vm19201_vm4 = vmmov %vm19194_vm7 }
0x11e5   :  { %v17771_v58 = vpop.permute.xlu0 %9789  ;;  %9855 = vmatprep.subr.bf16.mxu0 %v9800_v37  ;;  %vm19202_vm7 = vmmov %vm19201_vm4 }
0x11e6   :  { %9909 = vmatpush1.bf16.msra.mxu1 %v9748_v51  ;;  %vm19203_vm15 = vmmov %vm19201_vm4 }
0x11e7   :  { %9910 = vmatprep.subr.bf16.mxu1 %v19036_v50  ;;  %vm19205_vm8 = vmmov %vm19201_vm4 }
0x11e8   :  { %9856 = vmatpush1.bf16.msra.mxu0 %v9799_v42  ;;  %v9762_v35 = vpop.permute.xlu1 %9761 }
0x11e9   :  { %v9758_v59 = vpop.permute.xlu0 %9757  ;;  %9695 = vmatmul.mubr.bf16.gmra.mrb[100].mxu1 %v12690_v19  ;;  %9857 = vmatprep.subr.bf16.mxu0 %v9802_v36  ;;  %v9805_v9 = vsel %vm19202_vm7, %v9762_v35, %v9764_v6 }
0x11ea   :  { %9911 = vmatpush1.bf16.msra.mxu1 %v17686_v41  ;;  %12069 = vmatprep.mubr.msk.bf16.mxu1 %vm19196_vm5, %v12693_v21  ;;  %v9804_v60 = vsel %vm19198_vm9, %v9758_v59, %v9760_v1  ;;  %v9806_v41 = vsel %vm19201_vm4, %v9764_v6, %v9766_v2  ;;  %vm19204_vm5 = vmmov %vm19201_vm4 }
0x11eb   :  { %9912 = vmatprep.subr.bf16.mxu1 %v19036_v50  ;;  %9644 = vmatmul.mubr.bf16.gmra.mrb[152].mxu0 %v12690_v19  ;;  %vm19206_vm9 = vmmov %vm19201_vm4 }
0x11ec   :  { %9858 = vmatpush1.bf16.msra.mxu0 %v9801_v52  ;;  %v9772_v32 = vpop.permute.xlu1 %9771  ;;  %12067 = vmatprep.mubr.msk.bf16.mxu0 %vm19199_vm0, %v12693_v21  ;;  %vm19207_vm0 = vmmov %vm19201_vm4 }
0x11ed   :  { %v9756_v54 = vpop.permute.xlu0 %9755  ;;  %9859 = vmatprep.subr.bf16.mxu0 %v9804_v60  ;;  %vm19209_vm4 = vmmov %vm19207_vm0 }
0x11ee   :  { %v9803_v18 = vsel %vm19200_vm10, %v9756_v54, %v9758_v59  ;;  %9913 = vmatpush1.bf16.msra.mxu1 %v9760_v1  ;;  %vm19208_vm10 = vmmov %vm19207_vm0 }
0x11ef   :  { %9914 = vmatprep.subr.bf16.mxu1 %v19036_v50  ;;  %vm19210_vm7 = vmmov %vm19207_vm0 }
0x11f0   :  { %9860 = vmatpush1.bf16.msra.mxu0 %v9803_v18  ;;  %v9776_v43 = vpop.permute.xlu1 %9775 }
0x11f1   :  { %v9770_v40 = vpop.permute.xlu0 %9769  ;;  %9861 = vmatprep.subr.bf16.mxu0 %v9806_v41  ;;  %v9810_v24 = vsel %vm19205_vm8, %v9776_v43, %v9778_v57  ;;  %vm19213_vm8 = vcmask 261120  }
0x11f2   :  { %9915 = vmatpush1.bf16.msra.mxu1 %v9766_v2  ;;  %v9808_v26 = vsel %vm19203_vm15, %v9770_v40, %v9772_v32  ;;  %vm19211_vm15 = vmmov %vm19207_vm0 }
0x11f3   :  { %9916 = vmatprep.subr.bf16.mxu1 %v19036_v50 }
0x11f4   :  { %9862 = vmatpush1.bf16.msra.mxu0 %v9805_v9  ;;  %v9774_v29 = vpop.permute.xlu1 %9773 }
0x11f5   :  { %v9768_v63 = vpop.permute.xlu0 %9767  ;;  %9863 = vmatprep.subr.bf16.mxu0 %v9808_v26  ;;  %v9809_v17 = vsel %vm19206_vm9, %v9774_v29, %v9776_v43  ;;  %vm19214_vm9 = vmmov %vm19213_vm8 }
0x11f6   :  { %v9807_v13 = vsel %vm19204_vm5, %v9768_v63, %v9770_v40  ;;  %9917 = vmatpush1.bf16.msra.mxu1 %v9772_v32  ;;  %vm19212_vm5 = vmmov %vm19207_vm0 }
0x11f7   :  { %9918 = vmatprep.subr.bf16.mxu1 %v19036_v50 }
0x11f8   :  { %9864 = vmatpush1.bf16.msra.mxu0 %v9807_v13  ;;  %v9784_v38 = vpop.permute.xlu1 %9783 }
0x11f9   :  { %v9782_v62 = vpop.permute.xlu0 %9781  ;;  %9865 = vmatprep.subr.bf16.mxu0 %v9810_v24 }
0x11fa   :  { %9919 = vmatpush1.bf16.msra.mxu1 %v9778_v57  ;;  %v9812_v22 = vsel %vm19207_vm0, %v9782_v62, %v9784_v38 }
0x11fb   :  { %9920 = vmatprep.subr.bf16.mxu1 %v19036_v50 }
0x11fc   :  { %9866 = vmatpush1.bf16.msra.mxu0 %v9809_v17  ;;  %v9788_v44 = vpop.permute.xlu1 %9787 }
0x11fd   :  { %v9780_v34 = vpop.permute.xlu0 %9779  ;;  %9867 = vmatprep.subr.bf16.mxu0 %v9812_v22  ;;  %v9814_v25 = vsel %vm19209_vm4, %v9788_v44, %v17771_v58 }
0x11fe   :  { %v9811_v14 = vsel %vm19208_vm10, %v9780_v34, %v9782_v62  ;;  %9921 = vmatpush1.bf16.msra.mxu1 %v9784_v38 }
0x11ff   :  { %9922 = vmatprep.subr.bf16.mxu1 %v19036_v50 }
0x1200   :  { %9868 = vmatpush1.bf16.msra.mxu0 %v9811_v14  ;;  %v9786_v5 = vpop.permute.xlu1 %9785 }
0x1201   :  { %v9794_v20 = vpop.permute.xlu0 %9793  ;;  %9869 = vmatprep.subr.bf16.mxu0 %v9814_v25  ;;  %v9813_v11 = vsel %vm19210_vm7, %v9786_v5, %v9788_v44 }
0x1202   :  { %9923 = vmatpush1.bf16.msra.mxu1 %v17771_v58 }
0x1203   :  { %9924 = vmatprep.subr.bf16.mxu1 %v19036_v50 }
0x1204   :  { %9870 = vmatpush1.bf16.msra.mxu0 %v9813_v11  ;;  %v9796_v27 = vpop.permute.xlu1 %9795 }
0x1205   :  { %v9792_v51 = vpop.permute.xlu0 %9791  ;;  %v9816_v15 = vsel %vm19211_vm15, %v9794_v20, %v9796_v27 }
0x1206   :  { %v9815_v28 = vsel %vm19212_vm5, %v9792_v51, %v9794_v20  ;;  %9925 = vmatpush1.bf16.msra.mxu1 %v9796_v27  ;;  %9871 = vmatprep.subr.bf16.mxu0 %v9816_v15 }
0x1207   :  { %10528 = vmatprep.subr.bf16.mxu1 %v19036_v50 }
0x1208   :  { %9872 = vmatpush1.bf16.msra.mxu0 %v9815_v28 }
0x1209   :  { %9939 = vmatmul.mubr.bf16.vlgmr.msra.gmra.mrb[104].mxu1 %v12691_v47 }
0x120a   :  { %12070 = vmatprep.mubr.msk.bf16.mxu1 %vm19213_vm8, %v12694_v12 }
0x120b   :  { %9886 = vmatmul.mubr.bf16.vlgmr.msra.gmra.mrb[148].mxu0 %v12691_v47 }
0x120c   :  { %12068 = vmatprep.mubr.msk.bf16.mxu0 %vm19214_vm9, %v12694_v12 }
0x1211   :  { %9947 = vmatmul.mubr.bf16.gmra.mrb[108].mxu1 %v12696_v33 }
0x1213   :  { %9896 = vmatmul.mubr.bf16.gmra.mrb[152].mxu0 %v12696_v33 }
0x1215   :  { %v9974_v25 = vpop.permute.xlu1 %9973 }
0x123c   :  { %v9070_v45 = vpop.f32.mrb[72].mxu1 }
0x123d   :  { %v9072_v48 = vpop.f32.mrb[73].mxu1 }
0x123e   :  { %v9073_v8 = vpop.f32.mrb[74].mxu1  ;;  %v9979_v48 = vpop.permute.xlu0 %9978 }
0x123f   :  { %v9075_v2 = vpop.f32.mrb[75].mxu1 }
0x1244   :  { %v9078_v7 = vpop.f32.mrb[76].mxu1 }
0x1245   :  { %v9080_v46 = vpop.f32.mrb[77].mxu1 }
0x1246   :  { %v9081_v31 = vpop.f32.mrb[78].mxu1 }
0x1247   :  { %v9083_v3 = vpop.f32.mrb[79].mxu1 }
0x1264   :  { %v9196_v39 = vpop.f32.mrb[80].mxu1 }
0x1265   :  { %v9197_v0 = vadd.f32 %v9196_v39, %v9070_v45  ;;  %v9198_v4 = vpop.f32.mrb[81].mxu1 }
0x1266   :  { %v9199_v56 = vpop.f32.mrb[82].mxu1 }
0x1267   :  { %v9200_v1 = vadd.f32 %v9199_v56, %v9073_v8  ;;  %v9201_v57 = vpop.f32.mrb[83].mxu1 }
0x1268   :  { %v9984_v57 = vpop.permute.xlu1 %9983 }
0x126c   :  { %v9204_v49 = vpop.f32.mrb[84].mxu1 }
0x126d   :  { %v9205_v37 = vadd.f32 %v9204_v49, %v9078_v7  ;;  %v9206_v6 = vpop.f32.mrb[85].mxu1 }
0x126e   :  { %v9207_v58 = vpop.f32.mrb[86].mxu1 }
0x126f   :  { %v9208_v19 = vadd.f32 %v9207_v58, %v9081_v31  ;;  %v9209_v21 = vpop.f32.mrb[87].mxu1 }
0x128c   :  { %v9436_v42 = vpop.f32.mrb[88].mxu1 }
0x128d   :  { %v9453_v36 = vadd.f32 %v9436_v42, %v9197_v0  ;;  %v9438_v35 = vpop.f32.mrb[89].mxu1 }
0x128e   :  { %v9439_v59 = vpop.f32.mrb[90].mxu1 }
0x128f   :  { %v9456_v52 = vadd.f32 %v9439_v59, %v9200_v1  ;;  %v9441_v60 = vpop.f32.mrb[91].mxu1 }
0x1294   :  { %v9444_v32 = vpop.f32.mrb[92].mxu1 }
0x1295   :  { %v9459_v54 = vadd.f32 %v9444_v32, %v9205_v37  ;;  %v9446_v18 = vpop.f32.mrb[93].mxu1 }
0x1296   :  { %v9447_v41 = vpop.f32.mrb[94].mxu1 }
0x1297   :  { %v9462_v43 = vadd.f32 %v9447_v41, %v9208_v19  ;;  %v9449_v40 = vpop.f32.mrb[95].mxu1 }
0x12b4   :  { %v9688_v9 = vpop.f32.mrb[96].mxu1 }
0x12b5   :  { %v9705_v26 = vadd.f32 %v9688_v9, %v9453_v36  ;;  %v9690_v29 = vpop.f32.mrb[97].mxu1 }
0x12b6   :  { %v9691_v63 = vpop.f32.mrb[98].mxu1  ;;  %v9989_v29 = vpop.permute.xlu0 %9988 }
0x12b7   :  { %v9708_v13 = vadd.f32 %v9691_v63, %v9456_v52  ;;  %v9693_v24 = vpop.f32.mrb[99].mxu1 }
0x12bc   :  { %v9696_v38 = vpop.f32.mrb[100].mxu1 }
0x12bd   :  { %v9711_v62 = vadd.f32 %v9696_v38, %v9459_v54  ;;  %v9698_v17 = vpop.f32.mrb[101].mxu1 }
0x12be   :  { %v9699_v22 = vpop.f32.mrb[102].mxu1 }
0x12bf   :  { %v9714_v44 = vadd.f32 %v9699_v22, %v9462_v43  ;;  %v9701_v34 = vpop.f32.mrb[103].mxu1 }
0x12dc   :  { %v9940_v14 = vpop.f32.mrb[104].mxu1 }
0x12dd   :  { %v9957_v5 = vadd.f32 %v9940_v14, %v9705_v26  ;;  %v9942_v20 = vpop.f32.mrb[105].mxu1 }
0x12de   :  { %v9887_v11 = vpop.f32.mrb[148].mxu0  ;;  %v9943_v27 = vpop.f32.mrb[106].mxu1 }
0x12df   :  { %v9993_v51 = vadd.f32 %v9974_v25, %v9957_v5  ;;  %v9991_v15 = vadd.f32 %v9974_v25, %v9887_v11  ;;  %v9960_v47 = vadd.f32 %v9943_v27, %v9708_v13  ;;  %v9889_v28 = vpop.f32.mrb[149].mxu0  ;;  %v9945_v12 = vpop.f32.mrb[107].mxu1 }
0x12e0   :  { %v9992_v33 = vadd.f32 %v9974_v25, %v9889_v28  ;;  %v9891_v45 = vpop.f32.mrb[150].mxu0 }
0x12e1   :  { %vm10005_vm0 = vcmp.ge.f32.partialorder %v9993_v51, 0.0  ;;  %v10017_v8 = vmul.f32 0.2, %v9993_v51  ;;  %vm10003_vm10 = vcmp.ge.f32.partialorder %v9991_v15, 0.0  ;;  %v10015_v2 = vmul.f32 0.2, %v9991_v15 }
0x12e2   :  { %v9996_v7 = vadd.f32 %v9979_v48, %v9960_v47  ;;  %vm10004_vm4 = vcmp.ge.f32.partialorder %v9992_v33, 0.0  ;;  %v10016_v46 = vmul.f32 0.2, %v9992_v33  ;;  %v9994_v31 = vadd.f32 %v9979_v48, %v9891_v45  ;;  %v9893_v3 = vpop.f32.mrb[151].mxu0 }
0x12e3   :  { %v10027_v39 = vsel %vm10003_vm10, %v9991_v15, %v10015_v2  ;;  %v9995_v0 = vadd.f32 %v9979_v48, %v9893_v3  ;;  %v10029_v4 = vsel %vm10005_vm0, %v9993_v51, %v10017_v8  ;;  %vm19215_vm0 = vcmp.gt.f32.partialorder %v13138_v16, 0.5 }
0x12e4   :  { %vm10008_vm7 = vcmp.ge.f32.partialorder %v9996_v7, 0.0  ;;  %v10020_v56 = vmul.f32 0.2, %v9996_v7  ;;  %v9948_v1 = vpop.f32.mrb[108].mxu1  ;;  %v10028_v49 = vsel %vm10004_vm4, %v9992_v33, %v10016_v46  ;;  %vm10006_vm15 = vcmp.ge.f32.partialorder %v9994_v31, 0.0 }
0x12e5   :  { %v10018_v37 = vmul.f32 0.2, %v9994_v31  ;;  %vm10007_vm5 = vcmp.ge.f32.partialorder %v9995_v0, 0.0  ;;  %v9950_v6 = vpop.f32.mrb[109].mxu1  ;;  %v10039_v58 = vsel %vm13172_vm13, %v10027_v39, 0.0  ;;  %v9963_v42 = vadd.f32 %v9948_v1, %v9711_v62 }
0x12e6   :  { %v10032_v19 = vsel %vm10008_vm7, %v9996_v7, %v10020_v56  ;;  %v10019_v21 = vmul.f32 0.2, %v9995_v0  ;;  %v9897_v36 = vpop.f32.mrb[152].mxu0  ;;  %v9951_v35 = vpop.f32.mrb[110].mxu1  ;;  %v10040_v59 = vsel %vm86_vm6, %v10028_v49, 0.0  ;;  %vm19216_vm7 = vmmov %vm19215_vm0 }
0x12e7   :  { %v10030_v52 = vsel %vm10006_vm15, %v9994_v31, %v10018_v37  ;;  %v9997_v60 = vadd.f32 %v9984_v57, %v9897_v36  ;;  %v9966_v32 = vadd.f32 %v9951_v35, %v9714_v44  ;;  %v9899_v54 = vpop.f32.mrb[153].mxu0  ;;  %v9953_v18 = vpop.f32.mrb[111].mxu1  ;;  %v9999_v40 = vadd.f32 %v9984_v57, %v9963_v42 }
0x12e8   :  { %v10042_v41 = vsel %vm13172_vm13, %v10030_v52, 0.0  ;;  %v10031_v43 = vsel %vm10007_vm5, %v9995_v0, %v10019_v21  ;;  %v9998_v9 = vadd.f32 %v9984_v57, %v9899_v54  ;;  %v9901_v26 = vpop.f32.mrb[154].mxu0  ;;  %v10044_v44 = vsel %vm19215_vm0, %v10032_v19, 0.0  ;;  %vm19217_vm5 = vmmov %vm19215_vm0  ;;  %v10230_v0 = vld [vmem:[#allocation2 + $0x38] sm:$0xff] }
0x12e9   :  { %v10051_v63 = vpack.c.bf16 %v10042_v41, %v10039_v58  ;;  %v10043_v13 = vsel %vm86_vm6, %v10031_v43, 0.0  ;;  %vm10009_vm8 = vcmp.ge.f32.partialorder %v9997_v60, 0.0  ;;  %v10021_v24 = vmul.f32 0.2, %v9997_v60  ;;  %v9903_v38 = vpop.f32.mrb[155].mxu0 }
0x12ea   :  { %v10052_v62 = vpack.c.bf16 %v10043_v13, %v10040_v59  ;;  %vm10011_vm9 = vcmp.ge.f32.partialorder %v9999_v40, 0.0  ;;  %v10023_v17 = vmul.f32 0.2, %v9999_v40  ;;  %v10002_v22 = vadd.f32 %v9989_v29, %v9966_v32 }
0x12eb   :  { %v10033_v34 = vsel %vm10009_vm8, %v9997_v60, %v10021_v24  ;;  %v10022_v14 = vmul.f32 0.2, %v9998_v9  ;;  %v10000_v25 = vadd.f32 %v9989_v29, %v9901_v26  ;;  %vm10010_vm4 = vcmp.ge.f32.partialorder %v9998_v9, 0.0  ;;  %vm19218_vm8 = vmmov %vm19215_vm0 }
0x12ec   :  { %v10035_v5 = vsel %vm10011_vm9, %v9999_v40, %v10023_v17  ;;  %vm10014_vm10 = vcmp.ge.f32.partialorder %v10002_v22, 0.0  ;;  %v10026_v20 = vmul.f32 0.2, %v10002_v22  ;;  %10065 = vrot.lane.b32.xlu0 %v10052_v62, %s12788_s1  ;;  %v10041_v11 = vsel %vm19216_vm7, %v10029_v4, 0.0 }
0x12ed   :  { %vm10012_vm15 = vcmp.ge.f32.partialorder %v10000_v25, 0.0  ;;  %v10024_v27 = vmul.f32 0.2, %v10000_v25  ;;  %v10045_v51 = vsel %vm13172_vm13, %v10033_v34, 0.0  ;;  %v10001_v47 = vadd.f32 %v9989_v29, %v9903_v38 }
0x12ee   :  { %v10038_v15 = vsel %vm10014_vm10, %v10002_v22, %v10026_v20  ;;  %v10053_v28 = vpack.c.bf16 %v10044_v44, %v10041_v11  ;;  %v10047_v12 = vsel %vm19217_vm5, %v10035_v5, 0.0  ;;  %v10034_v45 = vsel %vm10010_vm4, %v9998_v9, %v10022_v14 }
0x12ef   :  { %v10050_v33 = vsel %vm19218_vm8, %v10038_v15, 0.0  ;;  %v10036_v48 = vsel %vm10012_vm15, %v10000_v25, %v10024_v27  ;;  %vm10013_vm9 = vcmp.ge.f32.partialorder %v10001_v47, 0.0  ;;  %v10025_v2 = vmul.f32 0.2, %v10001_v47 }
0x12f0   :  { %v10048_v8 = vsel %vm13172_vm13, %v10036_v48, 0.0  ;;  %10067 = vrot.lane.b32.xlu1 %v10053_v28, %s12788_s1  ;;  %v10056_v7 = vpack.c.bf16 %v10050_v33, %v10047_v12  ;;  %v10046_v3 = vsel %vm86_vm6, %v10034_v45, 0.0 }
0x12f1   :  { %v10054_v46 = vpack.c.bf16 %v10048_v8, %v10045_v51  ;;  %v10037_v31 = vsel %vm10013_vm9, %v10001_v47, %v10025_v2 }
0x12f2   :  { %v10049_v39 = vsel %vm86_vm6, %v10037_v31, 0.0  ;;  %vm19219_vm6 = vcmask 719872  }
0x12f3   :  { %10069 = vrot.lane.b32.xlu0 %v10054_v46, %s12788_s1  ;;  %v10055_v16 = vpack.c.bf16 %v10049_v39, %v10046_v3  ;;  %vm19221_vm13 = vmmov %vm19219_vm6 }
0x12f4   :  { %10063 = vrot.lane.b32.xlu1 %v10051_v63, %s12788_s1 }
0x12f7   :  { %10073 = vrot.lane.b32.xlu0 %v10056_v7, %s12788_s1 }
0x12f8   :  { %10071 = vrot.lane.b32.xlu1 %v10055_v16, %s12788_s1 }
0x12fc   :  { %10245 = vrot.lane.b32.xlu1 %v10226_v61, %s12780_s29 }
0x1300   :  { %10253 = vrot.lane.b32.xlu1 %v10230_v0, %s12780_s29 }
0x135e   :  { %v10066_v4 = vpop.permute.xlu0 %10065 }
0x1362   :  { %v10068_v56 = vpop.permute.xlu1 %10067 }
0x1363   :  { %v10076_v55 = vsel %vm59_vm11, %v10066_v4, %v10068_v56 }
0x1364   :  { %10087 = vst.msk [vmem:[#allocation2 + $0x10] sm:$0xff] %vm1325_vm12, %v10076_v55 }
0x1365   :  { %v10070_v1 = vpop.permute.xlu0 %10069 }
0x1366   :  { %v10064_v57 = vpop.permute.xlu1 %10063  ;;  %10088 = vst.msk [vmem:[#allocation2 + $0x20] sm:$0xff] %vm1322_vm14, %v10070_v1 }
0x1367   :  { %v17860_v49 = vsel %vm59_vm11, %v10064_v57, %v10066_v4  ;;  %10085 = vst.msk [vmem:[#allocation2] sm:$0xff] %vm1322_vm14, %v10064_v57  ;;  %vm19222_vm14 = vmmov %vm19219_vm6 }
0x1369   :  { %v10074_v37 = vpop.permute.xlu0 %10073 }
0x136a   :  { %v10072_v6 = vpop.permute.xlu1 %10071 }
0x136b   :  { %v17864_v58 = vsel %vm59_vm11, %v10070_v1, %v10072_v6  ;;  %v10078_v19 = vsel %vm59_vm11, %v10072_v6, %v10074_v37  ;;  %v10105_v21 = vld [vmem:[#allocation2 + $0x10] sm:$0xff]  ;;  %vm19220_vm11 = vmmov %vm19219_vm6 }
0x136c   :  { %10090 = vst.msk [vmem:[#allocation2 + $0x30] sm:$0xff] %vm1325_vm12, %v10078_v19 }
0x136d   :  { %10099 = vst.msk [vmem:[#allocation3 + $0x10] sm:$0xff] %vm122_vm1, %v10105_v21  ;;  %v17869_v42 = vld [vmem:[#allocation2 + $0x20] sm:$0xff] }
0x136e   :  { %v17871_v36 = vld [vmem:[#allocation2] sm:$0xff]  ;;  %v10246_v60 = vpop.permute.xlu1 %10245 }
0x136f   :  { %10239 = vrot.lane.b32.xlu0 %v17871_v36, %s12780_s29  ;;  %10115 = vrot.lane.b32.xlu1 %v17871_v36, %s12779_s23 }
0x1372   :  { %v17938_v32 = vpop.permute.xlu1 %10253 }
0x1373   :  { %10119 = vrot.lane.b32.xlu0 %v10105_v21, %s12779_s23  ;;  %10155 = vrot.lane.b32.xlu1 %v17871_v36, %s12781_s30  ;;  %v10108_v35 = vld [vmem:[#allocation2 + $0x30] sm:$0xff] }
0x1374   :  { %10102 = vst.msk [vmem:[#allocation3 + $0x28] sm:$0xff] %vm122_vm1, %v10108_v35  ;;  %v17918_v59 = vld [vmem:[#allocation3 + $0x10] sm:$0xff] }
0x1377   :  { %10159 = vrot.lane.b32.xlu0 %v10105_v21, %s12781_s30  ;;  %10195 = vrot.lane.b32.xlu1 %v17871_v36, %s12778_s22 }
0x137b   :  { %10199 = vrot.lane.b32.xlu0 %v10105_v21, %s12778_s22  ;;  %10117 = vrot.lane.b32.xlu1 %v17860_v49, %s12779_s23  ;;  %v17928_v52 = vld [vmem:[#allocation3 + $0x28] sm:$0xff] }
0x137f   :  { %10243 = vrot.lane.b32.xlu0 %v10105_v21, %s12780_s29  ;;  %10157 = vrot.lane.b32.xlu1 %v17860_v49, %s12781_s30 }
0x1383   :  { %10121 = vrot.lane.b32.xlu0 %v17869_v42, %s12779_s23  ;;  %10197 = vrot.lane.b32.xlu1 %v17860_v49, %s12778_s22 }
0x1387   :  { %10161 = vrot.lane.b32.xlu0 %v17869_v42, %s12781_s30  ;;  %10241 = vrot.lane.b32.xlu1 %v17860_v49, %s12780_s29 }
0x138b   :  { %10201 = vrot.lane.b32.xlu0 %v17869_v42, %s12778_s22  ;;  %10125 = vrot.lane.b32.xlu1 %v10108_v35, %s12779_s23 }
0x138f   :  { %10247 = vrot.lane.b32.xlu0 %v17869_v42, %s12780_s29  ;;  %10359 = vrot.lane.b32.xlu1 %v17871_v36, %s12783_s16 }
0x1393   :  { %10165 = vrot.lane.b32.xlu1 %v10108_v35, %s12781_s30  ;;  %10123 = vrot.lane.b32.xlu0 %v17864_v58, %s12779_s23 }
0x1397   :  { %10725 = vrot.lane.b32.xlu1 %v17871_v36, %s12784_s21  ;;  %10163 = vrot.lane.b32.xlu0 %v17864_v58, %s12781_s30 }
0x139b   :  { %10205 = vrot.lane.b32.xlu1 %v10108_v35, %s12778_s22  ;;  %10203 = vrot.lane.b32.xlu0 %v17864_v58, %s12778_s22 }
0x139f   :  { %10249 = vrot.lane.b32.xlu1 %v17864_v58, %s12780_s29  ;;  %10251 = vrot.lane.b32.xlu0 %v10108_v35, %s12780_s29 }
0x13a3   :  { %10361 = vrot.lane.b32.xlu1 %v17860_v49, %s12783_s16  ;;  %10363 = vrot.lane.b32.xlu0 %v17918_v59, %s12783_s16 }
0x13a7   :  { %10727 = vrot.lane.b32.xlu1 %v17860_v49, %s12784_s21  ;;  %10729 = vrot.lane.b32.xlu0 %v17918_v59, %s12784_s21 }
0x13ab   :  { %10369 = vrot.lane.b32.xlu1 %v17928_v52, %s12783_s16  ;;  %10365 = vrot.lane.b32.xlu0 %v17869_v42, %s12783_s16 }
0x13af   :  { %10367 = vrot.lane.b32.xlu0 %v17864_v58, %s12783_s16 }
0x13b3   :  { %10733 = vrot.lane.b32.xlu0 %v17864_v58, %s12784_s21 }
0x13e1   :  { %v10240_v54 = vpop.permute.xlu0 %10239  ;;  %v10116_v18 = vpop.permute.xlu1 %10115 }
0x13e5   :  { %v10120_v41 = vpop.permute.xlu0 %10119  ;;  %v10156_v43 = vpop.permute.xlu1 %10155 }
0x13e6   :  { %10139 = vst.msk [vmem:[#allocation3 + $0x40] sm:$0xff] %vm122_vm1, %v10120_v41 }
0x13e9   :  { %v10160_v40 = vpop.permute.xlu0 %10159  ;;  %v10196_v9 = vpop.permute.xlu1 %10195 }
0x13ea   :  { %10179 = vst.msk [vmem:[#allocation3 + $0x70] sm:$0xff] %vm122_vm1, %v10160_v40 }
0x13ed   :  { %v10200_v26 = vpop.permute.xlu0 %10199  ;;  %v10118_v29 = vpop.permute.xlu1 %10117  ;;  %v17942_v63 = vld [vmem:[#allocation3 + $0x40] sm:$0xff] }
0x13ee   :  { %10219 = vst.msk [vmem:[#allocation3 + $0xa0] sm:$0xff] %vm122_vm1, %v10200_v26  ;;  %v17946_v13 = vsel %vm100_vm2, %v10116_v18, %v10118_v29  ;;  %v17949_v24 = vsel %vm100_vm2, %v10118_v29, %v10120_v41  ;;  %10375 = vrot.lane.b32.xlu0 %v17942_v63, %s12783_s16 }
0x13ef   :  { %10373 = vrot.lane.b32.xlu1 %v17949_v24, %s12783_s16 }
0x13f1   :  { %v10244_v38 = vpop.permute.xlu0 %10243  ;;  %v10158_v62 = vpop.permute.xlu1 %10157  ;;  %v17955_v17 = vld [vmem:[#allocation3 + $0x70] sm:$0xff] }
0x13f2   :  { %v10257_v22 = vsel %vm133_vm3, %v10244_v38, %v10246_v60  ;;  %v17959_v44 = vsel %vm19219_vm6, %v10156_v43, %v10158_v62  ;;  %v17962_v34 = vsel %vm19220_vm11, %v10158_v62, %v10160_v40  ;;  %10387 = vrot.lane.b32.xlu0 %v17955_v17, %s12783_s16  ;;  %v12699_v43 = vld [vmem:[#allocation6 + $0x24] ss:$8 sps:$4 sm:$0xff]  }
0x13f3   :  { %10269 = vst.msk [vmem:[#allocation3 + $0xd0] sm:$0xff] %vm122_vm1, %v10257_v22  ;;  %10371 = vrot.lane.b32.xlu1 %v17946_v13, %s12783_s16 }
0x13f5   :  { %v10122_v14 = vpop.permute.xlu0 %10121  ;;  %v10198_v25 = vpop.permute.xlu1 %10197  ;;  %v17969_v5 = vld [vmem:[#allocation3 + $0xa0] sm:$0xff] }
0x13f6   :  { %v17972_v20 = vsel %vm122_vm1, %v10196_v9, %v10198_v25  ;;  %v17975_v11 = vsel %vm122_vm1, %v10198_v25, %v10200_v26  ;;  %10399 = vrot.lane.b32.xlu0 %v17969_v5, %s12783_s16 }
0x13f7   :  { %10385 = vrot.lane.b32.xlu1 %v17962_v34, %s12783_s16 }
0x13f9   :  { %v10162_v27 = vpop.permute.xlu0 %10161  ;;  %v10242_v51 = vpop.permute.xlu1 %10241 }
0x13fa   :  { %v17982_v15 = vsel %vm133_vm3, %v10240_v54, %v10242_v51  ;;  %v17985_v47 = vsel %vm133_vm3, %v10242_v51, %v10244_v38  ;;  %v17987_v28 = vld [vmem:[#allocation3 + $0xd0] sm:$0xff] }
0x13fb   :  { %10411 = vrot.lane.b32.xlu0 %v17987_v28, %s12783_s16  ;;  %10383 = vrot.lane.b32.xlu1 %v17959_v44, %s12783_s16 }
0x13fd   :  { %v10202_v12 = vpop.permute.xlu0 %10201  ;;  %v10126_v33 = vpop.permute.xlu1 %10125 }
0x13fe   :  { %10142 = vst.msk [vmem:[#allocation3 + $0x58] sm:$0xff] %vm122_vm1, %v10126_v33 }
0x13ff   :  { %10731 = vrot.lane.b32.xlu0 %v17869_v42, %s12784_s21  ;;  %10397 = vrot.lane.b32.xlu1 %v17975_v11, %s12783_s16 }
0x1401   :  { %v10248_v45 = vpop.permute.xlu0 %10247  ;;  %v10360_v48 = vpop.permute.xlu1 %10359 }
0x1403   :  { %10741 = vrot.lane.b32.xlu0 %v17942_v63, %s12784_s21  ;;  %10395 = vrot.lane.b32.xlu1 %v17972_v20, %s12783_s16 }
0x1405   :  { %v10124_v8 = vpop.permute.xlu0 %10123  ;;  %v10166_v2 = vpop.permute.xlu1 %10165  ;;  %v18032_v55 = vld [vmem:[#allocation3 + $0x58] sm:$0xff] }
0x1406   :  { %v18003_v7 = vsel %vm100_vm2, %v10122_v14, %v10124_v8  ;;  %v18006_v46 = vsel %vm100_vm2, %v10124_v8, %v10126_v33  ;;  %10182 = vst.msk [vmem:[#allocation3 + $0x88] sm:$0xff] %vm122_vm1, %v10166_v2  ;;  %vm19223_vm2 = vcmask 1039360  }
0x1407   :  { %10409 = vrot.lane.b32.xlu1 %v17985_v47, %s12783_s16  ;;  %10379 = vrot.lane.b32.xlu0 %v18006_v46, %s12783_s16  ;;  %vm19224_vm12 = vmmov %vm19223_vm2 }
0x1408   :  { %vm19227_vm0 = vmmov %vm19223_vm2 }
0x1409   :  { %v10164_v31 = vpop.permute.xlu0 %10163  ;;  %v18013_v3 = vpop.permute.xlu1 %10725  ;;  %vm19228_vm10 = vmmov %vm19227_vm0 }
0x140a   :  { %v18016_v39 = vsel %vm19221_vm13, %v10162_v27, %v10164_v31  ;;  %v18019_v16 = vsel %vm19222_vm14, %v10164_v31, %v10166_v2  ;;  %vm19229_vm4 = vmmov %vm19227_vm0 }
0x140b   :  { %10407 = vrot.lane.b32.xlu1 %v17982_v15, %s12783_s16  ;;  %10377 = vrot.lane.b32.xlu0 %v18003_v7, %s12783_s16  ;;  %vm19230_vm7 = vmmov %vm19227_vm0 }
0x140c   :  { %vm19231_vm15 = vmmov %vm19227_vm0 }
0x140d   :  { %v10204_v61 = vpop.permute.xlu0 %10203  ;;  %v10206_v0 = vpop.permute.xlu1 %10205  ;;  %v18054_v54 = vld [vmem:[#allocation3 + $0x88] sm:$0xff]  ;;  %vm19232_vm5 = vmmov %vm19227_vm0 }
0x140e   :  { %v18026_v4 = vsel %vm122_vm1, %v10202_v12, %v10204_v61  ;;  %v18029_v56 = vsel %vm122_vm1, %v10204_v61, %v10206_v0  ;;  %10222 = vst.msk [vmem:[#allocation3 + $0xb8] sm:$0xff] %vm122_vm1, %v10206_v0  ;;  %vm19233_vm8 = vmmov %vm19227_vm0 }
0x140f   :  { %10381 = vrot.lane.b32.xlu1 %v18032_v55, %s12783_s16  ;;  %10391 = vrot.lane.b32.xlu0 %v18019_v16, %s12783_s16  ;;  %vm19234_vm9 = vmmov %vm19227_vm0 }
0x1410   :  { %vm19235_vm6 = vmmov %vm19227_vm0 }
0x1411   :  { %v10252_v1 = vpop.permute.xlu0 %10251  ;;  %v10250_v57 = vpop.permute.xlu1 %10249  ;;  %vm19236_vm11 = vmmov %vm19227_vm0 }
0x1412   :  { %v10260_v37 = vsel %vm133_vm3, %v10252_v1, %v17938_v32  ;;  %v18041_v6 = vsel %vm133_vm3, %v10248_v45, %v10250_v57  ;;  %v18044_v19 = vsel %vm133_vm3, %v10250_v57, %v10252_v1  ;;  %vm19237_vm13 = vmmov %vm19227_vm0 }
0x1413   :  { %10272 = vst.msk [vmem:[#allocation3 + $0xe8] sm:$0xff] %vm122_vm1, %v10260_v37  ;;  %10735 = vrot.lane.b32.xlu1 %v17928_v52, %s12784_s21  ;;  %10389 = vrot.lane.b32.xlu0 %v18016_v39, %s12783_s16  ;;  %vm19225_vm1 = vcmask 261120   ;;  %vm19238_vm14 = vmmov %vm19227_vm0 }
0x1414   :  { %12077 = vmatprep.mubr.msk.bf16.mxu1 %vm19225_vm1, %v12699_v43  ;;  %vm19226_vm3 = vmmov %vm19225_vm1 }
0x1415   :  { %v10364_v21 = vpop.permute.xlu0 %10363  ;;  %v10362_v35 = vpop.permute.xlu1 %10361  ;;  %v18069_v26 = vld [vmem:[#allocation3 + $0xb8] sm:$0xff]  ;;  %12075 = vmatprep.mubr.msk.bf16.mxu0 %vm19226_vm3, %v12699_v43  ;;  %vm19241_vm1 = vmmov %vm19227_vm0 }
0x1416   :  { %10529 = vmatpush1.bf16.msra.mxu1 %v10364_v21  ;;  %v10420_v60 = vsel %vm19223_vm2, %v10362_v35, %v10364_v21  ;;  %v10419_v32 = vsel %vm19224_vm12, %v10360_v48, %v10362_v35  ;;  %vm19239_vm2 = vmmov %vm19227_vm0 }
0x1417   :  { %10475 = vmatprep.subr.bf16.mxu0 %v10420_v60  ;;  %10530 = vmatprep.subr.bf16.mxu1 %v19036_v50  ;;  %vm19240_vm12 = vmmov %vm19227_vm0 }
0x1418   :  { %10476 = vmatpush1.bf16.msra.mxu0 %v10419_v32  ;;  %10393 = vrot.lane.b32.xlu1 %v18054_v54, %s12783_s16  ;;  %vm19242_vm3 = vmmov %vm19227_vm0 }
0x1419   :  { %v18058_v18 = vpop.permute.xlu0 %10729  ;;  %v18060_v41 = vpop.permute.xlu1 %10727  ;;  %10403 = vrot.lane.b32.xlu0 %v18029_v56, %s12783_s16 }
0x141a   :  { %v18083_v22 = vld [vmem:[#allocation3 + $0xe8] sm:$0xff] }
0x141c   :  { %10739 = vrot.lane.b32.xlu1 %v17949_v24, %s12784_s21 }
0x141d   :  { %v10366_v40 = vpop.permute.xlu0 %10365  ;;  %v10370_v9 = vpop.permute.xlu1 %10369  ;;  %10401 = vrot.lane.b32.xlu0 %v18026_v4, %s12783_s16 }
0x141e   :  { %10531 = vmatpush1.bf16.msra.mxu1 %v10370_v9 }
0x141f   :  { %10532 = vmatprep.subr.bf16.mxu1 %v19036_v50 }
0x1420   :  { %10405 = vrot.lane.b32.xlu1 %v18069_v26, %s12783_s16 }
0x1421   :  { %v10368_v29 = vpop.permute.xlu0 %10367  ;;  %10415 = vrot.lane.b32.xlu0 %v18044_v19, %s12783_s16 }
0x1422   :  { %v10422_v38 = vsel %vm19227_vm0, %v10368_v29, %v10370_v9  ;;  %v10421_v62 = vsel %vm19228_vm10, %v10366_v40, %v10368_v29  ;;  %vm19243_vm10 = vmmov %vm19227_vm0 }
0x1423   :  { %10477 = vmatprep.subr.bf16.mxu0 %v10422_v38 }
0x1424   :  { %10478 = vmatpush1.bf16.msra.mxu0 %v10421_v62  ;;  %10737 = vrot.lane.b32.xlu1 %v17946_v13, %s12784_s21 }
0x1425   :  { %10753 = vrot.lane.b32.xlu0 %v17955_v17, %s12784_s21  ;;  %v18137_v14 = vpop.permute.xlu0 %10733 }
0x1428   :  { %10417 = vrot.lane.b32.xlu1 %v18083_v22, %s12783_s16 }
0x1429   :  { %10413 = vrot.lane.b32.xlu0 %v18041_v6, %s12783_s16 }
0x142c   :  { %10747 = vrot.lane.b32.xlu1 %v18032_v55, %s12784_s21 }
0x142d   :  { %10765 = vrot.lane.b32.xlu0 %v17969_v5, %s12784_s21 }
0x1430   :  { %10751 = vrot.lane.b32.xlu1 %v17962_v34, %s12784_s21 }
0x1431   :  { %10777 = vrot.lane.b32.xlu0 %v17987_v28, %s12784_s21 }
0x1434   :  { %10749 = vrot.lane.b32.xlu1 %v17959_v44, %s12784_s21 }
0x1435   :  { %10981 = vrot.lane.b32.xlu0 %v17918_v59, %s12785_s8 }
0x1438   :  { %10759 = vrot.lane.b32.xlu1 %v18054_v54, %s12784_s21 }
0x1439   :  { %10985 = vrot.lane.b32.xlu0 %v17864_v58, %s12785_s8 }
0x143c   :  { %10763 = vrot.lane.b32.xlu1 %v17975_v11, %s12784_s21 }
0x143d   :  { %10983 = vrot.lane.b32.xlu0 %v17869_v42, %s12785_s8 }
0x1440   :  { %10761 = vrot.lane.b32.xlu1 %v17972_v20, %s12784_s21 }
0x1441   :  { %10993 = vrot.lane.b32.xlu0 %v17942_v63, %s12785_s8 }
0x1444   :  { %10771 = vrot.lane.b32.xlu1 %v18069_v26, %s12784_s21 }
0x1445   :  { %11005 = vrot.lane.b32.xlu0 %v17955_v17, %s12785_s8 }
0x1448   :  { %10775 = vrot.lane.b32.xlu1 %v17985_v47, %s12784_s21 }
0x1449   :  { %11017 = vrot.lane.b32.xlu0 %v17969_v5, %s12785_s8 }
0x144c   :  { %10773 = vrot.lane.b32.xlu1 %v17982_v15, %s12784_s21 }
0x144d   :  { %10745 = vrot.lane.b32.xlu0 %v18006_v46, %s12784_s21 }
0x1450   :  { %10979 = vrot.lane.b32.xlu1 %v17860_v49, %s12785_s8 }
0x1451   :  { %10743 = vrot.lane.b32.xlu0 %v18003_v7, %s12784_s21 }
0x1454   :  { %10977 = vrot.lane.b32.xlu1 %v17871_v36, %s12785_s8 }
0x1455   :  { %10757 = vrot.lane.b32.xlu0 %v18019_v16, %s12784_s21 }
0x1458   :  { %10987 = vrot.lane.b32.xlu1 %v17928_v52, %s12785_s8 }
0x1459   :  { %10755 = vrot.lane.b32.xlu0 %v18016_v39, %s12784_s21 }
0x145c   :  { %10991 = vrot.lane.b32.xlu1 %v17949_v24, %s12785_s8 }
0x145d   :  { %10769 = vrot.lane.b32.xlu0 %v18029_v56, %s12784_s21 }
0x1460   :  { %v10376_v25 = vpop.permute.xlu0 %10375  ;;  %10989 = vrot.lane.b32.xlu1 %v17946_v13, %s12785_s8 }
0x1461   :  { %10533 = vmatpush1.bf16.msra.mxu1 %v10376_v25  ;;  %10767 = vrot.lane.b32.xlu0 %v18026_v4, %s12784_s21  ;;  %v10374_v27 = vpop.permute.xlu1 %10373 }
0x1462   :  { %v10424_v51 = vsel %vm19229_vm4, %v10374_v27, %v10376_v25  ;;  %10534 = vmatprep.subr.bf16.mxu1 %v19036_v50  ;;  %vm19244_vm4 = vcmask 261120  }
0x1463   :  { %10479 = vmatprep.subr.bf16.mxu0 %v10424_v51 }
0x1464   :  { %v10388_v12 = vpop.permute.xlu0 %10387  ;;  %10999 = vrot.lane.b32.xlu1 %v18032_v55, %s12785_s8 }
0x1465   :  { %10781 = vrot.lane.b32.xlu0 %v18044_v19, %s12784_s21  ;;  %v10372_v33 = vpop.permute.xlu1 %10371 }
0x1466   :  { %v10423_v45 = vsel %vm19230_vm7, %v10372_v33, %v10374_v27  ;;  %vm19245_vm7 = vmmov %vm19244_vm4 }
0x1467   :  { %10480 = vmatpush1.bf16.msra.mxu0 %v10423_v45 }
0x1468   :  { %v10400_v48 = vpop.permute.xlu0 %10399  ;;  %11003 = vrot.lane.b32.xlu1 %v17962_v34, %s12785_s8 }
0x1469   :  { %11029 = vrot.lane.b32.xlu0 %v17987_v28, %s12785_s8  ;;  %v10386_v8 = vpop.permute.xlu1 %10385 }
0x146a   :  { %v10428_v29 = vsel %vm19233_vm8, %v10386_v8, %v10388_v12  ;;  %vm19248_vm8 = vcmask 1022976  }
0x146c   :  { %11001 = vrot.lane.b32.xlu1 %v17959_v44, %s12785_s8 }
0x146d   :  { %v18160_v2 = vpop.permute.xlu0 %10411  ;;  %11233 = vrot.lane.b32.xlu0 %v17918_v59, %s12786_s24  ;;  %v10384_v31 = vpop.permute.xlu1 %10383 }
0x146e   :  { %v10427_v25 = vsel %vm19234_vm9, %v10384_v31, %v10386_v8  ;;  %vm19249_vm9 = vcmask 1031168  }
0x1470   :  { %11011 = vrot.lane.b32.xlu1 %v18054_v54, %s12785_s8 }
0x1471   :  { %v18166_v61 = vpop.permute.xlu0 %10731  ;;  %11237 = vrot.lane.b32.xlu0 %v17864_v58, %s12786_s24  ;;  %v10398_v0 = vpop.permute.xlu1 %10397 }
0x1474   :  { %11015 = vrot.lane.b32.xlu1 %v17975_v11, %s12785_s8 }
0x1475   :  { %v18172_v1 = vpop.permute.xlu0 %10741  ;;  %11235 = vrot.lane.b32.xlu0 %v17869_v42, %s12786_s24  ;;  %v10396_v57 = vpop.permute.xlu1 %10395 }
0x1478   :  { %10783 = vrot.lane.b32.xlu1 %v18083_v22, %s12784_s21 }
0x1479   :  { %10779 = vrot.lane.b32.xlu0 %v18041_v6, %s12784_s21  ;;  %v10380_v37 = vpop.permute.xlu0 %10379  ;;  %v18180_v21 = vpop.permute.xlu1 %10409 }
0x147c   :  { %11013 = vrot.lane.b32.xlu1 %v17972_v20, %s12785_s8 }
0x147d   :  { %11245 = vrot.lane.b32.xlu0 %v17942_v63, %s12786_s24  ;;  %v10378_v35 = vpop.permute.xlu0 %10377  ;;  %v10408_v60 = vpop.permute.xlu1 %10407 }
0x147e   :  { %v10425_v9 = vsel %vm19232_vm5, %v10378_v35, %v10380_v37  ;;  %vm19247_vm5 = vmmov %vm19244_vm4 }
0x1480   :  { %11023 = vrot.lane.b32.xlu1 %v18069_v26, %s12785_s8 }
0x1481   :  { %10997 = vrot.lane.b32.xlu0 %v18006_v46, %s12785_s8  ;;  %v10392_v32 = vpop.permute.xlu0 %10391  ;;  %v10382_v43 = vpop.permute.xlu1 %10381 }
0x1482   :  { %10535 = vmatpush1.bf16.msra.mxu1 %v10382_v43  ;;  %v10426_v40 = vsel %vm19231_vm15, %v10380_v37, %v10382_v43  ;;  %v10431_v37 = vsel %vm19238_vm14, %v10396_v57, %v10398_v0  ;;  %vm19246_vm15 = vmmov %vm19244_vm4 }
0x1483   :  { %10481 = vmatprep.subr.bf16.mxu0 %v10426_v40  ;;  %10536 = vmatprep.subr.bf16.mxu1 %v19036_v50 }
0x1484   :  { %11027 = vrot.lane.b32.xlu1 %v17985_v47, %s12785_s8  ;;  %10482 = vmatpush1.bf16.msra.mxu0 %v10425_v9  ;;  %v10435_v9 = vsel %vm19242_vm3, %v10408_v60, %v18180_v21 }
0x1485   :  { %10995 = vrot.lane.b32.xlu0 %v18003_v7, %s12785_s8  ;;  %v10390_v38 = vpop.permute.xlu0 %10389  ;;  %10483 = vmatprep.subr.bf16.mxu0 %v10428_v29  ;;  %v18198_v62 = vpop.permute.xlu1 %10735 }
0x1486   :  { %10537 = vmatpush1.bf16.msra.mxu1 %v10388_v12  ;;  %v10429_v45 = vsel %vm19236_vm11, %v10390_v38, %v10392_v32  ;;  %v10432_v12 = vsel %vm19237_vm13, %v10398_v0, %v10400_v48  ;;  %vm19252_vm13 = vmmov %vm19244_vm4 }
0x1487   :  { %10538 = vmatprep.subr.bf16.mxu1 %v19036_v50 }
0x1488   :  { %11025 = vrot.lane.b32.xlu1 %v17982_v15, %s12785_s8  ;;  %10484 = vmatpush1.bf16.msra.mxu0 %v10427_v25 }
0x1489   :  { %11009 = vrot.lane.b32.xlu0 %v18019_v16, %s12785_s8 }
0x148a   :  { %v10394_v27 = vpop.permute.xlu1 %10393 }
0x148b   :  { %v10404_v51 = vpop.permute.xlu0 %10403  ;;  %10539 = vmatpush1.bf16.msra.mxu1 %v10394_v27  ;;  %v10430_v33 = vsel %vm19235_vm6, %v10392_v32, %v10394_v27  ;;  %v12697_v27 = vld [vmem:[#allocation6 + $0x20] ss:$8 sps:$4 sm:$0xff]   ;;  %vm19250_vm6 = vmmov %vm19249_vm9 }
0x148c   :  { %11231 = vrot.lane.b32.xlu1 %v17860_v49, %s12786_s24  ;;  %10485 = vmatprep.subr.bf16.mxu0 %v10430_v33  ;;  %vm19251_vm11 = vmmov %vm19250_vm6 }
0x148d   :  { %11007 = vrot.lane.b32.xlu0 %v18016_v39, %s12785_s8  ;;  %10486 = vmatpush1.bf16.msra.mxu0 %v10429_v45  ;;  %vm19253_vm14 = vmmov %vm19250_vm6 }
0x148e   :  { %10487 = vmatprep.subr.bf16.mxu0 %v10432_v12  ;;  %10540 = vmatprep.subr.bf16.mxu1 %v19036_v50  ;;  %v18214_v8 = vpop.permute.xlu1 %10739 }
0x148f   :  { %v10402_v31 = vpop.permute.xlu0 %10401  ;;  %10541 = vmatpush1.bf16.msra.mxu1 %v10400_v48  ;;  %v10436_v48 = vsel %vm19241_vm1, %v18180_v21, %v18160_v2 }
0x1490   :  { %11229 = vrot.lane.b32.xlu1 %v17871_v36, %s12786_s24  ;;  %10542 = vmatprep.subr.bf16.mxu1 %v19036_v50  ;;  %v10433_v40 = vsel %vm19240_vm12, %v10402_v31, %v10404_v51  ;;  %vm19255_vm12 = vmmov %vm19244_vm4  ;;  %v12711_v31 = vld [vmem:[#allocation6 + $0x44] ss:$8 sps:$4 sm:$0xff]  }
0x1491   :  { %11021 = vrot.lane.b32.xlu0 %v18029_v56, %s12785_s8  ;;  %10488 = vmatpush1.bf16.msra.mxu0 %v10431_v37 }
0x1492   :  { %v10406_v35 = vpop.permute.xlu1 %10405 }
0x1493   :  { %v10416_v32 = vpop.permute.xlu0 %10415  ;;  %10543 = vmatpush1.bf16.msra.mxu1 %v10406_v35  ;;  %v10434_v43 = vsel %vm19239_vm2, %v10404_v51, %v10406_v35  ;;  %v12700_v51 = vld [vmem:[#allocation6 + $0x34] ss:$8 sps:$4 sm:$0xff]   ;;  %vm19254_vm2 = vmmov %vm19250_vm6 }
0x1494   :  { %11239 = vrot.lane.b32.xlu1 %v17928_v52, %s12786_s24  ;;  %10489 = vmatprep.subr.bf16.mxu0 %v10434_v43  ;;  %vm19256_vm1 = vmmov %vm19254_vm2 }
0x1495   :  { %11019 = vrot.lane.b32.xlu0 %v18026_v4, %s12785_s8  ;;  %10490 = vmatpush1.bf16.msra.mxu0 %v10433_v40  ;;  %vm19257_vm3 = vmmov %vm19256_vm1 }
0x1496   :  { %10491 = vmatprep.subr.bf16.mxu0 %v10436_v48  ;;  %10544 = vmatprep.subr.bf16.mxu1 %v19036_v50  ;;  %v18232_v0 = vpop.permute.xlu1 %10737 }
0x1497   :  { %v18234_v57 = vpop.permute.xlu0 %10753  ;;  %10545 = vmatpush1.bf16.msra.mxu1 %v18160_v2 }
0x1498   :  { %11243 = vrot.lane.b32.xlu1 %v17949_v24, %s12786_s24  ;;  %10546 = vmatprep.subr.bf16.mxu1 %v19036_v50 }
0x1499   :  { %11033 = vrot.lane.b32.xlu0 %v18044_v19, %s12785_s8  ;;  %10492 = vmatpush1.bf16.msra.mxu0 %v10435_v9  ;;  %v5775_v9 = vld [vmem:[%s18710_s10] sm:$0xff] }
0x149a   :  { %v10418_v29 = vpop.permute.xlu1 %10417 }
0x149b   :  { %v10414_v38 = vpop.permute.xlu0 %10413  ;;  %10547 = vmatpush1.bf16.msra.mxu1 %v10418_v29  ;;  %v10438_v25 = vsel %vm19227_vm0, %v10416_v32, %v10418_v29  ;;  %vm19258_vm0 = vmmov %vm19244_vm4 }
0x149c   :  { %v10437_v2 = vsel %vm19243_vm10, %v10414_v38, %v10416_v32  ;;  %11241 = vrot.lane.b32.xlu1 %v17946_v13, %s12786_s24  ;;  %10493 = vmatprep.subr.bf16.mxu0 %v10438_v25  ;;  %vm19259_vm10 = vmmov %vm19256_vm1  ;;  %v11462_v32 = vld [vmem:[%s18709_s9 + $0x18] sm:$0xff] }
0x149d   :  { %11257 = vrot.lane.b32.xlu0 %v17955_v17, %s12786_s24  ;;  %10494 = vmatpush1.bf16.msra.mxu0 %v10437_v2 }
0x149e   :  { %10601 = vmatprep.subr.bf16.mxu0 %v17860_v49  ;;  %10654 = vmatprep.subr.bf16.mxu1 %v19036_v50  ;;  %v18252_v21 = vpop.permute.xlu1 %10747 }
0x149f   :  { %v18254_v60 = vpop.permute.xlu0 %10765  ;;  %10561 = vmatmul.mubr.bf16.vlgmr.msra.gmra.mrb[112].mxu1 %v12697_v27 }
0x14a0   :  { %10655 = vmatpush1.bf16.msra.mxu1 %v17918_v59  ;;  %11035 = vrot.lane.b32.xlu1 %v18083_v22, %s12785_s8  ;;  %v12702_v59 = vld [vmem:[#allocation6 + $0x30] ss:$8 sps:$4 sm:$0xff]  }
0x14a1   :  { %11031 = vrot.lane.b32.xlu0 %v18041_v6, %s12785_s8  ;;  %10508 = vmatmul.mubr.bf16.vlgmr.msra.gmra.mrb[156].mxu0 %v12697_v27 }
0x14a2   :  { %10602 = vmatpush1.bf16.msra.mxu0 %v17871_v36  ;;  %10656 = vmatprep.subr.bf16.mxu1 %v19036_v50  ;;  %v18263_v49 = vpop.permute.xlu1 %10751 }
0x14a3   :  { %v18265_v33 = vpop.permute.xlu0 %10777  ;;  %10603 = vmatprep.subr.bf16.mxu0 %v17864_v58  ;;  %12078 = vmatprep.mubr.msk.bf16.mxu1 %vm19244_vm4, %v12700_v51  ;;  %v12705_v58 = vld [vmem:[#allocation6 + $0x4] ss:$8 sps:$4 sm:$0xff]   ;;  %vm19260_vm4 = vmmov %vm19256_vm1 }
0x14a4   :  { %10657 = vmatpush1.bf16.msra.mxu1 %v17928_v52  ;;  %11251 = vrot.lane.b32.xlu1 %v18032_v55, %s12786_s24  ;;  %v10794_v43 = vsel %vm19260_vm4, %v18263_v49, %v18234_v57 }
0x14a5   :  { %11269 = vrot.lane.b32.xlu0 %v17969_v5, %s12786_s24  ;;  %10658 = vmatprep.subr.bf16.mxu1 %v19036_v50 }
0x14a6   :  { %10604 = vmatpush1.bf16.msra.mxu0 %v17869_v42  ;;  %v18276_v36 = vpop.permute.xlu1 %10749  ;;  %12076 = vmatprep.mubr.msk.bf16.mxu0 %vm19245_vm7, %v12700_v51  ;;  %vm19261_vm7 = vmmov %vm19258_vm0 }
0x14a7   :  { %v18279_v45 = vpop.permute.xlu0 %10981  ;;  %10605 = vmatprep.subr.bf16.mxu0 %v17949_v24  ;;  %10569 = vmatmul.mubr.bf16.gmra.mrb[116].mxu1 %v12702_v59 }
0x14a8   :  { %10659 = vmatpush1.bf16.msra.mxu1 %v17942_v63  ;;  %11255 = vrot.lane.b32.xlu1 %v17962_v34, %s12786_s24 }
0x14a9   :  { %11281 = vrot.lane.b32.xlu0 %v17987_v28, %s12786_s24  ;;  %10660 = vmatprep.subr.bf16.mxu1 %v19036_v50 }
0x14aa   :  { %10606 = vmatpush1.bf16.msra.mxu0 %v17946_v13  ;;  %v18289_v42 = vpop.permute.xlu1 %10759  ;;  %12085 = vmatprep.mubr.msk.bf16.mxu1 %vm19246_vm15, %v12705_v58  ;;  %vm19262_vm15 = vmmov %vm19256_vm1 }
0x14ab   :  { %v18292_v52 = vpop.permute.xlu0 %10985  ;;  %10607 = vmatprep.subr.bf16.mxu0 %v18006_v46  ;;  %10518 = vmatmul.mubr.bf16.gmra.mrb[160].mxu0 %v12702_v59  ;;  %v11533_v59 = vld [vmem:[%s18710_s10 + $0x10] sm:$0xff] }
0x14ac   :  { %10661 = vmatpush1.bf16.msra.mxu1 %v18032_v55  ;;  %11253 = vrot.lane.b32.xlu1 %v17959_v44, %s12786_s24 }
0x14ad   :  { %11249 = vrot.lane.b32.xlu0 %v18006_v46, %s12786_s24  ;;  %10662 = vmatprep.subr.bf16.mxu1 %v19036_v50 }
0x14ae   :  { %10608 = vmatpush1.bf16.msra.mxu0 %v18003_v7  ;;  %v18302_v63 = vpop.permute.xlu1 %10763  ;;  %12083 = vmatprep.mubr.msk.bf16.mxu0 %vm19247_vm5, %v12705_v58  ;;  %vm19263_vm5 = vmmov %vm19256_vm1 }
0x14af   :  { %v10984_v13 = vpop.permute.xlu0 %10983  ;;  %10609 = vmatprep.subr.bf16.mxu0 %v17962_v34 }
0x14b0   :  { %v18308_v24 = vsel %vm19248_vm8, %v10984_v13, %v18292_v52  ;;  %10663 = vmatpush1.bf16.msra.mxu1 %v17955_v17  ;;  %11263 = vrot.lane.b32.xlu1 %v18054_v54, %s12786_s24  ;;  %vm19264_vm8 = vmmov %vm19256_vm1 }
0x14b1   :  { %11247 = vrot.lane.b32.xlu0 %v18003_v7, %s12786_s24  ;;  %10664 = vmatprep.subr.bf16.mxu1 %v19036_v50 }
0x14b2   :  { %10610 = vmatpush1.bf16.msra.mxu0 %v17959_v44  ;;  %v18317_v46 = vpop.permute.xlu1 %10761 }
0x14b3   :  { %v18319_v55 = vpop.permute.xlu0 %10993  ;;  %10611 = vmatprep.subr.bf16.mxu0 %v18019_v16 }
0x14b4   :  { %10665 = vmatpush1.bf16.msra.mxu1 %v18054_v54  ;;  %11267 = vrot.lane.b32.xlu1 %v17975_v11, %s12786_s24  ;;  %v10788_v54 = vsel %vm19251_vm11, %v18137_v14, %v18198_v62  ;;  %vm19267_vm11 = vmmov %vm19256_vm1 }
0x14b5   :  { %11261 = vrot.lane.b32.xlu0 %v18019_v16, %s12786_s24  ;;  %10666 = vmatprep.subr.bf16.mxu1 %v19036_v50  ;;  %v12703_v16 = vld [vmem:[#allocation6] ss:$8 sps:$4 sm:$0xff]  }
0x14b6   :  { %10612 = vmatpush1.bf16.msra.mxu0 %v18016_v39  ;;  %v18329_v17 = vpop.permute.xlu1 %10771 }
0x14b7   :  { %v18331_v44 = vpop.permute.xlu0 %11005  ;;  %10613 = vmatprep.subr.bf16.mxu0 %v17975_v11 }
0x14b8   :  { %10667 = vmatpush1.bf16.msra.mxu1 %v17969_v5  ;;  %11265 = vrot.lane.b32.xlu1 %v17972_v20, %s12786_s24 }
0x14b9   :  { %11259 = vrot.lane.b32.xlu0 %v18016_v39, %s12786_s24  ;;  %10668 = vmatprep.subr.bf16.mxu1 %v19036_v50 }
0x14ba   :  { %10614 = vmatpush1.bf16.msra.mxu0 %v17972_v20  ;;  %v18341_v34 = vpop.permute.xlu1 %10775 }
0x14bb   :  { %v18343_v7 = vpop.permute.xlu0 %11017  ;;  %10615 = vmatprep.subr.bf16.mxu0 %v18029_v56 }
0x14bc   :  { %10669 = vmatpush1.bf16.msra.mxu1 %v18069_v26  ;;  %11275 = vrot.lane.b32.xlu1 %v18069_v26, %s12786_s24 }
0x14bd   :  { %11273 = vrot.lane.b32.xlu0 %v18029_v56, %s12786_s24  ;;  %10670 = vmatprep.subr.bf16.mxu1 %v19036_v50  ;;  %v12706_v56 = vld [vmem:[#allocation6 + $0x14] ss:$8 sps:$4 sm:$0xff]  }
0x14be   :  { %10616 = vmatpush1.bf16.msra.mxu0 %v18026_v4  ;;  %v18353_v5 = vpop.permute.xlu1 %10773 }
0x14bf   :  { %v18355_v20 = vpop.permute.xlu0 %10745  ;;  %10617 = vmatprep.subr.bf16.mxu0 %v17985_v47 }
0x14c0   :  { %10671 = vmatpush1.bf16.msra.mxu1 %v17987_v28  ;;  %11279 = vrot.lane.b32.xlu1 %v17985_v47, %s12786_s24  ;;  %v10786_v47 = vsel %vm19249_vm9, %v18060_v41, %v18058_v18  ;;  %vm19265_vm9 = vmmov %vm19256_vm1 }
0x14c1   :  { %11271 = vrot.lane.b32.xlu0 %v18026_v4, %s12786_s24  ;;  %10672 = vmatprep.subr.bf16.mxu1 %v19036_v50  ;;  %v10798_v2 = vsel %vm19265_vm9, %v18302_v63, %v18254_v60 }
0x14c2   :  { %10618 = vmatpush1.bf16.msra.mxu0 %v17982_v15  ;;  %v18365_v11 = vpop.permute.xlu1 %10979 }
0x14c3   :  { %v10744_v39 = vpop.permute.xlu0 %10743  ;;  %10619 = vmatprep.subr.bf16.mxu0 %v18044_v19 }
0x14c4   :  { %10673 = vmatpush1.bf16.msra.mxu1 %v18083_v22  ;;  %11277 = vrot.lane.b32.xlu1 %v17982_v15, %s12786_s24  ;;  %v10785_v15 = vsel %vm19250_vm6, %v18013_v3, %v18060_v41  ;;  %v12708_v3 = vld [vmem:[#allocation6 + $0x10] ss:$8 sps:$4 sm:$0xff]   ;;  %v10787_v41 = vsel %vm19253_vm14, %v18166_v61, %v18137_v14  ;;  %v10789_v14 = vsel %vm19256_vm1, %v18232_v0, %v18214_v8  ;;  %v11461_v61 = vld [vmem:[%s18709_s9 + $0x10] sm:$0xff]  ;;  %vm19266_vm6 = vmmov %vm19256_vm1 }
0x14c5   :  { %11285 = vrot.lane.b32.xlu0 %v18044_v19, %s12786_s24  ;;  %10894 = vmatprep.subr.bf16.mxu1 %v19036_v50  ;;  %v5703_v19 = vld [vmem:[%s18709_s9] sm:$0xff]  ;;  %v10793_v0 = vsel %vm19262_vm15, %v18276_v36, %v18263_v49  ;;  %v10797_v49 = vsel %vm19266_vm6, %v18317_v46, %v18302_v63  ;;  %v11534_v63 = vld [vmem:[%s18710_s10 + $0x18] sm:$0xff]  ;;  %vm19269_vm14 = vmmov %vm19256_vm1 }
0x14c6   :  { %10620 = vmatpush1.bf16.msra.mxu0 %v18041_v6  ;;  %v18378_v28 = vpop.permute.xlu1 %10977  ;;  %v10802_v13 = vsel %vm19269_vm14, %v18341_v34, %v18265_v33  ;;  %vm19280_vm6 = vmmov %vm19258_vm0 }
0x14c7   :  { %v18380_v4 = vpop.permute.xlu0 %10757  ;;  %10687 = vmatmul.mubr.bf16.vlgmr.msra.gmra.mrb[120].mxu1 %v12703_v16  ;;  %10841 = vmatprep.subr.bf16.mxu0 %v10786_v47  ;;  %v11598_v47 = vld [vmem:[#allocation5] sm:$0x1] }
0x14c8   :  { %10895 = vmatpush1.bf16.msra.mxu1 %v18058_v18  ;;  %11287 = vrot.lane.b32.xlu1 %v18083_v22, %s12786_s24  ;;  %v10790_v22 = vsel %vm19254_vm2, %v18214_v8, %v18172_v1  ;;  %v10791_v8 = vsel %vm19259_vm10, %v10744_v39, %v18355_v20  ;;  %v10796_v29 = vsel %vm19263_vm5, %v18380_v4, %v18289_v42  ;;  %vm19270_vm2 = vmmov %vm19256_vm1  ;;  %v5843_v39 = vld [vmem:[#allocation5] sm:$0x1] }
0x14c9   :  { %11283 = vrot.lane.b32.xlu0 %v18041_v6, %s12786_s24  ;;  %10634 = vmatmul.mubr.bf16.vlgmr.msra.gmra.mrb[156].mxu0 %v12703_v16  ;;  %v5704_v6 = vld [vmem:[%s18709_s9 + $0x8] sm:$0xff]  ;;  %vm19277_vm5 = vmmov %vm19258_vm0 }
0x14ca   :  { %10842 = vmatpush1.bf16.msra.mxu0 %v10785_v15  ;;  %10896 = vmatprep.subr.bf16.mxu1 %v19036_v50  ;;  %v18397_v18 = vpop.permute.xlu1 %10987  ;;  %v12709_v15 = vld [vmem:[#allocation6 + $0x40] ss:$8 sps:$4 sm:$0xff]  }
0x14cb   :  { %v10756_v26 = vpop.permute.xlu0 %10755  ;;  %10843 = vmatprep.subr.bf16.mxu0 %v10788_v54  ;;  %12086 = vmatprep.mubr.msk.bf16.mxu1 %vm19252_vm13, %v12706_v56  ;;  %vm19268_vm13 = vmmov %vm19256_vm1 }
0x14cc   :  { %10897 = vmatpush1.bf16.msra.mxu1 %v18198_v62  ;;  %5709 = vperm.xlu1 %12547, %v5703_v19   ;;  %v10792_v62 = vsel %vm19257_vm3, %v18355_v20, %v18252_v21  ;;  %v10795_v27 = vsel %vm19264_vm8, %v10756_v26, %v18380_v4  ;;  %vm19272_vm3 = vcmask 1022976  }
0x14cd   :  { %5714 = vperm.xlu0 %12546, %v5704_v6   ;;  %10898 = vmatprep.subr.bf16.mxu1 %v19036_v50  ;;  %vm19273_vm10 = vmmov %vm19272_vm3 }
0x14ce   :  { %10844 = vmatpush1.bf16.msra.mxu0 %v10787_v41  ;;  %v18411_v12 = vpop.permute.xlu1 %10991  ;;  %12084 = vmatprep.mubr.msk.bf16.mxu0 %vm19255_vm12, %v12706_v56  ;;  %vm19271_vm12 = vmmov %vm19256_vm1 }
0x14cf   :  { %v18414_v37 = vpop.permute.xlu0 %10769  ;;  %10695 = vmatmul.mubr.bf16.gmra.mrb[124].mxu1 %v12708_v3  ;;  %10845 = vmatprep.subr.bf16.mxu0 %v10790_v22  ;;  %vm19274_vm4 = vmmov %vm19272_vm3  ;;  %v12717_v22 = vld [vmem:[#allocation6 + $0x64] ss:$8 sps:$4 sm:$0xff]  }
0x14d0   :  { %10899 = vmatpush1.bf16.msra.mxu1 %v18172_v1  ;;  %11465 = vperm.xlu1 %12547, %v5703_v19   ;;  %v10800_v36 = vsel %vm19267_vm11, %v18414_v37, %v18329_v17  ;;  %v11040_v26 = vsel %vm19274_vm4, %v18292_v52, %v18397_v18  ;;  %vm19276_vm15 = vmmov %vm19272_vm3 }
0x14d1   :  { %11470 = vperm.xlu0 %12546, %v5704_v6   ;;  %10900 = vmatprep.subr.bf16.mxu1 %v19036_v50  ;;  %v11037_v6 = vsel %vm19273_vm10, %v18378_v28, %v18365_v11  ;;  %vm19278_vm8 = vmmov %vm19272_vm3 }
0x14d2   :  { %10846 = vmatpush1.bf16.msra.mxu0 %v10789_v14  ;;  %v18427_v35 = vpop.permute.xlu1 %10989  ;;  %12093 = vmatprep.mubr.msk.bf16.mxu1 %vm19258_vm0, %v12711_v31  ;;  %vm19279_vm9 = vmmov %vm19272_vm3 }
0x14d3   :  { %v10768_v1 = vpop.permute.xlu0 %10767  ;;  %10847 = vmatprep.subr.bf16.mxu0 %v10792_v62  ;;  %10644 = vmatmul.mubr.bf16.gmra.mrb[160].mxu0 %v12708_v3  ;;  %v11041_v52 = vsel %vm19278_vm8, %v18427_v35, %v18411_v12  ;;  %vm19281_vm11 = vmmov %vm19272_vm3  ;;  %vm19294_vm8 = vcmask 1014784  }
0x14d4   :  { %10901 = vmatpush1.bf16.msra.mxu1 %v18252_v21  ;;  %5719 = vperm.xlu1 %12547, %v11461_v61   ;;  %vm19283_vm14 = vmmov %vm19272_vm3 }
0x14d5   :  { %11475 = vperm.xlu0 %12546, %v11461_v61   ;;  %10902 = vmatprep.subr.bf16.mxu1 %v19036_v50 }
0x14d6   :  { %10848 = vmatpush1.bf16.msra.mxu0 %v10791_v8  ;;  %v18440_v40 = vpop.permute.xlu1 %10999  ;;  %12091 = vmatprep.mubr.msk.bf16.mxu0 %vm19261_vm7, %v12711_v31  ;;  %vm19275_vm7 = vmmov %vm19258_vm0 }
0x14d7   :  { %v10782_v48 = vpop.permute.xlu0 %10781  ;;  %10849 = vmatprep.subr.bf16.mxu0 %v10794_v43 }
0x14d8   :  { %10903 = vmatpush1.bf16.msra.mxu1 %v18234_v57  ;;  %5724 = vperm.xlu1 %12547, %v11462_v32   ;;  %v5776_v57 = vld [vmem:[%s18710_s10 + $0x8] sm:$0xff]  ;;  %s12790_s10 = smov [#allocation9]  }
0x14d9   :  { %11480 = vperm.xlu0 %12546, %v11462_v32   ;;  %10904 = vmatprep.subr.bf16.mxu1 %v19036_v50  ;;  %s11648_s18 = sshll.u32 %s12790_s10, 4  ;;  %s11649_s18 = int_to_ptr.vmem [resolvable:$true] %s11648_s18 }
0x14da   :  { %10850 = vmatpush1.bf16.msra.mxu0 %v10793_v0  ;;  %v18454_v38 = vpop.permute.xlu1 %11003  ;;  %s12749_s19 = scalar_lea.vmem %s11649_s18, 96  ;;  %p12754_p9 = scmp.lt.s32.totalorder %s11649_s18, %s11649_s18 }
0x14db   :  { %v18459_v25 = vpop.permute.xlu0 %11029  ;;  %10851 = vmatprep.subr.bf16.mxu0 %v10796_v29  ;;  %p12750_p8 = scmp.ne.s32.totalorder %s11649_s18, %s12749_s19  ;;  %p12755_p10 = scmp.lt.s32.totalorder %s12749_s19, %s12749_s19 }
0x14dc   :  { %10905 = vmatpush1.bf16.msra.mxu1 %v18289_v42  ;;  %5781 = vperm.xlu1 %12547, %v5775_v9   ;;  %v10799_v42 = vsel %vm19268_vm13, %v10768_v1, %v18414_v37  ;;  %vm19282_vm13 = vmmov %vm19272_vm3 }
0x14dd   :  { %5786 = vperm.xlu0 %12546, %v5776_v57   ;;  %10906 = vmatprep.subr.bf16.mxu1 %v19036_v50  ;;  %p12756_p11 = por %p12755_p10, %p12754_p9 }
0x14de   :  { %10852 = vmatpush1.bf16.msra.mxu0 %v10795_v27  ;;  %v18468_v21 = vpop.permute.xlu1 %11001 }
0x14df   :  { %v18470_v51 = vpop.permute.xlu0 %11233  ;;  %10853 = vmatprep.subr.bf16.mxu0 %v10798_v2  ;;  %v11045_v62 = vsel %vm19283_vm14, %v18468_v21, %v18454_v38  ;;  %p12757_p12 = pnand %p12756_p11, %p12750_p8 }
0x14e0   :  { %10907 = vmatpush1.bf16.msra.mxu1 %v18254_v60  ;;  %11537 = vperm.xlu1 %12547, %v5775_v9  }
0x14e1   :  { %11542 = vperm.xlu0 %12546, %v5776_v57   ;;  %10908 = vmatprep.subr.bf16.mxu1 %v19036_v50 }
0x14e2   :  { %10854 = vmatpush1.bf16.msra.mxu0 %v10797_v49  ;;  %v18483_v58 = vpop.permute.xlu1 %11011 }
0x14e3   :  { %v18485_v60 = vpop.permute.xlu0 %11237  ;;  %10855 = vmatprep.subr.bf16.mxu0 %v10800_v36  ;;  %v12715_v36 = vld [vmem:[#allocation6 + $0x60] ss:$8 sps:$4 sm:$0xff]  }
0x14e4   :  { %10909 = vmatpush1.bf16.msra.mxu1 %v18329_v17  ;;  %5791 = vperm.xlu1 %12547, %v11533_v59   ;;  %v10801_v17 = vsel %vm19270_vm2, %v18353_v5, %v18341_v34  ;;  %v11038_v34 = vsel %vm19272_vm3, %v18365_v11, %v18279_v45  ;;  %v11042_v11 = vsel %vm19276_vm15, %v18411_v12, %v18319_v55  ;;  %vm19284_vm2 = vmmov %vm19272_vm3 }
0x14e5   :  { %11547 = vperm.xlu0 %12546, %v11533_v59   ;;  %10910 = vmatprep.subr.bf16.mxu1 %v19036_v50  ;;  %v11046_v12 = vsel %vm19282_vm13, %v18454_v38, %v18331_v44 }
0x14e6   :  { %10856 = vmatpush1.bf16.msra.mxu0 %v10799_v42  ;;  %v18497_v46 = vpop.permute.xlu1 %11015  ;;  %v12718_v42 = vld [vmem:[#allocation6 + $0x74] ss:$8 sps:$4 sm:$0xff]  }
0x14e7   :  { %v18499_v20 = vpop.permute.xlu0 %11235  ;;  %10857 = vmatprep.subr.bf16.mxu0 %v10802_v13 }
0x14e8   :  { %10911 = vmatpush1.bf16.msra.mxu1 %v18265_v33  ;;  %5796 = vperm.xlu1 %12547, %v11534_v63   ;;  %v12712_v33 = vld [vmem:[#allocation6 + $0x54] ss:$8 sps:$4 sm:$0xff]  }
0x14e9   :  { %11552 = vperm.xlu0 %12546, %v11534_v63   ;;  %10912 = vmatprep.subr.bf16.mxu1 %v19036_v50 }
0x14ea   :  { %10858 = vmatpush1.bf16.msra.mxu0 %v10801_v17  ;;  %v10784_v16 = vpop.permute.xlu1 %10783 }
0x14eb   :  { %v10780_v4 = vpop.permute.xlu0 %10779  ;;  %v10804_v56 = vsel %vm19271_vm12, %v10782_v48, %v10784_v16  ;;  %vm19285_vm12 = vmmov %vm19284_vm2 }
0x14ec   :  { %v10803_v19 = vsel %vm19256_vm1, %v10780_v4, %v10782_v48  ;;  %10913 = vmatpush1.bf16.msra.mxu1 %v10784_v16  ;;  %5846 = vperm.xlu1 %12547, %v5843_v39   ;;  %vm19286_vm1 = vmmov %vm19284_vm2 }
0x14ed   :  { %11601 = vperm.xlu0 %12546, %v11598_v47   ;;  %10859 = vmatprep.subr.bf16.mxu0 %v10804_v56  ;;  %vm19287_vm3 = vmmov %vm19286_vm1  ;;  %v12720_v47 = vld [vmem:[#allocation6 + $0x70] ss:$8 sps:$4 sm:$0xff]  }
0x14ee   :  { %10860 = vmatpush1.bf16.msra.mxu0 %v10803_v19  ;;  %11146 = vmatprep.subr.bf16.mxu1 %v19036_v50  ;;  %v11014_v5 = vpop.permute.xlu1 %11013 }
0x14ef   :  { %v18512_v54 = vpop.permute.xlu0 %11245  ;;  %10927 = vmatmul.mubr.bf16.vlgmr.msra.gmra.mrb[128].mxu1 %v12709_v15  ;;  %11093 = vmatprep.subr.bf16.mxu0 %v11038_v34  ;;  %v11049_v48 = vsel %vm19287_vm3, %v11014_v5, %v18497_v46 }
0x14f0   :  { %11147 = vmatpush1.bf16.msra.mxu1 %v18279_v45  ;;  %12094 = vmatprep.mubr.msk.bf16.mxu1 %vm19258_vm0, %v12712_v33  ;;  %v12714_v45 = vld [vmem:[#allocation6 + $0x50] ss:$8 sps:$4 sm:$0xff]   ;;  %vm19288_vm0 = vmmov %vm19286_vm1 }
0x14f1   :  { %10874 = vmatmul.mubr.bf16.vlgmr.msra.gmra.mrb[156].mxu0 %v12709_v15  ;;  %11148 = vmatprep.subr.bf16.mxu1 %v19036_v50  ;;  %vm19289_vm10 = vmmov %vm19288_vm0 }
0x14f2   :  { %11094 = vmatpush1.bf16.msra.mxu0 %v11037_v6  ;;  %v11024_v3 = vpop.permute.xlu1 %11023  ;;  %12092 = vmatprep.mubr.msk.bf16.mxu0 %vm19275_vm7, %v12712_v33  ;;  %vm19290_vm4 = vmmov %vm19288_vm0 }
0x14f3   :  { %v10998_v41 = vpop.permute.xlu0 %10997  ;;  %11095 = vmatprep.subr.bf16.mxu0 %v11040_v26  ;;  %vm19291_vm7 = vmmov %vm19288_vm0 }
0x14f4   :  { %11149 = vmatpush1.bf16.msra.mxu1 %v18397_v18  ;;  %vm19292_vm15 = vmmov %vm19288_vm0 }
0x14f5   :  { %11150 = vmatprep.subr.bf16.mxu1 %v19036_v50 }
0x14f6   :  { %11096 = vmatpush1.bf16.msra.mxu0 %v18308_v24  ;;  %v11028_v28 = vpop.permute.xlu1 %11027  ;;  %v11044_v24 = vsel %vm19279_vm9, %v10998_v41, %v18440_v40  ;;  %vm19295_vm9 = vmmov %vm19280_vm6 }
0x14f7   :  { %v10996_v31 = vpop.permute.xlu0 %10995  ;;  %10935 = vmatmul.mubr.bf16.gmra.mrb[132].mxu1 %v12714_v45  ;;  %11097 = vmatprep.subr.bf16.mxu0 %v11042_v11  ;;  %vm19298_vm13 = vmmov %vm19295_vm9 }
0x14f8   :  { %11151 = vmatpush1.bf16.msra.mxu1 %v18319_v55  ;;  %12101 = vmatprep.mubr.msk.bf16.mxu1 %vm19277_vm5, %v12717_v22  ;;  %v11043_v55 = vsel %vm19281_vm11, %v10996_v31, %v10998_v41  ;;  %vm19293_vm5 = vmmov %vm19288_vm0 }
0x14f9   :  { %11152 = vmatprep.subr.bf16.mxu1 %v19036_v50  ;;  %10884 = vmatmul.mubr.bf16.gmra.mrb[160].mxu0 %v12714_v45 }
0x14fa   :  { %11098 = vmatpush1.bf16.msra.mxu0 %v11041_v52  ;;  %v11026_v18 = vpop.permute.xlu1 %11025  ;;  %12099 = vmatprep.mubr.msk.bf16.mxu0 %vm19280_vm6, %v12717_v22  ;;  %vm19296_vm6 = vmmov %vm19294_vm8 }
0x14fb   :  { %v11010_v37 = vpop.permute.xlu0 %11009  ;;  %11099 = vmatprep.subr.bf16.mxu0 %v11044_v24  ;;  %v11053_v2 = vsel %vm19291_vm7, %v11026_v18, %v11028_v28  ;;  %vm19297_vm11 = vmmov %vm19296_vm6 }
0x14fc   :  { %11153 = vmatpush1.bf16.msra.mxu1 %v18440_v40  ;;  %v11048_v35 = vsel %vm19284_vm2, %v11010_v37, %v18483_v58  ;;  %vm19299_vm14 = vmmov %vm19296_vm6 }
0x14fd   :  { %11154 = vmatprep.subr.bf16.mxu1 %v19036_v50  ;;  %v11291_v4 = vsel %vm19299_vm14, %v18499_v20, %v18485_v60  ;;  %vm19300_vm2 = vmmov %vm19296_vm6 }
0x14fe   :  { %11100 = vmatpush1.bf16.msra.mxu0 %v11043_v55  ;;  %v11232_v14 = vpop.permute.xlu1 %11231 }
0x14ff   :  { %v11008_v61 = vpop.permute.xlu0 %11007  ;;  %11101 = vmatprep.subr.bf16.mxu0 %v11046_v12 }
0x1500   :  { %11155 = vmatpush1.bf16.msra.mxu1 %v18331_v44  ;;  %v11047_v32 = vsel %vm19285_vm12, %v11008_v61, %v11010_v37  ;;  %v11050_v44 = vsel %vm19286_vm1, %v18497_v46, %v18343_v7  ;;  %vm19301_vm12 = vmmov %vm19295_vm9 }
0x1501   :  { %11156 = vmatprep.subr.bf16.mxu1 %v19036_v50  ;;  %vm19302_vm1 = vmmov %vm19300_vm2 }
0x1502   :  { %11102 = vmatpush1.bf16.msra.mxu0 %v11045_v62  ;;  %v11230_v1 = vpop.permute.xlu1 %11229  ;;  %vm19303_vm3 = vmmov %vm19302_vm1 }
0x1503   :  { %v11022_v8 = vpop.permute.xlu0 %11021  ;;  %11103 = vmatprep.subr.bf16.mxu0 %v11048_v35  ;;  %v11289_v46 = vsel %vm19296_vm6, %v11230_v1, %v11232_v14  ;;  %vm19307_vm7 = vmmov %vm19302_vm1 }
0x1504   :  { %11157 = vmatpush1.bf16.msra.mxu1 %v18483_v58  ;;  %v11052_v0 = vsel %vm19288_vm0, %v11022_v8, %v11024_v3  ;;  %vm19304_vm0 = vmmov %vm19295_vm9 }
0x1505   :  { %11158 = vmatprep.subr.bf16.mxu1 %v19036_v50  ;;  %vm19312_vm6 = vmmov %vm19302_vm1 }
0x1506   :  { %11104 = vmatpush1.bf16.msra.mxu0 %v11047_v32  ;;  %v11240_v43 = vpop.permute.xlu1 %11239  ;;  %vm19315_vm14 = vmmov %vm19302_vm1 }
0x1507   :  { %v11020_v40 = vpop.permute.xlu0 %11019  ;;  %11105 = vmatprep.subr.bf16.mxu0 %v11050_v44  ;;  %v11292_v17 = vsel %vm19297_vm11, %v18485_v60, %v11240_v43  ;;  %vm19313_vm11 = vmmov %vm19302_vm1  ;;  %v12721_v44 = vld [vmem:[#allocation6 + $0x80] ss:$8 sps:$4 sm:$0xff]  }
0x1508   :  { %11159 = vmatpush1.bf16.msra.mxu1 %v18343_v7  ;;  %v11051_v38 = vsel %vm19289_vm10, %v11020_v40, %v11022_v8  ;;  %v11054_v7 = vsel %vm19290_vm4, %v11028_v28, %v18459_v25  ;;  %vm19305_vm10 = vmmov %vm19302_vm1  ;;  %v12724_v40 = vld [vmem:[#allocation6 + $0x94] ss:$8 sps:$4 sm:$0xff]  }
0x1509   :  { %11160 = vmatprep.subr.bf16.mxu1 %v19036_v50  ;;  %vm19306_vm4 = vmmov %vm19302_vm1 }
0x150a   :  { %11106 = vmatpush1.bf16.msra.mxu0 %v11049_v48  ;;  %v11244_v9 = vpop.permute.xlu1 %11243  ;;  %v12726_v48 = vld [vmem:[#allocation6 + $0x90] ss:$8 sps:$4 sm:$0xff]  }
0x150b   :  { %v11034_v29 = vpop.permute.xlu0 %11033  ;;  %11107 = vmatprep.subr.bf16.mxu0 %v11052_v0  ;;  %v11294_v56 = vsel %vm19300_vm2, %v11244_v9, %v18512_v54  ;;  %vm19316_vm2 = vmmov %vm19302_vm1 }
0x150c   :  { %11161 = vmatpush1.bf16.msra.mxu1 %v11024_v3 }
0x150d   :  { %11162 = vmatprep.subr.bf16.mxu1 %v19036_v50 }
0x150e   :  { %11108 = vmatpush1.bf16.msra.mxu0 %v11051_v38  ;;  %v11242_v57 = vpop.permute.xlu1 %11241 }
0x150f   :  { %v11258_v27 = vpop.permute.xlu0 %11257  ;;  %11109 = vmatprep.subr.bf16.mxu0 %v11054_v7  ;;  %v11293_v33 = vsel %vm19302_vm1, %v11242_v57, %v11244_v9 }
0x1510   :  { %11163 = vmatpush1.bf16.msra.mxu1 %v18459_v25  ;;  %v11290_v25 = vsel %vm19294_vm8, %v11232_v14, %v18470_v51  ;;  %vm19310_vm8 = vmmov %vm19302_vm1 }
0x1511   :  { %11164 = vmatprep.subr.bf16.mxu1 %v19036_v50 }
0x1512   :  { %11110 = vmatpush1.bf16.msra.mxu0 %v11053_v2  ;;  %v11036_v21 = vpop.permute.xlu1 %11035 }
0x1513   :  { %v11032_v49 = vpop.permute.xlu0 %11031  ;;  %v11056_v59 = vsel %vm19292_vm15, %v11034_v29, %v11036_v21  ;;  %vm19308_vm15 = vmmov %vm19302_vm1 }
0x1514   :  { %v11055_v58 = vsel %vm19293_vm5, %v11032_v49, %v11034_v29  ;;  %11165 = vmatpush1.bf16.msra.mxu1 %v11036_v21  ;;  %11111 = vmatprep.subr.bf16.mxu0 %v11056_v59  ;;  %vm19309_vm5 = vmmov %vm19302_vm1  ;;  %v19321_v21 = vld [vmem:[#allocation15_spill] sm:$0xff] }
0x1515   :  { %11398 = vmatprep.subr.bf16.mxu1 %v19036_v50 }
0x1516   :  { %11112 = vmatpush1.bf16.msra.mxu0 %v11055_v58  ;;  %v11252_v63 = vpop.permute.xlu1 %11251 }
0x1517   :  { %v11270_v13 = vpop.permute.xlu0 %11269  ;;  %11179 = vmatmul.mubr.bf16.vlgmr.msra.gmra.mrb[136].mxu1 %v12715_v36  ;;  %11345 = vmatprep.subr.bf16.mxu0 %v11290_v25 }
0x1518   :  { %11399 = vmatpush1.bf16.msra.mxu1 %v18470_v51  ;;  %12102 = vmatprep.mubr.msk.bf16.mxu1 %vm19295_vm9, %v12718_v42  ;;  %v12723_v51 = vld [vmem:[#allocation6 + $0x84] ss:$8 sps:$4 sm:$0xff]   ;;  %vm19311_vm9 = vmmov %vm19302_vm1 }
0x1519   :  { %11126 = vmatmul.mubr.bf16.vlgmr.msra.gmra.mrb[156].mxu0 %v12715_v36  ;;  %11400 = vmatprep.subr.bf16.mxu1 %v19036_v50 }
0x151a   :  { %11346 = vmatpush1.bf16.msra.mxu0 %v11289_v46  ;;  %v11256_v39 = vpop.permute.xlu1 %11255  ;;  %12100 = vmatprep.mubr.msk.bf16.mxu0 %vm19298_vm13, %v12718_v42  ;;  %vm19314_vm13 = vmmov %vm19302_vm1 }
0x151b   :  { %v18582_v16 = vpop.permute.xlu0 %11281  ;;  %11347 = vmatprep.subr.bf16.mxu0 %v11292_v17  ;;  %v19323_v17 = vld [vmem:[#allocation17_spill] sm:$0xff] }
0x151c   :  { %11401 = vmatpush1.bf16.msra.mxu1 %v11240_v43 }
0x151d   :  { %11402 = vmatprep.subr.bf16.mxu1 %v19036_v50 }
0x151e   :  { %11348 = vmatpush1.bf16.msra.mxu0 %v11291_v4  ;;  %v11254_v15 = vpop.permute.xlu1 %11253 }
0x151f   :  { %v11250_v19 = vpop.permute.xlu0 %11249  ;;  %11187 = vmatmul.mubr.bf16.gmra.mrb[140].mxu1 %v12720_v47  ;;  %11349 = vmatprep.subr.bf16.mxu0 %v11294_v56  ;;  %v11297_v3 = vsel %vm19307_vm7, %v11254_v15, %v11256_v39 }
0x1520   :  { %11403 = vmatpush1.bf16.msra.mxu1 %v18512_v54  ;;  %12109 = vmatprep.mubr.msk.bf16.mxu1 %vm19301_vm12, %v12723_v51  ;;  %v11296_v60 = vsel %vm19303_vm3, %v11250_v19, %v11252_v63  ;;  %v11298_v54 = vsel %vm19306_vm4, %v11256_v39, %v11258_v27  ;;  %vm19317_vm12 = vmmov %vm19302_vm1 }
0x1521   :  { %11404 = vmatprep.subr.bf16.mxu1 %v19036_v50  ;;  %11136 = vmatmul.mubr.bf16.gmra.mrb[160].mxu0 %v12720_v47  ;;  %vm19318_vm1 = vmmov %vm19304_vm0 }
0x1522   :  { %11350 = vmatpush1.bf16.msra.mxu0 %v11293_v33  ;;  %v11264_v20 = vpop.permute.xlu1 %11263  ;;  %12107 = vmatprep.mubr.msk.bf16.mxu0 %vm19304_vm0, %v12723_v51  ;;  %vm19319_vm3 = vmmov %vm19304_vm0 }
0x1523   :  { %v11248_v34 = vpop.permute.xlu0 %11247  ;;  %11351 = vmatprep.subr.bf16.mxu0 %v11296_v60 }
0x1524   :  { %v11295_v5 = vsel %vm19305_vm10, %v11248_v34, %v11250_v19  ;;  %11405 = vmatpush1.bf16.msra.mxu1 %v11252_v63 }
0x1525   :  { %11406 = vmatprep.subr.bf16.mxu1 %v19036_v50 }
0x1526   :  { %11352 = vmatpush1.bf16.msra.mxu0 %v11295_v5  ;;  %v11268_v6 = vpop.permute.xlu1 %11267 }
0x1527   :  { %v11262_v26 = vpop.permute.xlu0 %11261  ;;  %11353 = vmatprep.subr.bf16.mxu0 %v11298_v54  ;;  %v11302_v28 = vsel %vm19310_vm8, %v11268_v6, %v11270_v13  ;;  %vm5829_vm8 = vcmask 523264  }
0x1528   :  { %11407 = vmatpush1.bf16.msra.mxu1 %v11258_v27  ;;  %v11300_v41 = vsel %vm19308_vm15, %v11262_v26, %v11264_v20  ;;  %v19320_v27 = vld [vmem:[#allocation14_spill] sm:$0xff] }
0x1529   :  { %11408 = vmatprep.subr.bf16.mxu1 %v19036_v50 }
0x152a   :  { %11354 = vmatpush1.bf16.msra.mxu0 %v11297_v3  ;;  %v11266_v45 = vpop.permute.xlu1 %11265 }
0x152b   :  { %v11260_v22 = vpop.permute.xlu0 %11259  ;;  %11355 = vmatprep.subr.bf16.mxu0 %v11300_v41  ;;  %v11301_v24 = vsel %vm19311_vm9, %v11266_v45, %v11268_v6 }
0x152c   :  { %v11299_v11 = vsel %vm19309_vm5, %v11260_v22, %v11262_v26  ;;  %11409 = vmatpush1.bf16.msra.mxu1 %v11264_v20 }
0x152d   :  { %11410 = vmatprep.subr.bf16.mxu1 %v19036_v50 }
0x152e   :  { %11356 = vmatpush1.bf16.msra.mxu0 %v11299_v11  ;;  %v11276_v31 = vpop.permute.xlu1 %11275 }
0x152f   :  { %v11274_v52 = vpop.permute.xlu0 %11273  ;;  %11357 = vmatprep.subr.bf16.mxu0 %v11302_v28  ;;  %v19325_v28 = vld [vmem:[#allocation18_spill] sm:$0xff] }
0x1530   :  { %11411 = vmatpush1.bf16.msra.mxu1 %v11270_v13  ;;  %v11304_v18 = vsel %vm19312_vm6, %v11274_v52, %v11276_v31 }
0x1531   :  { %11412 = vmatprep.subr.bf16.mxu1 %v19036_v50 }
0x1532   :  { %11358 = vmatpush1.bf16.msra.mxu0 %v11301_v24  ;;  %v11280_v37 = vpop.permute.xlu1 %11279 }
0x1533   :  { %v11272_v55 = vpop.permute.xlu0 %11271  ;;  %11359 = vmatprep.subr.bf16.mxu0 %v11304_v18  ;;  %v11306_v14 = vsel %vm19314_vm13, %v11280_v37, %v18582_v16 }
0x1534   :  { %v11303_v12 = vsel %vm19313_vm11, %v11272_v55, %v11274_v52  ;;  %11413 = vmatpush1.bf16.msra.mxu1 %v11276_v31  ;;  %v19326_v52 = vld [vmem:[#allocation19_spill] sm:$0xff] }
0x1535   :  { %11414 = vmatprep.subr.bf16.mxu1 %v19036_v50 }
0x1536   :  { %11360 = vmatpush1.bf16.msra.mxu0 %v11303_v12  ;;  %v11278_v61 = vpop.permute.xlu1 %11277 }
0x1537   :  { %v11286_v62 = vpop.permute.xlu0 %11285  ;;  %11361 = vmatprep.subr.bf16.mxu0 %v11306_v14  ;;  %v11305_v35 = vsel %vm19315_vm14, %v11278_v61, %v11280_v37  ;;  %v19327_v37 = vld [vmem:[#allocation21_spill] sm:$0xff] }
0x1538   :  { %11415 = vmatpush1.bf16.msra.mxu1 %v18582_v16  ;;  %v19324_v16 = vld [vmem:[#allocation20_spill] sm:$0xff] }
0x1539   :  { %11416 = vmatprep.subr.bf16.mxu1 %v19036_v50 }
0x153a   :  { %11362 = vmatpush1.bf16.msra.mxu0 %v11305_v35  ;;  %v11288_v1 = vpop.permute.xlu1 %11287 }
0x153b   :  { %v11284_v8 = vpop.permute.xlu0 %11283  ;;  %v11308_v32 = vsel %vm19316_vm2, %v11286_v62, %v11288_v1 }
0x153c   :  { %v11307_v43 = vsel %vm19317_vm12, %v11284_v8, %v11286_v62  ;;  %11417 = vmatpush1.bf16.msra.mxu1 %v11288_v1  ;;  %11363 = vmatprep.subr.bf16.mxu0 %v11308_v32 }
0x153e   :  { %11364 = vmatpush1.bf16.msra.mxu0 %v11307_v43 }
0x153f   :  { %11431 = vmatmul.mubr.bf16.vlgmr.msra.gmra.mrb[144].mxu1 %v12721_v44 }
0x1540   :  { %12110 = vmatprep.mubr.msk.bf16.mxu1 %vm19318_vm1, %v12724_v40 }
0x1541   :  { %11378 = vmatmul.mubr.bf16.vlgmr.msra.gmra.mrb[156].mxu0 %v12721_v44 }
0x1542   :  { %12108 = vmatprep.mubr.msk.bf16.mxu0 %vm19319_vm3, %v12724_v40 }
0x1547   :  { %11439 = vmatmul.mubr.bf16.gmra.mrb[148].mxu1 %v12726_v48 }
0x1549   :  { %11388 = vmatmul.mubr.bf16.gmra.mrb[160].mxu0 %v12726_v48 }
0x154b   :  { %v5710_v50 = vpop.permute.xlu1 %5709 }
0x154c   :  { %v5715_v0 = vpop.permute.xlu0 %5714  ;;  %v5727_v29 = vadd.f32 %v5710_v50, %v15893_v10  ;;  %v5728_v38 = vadd.f32 %v5710_v50, %v15895_v53  ;;  %v5729_v7 = vadd.f32 %v5710_v50, %v16226_v30  ;;  %v19322_v53 = vld [vmem:[#allocation16_spill] sm:$0xff] }
0x154d   :  { %v5730_v2 = vadd.f32 %v5715_v0, %v19320_v27  ;;  %v5731_v49 = vadd.f32 %v5715_v0, %v19321_v21  ;;  %v5732_v59 = vadd.f32 %v5715_v0, %v16230_v23 }
0x154e   :  { %v5751_v58 = vmul.f32 0.2, %v5727_v29  ;;  %v5752_v42 = vmul.f32 0.2, %v5728_v38  ;;  %v5753_v25 = vmul.f32 0.2, %v5729_v7 }
0x154f   :  { %v18619_v9 = vpop.permute.xlu1 %11465  ;;  %v5754_v13 = vmul.f32 0.2, %v5730_v2  ;;  %v5755_v10 = vmul.f32 0.2, %v5731_v49  ;;  %v5756_v46 = vmul.f32 0.2, %v5732_v59 }
0x1550   :  { %v18624_v57 = vpop.permute.xlu0 %11470  ;;  %vm5742_vm0 = vcmp.ge.f32.partialorder %v5730_v2, 0.0  ;;  %vm5743_vm10 = vcmp.ge.f32.partialorder %v5731_v49, 0.0  ;;  %vm5744_vm4 = vcmp.ge.f32.partialorder %v5732_v59, 0.0  ;;  %vm5739_vm7 = vcmp.ge.f32.partialorder %v5727_v29, 0.0 }
0x1551   :  { %vm5740_vm15 = vcmp.ge.f32.partialorder %v5728_v38, 0.0  ;;  %vm5741_vm5 = vcmp.ge.f32.partialorder %v5729_v7, 0.0  ;;  %v5766_v4 = vsel %vm5742_vm0, %v5730_v2, %v5754_v13  ;;  %v5767_v56 = vsel %vm5743_vm10, %v5731_v49, %v5755_v10 }
0x1552   :  { %v5768_v15 = vsel %vm5744_vm4, %v5732_v59, %v5756_v46  ;;  %v5763_v19 = vsel %vm5739_vm7, %v5727_v29, %v5751_v58  ;;  %v5764_v33 = vsel %vm5740_vm15, %v5728_v38, %v5752_v42  ;;  %v5765_v5 = vsel %vm5741_vm5, %v5729_v7, %v5753_v25 }
0x1553   :  { %v5720_v36 = vpop.permute.xlu1 %5719 }
0x1554   :  { %v18629_v63 = vpop.permute.xlu0 %11475  ;;  %v5733_v30 = vadd.f32 %v5720_v36, %v19322_v53  ;;  %v5734_v39 = vadd.f32 %v5720_v36, %v19323_v17  ;;  %v5735_v47 = vadd.f32 %v5720_v36, %v19324_v16 }
0x1556   :  { %v5757_v60 = vmul.f32 0.2, %v5733_v30  ;;  %v5758_v20 = vmul.f32 0.2, %v5734_v39  ;;  %v5759_v34 = vmul.f32 0.2, %v5735_v47 }
0x1557   :  { %v5725_v23 = vpop.permute.xlu1 %5724  ;;  %vm5745_vm9 = vcmp.ge.f32.partialorder %v5733_v30, 0.0  ;;  %vm5746_vm6 = vcmp.ge.f32.partialorder %v5734_v39, 0.0  ;;  %vm5747_vm11 = vcmp.ge.f32.partialorder %v5735_v47, 0.0 }
0x1558   :  { %v18634_v51 = vpop.permute.xlu0 %11480  ;;  %v5736_v31 = vadd.f32 %v5725_v23, %v19325_v28  ;;  %v5737_v24 = vadd.f32 %v5725_v23, %v19326_v52  ;;  %v5738_v55 = vadd.f32 %v5725_v23, %v19327_v37  ;;  %v5769_v8 = vsel %vm5745_vm9, %v5733_v30, %v5757_v60  ;;  %v19328_v52 = vld [vmem:[#allocation13_spill] sm:$0xff] }
0x1559   :  { %v5770_v32 = vsel %vm5746_vm6, %v5734_v39, %v5758_v20  ;;  %v5771_v44 = vsel %vm5747_vm11, %v5735_v47, %v5759_v34 }
0x155a   :  { %v5760_v1 = vmul.f32 0.2, %v5736_v31  ;;  %v5761_v43 = vmul.f32 0.2, %v5737_v24  ;;  %v5762_v40 = vmul.f32 0.2, %v5738_v55 }
0x155b   :  { %v5782_v54 = vpop.permute.xlu1 %5781  ;;  %vm5748_vm13 = vcmp.ge.f32.partialorder %v5736_v31, 0.0  ;;  %vm5749_vm14 = vcmp.ge.f32.partialorder %v5737_v24, 0.0  ;;  %vm5750_vm2 = vcmp.ge.f32.partialorder %v5738_v55, 0.0 }
0x155c   :  { %v5787_v6 = vpop.permute.xlu0 %5786  ;;  %v5799_v26 = vmul.f32 %v5782_v54, %v5763_v19  ;;  %v5800_v3 = vmul.f32 %v5782_v54, %v5764_v33  ;;  %v5801_v41 = vmul.f32 %v5782_v54, %v5765_v5  ;;  %v5772_v21 = vsel %vm5748_vm13, %v5736_v31, %v5760_v1 }
0x155d   :  { %v5802_v45 = vmul.f32 %v5787_v6, %v5766_v4  ;;  %v5803_v22 = vmul.f32 %v5787_v6, %v5767_v56  ;;  %v5804_v11 = vmul.f32 %v5787_v6, %v5768_v15  ;;  %v5773_v49 = vsel %vm5749_vm14, %v5737_v24, %v5761_v43 }
0x155e   :  { %v5830_v18 = vsel %vm5829_vm8, %v5801_v41, 0.0  ;;  %v5774_v59 = vsel %vm5750_vm2, %v5738_v55, %v5762_v40  ;;  %v12789_v19 = vmov 1966171168  }
0x155f   :  { %v5831_v12 = vsel %vm5829_vm8, %v5804_v11, 0.0  ;;  %v5811_v14 = vadd.f32 %v5802_v45, %v5799_v26  ;;  %v5820_v61 = vadd.f32 %v5803_v22, %v5800_v3  ;;  %v18641_v62 = vpop.permute.xlu1 %11537  ;;  %v5864_v33 = vunpack.c.l.s4 %v12789_v19 }
0x1560   :  { %v5832_v35 = vadd.f32 %v5831_v12, %v5830_v18  ;;  %v19329_v12 = vld [vmem:[#allocation12_spill] sm:$0xff] }
0x1561   :  { %v5865_v22 = vunpack.c.0.s8 %v5864_v33 }
0x1563   :  { %v5792_v48 = vpop.permute.xlu1 %5791 }
0x1564   :  { %v5805_v50 = vmul.f32 %v5792_v48, %v5769_v8  ;;  %v5806_v0 = vmul.f32 %v5792_v48, %v5770_v32  ;;  %v5807_v29 = vmul.f32 %v5792_v48, %v5771_v44 }
0x1566   :  { %v5812_v38 = vadd.f32 %v5811_v14, %v5805_v50  ;;  %v5821_v7 = vadd.f32 %v5820_v61, %v5806_v0  ;;  %v5833_v27 = vsel %vm5829_vm8, %v5807_v29, 0.0  ;;  %v18648_v14 = vsub.s32 %v5865_v22, %v19329_v12 }
0x1567   :  { %v5834_v2 = vadd.f32 %v5833_v27, %v5832_v35  ;;  %v5797_v36 = vpop.permute.xlu1 %5796 }
0x1568   :  { %v5808_v58 = vmul.f32 %v5797_v36, %v5772_v21  ;;  %v5809_v42 = vmul.f32 %v5797_v36, %v5773_v49  ;;  %v5810_v25 = vmul.f32 %v5797_v36, %v5774_v59 }
0x156a   :  { %v5813_v13 = vadd.f32 %v5812_v38, %v5808_v58  ;;  %v5822_v10 = vadd.f32 %v5821_v7, %v5809_v42  ;;  %v5835_v46 = vsel %vm5829_vm8, %v5810_v25, 0.0  ;;  %v19330_v38 = vlaneseq }
0x156b   :  { %v5836_v53 = vadd.f32 %v5835_v46, %v5834_v2  ;;  %v5847_v54 = vpop.permute.xlu1 %5846 }
0x156c   :  { %v5814_v30 = vrot.slane %v5813_v13, 4  ;;  %v5823_v17 = vrot.slane %v5822_v10, 4  ;;  %v5852_v24 = vrot.slane %v5847_v54, %v19328_v52  ;;  %vm18653_vm12 = vcmp.lt.s32.totalorder %v19330_v38, 320 }
0x156d   :  { %v5837_v39 = vrot.slane %v5836_v53, 4 }
0x156e   :  { %v5815_v16 = vadd.f32 %v5814_v30, %v5813_v13  ;;  %v5824_v47 = vadd.f32 %v5823_v17, %v5822_v10 }
0x156f   :  { %v5838_v23 = vadd.f32 %v5837_v39, %v5836_v53 }
0x1570   :  { %v5816_v4 = vrot.slane %v5815_v16, 2  ;;  %v5825_v56 = vrot.slane %v5824_v47, 2 }
0x1571   :  { %v5839_v15 = vrot.slane %v5838_v23, 2 }
0x1572   :  { %v5817_v60 = vadd.f32 %v5816_v4, %v5815_v16  ;;  %v5826_v20 = vadd.f32 %v5825_v56, %v5824_v47  ;;  %v10562_v34 = vpop.f32.mrb[112].mxu1 }
0x1573   :  { %v5840_v5 = vadd.f32 %v5839_v15, %v5838_v23  ;;  %v10564_v6 = vpop.f32.mrb[113].mxu1 }
0x1574   :  { %v5818_v26 = vrot.slane %v5817_v60, 1  ;;  %v5827_v3 = vrot.slane %v5826_v20, 1  ;;  %v10565_v41 = vpop.f32.mrb[114].mxu1 }
0x1575   :  { %v5841_v45 = vrot.slane %v5840_v5, 1  ;;  %v10567_v11 = vpop.f32.mrb[115].mxu1 }
0x1576   :  { %v5819_v28 = vadd.f32 %v5818_v26, %v5817_v60  ;;  %v5828_v31 = vadd.f32 %v5827_v3, %v5826_v20 }
0x1577   :  { %v5842_v18 = vadd.f32 %v5841_v45, %v5840_v5 }
0x1578   :  { %v5853_v37 = vadd.f32 %v5852_v24, %v5819_v28  ;;  %v5854_v55 = vadd.f32 %v5852_v24, %v5828_v31 }
0x1579   :  { %v5855_v61 = vadd.f32 %v5852_v24, %v5842_v18 }
0x157a   :  { %v5856_v35 = vmax.f32 %v5853_v37, 0.0  ;;  %v5857_v1 = vmax.f32 %v5854_v55, 0.0  ;;  %v10570_v8 = vpop.f32.mrb[116].mxu1 }
0x157b   :  { %v5858_v32 = vmax.f32 %v5855_v61, 0.0  ;;  %v10572_v44 = vpop.f32.mrb[117].mxu1 }
0x157c   :  { %v5862_v43 = vcombine.low %v5856_v35, %v5857_v1  ;;  %v10573_v40 = vpop.f32.mrb[118].mxu1 }
0x157d   :  { %v5876_v48 = vrot.slane %v5858_v32, %v18648_v14  ;;  %v10575_v50 = vpop.f32.mrb[119].mxu1 }
0x157e   :  { %v5869_v0 = vrot.slane %v5862_v43, %v18648_v14 }
0x1580   :  { %v5877_v29 = vcombine.low %v5869_v0, %v5876_v48  ;;  %v11543_v48 = vpop.permute.xlu0 %11542 }
0x1582   :  { %v5884_v27 = vrot.slane %v5877_v29, %v18648_v14 }
0x1584   :  { %5888 = vst.msk [vmem:[#allocation9] sm:$0x7] %vm18653_vm12, %v5884_v27 }
0x159a   :  { %v10688_v2 = vpop.f32.mrb[120].mxu1 }
0x159b   :  { %v10689_v21 = vadd.f32 %v10688_v2, %v10562_v34  ;;  %v10690_v49 = vpop.f32.mrb[121].mxu1 }
0x159c   :  { %v10691_v59 = vpop.f32.mrb[122].mxu1 }
0x159d   :  { %v10692_v36 = vadd.f32 %v10691_v59, %v10565_v41  ;;  %v10693_v58 = vpop.f32.mrb[123].mxu1 }
0x15a2   :  { %v10696_v42 = vpop.f32.mrb[124].mxu1 }
0x15a3   :  { %v10697_v25 = vadd.f32 %v10696_v42, %v10570_v8  ;;  %v10698_v13 = vpop.f32.mrb[125].mxu1 }
0x15a4   :  { %v10699_v10 = vpop.f32.mrb[126].mxu1 }
0x15a5   :  { %v10700_v46 = vadd.f32 %v10699_v10, %v10573_v40  ;;  %v10701_v53 = vpop.f32.mrb[127].mxu1 }
0x15c2   :  { %v10928_v30 = vpop.f32.mrb[128].mxu1 }
0x15c3   :  { %v10945_v17 = vadd.f32 %v10928_v30, %v10689_v21  ;;  %v10930_v39 = vpop.f32.mrb[129].mxu1 }
0x15c4   :  { %v10931_v16 = vpop.f32.mrb[130].mxu1 }
0x15c5   :  { %v10948_v47 = vadd.f32 %v10931_v16, %v10692_v36  ;;  %v10933_v23 = vpop.f32.mrb[131].mxu1 }
0x15ca   :  { %v10936_v4 = vpop.f32.mrb[132].mxu1 }
0x15cb   :  { %v10951_v56 = vadd.f32 %v10936_v4, %v10697_v25  ;;  %v10938_v15 = vpop.f32.mrb[133].mxu1 }
0x15cc   :  { %v10939_v19 = vpop.f32.mrb[134].mxu1 }
0x15cd   :  { %v10954_v33 = vadd.f32 %v10939_v19, %v10700_v46  ;;  %v10941_v60 = vpop.f32.mrb[135].mxu1 }
0x15ea   :  { %v11180_v20 = vpop.f32.mrb[136].mxu1 }
0x15eb   :  { %v11197_v34 = vadd.f32 %v11180_v20, %v10945_v17  ;;  %v11182_v5 = vpop.f32.mrb[137].mxu1 }
0x15ec   :  { %v11183_v54 = vpop.f32.mrb[138].mxu1 }
0x15ed   :  { %v11200_v6 = vadd.f32 %v11183_v54, %v10948_v47  ;;  %v11185_v26 = vpop.f32.mrb[139].mxu1 }
0x15f2   :  { %v11188_v3 = vpop.f32.mrb[140].mxu1 }
0x15f3   :  { %v11203_v41 = vadd.f32 %v11188_v3, %v10951_v56  ;;  %v11190_v45 = vpop.f32.mrb[141].mxu1  ;;  %v11548_v56 = vpop.permute.xlu0 %11547 }
0x15f4   :  { %v11191_v22 = vpop.f32.mrb[142].mxu1 }
0x15f5   :  { %v11206_v11 = vadd.f32 %v11191_v22, %v10954_v33  ;;  %v11193_v28 = vpop.f32.mrb[143].mxu1 }
0x1612   :  { %v11432_v31 = vpop.f32.mrb[144].mxu1 }
0x1613   :  { %v11449_v24 = vadd.f32 %v11432_v31, %v11197_v34  ;;  %v11434_v18 = vpop.f32.mrb[145].mxu1 }
0x1614   :  { %v11379_v37 = vpop.f32.mrb[156].mxu0  ;;  %v11435_v55 = vpop.f32.mrb[146].mxu1 }
0x1615   :  { %v11485_v12 = vadd.f32 %v18619_v9, %v11449_v24  ;;  %v11483_v61 = vadd.f32 %v18619_v9, %v11379_v37  ;;  %v11452_v35 = vadd.f32 %v11435_v55, %v11200_v6  ;;  %v11381_v1 = vpop.f32.mrb[157].mxu0  ;;  %v11437_v8 = vpop.f32.mrb[147].mxu1 }
0x1616   :  { %v11484_v32 = vadd.f32 %v18619_v9, %v11381_v1  ;;  %v11383_v44 = vpop.f32.mrb[158].mxu0  ;;  %v11553_v55 = vpop.permute.xlu0 %11552 }
0x1617   :  { %vm11497_vm1 = vcmp.ge.f32.partialorder %v11485_v12, 0.0  ;;  %v11509_v43 = vmul.f32 0.2, %v11485_v12  ;;  %vm11495_vm3 = vcmp.ge.f32.partialorder %v11483_v61, 0.0  ;;  %v11507_v40 = vmul.f32 0.2, %v11483_v61 }
0x1618   :  { %v11488_v50 = vadd.f32 %v18624_v57, %v11452_v35  ;;  %vm11496_vm0 = vcmp.ge.f32.partialorder %v11484_v32, 0.0  ;;  %v11508_v0 = vmul.f32 0.2, %v11484_v32  ;;  %v11486_v29 = vadd.f32 %v18624_v57, %v11383_v44  ;;  %v11385_v38 = vpop.f32.mrb[159].mxu0 }
0x1619   :  { %v11521_v27 = vsel %vm11497_vm1, %v11485_v12, %v11509_v43  ;;  %v11519_v2 = vsel %vm11495_vm3, %v11483_v61, %v11507_v40  ;;  %v11487_v21 = vadd.f32 %v18624_v57, %v11385_v38 }
0x161a   :  { %v11557_v49 = vmul.f32 %v18641_v62, %v11521_v27  ;;  %v11555_v9 = vmul.f32 %v18641_v62, %v11519_v2  ;;  %vm11500_vm10 = vcmp.ge.f32.partialorder %v11488_v50, 0.0  ;;  %v11512_v59 = vmul.f32 0.2, %v11488_v50  ;;  %v11440_v36 = vpop.f32.mrb[148].mxu1 }
0x161b   :  { %v11520_v58 = vsel %vm11496_vm0, %v11484_v32, %v11508_v0  ;;  %vm11498_vm4 = vcmp.ge.f32.partialorder %v11486_v29, 0.0  ;;  %v11510_v42 = vmul.f32 0.2, %v11486_v29  ;;  %vm11499_vm7 = vcmp.ge.f32.partialorder %v11487_v21, 0.0  ;;  %v11442_v25 = vpop.f32.mrb[149].mxu1 }
0x161c   :  { %v11585_v13 = vsel %vm5829_vm8, %v11557_v49, 0.0  ;;  %v11524_v10 = vsel %vm11500_vm10, %v11488_v50, %v11512_v59  ;;  %v11556_v46 = vmul.f32 %v18641_v62, %v11520_v58  ;;  %v11511_v53 = vmul.f32 0.2, %v11487_v21  ;;  %v11389_v30 = vpop.f32.mrb[160].mxu0  ;;  %v11443_v57 = vpop.f32.mrb[150].mxu1 }
0x161d   :  { %v11560_v17 = vmul.f32 %v11543_v48, %v11524_v10  ;;  %v11522_v39 = vsel %vm11498_vm4, %v11486_v29, %v11510_v42  ;;  %v11455_v16 = vadd.f32 %v11440_v36, %v11203_v41  ;;  %v11489_v47 = vadd.f32 %v18629_v63, %v11389_v30  ;;  %v11391_v23 = vpop.f32.mrb[161].mxu0  ;;  %v11445_v4 = vpop.f32.mrb[151].mxu1 }
0x161e   :  { %v11558_v15 = vmul.f32 %v11543_v48, %v11522_v39  ;;  %v11523_v19 = vsel %vm11499_vm7, %v11487_v21, %v11511_v53  ;;  %v11458_v33 = vadd.f32 %v11443_v57, %v11206_v11  ;;  %v11490_v60 = vadd.f32 %v18629_v63, %v11391_v23  ;;  %v11393_v20 = vpop.f32.mrb[162].mxu0  ;;  %v11602_v30 = vpop.permute.xlu0 %11601 }
0x161f   :  { %v11586_v62 = vsel %vm5829_vm8, %v11560_v17, 0.0  ;;  %v11559_v34 = vmul.f32 %v11543_v48, %v11523_v19  ;;  %v11491_v5 = vadd.f32 %v18629_v63, %v11455_v16  ;;  %vm11501_vm15 = vcmp.ge.f32.partialorder %v11489_v47, 0.0  ;;  %v11395_v54 = vpop.f32.mrb[163].mxu0 }
0x1620   :  { %v11587_v6 = vadd.f32 %v11586_v62, %v11585_v13  ;;  %v11567_v26 = vadd.f32 %v11558_v15, %v11555_v9  ;;  %v11513_v3 = vmul.f32 0.2, %v11489_v47  ;;  %v11494_v41 = vadd.f32 %v18634_v51, %v11458_v33 }
0x1621   :  { %v11576_v45 = vadd.f32 %v11559_v34, %v11556_v46  ;;  %vm11503_vm5 = vcmp.ge.f32.partialorder %v11491_v5, 0.0  ;;  %v11515_v22 = vmul.f32 0.2, %v11491_v5  ;;  %vm11502_vm9 = vcmp.ge.f32.partialorder %v11490_v60, 0.0 }
0x1622   :  { %v11525_v11 = vsel %vm11501_vm15, %v11489_v47, %v11513_v3  ;;  %vm11506_vm6 = vcmp.ge.f32.partialorder %v11494_v41, 0.0  ;;  %v11518_v28 = vmul.f32 0.2, %v11494_v41  ;;  %v11514_v31 = vmul.f32 0.2, %v11490_v60 }
0x1623   :  { %v11527_v24 = vsel %vm11503_vm5, %v11491_v5, %v11515_v22  ;;  %v11561_v18 = vmul.f32 %v11548_v56, %v11525_v11  ;;  %v11492_v37 = vadd.f32 %v18634_v51, %v11393_v20  ;;  %v11493_v63 = vadd.f32 %v18634_v51, %v11395_v54 }
0x1624   :  { %v11563_v12 = vmul.f32 %v11548_v56, %v11527_v24  ;;  %v11530_v61 = vsel %vm11506_vm6, %v11494_v41, %v11518_v28  ;;  %v11526_v35 = vsel %vm11502_vm9, %v11490_v60, %v11514_v31  ;;  %v11607_v16 = vrot.slane %v11602_v30, %v19328_v52 }
0x1625   :  { %v11568_v1 = vadd.f32 %v11567_v26, %v11561_v18  ;;  %v11566_v8 = vmul.f32 %v11553_v55, %v11530_v61  ;;  %v11562_v32 = vmul.f32 %v11548_v56, %v11526_v35  ;;  %vm11504_vm11 = vcmp.ge.f32.partialorder %v11492_v37, 0.0 }
0x1626   :  { %v11588_v44 = vsel %vm5829_vm8, %v11563_v12, 0.0  ;;  %v11516_v43 = vmul.f32 0.2, %v11492_v37  ;;  %vm11505_vm13 = vcmp.ge.f32.partialorder %v11493_v63, 0.0  ;;  %v11517_v40 = vmul.f32 0.2, %v11493_v63 }
0x1627   :  { %v11589_v48 = vadd.f32 %v11588_v44, %v11587_v6  ;;  %v11590_v50 = vsel %vm5829_vm8, %v11566_v8, 0.0  ;;  %v11577_v0 = vadd.f32 %v11576_v45, %v11562_v32 }
0x1628   :  { %v11528_v29 = vsel %vm11504_vm11, %v11492_v37, %v11516_v43  ;;  %v11529_v38 = vsel %vm11505_vm13, %v11493_v63, %v11517_v40 }
0x1629   :  { %v11591_v51 = vadd.f32 %v11590_v50, %v11589_v48  ;;  %v11564_v27 = vmul.f32 %v11553_v55, %v11528_v29  ;;  %v11565_v2 = vmul.f32 %v11553_v55, %v11529_v38 }
0x162b   :  { %v11592_v21 = vrot.slane %v11591_v51, 4  ;;  %v11569_v49 = vadd.f32 %v11568_v1, %v11564_v27  ;;  %v11578_v9 = vadd.f32 %v11577_v0, %v11565_v2 }
0x162d   :  { %v11593_v59 = vadd.f32 %v11592_v21, %v11591_v51  ;;  %v11570_v36 = vrot.slane %v11569_v49, 4  ;;  %v11579_v58 = vrot.slane %v11578_v9, 4 }
0x162f   :  { %v11594_v42 = vrot.slane %v11593_v59, 2  ;;  %v11571_v25 = vadd.f32 %v11570_v36, %v11569_v49  ;;  %v11580_v13 = vadd.f32 %v11579_v58, %v11578_v9 }
0x1631   :  { %v11595_v10 = vadd.f32 %v11594_v42, %v11593_v59  ;;  %v11572_v46 = vrot.slane %v11571_v25, 2  ;;  %v11581_v53 = vrot.slane %v11580_v13, 2 }
0x1633   :  { %v11596_v57 = vrot.slane %v11595_v10, 1  ;;  %v11573_v17 = vadd.f32 %v11572_v46, %v11571_v25  ;;  %v11582_v39 = vadd.f32 %v11581_v53, %v11580_v13 }
0x1635   :  { %v11597_v47 = vadd.f32 %v11596_v57, %v11595_v10  ;;  %v11574_v23 = vrot.slane %v11573_v17, 1  ;;  %v11583_v4 = vrot.slane %v11582_v39, 1 }
0x1637   :  { %v11610_v56 = vadd.f32 %v11607_v16, %v11597_v47  ;;  %v11575_v15 = vadd.f32 %v11574_v23, %v11573_v17  ;;  %v11584_v19 = vadd.f32 %v11583_v4, %v11582_v39 }
0x1639   :  { %v11608_v33 = vadd.f32 %v11607_v16, %v11575_v15  ;;  %v11609_v60 = vadd.f32 %v11607_v16, %v11584_v19  ;;  %v11613_v34 = vmax.f32 %v11610_v56, 0.0 }
0x163b   :  { %v11611_v20 = vmax.f32 %v11608_v33, 0.0  ;;  %v11612_v62 = vmax.f32 %v11609_v60, 0.0  ;;  %v11631_v6 = vrot.slane %v11613_v34, %v18648_v14 }
0x163d   :  { %v11617_v5 = vcombine.low %v11611_v20, %v11612_v62 }
0x163f   :  { %v11624_v54 = vrot.slane %v11617_v5, %v18648_v14 }
0x1641   :  { %v11632_v26 = vcombine.low %v11624_v54, %v11631_v6 }
0x1643   :  { %v11639_v52 = vrot.slane %v11632_v26, %v18648_v14 }
0x1645   :  { %11642 = vst.msk [vmem:[#allocation9 + $0x3] sm:$0x7] %vm18653_vm12, %v11639_v52 }
0x1646   :  { %12760 = shalt.err (!%p12757_p12)
}
0x1647   :  { %s12761_s25 = scalar_lea.hbm %s18712_s12, 96 }
0x1648   :  { %p12762_p13 = scmp.ne.s32.totalorder %s18712_s12, %s12761_s25  ;;  %p12765_p0 = scmp.lt.u32.totalorder %s12761_s25, %s18712_s12 }
0x164a   :  { %p12767_p1 = pnand %p12765_p0, %p12762_p13 }
0x164c   :  { %12770 = shalt.err (!%p12767_p1)
}
0x164d   :  { %s12791_s0 = smov 3  }
0x164e   :  { %11654 = dma.vmem_to_hbm [thread:$0]  %s11649_s18, 96, %s18712_s12, [#allocation8], %s12780_s29, %s12780_s29, %s12791_s0  }
0x164f   :  { %12773 = dma.done.wait [#allocation8], 96  }
0x1650   :  { %12774 = vsyncadd [#allocation8], 4294967200 }
0x1651   :  { %11658 = vsyncpa [#allocation7], 1 }
0x1652   :  { %11659 = vsyncpa [#allocation8], 1 }

</bundles_post_ra>
